<compile_context>
chip_gen: v5e
topology: v5e:2x2
jax: 0.10.0
libtpu: 0.0.40
codegen_flags: <defaults>
</compile_context>

<pallas_src>
import jax
import jax.numpy as jnp
from jax import lax
from jax.experimental import pallas as pl
from jax.experimental.pallas import tpu as pltpu

BN_EPS = 1e-5
SEQ_LEN = 1024
IN_CH = 9
POOL1_KERNEL = 32          # 2**5
FC1_OUT = 64
FC2_OUT = 32
L_FINAL = SEQ_LEN // 8     # 128, length after the three stride-2 convs
N_POS = L_FINAL // POOL1_KERNEL   # 4 pooled positions per channel
FC_IN = 32 * N_POS         # 128 flattened features
assert L_FINAL % POOL1_KERNEL == 0

CONV_CFGS = [
    dict(cin=9,  cout=18, k=3, stride=2, dil=1, groups=9, pad=1),
    dict(cin=18, cout=32, k=3, stride=2, dil=1, groups=1, pad=1),
    dict(cin=32, cout=32, k=3, stride=2, dil=1, groups=1, pad=1),
]


# ---------------------------------------------------------------------------
# Fused forward kernel: one batch tile per grid step.
# ---------------------------------------------------------------------------
def _fused_forward_kernel(x_ref, w0_ref, s0_ref, b0_ref,
                          w1_ref, s1_ref, b1_ref,
                          w2_ref, s2_ref, b2_ref,
                          wf1_ref, bf1_ref, wf2_ref, bf2_ref, wf3_ref, bf3_ref,
                          o_ref, a_ref, b_ref, c_ref, p_ref):
    # Lane layout of every activation row: lane = b*128 + m (b = sample in tile).
    #   x_ref : (8, 18, BT*128)  input, 8 length-phases, channels duplicated 9->18
    #   a_ref : (4, 18, BT*128)  conv0 output phases (scratch)
    #   b_ref : (2, 32, BT*128)  conv1 output even/odd phases (scratch)
    #   c_ref : (32, BT*128)     conv2 output (scratch)
    #   p_ref : (128, BT)        pooled+flattened features, row = pos*32 + ch (scratch)
    #   o_ref : (1, 1, BT)       network output for this tile
    w_lane = x_ref.shape[-1]
    bt = w_lane // 128

    def shift_right(v):
        # v[:, l] -> v[:, l-1] without crossing the per-sample 128-lane boundaries;
        # the shifted-in element is the conv's left zero padding.
        s = jnp.concatenate([jnp.zeros((v.shape[0], 1), v.dtype), v[:, :-1]], axis=1)
        lane = lax.broadcasted_iota(jnp.int32, s.shape, 1)
        return jnp.where(jnp.bitwise_and(lane, 127) == 0, 0.0, s)

    # ---- conv0 (k=3, s=2, pad=1, groups=9) + BN + ReLU ---------------------
    # Channels were pre-duplicated 9->18, so each output channel is a per-channel
    # broadcast FMA (pure VPU).  Output phase r holds a[4m + r].
    w00, w01, w02 = w0_ref[:, 0:1], w0_ref[:, 1:2], w0_ref[:, 2:3]
    sc0, bi0 = s0_ref[...], b0_ref[...]
    for r, (ta, tb, tc) in enumerate(((7, 0, 1), (1, 2, 3), (3, 4, 5), (5, 6, 7))):
        xa = x_ref[ta]
        if r == 0:                       # tap at position -1 uses shifted phase 7
            xa = shift_right(xa)
        acc = w00 * xa + w01 * x_ref[tb] + w02 * x_ref[tc]
        a_ref[r] = jnp.maximum(acc * sc0 + bi0, 0.0)

    # ---- conv1 (18 -> 32, k=3, s=2, pad=1) + BN + ReLU ---------------------
    sc1, bi1 = s1_ref[...], b1_ref[...]
    for e, (ta, tb, tc) in enumerate(((3, 0, 1), (1, 2, 3))):   # even / odd outputs
        xa = a_ref[ta]
        if e == 0:
            xa = shift_right(xa)
        acc = jnp.dot(w1_ref[0], xa, preferred_element_type=jnp.float32)
        acc += jnp.dot(w1_ref[1], a_ref[tb], preferred_element_type=jnp.float32)
        acc += jnp.dot(w1_ref[2], a_ref[tc], preferred_element_type=jnp.float32)
        b_ref[e] = jnp.maximum(acc * sc1 + bi1, 0.0)

    # ---- conv2 (32 -> 32, k=3, s=2, pad=1) + BN + ReLU ---------------------
    sc2, bi2 = s2_ref[...], b2_ref[...]
    acc = jnp.dot(w2_ref[0], shift_right(b_ref[1]), preferred_element_type=jnp.float32)
    acc += jnp.dot(w2_ref[1], b_ref[0], preferred_element_type=jnp.float32)
    acc += jnp.dot(w2_ref[2], b_ref[1], preferred_element_type=jnp.float32)
    c_ref[...] = jnp.maximum(acc * sc2 + bi2, 0.0)

    # ---- MaxPool1d(32) + flatten(1) ----------------------------------------
    # Window q covers lanes [32q, 32q+32) = sample q//4, pooled position q%4.
    # Stored pos-major (row = pos*32 + ch) so fc1 is one (64,128)x(128,BT) matmul.
    for q in range(N_POS * bt):
        b_idx, pos = q // N_POS, q % N_POS
        win = c_ref[:, q * POOL1_KERNEL:(q + 1) * POOL1_KERNEL]
        p_ref[pos * 32:(pos + 1) * 32, b_idx:b_idx + 1] = jnp.max(win, axis=1,
                                                                  keepdims=True)

    # ---- MLP head: fc1 -> ReLU -> fc2 -> ReLU -> fc3 (dropout = identity) --
    h = jnp.dot(wf1_ref[...], p_ref[...], preferred_element_type=jnp.float32) + bf1_ref[...]
    h = jnp.maximum(h, 0.0)
    h = jnp.dot(wf2_ref[...], h, preferred_element_type=jnp.float32) + bf2_ref[...]
    h = jnp.maximum(h, 0.0)
    out = jnp.dot(wf3_ref[...], h, preferred_element_type=jnp.float32) + bf3_ref[...]
    o_ref[...] = out[None]                                   # (1, 1, BT)


# ---------------------------------------------------------------------------
# Wrapper: one-time input prep + parameter folding + single pallas_call.
# ---------------------------------------------------------------------------
def _fold_bn(p):
    scale = p["gamma"] / jnp.sqrt(p["var"] + BN_EPS)
    bias = p["beta"] + (p["b"] - p["mean"]) * scale
    return scale, bias


def custom_net_forward(x, params, *, b_tile=None):
    """Fused Pallas forward. x: (N, 9, 1024) float32 -> (N, 1) float32."""
    n, cin, seq = x.shape
    assert cin == IN_CH and seq == SEQ_LEN, (cin, seq)

    if b_tile is None:
        # 8 samples minimum (sublane-friendly), cap at 32 to stay well inside VMEM
        # on every TPU generation (v5e 16 MiB scoped default, v7x 64 MiB physical).
        b_tile = max(8, min(32, pl.next_power_of_2(n)))
    n_pad = b_tile * pl.cdiv(n, b_tile)
    w_lane = b_tile * 128

    # One-time host-side glue on the *input only*: duplicate the 9 channels to 18
    # (conv0 has groups=9 with 2 outputs per group) and split the length into the
    # 8 stride-phases consumed by the 3 cascaded stride-2 convs, packing the batch
    # onto lanes:  xph[s, c, b*128 + m] = x[b, c//2, 8*m + s].
    xd = jnp.repeat(x.astype(jnp.float32), 2, axis=1)          # (n, 18, 1024)
    if n_pad != n:
        xd = jnp.pad(xd, ((0, n_pad - n), (0, 0), (0, 0)))
    xph = (xd.reshape(n_pad, 2 * IN_CH, L_FINAL, 8)
             .transpose(3, 1, 0, 2)
             .reshape(8, 2 * IN_CH, n_pad * L_FINAL))

    # Fold conv bias + BatchNorm (eval) into one affine per conv layer.
    s0, bb0 = _fold_bn(params["conv0"])
    s1, bb1 = _fold_bn(params["conv1"])
    s2, bb2 = _fold_bn(params["conv2"])

    w0 = params["conv0"]["w"].reshape(18, 3)                   # (cout, k)
    w1 = jnp.transpose(params["conv1"]["w"], (2, 0, 1))        # (k, cout, cin)
    w2 = jnp.transpose(params["conv2"]["w"], (2, 0, 1))        # (k, cout, cin)
    # fc1 columns reordered from torch-flatten order (ch*4 + pos) to the pos-major
    # order (pos*32 + ch) used by the pooled-feature slab.
    wf1 = (params["fc1_w"].reshape(FC1_OUT, 32, N_POS)
           .transpose(0, 2, 1).reshape(FC1_OUT, FC_IN))

    consts = [
        w0, s0.reshape(18, 1), bb0.reshape(18, 1),
        w1, s1.reshape(32, 1), bb1.reshape(32, 1),
        w2, s2.reshape(32, 1), bb2.reshape(32, 1),
        wf1, params["fc1_b"].reshape(FC1_OUT, 1),
        params["fc2_w"], params["fc2_b"].reshape(FC2_OUT, 1),
        params["fc3_w"], params["fc3_b"].reshape(1, 1),
    ]

    def _const_spec(a):
        return pl.BlockSpec(a.shape, lambda i, _z=(0,) * a.ndim: _z)

    grid = (n_pad // b_tile,)
    out = pl.pallas_call(
        _fused_forward_kernel,
        out_shape=jax.ShapeDtypeStruct((n_pad // b_tile, 1, b_tile), jnp.float32),
        grid=grid,
        in_specs=[pl.BlockSpec((8, 2 * IN_CH, w_lane), lambda i: (0, 0, i))]
                 + [_const_spec(a) for a in consts],
        out_specs=pl.BlockSpec((1, 1, b_tile), lambda i: (i, 0, 0)),
        scratch_shapes=[
            pltpu.VMEM((4, 18, w_lane), jnp.float32),   # conv0 output phases
            pltpu.VMEM((2, 32, w_lane), jnp.float32),   # conv1 output phases
            pltpu.VMEM((32, w_lane), jnp.float32),      # conv2 output
            pltpu.VMEM((FC_IN, b_tile), jnp.float32),   # pooled + flattened features
        ],
        compiler_params=pltpu.CompilerParams(
            dimension_semantics=("parallel",),
            vmem_limit_bytes=32 * 1024 * 1024),
    )(xph, *consts)

    return out.reshape(n_pad, 1)[:n]


# ---------------------------------------------------------------------------
# Plain-JAX reference (eval-mode semantics) and parameter init.
# ---------------------------------------------------------------------------
def reference_forward(x, params):
    hp = lax.Precision.HIGHEST
    h = x
    for i, cfg in enumerate(CONV_CFGS):
        p = params[f"conv{i}"]
        h = lax.conv_general_dilated(
            h, p["w"], window_strides=(cfg["stride"],),
            padding=[(cfg["pad"], cfg["pad"])], rhs_dilation=(cfg["dil"],),
            dimension_numbers=("NCH", "OIH", "NCH"),
            feature_group_count=cfg["groups"], precision=hp)
        h = h + p["b"][None, :, None]
        h = (h - p["mean"][None, :, None]) / jnp.sqrt(p["var"][None, :, None] + BN_EPS)
        h = h * p["gamma"][None, :, None] + p["beta"][None, :, None]
        h = jnp.maximum(h, 0.0)
    n, c, l = h.shape
    h = jnp.max(h.reshape(n, c, l // POOL1_KERNEL, POOL1_KERNEL), axis=-1)
    h = h.reshape(n, -1)
    h = jnp.maximum(jnp.dot(h, params["fc1_w"].T, precision=hp) + params["fc1_b"], 0.0)
    h = jnp.maximum(jnp.dot(h, params["fc2_w"].T, precision=hp) + params["fc2_b"], 0.0)
    return jnp.dot(h, params["fc3_w"].T, precision=hp) + params["fc3_b"]


def init_params(key):
    params = {}
    for i, cfg in enumerate(CONV_CFGS):
        key, k1, k2, k3, k4, k5, k6 = jax.random.split(key, 7)
        cig = cfg["cin"] // cfg["groups"]
        params[f"conv{i}"] = dict(
            w=0.2 * jax.random.normal(k1, (cfg["cout"], cig, cfg["k"]), jnp.float32),
            b=0.1 * jax.random.normal(k2, (cfg["cout"],), jnp.float32),
            gamma=1.0 + 0.1 * jax.random.normal(k3, (cfg["cout"],), jnp.float32),
            beta=0.1 * jax.random.normal(k4, (cfg["cout"],), jnp.float32),
            mean=0.1 * jax.random.normal(k5, (cfg["cout"],), jnp.float32),
            var=jax.random.uniform(k6, (cfg["cout"],), jnp.float32, 0.5, 1.5),
        )
    fc_in = CONV_CFGS[-1]["cout"] * (L_FINAL // POOL1_KERNEL)   # 32 * 4 = 128
    key, k1, k2, k3, k4, k5, k6 = jax.random.split(key, 7)
    params["fc1_w"] = 0.1 * jax.random.normal(k1, (FC1_OUT, fc_in), jnp.float32)
    params["fc1_b"] = 0.1 * jax.random.normal(k2, (FC1_OUT,), jnp.float32)
    params["fc2_w"] = 0.1 * jax.random.normal(k3, (FC2_OUT, FC1_OUT), jnp.float32)
    params["fc2_b"] = 0.1 * jax.random.normal(k4, (FC2_OUT,), jnp.float32)
    params["fc3_w"] = 0.1 * jax.random.normal(k5, (1, FC2_OUT), jnp.float32)
    params["fc3_b"] = 0.1 * jax.random.normal(k6, (1,), jnp.float32)
    return params


if __name__ == "__main__":
    key = jax.random.PRNGKey(0)
    pkey, xkey = jax.random.split(key)
    params = init_params(pkey)
    x = jax.random.normal(xkey, (2, IN_CH, SEQ_LEN), jnp.float32)   # PyTorch NCL layout

    fwd = jax.jit(custom_net_forward)
    out = jax.block_until_ready(fwd(x, params))
    assert out.shape == (2, 1), out.shape

    ref = reference_forward(x, params)
    max_err = float(jnp.max(jnp.abs(out - ref)))
    if not jnp.allclose(out, ref, rtol=2e-3, atol=2e-3):
        raise AssertionError(f"mismatch: max|diff|={max_err}, pallas={out}, ref={ref}")

    # TODO(synk): dropout / batchnorm are implemented with inference (eval-mode) semantics only.
    print("KERNEL_OK")
</pallas_src>

<mosaic_0001>
module attributes {stable_mosaic.version = 11 : i64} {
  func.func @_fused_forward_kernel(%arg0: i32, %arg1: memref<8x18x1024xf32, #tpu.memory_space<vmem>>, %arg2: memref<18x3xf32, #tpu.memory_space<vmem>>, %arg3: memref<18x1xf32, #tpu.memory_space<vmem>>, %arg4: memref<18x1xf32, #tpu.memory_space<vmem>>, %arg5: memref<3x32x18xf32, #tpu.memory_space<vmem>>, %arg6: memref<32x1xf32, #tpu.memory_space<vmem>>, %arg7: memref<32x1xf32, #tpu.memory_space<vmem>>, %arg8: memref<3x32x32xf32, #tpu.memory_space<vmem>>, %arg9: memref<32x1xf32, #tpu.memory_space<vmem>>, %arg10: memref<32x1xf32, #tpu.memory_space<vmem>>, %arg11: memref<64x128xf32, #tpu.memory_space<vmem>>, %arg12: memref<64x1xf32, #tpu.memory_space<vmem>>, %arg13: memref<32x64xf32, #tpu.memory_space<vmem>>, %arg14: memref<32x1xf32, #tpu.memory_space<vmem>>, %arg15: memref<1x32xf32, #tpu.memory_space<vmem>>, %arg16: memref<1x1xf32, #tpu.memory_space<vmem>>, %arg17: memref<1x1x8xf32, #tpu.memory_space<vmem>>, %arg18: memref<4x18x1024xf32, #tpu.memory_space<vmem>>, %arg19: memref<2x32x1024xf32, #tpu.memory_space<vmem>>, %arg20: memref<32x1024xf32, #tpu.memory_space<vmem>>, %arg21: memref<128x8xf32, #tpu.memory_space<vmem>>) attributes {dimension_semantics = [#tpu.dimension_semantics<parallel>], iteration_bounds = array<i64: 1>, scalar_prefetch = 0 : i64, scratch_operands = 4 : i64, tpu.core_type = #tpu.core_type<tc>, window_params = [{transform_indices = @transform_0, window_bounds = array<i64: 8, 18, 1024>}, {pipeline_mode = #tpu.pipeline_mode<synchronous>, transform_indices = @transform_1, window_bounds = array<i64: 18, 3>}, {pipeline_mode = #tpu.pipeline_mode<synchronous>, transform_indices = @transform_2, window_bounds = array<i64: 18, 1>}, {pipeline_mode = #tpu.pipeline_mode<synchronous>, transform_indices = @transform_3, window_bounds = array<i64: 18, 1>}, {pipeline_mode = #tpu.pipeline_mode<synchronous>, transform_indices = @transform_4, window_bounds = array<i64: 3, 32, 18>}, {pipeline_mode = #tpu.pipeline_mode<synchronous>, transform_indices = @transform_5, window_bounds = array<i64: 32, 1>}, {pipeline_mode = #tpu.pipeline_mode<synchronous>, transform_indices = @transform_6, window_bounds = array<i64: 32, 1>}, {pipeline_mode = #tpu.pipeline_mode<synchronous>, transform_indices = @transform_7, window_bounds = array<i64: 3, 32, 32>}, {pipeline_mode = #tpu.pipeline_mode<synchronous>, transform_indices = @transform_8, window_bounds = array<i64: 32, 1>}, {pipeline_mode = #tpu.pipeline_mode<synchronous>, transform_indices = @transform_9, window_bounds = array<i64: 32, 1>}, {pipeline_mode = #tpu.pipeline_mode<synchronous>, transform_indices = @transform_10, window_bounds = array<i64: 64, 128>}, {pipeline_mode = #tpu.pipeline_mode<synchronous>, transform_indices = @transform_11, window_bounds = array<i64: 64, 1>}, {pipeline_mode = #tpu.pipeline_mode<synchronous>, transform_indices = @transform_12, window_bounds = array<i64: 32, 64>}, {pipeline_mode = #tpu.pipeline_mode<synchronous>, transform_indices = @transform_13, window_bounds = array<i64: 32, 1>}, {pipeline_mode = #tpu.pipeline_mode<synchronous>, transform_indices = @transform_14, window_bounds = array<i64: 1, 32>}, {pipeline_mode = #tpu.pipeline_mode<synchronous>, transform_indices = @transform_15, window_bounds = array<i64: 1, 1>}, {transform_indices = @transform_16, window_bounds = array<i64: 1, 1, 8>}]} {
    %c0 = arith.constant 0 : index
    %c0_0 = arith.constant 0 : index
    %0 = vector.load %arg2[%c0, %c0_0] : memref<18x3xf32, #tpu.memory_space<vmem>>, vector<18x1xf32>
    %c0_1 = arith.constant 0 : index
    %c1 = arith.constant 1 : index
    %1 = vector.load %arg2[%c0_1, %c1] : memref<18x3xf32, #tpu.memory_space<vmem>>, vector<18x1xf32>
    %c0_2 = arith.constant 0 : index
    %c2 = arith.constant 2 : index
    %2 = vector.load %arg2[%c0_2, %c2] : memref<18x3xf32, #tpu.memory_space<vmem>>, vector<18x1xf32>
    %c0_3 = arith.constant 0 : index
    %c0_4 = arith.constant 0 : index
    %3 = vector.load %arg3[%c0_3, %c0_4] : memref<18x1xf32, #tpu.memory_space<vmem>>, vector<18x1xf32>
    %c0_5 = arith.constant 0 : index
    %c0_6 = arith.constant 0 : index
    %4 = vector.load %arg4[%c0_5, %c0_6] : memref<18x1xf32, #tpu.memory_space<vmem>>, vector<18x1xf32>
    %c7 = arith.constant 7 : index
    %c0_7 = arith.constant 0 : index
    %c0_8 = arith.constant 0 : index
    %5 = vector.load %arg1[%c7, %c0_7, %c0_8] : memref<8x18x1024xf32, #tpu.memory_space<vmem>>, vector<1x18x1024xf32>
    %6 = vector.shape_cast %5 : vector<1x18x1024xf32> to vector<18x1024xf32>
    %cst = arith.constant 0.000000e+00 : f32
    %7 = vector.broadcast %cst : f32 to vector<18x1xf32>
    %8 = vector.extract_strided_slice %6 {offsets = [0, 0], sizes = [18, 1023], strides = [1, 1]} : vector<18x1024xf32> to vector<18x1023xf32>
    %9 = tpu.concatenate %7, %8 in 1 : vector<18x1xf32>, vector<18x1023xf32> -> vector<18x1024xf32>
    %10 = tpu.iota {dimensions = array<i32: 1>} : vector<18x1024xi32>
    %c127_i32 = arith.constant 127 : i32
    %11 = vector.broadcast %c127_i32 : i32 to vector<18x1024xi32>
    %12 = arith.andi %10, %11 : vector<18x1024xi32>
    %c0_i32 = arith.constant 0 : i32
    %13 = vector.broadcast %c0_i32 : i32 to vector<18x1024xi32>
    %14 = arith.cmpi eq, %12, %13 : vector<18x1024xi32>
    %cst_9 = arith.constant 0.000000e+00 : f32
    %15 = vector.broadcast %cst_9 : f32 to vector<18x1024xf32>
    %16 = arith.select %14, %15, %9 : vector<18x1024xi1>, vector<18x1024xf32>
    %17 = vector.broadcast %0 : vector<18x1xf32> to vector<18x1024xf32>
    %18 = arith.mulf %17, %16 : vector<18x1024xf32>
    %c0_10 = arith.constant 0 : index
    %c0_11 = arith.constant 0 : index
    %c0_12 = arith.constant 0 : index
    %19 = vector.load %arg1[%c0_10, %c0_11, %c0_12] : memref<8x18x1024xf32, #tpu.memory_space<vmem>>, vector<1x18x1024xf32>
    %20 = vector.shape_cast %19 : vector<1x18x1024xf32> to vector<18x1024xf32>
    %21 = vector.broadcast %1 : vector<18x1xf32> to vector<18x1024xf32>
    %22 = arith.mulf %21, %20 : vector<18x1024xf32>
    %23 = arith.addf %18, %22 : vector<18x1024xf32>
    %c1_13 = arith.constant 1 : index
    %c0_14 = arith.constant 0 : index
    %c0_15 = arith.constant 0 : index
    %24 = vector.load %arg1[%c1_13, %c0_14, %c0_15] : memref<8x18x1024xf32, #tpu.memory_space<vmem>>, vector<1x18x1024xf32>
    %25 = vector.shape_cast %24 : vector<1x18x1024xf32> to vector<18x1024xf32>
    %26 = vector.broadcast %2 : vector<18x1xf32> to vector<18x1024xf32>
    %27 = arith.mulf %26, %25 : vector<18x1024xf32>
    %28 = arith.addf %23, %27 : vector<18x1024xf32>
    %29 = vector.broadcast %3 : vector<18x1xf32> to vector<18x1024xf32>
    %30 = arith.mulf %28, %29 : vector<18x1024xf32>
    %31 = vector.broadcast %4 : vector<18x1xf32> to vector<18x1024xf32>
    %32 = arith.addf %30, %31 : vector<18x1024xf32>
    %cst_16 = arith.constant 0.000000e+00 : f32
    %33 = vector.broadcast %cst_16 : f32 to vector<18x1024xf32>
    %34 = arith.maximumf %32, %33 : vector<18x1024xf32>
    %c0_17 = arith.constant 0 : index
    %c0_18 = arith.constant 0 : index
    %c0_19 = arith.constant 0 : index
    %35 = vector.load %arg18[%c0_17, %c0_18, %c0_19] : memref<4x18x1024xf32, #tpu.memory_space<vmem>>, vector<1x18x1024xf32>
    %36 = vector.shape_cast %35 : vector<1x18x1024xf32> to vector<18x1024xf32>
    %37 = vector.shape_cast %34 : vector<18x1024xf32> to vector<1x18x1024xf32>
    tpu.vector_store %arg18[%c0_17, %c0_18, %c0_19], %37 {strides = array<i32>} : memref<4x18x1024xf32, #tpu.memory_space<vmem>>, vector<1x18x1024xf32>,
    %c1_20 = arith.constant 1 : index
    %c0_21 = arith.constant 0 : index
    %c0_22 = arith.constant 0 : index
    %38 = vector.load %arg1[%c1_20, %c0_21, %c0_22] : memref<8x18x1024xf32, #tpu.memory_space<vmem>>, vector<1x18x1024xf32>
    %39 = vector.shape_cast %38 : vector<1x18x1024xf32> to vector<18x1024xf32>
    %40 = vector.broadcast %0 : vector<18x1xf32> to vector<18x1024xf32>
    %41 = arith.mulf %40, %39 : vector<18x1024xf32>
    %c2_23 = arith.constant 2 : index
    %c0_24 = arith.constant 0 : index
    %c0_25 = arith.constant 0 : index
    %42 = vector.load %arg1[%c2_23, %c0_24, %c0_25] : memref<8x18x1024xf32, #tpu.memory_space<vmem>>, vector<1x18x1024xf32>
    %43 = vector.shape_cast %42 : vector<1x18x1024xf32> to vector<18x1024xf32>
    %44 = vector.broadcast %1 : vector<18x1xf32> to vector<18x1024xf32>
    %45 = arith.mulf %44, %43 : vector<18x1024xf32>
    %46 = arith.addf %41, %45 : vector<18x1024xf32>
    %c3 = arith.constant 3 : index
    %c0_26 = arith.constant 0 : index
    %c0_27 = arith.constant 0 : index
    %47 = vector.load %arg1[%c3, %c0_26, %c0_27] : memref<8x18x1024xf32, #tpu.memory_space<vmem>>, vector<1x18x1024xf32>
    %48 = vector.shape_cast %47 : vector<1x18x1024xf32> to vector<18x1024xf32>
    %49 = vector.broadcast %2 : vector<18x1xf32> to vector<18x1024xf32>
    %50 = arith.mulf %49, %48 : vector<18x1024xf32>
    %51 = arith.addf %46, %50 : vector<18x1024xf32>
    %52 = vector.broadcast %3 : vector<18x1xf32> to vector<18x1024xf32>
    %53 = arith.mulf %51, %52 : vector<18x1024xf32>
    %54 = vector.broadcast %4 : vector<18x1xf32> to vector<18x1024xf32>
    %55 = arith.addf %53, %54 : vector<18x1024xf32>
    %cst_28 = arith.constant 0.000000e+00 : f32
    %56 = vector.broadcast %cst_28 : f32 to vector<18x1024xf32>
    %57 = arith.maximumf %55, %56 : vector<18x1024xf32>
    %c1_29 = arith.constant 1 : index
    %c0_30 = arith.constant 0 : index
    %c0_31 = arith.constant 0 : index
    %58 = vector.load %arg18[%c1_29, %c0_30, %c0_31] : memref<4x18x1024xf32, #tpu.memory_space<vmem>>, vector<1x18x1024xf32>
    %59 = vector.shape_cast %58 : vector<1x18x1024xf32> to vector<18x1024xf32>
    %60 = vector.shape_cast %57 : vector<18x1024xf32> to vector<1x18x1024xf32>
    tpu.vector_store %arg18[%c1_29, %c0_30, %c0_31], %60 {strides = array<i32>} : memref<4x18x1024xf32, #tpu.memory_space<vmem>>, vector<1x18x1024xf32>,
    %c3_32 = arith.constant 3 : index
    %c0_33 = arith.constant 0 : index
    %c0_34 = arith.constant 0 : index
    %61 = vector.load %arg1[%c3_32, %c0_33, %c0_34] : memref<8x18x1024xf32, #tpu.memory_space<vmem>>, vector<1x18x1024xf32>
    %62 = vector.shape_cast %61 : vector<1x18x1024xf32> to vector<18x1024xf32>
    %63 = vector.broadcast %0 : vector<18x1xf32> to vector<18x1024xf32>
    %64 = arith.mulf %63, %62 : vector<18x1024xf32>
    %c4 = arith.constant 4 : index
    %c0_35 = arith.constant 0 : index
    %c0_36 = arith.constant 0 : index
    %65 = vector.load %arg1[%c4, %c0_35, %c0_36] : memref<8x18x1024xf32, #tpu.memory_space<vmem>>, vector<1x18x1024xf32>
    %66 = vector.shape_cast %65 : vector<1x18x1024xf32> to vector<18x1024xf32>
    %67 = vector.broadcast %1 : vector<18x1xf32> to vector<18x1024xf32>
    %68 = arith.mulf %67, %66 : vector<18x1024xf32>
    %69 = arith.addf %64, %68 : vector<18x1024xf32>
    %c5 = arith.constant 5 : index
    %c0_37 = arith.constant 0 : index
    %c0_38 = arith.constant 0 : index
    %70 = vector.load %arg1[%c5, %c0_37, %c0_38] : memref<8x18x1024xf32, #tpu.memory_space<vmem>>, vector<1x18x1024xf32>
    %71 = vector.shape_cast %70 : vector<1x18x1024xf32> to vector<18x1024xf32>
    %72 = vector.broadcast %2 : vector<18x1xf32> to vector<18x1024xf32>
    %73 = arith.mulf %72, %71 : vector<18x1024xf32>
    %74 = arith.addf %69, %73 : vector<18x1024xf32>
    %75 = vector.broadcast %3 : vector<18x1xf32> to vector<18x1024xf32>
    %76 = arith.mulf %74, %75 : vector<18x1024xf32>
    %77 = vector.broadcast %4 : vector<18x1xf32> to vector<18x1024xf32>
    %78 = arith.addf %76, %77 : vector<18x1024xf32>
    %cst_39 = arith.constant 0.000000e+00 : f32
    %79 = vector.broadcast %cst_39 : f32 to vector<18x1024xf32>
    %80 = arith.maximumf %78, %79 : vector<18x1024xf32>
    %c2_40 = arith.constant 2 : index
    %c0_41 = arith.constant 0 : index
    %c0_42 = arith.constant 0 : index
    %81 = vector.load %arg18[%c2_40, %c0_41, %c0_42] : memref<4x18x1024xf32, #tpu.memory_space<vmem>>, vector<1x18x1024xf32>
    %82 = vector.shape_cast %81 : vector<1x18x1024xf32> to vector<18x1024xf32>
    %83 = vector.shape_cast %80 : vector<18x1024xf32> to vector<1x18x1024xf32>
    tpu.vector_store %arg18[%c2_40, %c0_41, %c0_42], %83 {strides = array<i32>} : memref<4x18x1024xf32, #tpu.memory_space<vmem>>, vector<1x18x1024xf32>,
    %c5_43 = arith.constant 5 : index
    %c0_44 = arith.constant 0 : index
    %c0_45 = arith.constant 0 : index
    %84 = vector.load %arg1[%c5_43, %c0_44, %c0_45] : memref<8x18x1024xf32, #tpu.memory_space<vmem>>, vector<1x18x1024xf32>
    %85 = vector.shape_cast %84 : vector<1x18x1024xf32> to vector<18x1024xf32>
    %86 = vector.broadcast %0 : vector<18x1xf32> to vector<18x1024xf32>
    %87 = arith.mulf %86, %85 : vector<18x1024xf32>
    %c6 = arith.constant 6 : index
    %c0_46 = arith.constant 0 : index
    %c0_47 = arith.constant 0 : index
    %88 = vector.load %arg1[%c6, %c0_46, %c0_47] : memref<8x18x1024xf32, #tpu.memory_space<vmem>>, vector<1x18x1024xf32>
    %89 = vector.shape_cast %88 : vector<1x18x1024xf32> to vector<18x1024xf32>
    %90 = vector.broadcast %1 : vector<18x1xf32> to vector<18x1024xf32>
    %91 = arith.mulf %90, %89 : vector<18x1024xf32>
    %92 = arith.addf %87, %91 : vector<18x1024xf32>
    %c7_48 = arith.constant 7 : index
    %c0_49 = arith.constant 0 : index
    %c0_50 = arith.constant 0 : index
    %93 = vector.load %arg1[%c7_48, %c0_49, %c0_50] : memref<8x18x1024xf32, #tpu.memory_space<vmem>>, vector<1x18x1024xf32>
    %94 = vector.shape_cast %93 : vector<1x18x1024xf32> to vector<18x1024xf32>
    %95 = vector.broadcast %2 : vector<18x1xf32> to vector<18x1024xf32>
    %96 = arith.mulf %95, %94 : vector<18x1024xf32>
    %97 = arith.addf %92, %96 : vector<18x1024xf32>
    %98 = vector.broadcast %3 : vector<18x1xf32> to vector<18x1024xf32>
    %99 = arith.mulf %97, %98 : vector<18x1024xf32>
    %100 = vector.broadcast %4 : vector<18x1xf32> to vector<18x1024xf32>
    %101 = arith.addf %99, %100 : vector<18x1024xf32>
    %cst_51 = arith.constant 0.000000e+00 : f32
    %102 = vector.broadcast %cst_51 : f32 to vector<18x1024xf32>
    %103 = arith.maximumf %101, %102 : vector<18x1024xf32>
    %c3_52 = arith.constant 3 : index
    %c0_53 = arith.constant 0 : index
    %c0_54 = arith.constant 0 : index
    %104 = vector.load %arg18[%c3_52, %c0_53, %c0_54] : memref<4x18x1024xf32, #tpu.memory_space<vmem>>, vector<1x18x1024xf32>
    %105 = vector.shape_cast %104 : vector<1x18x1024xf32> to vector<18x1024xf32>
    %106 = vector.shape_cast %103 : vector<18x1024xf32> to vector<1x18x1024xf32>
    tpu.vector_store %arg18[%c3_52, %c0_53, %c0_54], %106 {strides = array<i32>} : memref<4x18x1024xf32, #tpu.memory_space<vmem>>, vector<1x18x1024xf32>,
    %c0_55 = arith.constant 0 : index
    %c0_56 = arith.constant 0 : index
    %107 = vector.load %arg6[%c0_55, %c0_56] : memref<32x1xf32, #tpu.memory_space<vmem>>, vector<32x1xf32>
    %c0_57 = arith.constant 0 : index
    %c0_58 = arith.constant 0 : index
    %108 = vector.load %arg7[%c0_57, %c0_58] : memref<32x1xf32, #tpu.memory_space<vmem>>, vector<32x1xf32>
    %c3_59 = arith.constant 3 : index
    %c0_60 = arith.constant 0 : index
    %c0_61 = arith.constant 0 : index
    %109 = vector.load %arg18[%c3_59, %c0_60, %c0_61] : memref<4x18x1024xf32, #tpu.memory_space<vmem>>, vector<1x18x1024xf32>
    %110 = vector.shape_cast %109 : vector<1x18x1024xf32> to vector<18x1024xf32>
    %cst_62 = arith.constant 0.000000e+00 : f32
    %111 = vector.broadcast %cst_62 : f32 to vector<18x1xf32>
    %112 = vector.extract_strided_slice %110 {offsets = [0, 0], sizes = [18, 1023], strides = [1, 1]} : vector<18x1024xf32> to vector<18x1023xf32>
    %113 = tpu.concatenate %111, %112 in 1 : vector<18x1xf32>, vector<18x1023xf32> -> vector<18x1024xf32>
    %114 = tpu.iota {dimensions = array<i32: 1>} : vector<18x1024xi32>
    %c127_i32_63 = arith.constant 127 : i32
    %115 = vector.broadcast %c127_i32_63 : i32 to vector<18x1024xi32>
    %116 = arith.andi %114, %115 : vector<18x1024xi32>
    %c0_i32_64 = arith.constant 0 : i32
    %117 = vector.broadcast %c0_i32_64 : i32 to vector<18x1024xi32>
    %118 = arith.cmpi eq, %116, %117 : vector<18x1024xi32>
    %cst_65 = arith.constant 0.000000e+00 : f32
    %119 = vector.broadcast %cst_65 : f32 to vector<18x1024xf32>
    %120 = arith.select %118, %119, %113 : vector<18x1024xi1>, vector<18x1024xf32>
    %c0_66 = arith.constant 0 : index
    %c0_67 = arith.constant 0 : index
    %c0_68 = arith.constant 0 : index
    %121 = vector.load %arg5[%c0_66, %c0_67, %c0_68] : memref<3x32x18xf32, #tpu.memory_space<vmem>>, vector<1x32x18xf32>
    %122 = vector.shape_cast %121 : vector<1x32x18xf32> to vector<32x18xf32>
    %cst_69 = arith.constant dense<0.000000e+00> : vector<32x1024xf32>
    %123 = tpu.matmul %122, %120, %cst_69 {dimension_numbers = #tpu.dot_dimension_numbers<[1], [0], [0], [1], [0, 0, 1, 1], [], []>} : vector<32x18xf32>, vector<18x1024xf32>, vector<32x1024xf32> -> vector<32x1024xf32>
    %c1_70 = arith.constant 1 : index
    %c0_71 = arith.constant 0 : index
    %c0_72 = arith.constant 0 : index
    %124 = vector.load %arg5[%c1_70, %c0_71, %c0_72] : memref<3x32x18xf32, #tpu.memory_space<vmem>>, vector<1x32x18xf32>
    %125 = vector.shape_cast %124 : vector<1x32x18xf32> to vector<32x18xf32>
    %c0_73 = arith.constant 0 : index
    %c0_74 = arith.constant 0 : index
    %c0_75 = arith.constant 0 : index
    %126 = vector.load %arg18[%c0_73, %c0_74, %c0_75] : memref<4x18x1024xf32, #tpu.memory_space<vmem>>, vector<1x18x1024xf32>
    %127 = vector.shape_cast %126 : vector<1x18x1024xf32> to vector<18x1024xf32>
    %cst_76 = arith.constant dense<0.000000e+00> : vector<32x1024xf32>
    %128 = tpu.matmul %125, %127, %cst_76 {dimension_numbers = #tpu.dot_dimension_numbers<[1], [0], [0], [1], [0, 0, 1, 1], [], []>} : vector<32x18xf32>, vector<18x1024xf32>, vector<32x1024xf32> -> vector<32x1024xf32>
    %129 = arith.addf %123, %128 : vector<32x1024xf32>
    %c2_77 = arith.constant 2 : index
    %c0_78 = arith.constant 0 : index
    %c0_79 = arith.constant 0 : index
    %130 = vector.load %arg5[%c2_77, %c0_78, %c0_79] : memref<3x32x18xf32, #tpu.memory_space<vmem>>, vector<1x32x18xf32>
    %131 = vector.shape_cast %130 : vector<1x32x18xf32> to vector<32x18xf32>
    %c1_80 = arith.constant 1 : index
    %c0_81 = arith.constant 0 : index
    %c0_82 = arith.constant 0 : index
    %132 = vector.load %arg18[%c1_80, %c0_81, %c0_82] : memref<4x18x1024xf32, #tpu.memory_space<vmem>>, vector<1x18x1024xf32>
    %133 = vector.shape_cast %132 : vector<1x18x1024xf32> to vector<18x1024xf32>
    %cst_83 = arith.constant dense<0.000000e+00> : vector<32x1024xf32>
    %134 = tpu.matmul %131, %133, %cst_83 {dimension_numbers = #tpu.dot_dimension_numbers<[1], [0], [0], [1], [0, 0, 1, 1], [], []>} : vector<32x18xf32>, vector<18x1024xf32>, vector<32x1024xf32> -> vector<32x1024xf32>
    %135 = arith.addf %129, %134 : vector<32x1024xf32>
    %136 = vector.broadcast %107 : vector<32x1xf32> to vector<32x1024xf32>
    %137 = arith.mulf %135, %136 : vector<32x1024xf32>
    %138 = vector.broadcast %108 : vector<32x1xf32> to vector<32x1024xf32>
    %139 = arith.addf %137, %138 : vector<32x1024xf32>
    %cst_84 = arith.constant 0.000000e+00 : f32
    %140 = vector.broadcast %cst_84 : f32 to vector<32x1024xf32>
    %141 = arith.maximumf %139, %140 : vector<32x1024xf32>
    %c0_85 = arith.constant 0 : index
    %c0_86 = arith.constant 0 : index
    %c0_87 = arith.constant 0 : index
    %142 = vector.load %arg19[%c0_85, %c0_86, %c0_87] : memref<2x32x1024xf32, #tpu.memory_space<vmem>>, vector<1x32x1024xf32>
    %143 = vector.shape_cast %142 : vector<1x32x1024xf32> to vector<32x1024xf32>
    %144 = vector.shape_cast %141 : vector<32x1024xf32> to vector<1x32x1024xf32>
    tpu.vector_store %arg19[%c0_85, %c0_86, %c0_87], %144 {strides = array<i32>} : memref<2x32x1024xf32, #tpu.memory_space<vmem>>, vector<1x32x1024xf32>,
    %c1_88 = arith.constant 1 : index
    %c0_89 = arith.constant 0 : index
    %c0_90 = arith.constant 0 : index
    %145 = vector.load %arg18[%c1_88, %c0_89, %c0_90] : memref<4x18x1024xf32, #tpu.memory_space<vmem>>, vector<1x18x1024xf32>
    %146 = vector.shape_cast %145 : vector<1x18x1024xf32> to vector<18x1024xf32>
    %c0_91 = arith.constant 0 : index
    %c0_92 = arith.constant 0 : index
    %c0_93 = arith.constant 0 : index
    %147 = vector.load %arg5[%c0_91, %c0_92, %c0_93] : memref<3x32x18xf32, #tpu.memory_space<vmem>>, vector<1x32x18xf32>
    %148 = vector.shape_cast %147 : vector<1x32x18xf32> to vector<32x18xf32>
    %cst_94 = arith.constant dense<0.000000e+00> : vector<32x1024xf32>
    %149 = tpu.matmul %148, %146, %cst_94 {dimension_numbers = #tpu.dot_dimension_numbers<[1], [0], [0], [1], [0, 0, 1, 1], [], []>} : vector<32x18xf32>, vector<18x1024xf32>, vector<32x1024xf32> -> vector<32x1024xf32>
    %c1_95 = arith.constant 1 : index
    %c0_96 = arith.constant 0 : index
    %c0_97 = arith.constant 0 : index
    %150 = vector.load %arg5[%c1_95, %c0_96, %c0_97] : memref<3x32x18xf32, #tpu.memory_space<vmem>>, vector<1x32x18xf32>
    %151 = vector.shape_cast %150 : vector<1x32x18xf32> to vector<32x18xf32>
    %c2_98 = arith.constant 2 : index
    %c0_99 = arith.constant 0 : index
    %c0_100 = arith.constant 0 : index
    %152 = vector.load %arg18[%c2_98, %c0_99, %c0_100] : memref<4x18x1024xf32, #tpu.memory_space<vmem>>, vector<1x18x1024xf32>
    %153 = vector.shape_cast %152 : vector<1x18x1024xf32> to vector<18x1024xf32>
    %cst_101 = arith.constant dense<0.000000e+00> : vector<32x1024xf32>
    %154 = tpu.matmul %151, %153, %cst_101 {dimension_numbers = #tpu.dot_dimension_numbers<[1], [0], [0], [1], [0, 0, 1, 1], [], []>} : vector<32x18xf32>, vector<18x1024xf32>, vector<32x1024xf32> -> vector<32x1024xf32>
    %155 = arith.addf %149, %154 : vector<32x1024xf32>
    %c2_102 = arith.constant 2 : index
    %c0_103 = arith.constant 0 : index
    %c0_104 = arith.constant 0 : index
    %156 = vector.load %arg5[%c2_102, %c0_103, %c0_104] : memref<3x32x18xf32, #tpu.memory_space<vmem>>, vector<1x32x18xf32>
    %157 = vector.shape_cast %156 : vector<1x32x18xf32> to vector<32x18xf32>
    %c3_105 = arith.constant 3 : index
    %c0_106 = arith.constant 0 : index
    %c0_107 = arith.constant 0 : index
    %158 = vector.load %arg18[%c3_105, %c0_106, %c0_107] : memref<4x18x1024xf32, #tpu.memory_space<vmem>>, vector<1x18x1024xf32>
    %159 = vector.shape_cast %158 : vector<1x18x1024xf32> to vector<18x1024xf32>
    %cst_108 = arith.constant dense<0.000000e+00> : vector<32x1024xf32>
    %160 = tpu.matmul %157, %159, %cst_108 {dimension_numbers = #tpu.dot_dimension_numbers<[1], [0], [0], [1], [0, 0, 1, 1], [], []>} : vector<32x18xf32>, vector<18x1024xf32>, vector<32x1024xf32> -> vector<32x1024xf32>
    %161 = arith.addf %155, %160 : vector<32x1024xf32>
    %162 = vector.broadcast %107 : vector<32x1xf32> to vector<32x1024xf32>
    %163 = arith.mulf %161, %162 : vector<32x1024xf32>
    %164 = vector.broadcast %108 : vector<32x1xf32> to vector<32x1024xf32>
    %165 = arith.addf %163, %164 : vector<32x1024xf32>
    %cst_109 = arith.constant 0.000000e+00 : f32
    %166 = vector.broadcast %cst_109 : f32 to vector<32x1024xf32>
    %167 = arith.maximumf %165, %166 : vector<32x1024xf32>
    %c1_110 = arith.constant 1 : index
    %c0_111 = arith.constant 0 : index
    %c0_112 = arith.constant 0 : index
    %168 = vector.load %arg19[%c1_110, %c0_111, %c0_112] : memref<2x32x1024xf32, #tpu.memory_space<vmem>>, vector<1x32x1024xf32>
    %169 = vector.shape_cast %168 : vector<1x32x1024xf32> to vector<32x1024xf32>
    %170 = vector.shape_cast %167 : vector<32x1024xf32> to vector<1x32x1024xf32>
    tpu.vector_store %arg19[%c1_110, %c0_111, %c0_112], %170 {strides = array<i32>} : memref<2x32x1024xf32, #tpu.memory_space<vmem>>, vector<1x32x1024xf32>,
    %c0_113 = arith.constant 0 : index
    %c0_114 = arith.constant 0 : index
    %171 = vector.load %arg9[%c0_113, %c0_114] : memref<32x1xf32, #tpu.memory_space<vmem>>, vector<32x1xf32>
    %c0_115 = arith.constant 0 : index
    %c0_116 = arith.constant 0 : index
    %172 = vector.load %arg10[%c0_115, %c0_116] : memref<32x1xf32, #tpu.memory_space<vmem>>, vector<32x1xf32>
    %c0_117 = arith.constant 0 : index
    %c0_118 = arith.constant 0 : index
    %c0_119 = arith.constant 0 : index
    %173 = vector.load %arg8[%c0_117, %c0_118, %c0_119] : memref<3x32x32xf32, #tpu.memory_space<vmem>>, vector<1x32x32xf32>
    %174 = vector.shape_cast %173 : vector<1x32x32xf32> to vector<32x32xf32>
    %c1_120 = arith.constant 1 : index
    %c0_121 = arith.constant 0 : index
    %c0_122 = arith.constant 0 : index
    %175 = vector.load %arg19[%c1_120, %c0_121, %c0_122] : memref<2x32x1024xf32, #tpu.memory_space<vmem>>, vector<1x32x1024xf32>
    %176 = vector.shape_cast %175 : vector<1x32x1024xf32> to vector<32x1024xf32>
    %cst_123 = arith.constant 0.000000e+00 : f32
    %177 = vector.broadcast %cst_123 : f32 to vector<32x1xf32>
    %178 = vector.extract_strided_slice %176 {offsets = [0, 0], sizes = [32, 1023], strides = [1, 1]} : vector<32x1024xf32> to vector<32x1023xf32>
    %179 = tpu.concatenate %177, %178 in 1 : vector<32x1xf32>, vector<32x1023xf32> -> vector<32x1024xf32>
    %180 = tpu.iota {dimensions = array<i32: 1>} : vector<32x1024xi32>
    %c127_i32_124 = arith.constant 127 : i32
    %181 = vector.broadcast %c127_i32_124 : i32 to vector<32x1024xi32>
    %182 = arith.andi %180, %181 : vector<32x1024xi32>
    %c0_i32_125 = arith.constant 0 : i32
    %183 = vector.broadcast %c0_i32_125 : i32 to vector<32x1024xi32>
    %184 = arith.cmpi eq, %182, %183 : vector<32x1024xi32>
    %cst_126 = arith.constant 0.000000e+00 : f32
    %185 = vector.broadcast %cst_126 : f32 to vector<32x1024xf32>
    %186 = arith.select %184, %185, %179 : vector<32x1024xi1>, vector<32x1024xf32>
    %cst_127 = arith.constant dense<0.000000e+00> : vector<32x1024xf32>
    %187 = tpu.matmul %174, %186, %cst_127 {dimension_numbers = #tpu.dot_dimension_numbers<[1], [0], [0], [1], [0, 0, 1, 1], [], []>} : vector<32x32xf32>, vector<32x1024xf32>, vector<32x1024xf32> -> vector<32x1024xf32>
    %c1_128 = arith.constant 1 : index
    %c0_129 = arith.constant 0 : index
    %c0_130 = arith.constant 0 : index
    %188 = vector.load %arg8[%c1_128, %c0_129, %c0_130] : memref<3x32x32xf32, #tpu.memory_space<vmem>>, vector<1x32x32xf32>
    %189 = vector.shape_cast %188 : vector<1x32x32xf32> to vector<32x32xf32>
    %c0_131 = arith.constant 0 : index
    %c0_132 = arith.constant 0 : index
    %c0_133 = arith.constant 0 : index
    %190 = vector.load %arg19[%c0_131, %c0_132, %c0_133] : memref<2x32x1024xf32, #tpu.memory_space<vmem>>, vector<1x32x1024xf32>
    %191 = vector.shape_cast %190 : vector<1x32x1024xf32> to vector<32x1024xf32>
    %cst_134 = arith.constant dense<0.000000e+00> : vector<32x1024xf32>
    %192 = tpu.matmul %189, %191, %cst_134 {dimension_numbers = #tpu.dot_dimension_numbers<[1], [0], [0], [1], [0, 0, 1, 1], [], []>} : vector<32x32xf32>, vector<32x1024xf32>, vector<32x1024xf32> -> vector<32x1024xf32>
    %193 = arith.addf %187, %192 : vector<32x1024xf32>
    %c2_135 = arith.constant 2 : index
    %c0_136 = arith.constant 0 : index
    %c0_137 = arith.constant 0 : index
    %194 = vector.load %arg8[%c2_135, %c0_136, %c0_137] : memref<3x32x32xf32, #tpu.memory_space<vmem>>, vector<1x32x32xf32>
    %195 = vector.shape_cast %194 : vector<1x32x32xf32> to vector<32x32xf32>
    %c1_138 = arith.constant 1 : index
    %c0_139 = arith.constant 0 : index
    %c0_140 = arith.constant 0 : index
    %196 = vector.load %arg19[%c1_138, %c0_139, %c0_140] : memref<2x32x1024xf32, #tpu.memory_space<vmem>>, vector<1x32x1024xf32>
    %197 = vector.shape_cast %196 : vector<1x32x1024xf32> to vector<32x1024xf32>
    %cst_141 = arith.constant dense<0.000000e+00> : vector<32x1024xf32>
    %198 = tpu.matmul %195, %197, %cst_141 {dimension_numbers = #tpu.dot_dimension_numbers<[1], [0], [0], [1], [0, 0, 1, 1], [], []>} : vector<32x32xf32>, vector<32x1024xf32>, vector<32x1024xf32> -> vector<32x1024xf32>
    %199 = arith.addf %193, %198 : vector<32x1024xf32>
    %200 = vector.broadcast %171 : vector<32x1xf32> to vector<32x1024xf32>
    %201 = arith.mulf %199, %200 : vector<32x1024xf32>
    %202 = vector.broadcast %172 : vector<32x1xf32> to vector<32x1024xf32>
    %203 = arith.addf %201, %202 : vector<32x1024xf32>
    %cst_142 = arith.constant 0.000000e+00 : f32
    %204 = vector.broadcast %cst_142 : f32 to vector<32x1024xf32>
    %205 = arith.maximumf %203, %204 : vector<32x1024xf32>
    %c0_143 = arith.constant 0 : index
    %c0_144 = arith.constant 0 : index
    %206 = vector.load %arg20[%c0_143, %c0_144] : memref<32x1024xf32, #tpu.memory_space<vmem>>, vector<32x1024xf32>
    tpu.vector_store %arg20[%c0_143, %c0_144], %205 {strides = array<i32>} : memref<32x1024xf32, #tpu.memory_space<vmem>>, vector<32x1024xf32>,
    %c0_145 = arith.constant 0 : index
    %c0_146 = arith.constant 0 : index
    %207 = vector.load %arg20[%c0_145, %c0_146] : memref<32x1024xf32, #tpu.memory_space<vmem>>, vector<32x32xf32>
    %cst_147 = arith.constant dense<0xFF800000> : vector<32xf32>
    %208 = vector.multi_reduction <maximumf>, %207, %cst_147 [1] : vector<32x32xf32> to vector<32xf32>
    %209 = vector.shape_cast %208 : vector<32xf32> to vector<32x1xf32>
    %c0_148 = arith.constant 0 : index
    %c0_149 = arith.constant 0 : index
    %210 = vector.load %arg21[%c0_148, %c0_149] : memref<128x8xf32, #tpu.memory_space<vmem>>, vector<32x1xf32>
    tpu.vector_store %arg21[%c0_148, %c0_149], %209 {strides = array<i32>} : memref<128x8xf32, #tpu.memory_space<vmem>>, vector<32x1xf32>,
    %c0_150 = arith.constant 0 : index
    %c32 = arith.constant 32 : index
    %211 = vector.load %arg20[%c0_150, %c32] : memref<32x1024xf32, #tpu.memory_space<vmem>>, vector<32x32xf32>
    %cst_151 = arith.constant dense<0xFF800000> : vector<32xf32>
    %212 = vector.multi_reduction <maximumf>, %211, %cst_151 [1] : vector<32x32xf32> to vector<32xf32>
    %213 = vector.shape_cast %212 : vector<32xf32> to vector<32x1xf32>
    %c32_152 = arith.constant 32 : index
    %c0_153 = arith.constant 0 : index
    %214 = vector.load %arg21[%c32_152, %c0_153] : memref<128x8xf32, #tpu.memory_space<vmem>>, vector<32x1xf32>
    tpu.vector_store %arg21[%c32_152, %c0_153], %213 {strides = array<i32>} : memref<128x8xf32, #tpu.memory_space<vmem>>, vector<32x1xf32>,
    %c0_154 = arith.constant 0 : index
    %c64 = arith.constant 64 : index
    %215 = vector.load %arg20[%c0_154, %c64] : memref<32x1024xf32, #tpu.memory_space<vmem>>, vector<32x32xf32>
    %cst_155 = arith.constant dense<0xFF800000> : vector<32xf32>
    %216 = vector.multi_reduction <maximumf>, %215, %cst_155 [1] : vector<32x32xf32> to vector<32xf32>
    %217 = vector.shape_cast %216 : vector<32xf32> to vector<32x1xf32>
    %c64_156 = arith.constant 64 : index
    %c0_157 = arith.constant 0 : index
    %218 = vector.load %arg21[%c64_156, %c0_157] : memref<128x8xf32, #tpu.memory_space<vmem>>, vector<32x1xf32>
    tpu.vector_store %arg21[%c64_156, %c0_157], %217 {strides = array<i32>} : memref<128x8xf32, #tpu.memory_space<vmem>>, vector<32x1xf32>,
    %c0_158 = arith.constant 0 : index
    %c96 = arith.constant 96 : index
    %219 = vector.load %arg20[%c0_158, %c96] : memref<32x1024xf32, #tpu.memory_space<vmem>>, vector<32x32xf32>
    %cst_159 = arith.constant dense<0xFF800000> : vector<32xf32>
    %220 = vector.multi_reduction <maximumf>, %219, %cst_159 [1] : vector<32x32xf32> to vector<32xf32>
    %221 = vector.shape_cast %220 : vector<32xf32> to vector<32x1xf32>
    %c96_160 = arith.constant 96 : index
    %c0_161 = arith.constant 0 : index
    %222 = vector.load %arg21[%c96_160, %c0_161] : memref<128x8xf32, #tpu.memory_space<vmem>>, vector<32x1xf32>
    tpu.vector_store %arg21[%c96_160, %c0_161], %221 {strides = array<i32>} : memref<128x8xf32, #tpu.memory_space<vmem>>, vector<32x1xf32>,
    %c0_162 = arith.constant 0 : index
    %c128 = arith.constant 128 : index
    %223 = vector.load %arg20[%c0_162, %c128] : memref<32x1024xf32, #tpu.memory_space<vmem>>, vector<32x32xf32>
    %cst_163 = arith.constant dense<0xFF800000> : vector<32xf32>
    %224 = vector.multi_reduction <maximumf>, %223, %cst_163 [1] : vector<32x32xf32> to vector<32xf32>
    %225 = vector.shape_cast %224 : vector<32xf32> to vector<32x1xf32>
    %c0_164 = arith.constant 0 : index
    %c1_165 = arith.constant 1 : index
    %226 = vector.load %arg21[%c0_164, %c1_165] : memref<128x8xf32, #tpu.memory_space<vmem>>, vector<32x1xf32>
    tpu.vector_store %arg21[%c0_164, %c1_165], %225 {strides = array<i32>} : memref<128x8xf32, #tpu.memory_space<vmem>>, vector<32x1xf32>,
    %c0_166 = arith.constant 0 : index
    %c160 = arith.constant 160 : index
    %227 = vector.load %arg20[%c0_166, %c160] : memref<32x1024xf32, #tpu.memory_space<vmem>>, vector<32x32xf32>
    %cst_167 = arith.constant dense<0xFF800000> : vector<32xf32>
    %228 = vector.multi_reduction <maximumf>, %227, %cst_167 [1] : vector<32x32xf32> to vector<32xf32>
    %229 = vector.shape_cast %228 : vector<32xf32> to vector<32x1xf32>
    %c32_168 = arith.constant 32 : index
    %c1_169 = arith.constant 1 : index
    %230 = vector.load %arg21[%c32_168, %c1_169] : memref<128x8xf32, #tpu.memory_space<vmem>>, vector<32x1xf32>
    tpu.vector_store %arg21[%c32_168, %c1_169], %229 {strides = array<i32>} : memref<128x8xf32, #tpu.memory_space<vmem>>, vector<32x1xf32>,
    %c0_170 = arith.constant 0 : index
    %c192 = arith.constant 192 : index
    %231 = vector.load %arg20[%c0_170, %c192] : memref<32x1024xf32, #tpu.memory_space<vmem>>, vector<32x32xf32>
    %cst_171 = arith.constant dense<0xFF800000> : vector<32xf32>
    %232 = vector.multi_reduction <maximumf>, %231, %cst_171 [1] : vector<32x32xf32> to vector<32xf32>
    %233 = vector.shape_cast %232 : vector<32xf32> to vector<32x1xf32>
    %c64_172 = arith.constant 64 : index
    %c1_173 = arith.constant 1 : index
    %234 = vector.load %arg21[%c64_172, %c1_173] : memref<128x8xf32, #tpu.memory_space<vmem>>, vector<32x1xf32>
    tpu.vector_store %arg21[%c64_172, %c1_173], %233 {strides = array<i32>} : memref<128x8xf32, #tpu.memory_space<vmem>>, vector<32x1xf32>,
    %c0_174 = arith.constant 0 : index
    %c224 = arith.constant 224 : index
    %235 = vector.load %arg20[%c0_174, %c224] : memref<32x1024xf32, #tpu.memory_space<vmem>>, vector<32x32xf32>
    %cst_175 = arith.constant dense<0xFF800000> : vector<32xf32>
    %236 = vector.multi_reduction <maximumf>, %235, %cst_175 [1] : vector<32x32xf32> to vector<32xf32>
    %237 = vector.shape_cast %236 : vector<32xf32> to vector<32x1xf32>
    %c96_176 = arith.constant 96 : index
    %c1_177 = arith.constant 1 : index
    %238 = vector.load %arg21[%c96_176, %c1_177] : memref<128x8xf32, #tpu.memory_space<vmem>>, vector<32x1xf32>
    tpu.vector_store %arg21[%c96_176, %c1_177], %237 {strides = array<i32>} : memref<128x8xf32, #tpu.memory_space<vmem>>, vector<32x1xf32>,
    %c0_178 = arith.constant 0 : index
    %c256 = arith.constant 256 : index
    %239 = vector.load %arg20[%c0_178, %c256] : memref<32x1024xf32, #tpu.memory_space<vmem>>, vector<32x32xf32>
    %cst_179 = arith.constant dense<0xFF800000> : vector<32xf32>
    %240 = vector.multi_reduction <maximumf>, %239, %cst_179 [1] : vector<32x32xf32> to vector<32xf32>
    %241 = vector.shape_cast %240 : vector<32xf32> to vector<32x1xf32>
    %c0_180 = arith.constant 0 : index
    %c2_181 = arith.constant 2 : index
    %242 = vector.load %arg21[%c0_180, %c2_181] : memref<128x8xf32, #tpu.memory_space<vmem>>, vector<32x1xf32>
    tpu.vector_store %arg21[%c0_180, %c2_181], %241 {strides = array<i32>} : memref<128x8xf32, #tpu.memory_space<vmem>>, vector<32x1xf32>,
    %c0_182 = arith.constant 0 : index
    %c288 = arith.constant 288 : index
    %243 = vector.load %arg20[%c0_182, %c288] : memref<32x1024xf32, #tpu.memory_space<vmem>>, vector<32x32xf32>
    %cst_183 = arith.constant dense<0xFF800000> : vector<32xf32>
    %244 = vector.multi_reduction <maximumf>, %243, %cst_183 [1] : vector<32x32xf32> to vector<32xf32>
    %245 = vector.shape_cast %244 : vector<32xf32> to vector<32x1xf32>
    %c32_184 = arith.constant 32 : index
    %c2_185 = arith.constant 2 : index
    %246 = vector.load %arg21[%c32_184, %c2_185] : memref<128x8xf32, #tpu.memory_space<vmem>>, vector<32x1xf32>
    tpu.vector_store %arg21[%c32_184, %c2_185], %245 {strides = array<i32>} : memref<128x8xf32, #tpu.memory_space<vmem>>, vector<32x1xf32>,
    %c0_186 = arith.constant 0 : index
    %c320 = arith.constant 320 : index
    %247 = vector.load %arg20[%c0_186, %c320] : memref<32x1024xf32, #tpu.memory_space<vmem>>, vector<32x32xf32>
    %cst_187 = arith.constant dense<0xFF800000> : vector<32xf32>
    %248 = vector.multi_reduction <maximumf>, %247, %cst_187 [1] : vector<32x32xf32> to vector<32xf32>
    %249 = vector.shape_cast %248 : vector<32xf32> to vector<32x1xf32>
    %c64_188 = arith.constant 64 : index
    %c2_189 = arith.constant 2 : index
    %250 = vector.load %arg21[%c64_188, %c2_189] : memref<128x8xf32, #tpu.memory_space<vmem>>, vector<32x1xf32>
    tpu.vector_store %arg21[%c64_188, %c2_189], %249 {strides = array<i32>} : memref<128x8xf32, #tpu.memory_space<vmem>>, vector<32x1xf32>,
    %c0_190 = arith.constant 0 : index
    %c352 = arith.constant 352 : index
    %251 = vector.load %arg20[%c0_190, %c352] : memref<32x1024xf32, #tpu.memory_space<vmem>>, vector<32x32xf32>
    %cst_191 = arith.constant dense<0xFF800000> : vector<32xf32>
    %252 = vector.multi_reduction <maximumf>, %251, %cst_191 [1] : vector<32x32xf32> to vector<32xf32>
    %253 = vector.shape_cast %252 : vector<32xf32> to vector<32x1xf32>
    %c96_192 = arith.constant 96 : index
    %c2_193 = arith.constant 2 : index
    %254 = vector.load %arg21[%c96_192, %c2_193] : memref<128x8xf32, #tpu.memory_space<vmem>>, vector<32x1xf32>
    tpu.vector_store %arg21[%c96_192, %c2_193], %253 {strides = array<i32>} : memref<128x8xf32, #tpu.memory_space<vmem>>, vector<32x1xf32>,
    %c0_194 = arith.constant 0 : index
    %c384 = arith.constant 384 : index
    %255 = vector.load %arg20[%c0_194, %c384] : memref<32x1024xf32, #tpu.memory_space<vmem>>, vector<32x32xf32>
    %cst_195 = arith.constant dense<0xFF800000> : vector<32xf32>
    %256 = vector.multi_reduction <maximumf>, %255, %cst_195 [1] : vector<32x32xf32> to vector<32xf32>
    %257 = vector.shape_cast %256 : vector<32xf32> to vector<32x1xf32>
    %c0_196 = arith.constant 0 : index
    %c3_197 = arith.constant 3 : index
    %258 = vector.load %arg21[%c0_196, %c3_197] : memref<128x8xf32, #tpu.memory_space<vmem>>, vector<32x1xf32>
    tpu.vector_store %arg21[%c0_196, %c3_197], %257 {strides = array<i32>} : memref<128x8xf32, #tpu.memory_space<vmem>>, vector<32x1xf32>,
    %c0_198 = arith.constant 0 : index
    %c416 = arith.constant 416 : index
    %259 = vector.load %arg20[%c0_198, %c416] : memref<32x1024xf32, #tpu.memory_space<vmem>>, vector<32x32xf32>
    %cst_199 = arith.constant dense<0xFF800000> : vector<32xf32>
    %260 = vector.multi_reduction <maximumf>, %259, %cst_199 [1] : vector<32x32xf32> to vector<32xf32>
    %261 = vector.shape_cast %260 : vector<32xf32> to vector<32x1xf32>
    %c32_200 = arith.constant 32 : index
    %c3_201 = arith.constant 3 : index
    %262 = vector.load %arg21[%c32_200, %c3_201] : memref<128x8xf32, #tpu.memory_space<vmem>>, vector<32x1xf32>
    tpu.vector_store %arg21[%c32_200, %c3_201], %261 {strides = array<i32>} : memref<128x8xf32, #tpu.memory_space<vmem>>, vector<32x1xf32>,
    %c0_202 = arith.constant 0 : index
    %c448 = arith.constant 448 : index
    %263 = vector.load %arg20[%c0_202, %c448] : memref<32x1024xf32, #tpu.memory_space<vmem>>, vector<32x32xf32>
    %cst_203 = arith.constant dense<0xFF800000> : vector<32xf32>
    %264 = vector.multi_reduction <maximumf>, %263, %cst_203 [1] : vector<32x32xf32> to vector<32xf32>
    %265 = vector.shape_cast %264 : vector<32xf32> to vector<32x1xf32>
    %c64_204 = arith.constant 64 : index
    %c3_205 = arith.constant 3 : index
    %266 = vector.load %arg21[%c64_204, %c3_205] : memref<128x8xf32, #tpu.memory_space<vmem>>, vector<32x1xf32>
    tpu.vector_store %arg21[%c64_204, %c3_205], %265 {strides = array<i32>} : memref<128x8xf32, #tpu.memory_space<vmem>>, vector<32x1xf32>,
    %c0_206 = arith.constant 0 : index
    %c480 = arith.constant 480 : index
    %267 = vector.load %arg20[%c0_206, %c480] : memref<32x1024xf32, #tpu.memory_space<vmem>>, vector<32x32xf32>
    %cst_207 = arith.constant dense<0xFF800000> : vector<32xf32>
    %268 = vector.multi_reduction <maximumf>, %267, %cst_207 [1] : vector<32x32xf32> to vector<32xf32>
    %269 = vector.shape_cast %268 : vector<32xf32> to vector<32x1xf32>
    %c96_208 = arith.constant 96 : index
    %c3_209 = arith.constant 3 : index
    %270 = vector.load %arg21[%c96_208, %c3_209] : memref<128x8xf32, #tpu.memory_space<vmem>>, vector<32x1xf32>
    tpu.vector_store %arg21[%c96_208, %c3_209], %269 {strides = array<i32>} : memref<128x8xf32, #tpu.memory_space<vmem>>, vector<32x1xf32>,
    %c0_210 = arith.constant 0 : index
    %c512 = arith.constant 512 : index
    %271 = vector.load %arg20[%c0_210, %c512] : memref<32x1024xf32, #tpu.memory_space<vmem>>, vector<32x32xf32>
    %cst_211 = arith.constant dense<0xFF800000> : vector<32xf32>
    %272 = vector.multi_reduction <maximumf>, %271, %cst_211 [1] : vector<32x32xf32> to vector<32xf32>
    %273 = vector.shape_cast %272 : vector<32xf32> to vector<32x1xf32>
    %c0_212 = arith.constant 0 : index
    %c4_213 = arith.constant 4 : index
    %274 = vector.load %arg21[%c0_212, %c4_213] : memref<128x8xf32, #tpu.memory_space<vmem>>, vector<32x1xf32>
    tpu.vector_store %arg21[%c0_212, %c4_213], %273 {strides = array<i32>} : memref<128x8xf32, #tpu.memory_space<vmem>>, vector<32x1xf32>,
    %c0_214 = arith.constant 0 : index
    %c544 = arith.constant 544 : index
    %275 = vector.load %arg20[%c0_214, %c544] : memref<32x1024xf32, #tpu.memory_space<vmem>>, vector<32x32xf32>
    %cst_215 = arith.constant dense<0xFF800000> : vector<32xf32>
    %276 = vector.multi_reduction <maximumf>, %275, %cst_215 [1] : vector<32x32xf32> to vector<32xf32>
    %277 = vector.shape_cast %276 : vector<32xf32> to vector<32x1xf32>
    %c32_216 = arith.constant 32 : index
    %c4_217 = arith.constant 4 : index
    %278 = vector.load %arg21[%c32_216, %c4_217] : memref<128x8xf32, #tpu.memory_space<vmem>>, vector<32x1xf32>
    tpu.vector_store %arg21[%c32_216, %c4_217], %277 {strides = array<i32>} : memref<128x8xf32, #tpu.memory_space<vmem>>, vector<32x1xf32>,
    %c0_218 = arith.constant 0 : index
    %c576 = arith.constant 576 : index
    %279 = vector.load %arg20[%c0_218, %c576] : memref<32x1024xf32, #tpu.memory_space<vmem>>, vector<32x32xf32>
    %cst_219 = arith.constant dense<0xFF800000> : vector<32xf32>
    %280 = vector.multi_reduction <maximumf>, %279, %cst_219 [1] : vector<32x32xf32> to vector<32xf32>
    %281 = vector.shape_cast %280 : vector<32xf32> to vector<32x1xf32>
    %c64_220 = arith.constant 64 : index
    %c4_221 = arith.constant 4 : index
    %282 = vector.load %arg21[%c64_220, %c4_221] : memref<128x8xf32, #tpu.memory_space<vmem>>, vector<32x1xf32>
    tpu.vector_store %arg21[%c64_220, %c4_221], %281 {strides = array<i32>} : memref<128x8xf32, #tpu.memory_space<vmem>>, vector<32x1xf32>,
    %c0_222 = arith.constant 0 : index
    %c608 = arith.constant 608 : index
    %283 = vector.load %arg20[%c0_222, %c608] : memref<32x1024xf32, #tpu.memory_space<vmem>>, vector<32x32xf32>
    %cst_223 = arith.constant dense<0xFF800000> : vector<32xf32>
    %284 = vector.multi_reduction <maximumf>, %283, %cst_223 [1] : vector<32x32xf32> to vector<32xf32>
    %285 = vector.shape_cast %284 : vector<32xf32> to vector<32x1xf32>
    %c96_224 = arith.constant 96 : index
    %c4_225 = arith.constant 4 : index
    %286 = vector.load %arg21[%c96_224, %c4_225] : memref<128x8xf32, #tpu.memory_space<vmem>>, vector<32x1xf32>
    tpu.vector_store %arg21[%c96_224, %c4_225], %285 {strides = array<i32>} : memref<128x8xf32, #tpu.memory_space<vmem>>, vector<32x1xf32>,
    %c0_226 = arith.constant 0 : index
    %c640 = arith.constant 640 : index
    %287 = vector.load %arg20[%c0_226, %c640] : memref<32x1024xf32, #tpu.memory_space<vmem>>, vector<32x32xf32>
    %cst_227 = arith.constant dense<0xFF800000> : vector<32xf32>
    %288 = vector.multi_reduction <maximumf>, %287, %cst_227 [1] : vector<32x32xf32> to vector<32xf32>
    %289 = vector.shape_cast %288 : vector<32xf32> to vector<32x1xf32>
    %c0_228 = arith.constant 0 : index
    %c5_229 = arith.constant 5 : index
    %290 = vector.load %arg21[%c0_228, %c5_229] : memref<128x8xf32, #tpu.memory_space<vmem>>, vector<32x1xf32>
    tpu.vector_store %arg21[%c0_228, %c5_229], %289 {strides = array<i32>} : memref<128x8xf32, #tpu.memory_space<vmem>>, vector<32x1xf32>,
    %c0_230 = arith.constant 0 : index
    %c672 = arith.constant 672 : index
    %291 = vector.load %arg20[%c0_230, %c672] : memref<32x1024xf32, #tpu.memory_space<vmem>>, vector<32x32xf32>
    %cst_231 = arith.constant dense<0xFF800000> : vector<32xf32>
    %292 = vector.multi_reduction <maximumf>, %291, %cst_231 [1] : vector<32x32xf32> to vector<32xf32>
    %293 = vector.shape_cast %292 : vector<32xf32> to vector<32x1xf32>
    %c32_232 = arith.constant 32 : index
    %c5_233 = arith.constant 5 : index
    %294 = vector.load %arg21[%c32_232, %c5_233] : memref<128x8xf32, #tpu.memory_space<vmem>>, vector<32x1xf32>
    tpu.vector_store %arg21[%c32_232, %c5_233], %293 {strides = array<i32>} : memref<128x8xf32, #tpu.memory_space<vmem>>, vector<32x1xf32>,
    %c0_234 = arith.constant 0 : index
    %c704 = arith.constant 704 : index
    %295 = vector.load %arg20[%c0_234, %c704] : memref<32x1024xf32, #tpu.memory_space<vmem>>, vector<32x32xf32>
    %cst_235 = arith.constant dense<0xFF800000> : vector<32xf32>
    %296 = vector.multi_reduction <maximumf>, %295, %cst_235 [1] : vector<32x32xf32> to vector<32xf32>
    %297 = vector.shape_cast %296 : vector<32xf32> to vector<32x1xf32>
    %c64_236 = arith.constant 64 : index
    %c5_237 = arith.constant 5 : index
    %298 = vector.load %arg21[%c64_236, %c5_237] : memref<128x8xf32, #tpu.memory_space<vmem>>, vector<32x1xf32>
    tpu.vector_store %arg21[%c64_236, %c5_237], %297 {strides = array<i32>} : memref<128x8xf32, #tpu.memory_space<vmem>>, vector<32x1xf32>,
    %c0_238 = arith.constant 0 : index
    %c736 = arith.constant 736 : index
    %299 = vector.load %arg20[%c0_238, %c736] : memref<32x1024xf32, #tpu.memory_space<vmem>>, vector<32x32xf32>
    %cst_239 = arith.constant dense<0xFF800000> : vector<32xf32>
    %300 = vector.multi_reduction <maximumf>, %299, %cst_239 [1] : vector<32x32xf32> to vector<32xf32>
    %301 = vector.shape_cast %300 : vector<32xf32> to vector<32x1xf32>
    %c96_240 = arith.constant 96 : index
    %c5_241 = arith.constant 5 : index
    %302 = vector.load %arg21[%c96_240, %c5_241] : memref<128x8xf32, #tpu.memory_space<vmem>>, vector<32x1xf32>
    tpu.vector_store %arg21[%c96_240, %c5_241], %301 {strides = array<i32>} : memref<128x8xf32, #tpu.memory_space<vmem>>, vector<32x1xf32>,
    %c0_242 = arith.constant 0 : index
    %c768 = arith.constant 768 : index
    %303 = vector.load %arg20[%c0_242, %c768] : memref<32x1024xf32, #tpu.memory_space<vmem>>, vector<32x32xf32>
    %cst_243 = arith.constant dense<0xFF800000> : vector<32xf32>
    %304 = vector.multi_reduction <maximumf>, %303, %cst_243 [1] : vector<32x32xf32> to vector<32xf32>
    %305 = vector.shape_cast %304 : vector<32xf32> to vector<32x1xf32>
    %c0_244 = arith.constant 0 : index
    %c6_245 = arith.constant 6 : index
    %306 = vector.load %arg21[%c0_244, %c6_245] : memref<128x8xf32, #tpu.memory_space<vmem>>, vector<32x1xf32>
    tpu.vector_store %arg21[%c0_244, %c6_245], %305 {strides = array<i32>} : memref<128x8xf32, #tpu.memory_space<vmem>>, vector<32x1xf32>,
    %c0_246 = arith.constant 0 : index
    %c800 = arith.constant 800 : index
    %307 = vector.load %arg20[%c0_246, %c800] : memref<32x1024xf32, #tpu.memory_space<vmem>>, vector<32x32xf32>
    %cst_247 = arith.constant dense<0xFF800000> : vector<32xf32>
    %308 = vector.multi_reduction <maximumf>, %307, %cst_247 [1] : vector<32x32xf32> to vector<32xf32>
    %309 = vector.shape_cast %308 : vector<32xf32> to vector<32x1xf32>
    %c32_248 = arith.constant 32 : index
    %c6_249 = arith.constant 6 : index
    %310 = vector.load %arg21[%c32_248, %c6_249] : memref<128x8xf32, #tpu.memory_space<vmem>>, vector<32x1xf32>
    tpu.vector_store %arg21[%c32_248, %c6_249], %309 {strides = array<i32>} : memref<128x8xf32, #tpu.memory_space<vmem>>, vector<32x1xf32>,
    %c0_250 = arith.constant 0 : index
    %c832 = arith.constant 832 : index
    %311 = vector.load %arg20[%c0_250, %c832] : memref<32x1024xf32, #tpu.memory_space<vmem>>, vector<32x32xf32>
    %cst_251 = arith.constant dense<0xFF800000> : vector<32xf32>
    %312 = vector.multi_reduction <maximumf>, %311, %cst_251 [1] : vector<32x32xf32> to vector<32xf32>
    %313 = vector.shape_cast %312 : vector<32xf32> to vector<32x1xf32>
    %c64_252 = arith.constant 64 : index
    %c6_253 = arith.constant 6 : index
    %314 = vector.load %arg21[%c64_252, %c6_253] : memref<128x8xf32, #tpu.memory_space<vmem>>, vector<32x1xf32>
    tpu.vector_store %arg21[%c64_252, %c6_253], %313 {strides = array<i32>} : memref<128x8xf32, #tpu.memory_space<vmem>>, vector<32x1xf32>,
    %c0_254 = arith.constant 0 : index
    %c864 = arith.constant 864 : index
    %315 = vector.load %arg20[%c0_254, %c864] : memref<32x1024xf32, #tpu.memory_space<vmem>>, vector<32x32xf32>
    %cst_255 = arith.constant dense<0xFF800000> : vector<32xf32>
    %316 = vector.multi_reduction <maximumf>, %315, %cst_255 [1] : vector<32x32xf32> to vector<32xf32>
    %317 = vector.shape_cast %316 : vector<32xf32> to vector<32x1xf32>
    %c96_256 = arith.constant 96 : index
    %c6_257 = arith.constant 6 : index
    %318 = vector.load %arg21[%c96_256, %c6_257] : memref<128x8xf32, #tpu.memory_space<vmem>>, vector<32x1xf32>
    tpu.vector_store %arg21[%c96_256, %c6_257], %317 {strides = array<i32>} : memref<128x8xf32, #tpu.memory_space<vmem>>, vector<32x1xf32>,
    %c0_258 = arith.constant 0 : index
    %c896 = arith.constant 896 : index
    %319 = vector.load %arg20[%c0_258, %c896] : memref<32x1024xf32, #tpu.memory_space<vmem>>, vector<32x32xf32>
    %cst_259 = arith.constant dense<0xFF800000> : vector<32xf32>
    %320 = vector.multi_reduction <maximumf>, %319, %cst_259 [1] : vector<32x32xf32> to vector<32xf32>
    %321 = vector.shape_cast %320 : vector<32xf32> to vector<32x1xf32>
    %c0_260 = arith.constant 0 : index
    %c7_261 = arith.constant 7 : index
    %322 = vector.load %arg21[%c0_260, %c7_261] : memref<128x8xf32, #tpu.memory_space<vmem>>, vector<32x1xf32>
    tpu.vector_store %arg21[%c0_260, %c7_261], %321 {strides = array<i32>} : memref<128x8xf32, #tpu.memory_space<vmem>>, vector<32x1xf32>,
    %c0_262 = arith.constant 0 : index
    %c928 = arith.constant 928 : index
    %323 = vector.load %arg20[%c0_262, %c928] : memref<32x1024xf32, #tpu.memory_space<vmem>>, vector<32x32xf32>
    %cst_263 = arith.constant dense<0xFF800000> : vector<32xf32>
    %324 = vector.multi_reduction <maximumf>, %323, %cst_263 [1] : vector<32x32xf32> to vector<32xf32>
    %325 = vector.shape_cast %324 : vector<32xf32> to vector<32x1xf32>
    %c32_264 = arith.constant 32 : index
    %c7_265 = arith.constant 7 : index
    %326 = vector.load %arg21[%c32_264, %c7_265] : memref<128x8xf32, #tpu.memory_space<vmem>>, vector<32x1xf32>
    tpu.vector_store %arg21[%c32_264, %c7_265], %325 {strides = array<i32>} : memref<128x8xf32, #tpu.memory_space<vmem>>, vector<32x1xf32>,
    %c0_266 = arith.constant 0 : index
    %c960 = arith.constant 960 : index
    %327 = vector.load %arg20[%c0_266, %c960] : memref<32x1024xf32, #tpu.memory_space<vmem>>, vector<32x32xf32>
    %cst_267 = arith.constant dense<0xFF800000> : vector<32xf32>
    %328 = vector.multi_reduction <maximumf>, %327, %cst_267 [1] : vector<32x32xf32> to vector<32xf32>
    %329 = vector.shape_cast %328 : vector<32xf32> to vector<32x1xf32>
    %c64_268 = arith.constant 64 : index
    %c7_269 = arith.constant 7 : index
    %330 = vector.load %arg21[%c64_268, %c7_269] : memref<128x8xf32, #tpu.memory_space<vmem>>, vector<32x1xf32>
    tpu.vector_store %arg21[%c64_268, %c7_269], %329 {strides = array<i32>} : memref<128x8xf32, #tpu.memory_space<vmem>>, vector<32x1xf32>,
    %c0_270 = arith.constant 0 : index
    %c992 = arith.constant 992 : index
    %331 = vector.load %arg20[%c0_270, %c992] : memref<32x1024xf32, #tpu.memory_space<vmem>>, vector<32x32xf32>
    %cst_271 = arith.constant dense<0xFF800000> : vector<32xf32>
    %332 = vector.multi_reduction <maximumf>, %331, %cst_271 [1] : vector<32x32xf32> to vector<32xf32>
    %333 = vector.shape_cast %332 : vector<32xf32> to vector<32x1xf32>
    %c96_272 = arith.constant 96 : index
    %c7_273 = arith.constant 7 : index
    %334 = vector.load %arg21[%c96_272, %c7_273] : memref<128x8xf32, #tpu.memory_space<vmem>>, vector<32x1xf32>
    tpu.vector_store %arg21[%c96_272, %c7_273], %333 {strides = array<i32>} : memref<128x8xf32, #tpu.memory_space<vmem>>, vector<32x1xf32>,
    %c0_274 = arith.constant 0 : index
    %c0_275 = arith.constant 0 : index
    %335 = vector.load %arg11[%c0_274, %c0_275] : memref<64x128xf32, #tpu.memory_space<vmem>>, vector<64x128xf32>
    %c0_276 = arith.constant 0 : index
    %c0_277 = arith.constant 0 : index
    %336 = vector.load %arg21[%c0_276, %c0_277] : memref<128x8xf32, #tpu.memory_space<vmem>>, vector<128x8xf32>
    %cst_278 = arith.constant dense<0.000000e+00> : vector<64x8xf32>
    %337 = tpu.matmul %335, %336, %cst_278 {dimension_numbers = #tpu.dot_dimension_numbers<[1], [0], [0], [1], [0, 0, 1, 1], [], []>} : vector<64x128xf32>, vector<128x8xf32>, vector<64x8xf32> -> vector<64x8xf32>
    %c0_279 = arith.constant 0 : index
    %c0_280 = arith.constant 0 : index
    %338 = vector.load %arg12[%c0_279, %c0_280] : memref<64x1xf32, #tpu.memory_space<vmem>>, vector<64x1xf32>
    %339 = vector.broadcast %338 : vector<64x1xf32> to vector<64x8xf32>
    %340 = arith.addf %337, %339 : vector<64x8xf32>
    %cst_281 = arith.constant 0.000000e+00 : f32
    %341 = vector.broadcast %cst_281 : f32 to vector<64x8xf32>
    %342 = arith.maximumf %340, %341 : vector<64x8xf32>
    %c0_282 = arith.constant 0 : index
    %c0_283 = arith.constant 0 : index
    %343 = vector.load %arg13[%c0_282, %c0_283] : memref<32x64xf32, #tpu.memory_space<vmem>>, vector<32x64xf32>
    %cst_284 = arith.constant dense<0.000000e+00> : vector<32x8xf32>
    %344 = tpu.matmul %343, %342, %cst_284 {dimension_numbers = #tpu.dot_dimension_numbers<[1], [0], [0], [1], [0, 0, 1, 1], [], []>} : vector<32x64xf32>, vector<64x8xf32>, vector<32x8xf32> -> vector<32x8xf32>
    %c0_285 = arith.constant 0 : index
    %c0_286 = arith.constant 0 : index
    %345 = vector.load %arg14[%c0_285, %c0_286] : memref<32x1xf32, #tpu.memory_space<vmem>>, vector<32x1xf32>
    %346 = vector.broadcast %345 : vector<32x1xf32> to vector<32x8xf32>
    %347 = arith.addf %344, %346 : vector<32x8xf32>
    %cst_287 = arith.constant 0.000000e+00 : f32
    %348 = vector.broadcast %cst_287 : f32 to vector<32x8xf32>
    %349 = arith.maximumf %347, %348 : vector<32x8xf32>
    %c0_288 = arith.constant 0 : index
    %c0_289 = arith.constant 0 : index
    %350 = vector.load %arg15[%c0_288, %c0_289] : memref<1x32xf32, #tpu.memory_space<vmem>>, vector<1x32xf32>
    %cst_290 = arith.constant dense<0.000000e+00> : vector<1x8xf32>
    %351 = tpu.matmul %350, %349, %cst_290 {dimension_numbers = #tpu.dot_dimension_numbers<[1], [0], [0], [1], [0, 0, 1, 1], [], []>} : vector<1x32xf32>, vector<32x8xf32>, vector<1x8xf32> -> vector<1x8xf32>
    %c0_291 = arith.constant 0 : index
    %c0_292 = arith.constant 0 : index
    %352 = vector.load %arg16[%c0_291, %c0_292] : memref<1x1xf32, #tpu.memory_space<vmem>>, vector<1x1xf32>
    %353 = vector.broadcast %352 : vector<1x1xf32> to vector<1x8xf32>
    %354 = arith.addf %351, %353 : vector<1x8xf32>
    %355 = vector.shape_cast %354 : vector<1x8xf32> to vector<1x1x8xf32>
    %c0_293 = arith.constant 0 : index
    %c0_294 = arith.constant 0 : index
    %c0_295 = arith.constant 0 : index
    %356 = vector.load %arg17[%c0_293, %c0_294, %c0_295] : memref<1x1x8xf32, #tpu.memory_space<vmem>>, vector<1x1x8xf32>
    tpu.vector_store %arg17[%c0_293, %c0_294, %c0_295], %355 {strides = array<i32>} : memref<1x1x8xf32, #tpu.memory_space<vmem>>, vector<1x1x8xf32>,
    return
  }
  func.func @transform_0(%arg0: i32) -> (i32, i32, i32) {
    %c0_i32 = arith.constant 0 : i32
    %c0_i32_0 = arith.constant 0 : i32
    %c0_i32_1 = arith.constant 0 : i32
    return %c0_i32, %c0_i32_0, %arg0 : i32, i32, i32
  }
  func.func @transform_1(%arg0: i32) -> (i32, i32) {
    %c0_i32 = arith.constant 0 : i32
    %c0_i32_0 = arith.constant 0 : i32
    %c0_i32_1 = arith.constant 0 : i32
    return %c0_i32, %c0_i32_0 : i32, i32
  }
  func.func @transform_2(%arg0: i32) -> (i32, i32) {
    %c0_i32 = arith.constant 0 : i32
    %c0_i32_0 = arith.constant 0 : i32
    %c0_i32_1 = arith.constant 0 : i32
    return %c0_i32, %c0_i32_0 : i32, i32
  }
  func.func @transform_3(%arg0: i32) -> (i32, i32) {
    %c0_i32 = arith.constant 0 : i32
    %c0_i32_0 = arith.constant 0 : i32
    %c0_i32_1 = arith.constant 0 : i32
    return %c0_i32, %c0_i32_0 : i32, i32
  }
  func.func @transform_4(%arg0: i32) -> (i32, i32, i32) {
    %c0_i32 = arith.constant 0 : i32
    %c0_i32_0 = arith.constant 0 : i32
    %c0_i32_1 = arith.constant 0 : i32
    %c0_i32_2 = arith.constant 0 : i32
    return %c0_i32, %c0_i32_0, %c0_i32_1 : i32, i32, i32
  }
  func.func @transform_5(%arg0: i32) -> (i32, i32) {
    %c0_i32 = arith.constant 0 : i32
    %c0_i32_0 = arith.constant 0 : i32
    %c0_i32_1 = arith.constant 0 : i32
    return %c0_i32, %c0_i32_0 : i32, i32
  }
  func.func @transform_6(%arg0: i32) -> (i32, i32) {
    %c0_i32 = arith.constant 0 : i32
    %c0_i32_0 = arith.constant 0 : i32
    %c0_i32_1 = arith.constant 0 : i32
    return %c0_i32, %c0_i32_0 : i32, i32
  }
  func.func @transform_7(%arg0: i32) -> (i32, i32, i32) {
    %c0_i32 = arith.constant 0 : i32
    %c0_i32_0 = arith.constant 0 : i32
    %c0_i32_1 = arith.constant 0 : i32
    %c0_i32_2 = arith.constant 0 : i32
    return %c0_i32, %c0_i32_0, %c0_i32_1 : i32, i32, i32
  }
  func.func @transform_8(%arg0: i32) -> (i32, i32) {
    %c0_i32 = arith.constant 0 : i32
    %c0_i32_0 = arith.constant 0 : i32
    %c0_i32_1 = arith.constant 0 : i32
    return %c0_i32, %c0_i32_0 : i32, i32
  }
  func.func @transform_9(%arg0: i32) -> (i32, i32) {
    %c0_i32 = arith.constant 0 : i32
    %c0_i32_0 = arith.constant 0 : i32
    %c0_i32_1 = arith.constant 0 : i32
    return %c0_i32, %c0_i32_0 : i32, i32
  }
  func.func @transform_10(%arg0: i32) -> (i32, i32) {
    %c0_i32 = arith.constant 0 : i32
    %c0_i32_0 = arith.constant 0 : i32
    %c0_i32_1 = arith.constant 0 : i32
    return %c0_i32, %c0_i32_0 : i32, i32
  }
  func.func @transform_11(%arg0: i32) -> (i32, i32) {
    %c0_i32 = arith.constant 0 : i32
    %c0_i32_0 = arith.constant 0 : i32
    %c0_i32_1 = arith.constant 0 : i32
    return %c0_i32, %c0_i32_0 : i32, i32
  }
  func.func @transform_12(%arg0: i32) -> (i32, i32) {
    %c0_i32 = arith.constant 0 : i32
    %c0_i32_0 = arith.constant 0 : i32
    %c0_i32_1 = arith.constant 0 : i32
    return %c0_i32, %c0_i32_0 : i32, i32
  }
  func.func @transform_13(%arg0: i32) -> (i32, i32) {
    %c0_i32 = arith.constant 0 : i32
    %c0_i32_0 = arith.constant 0 : i32
    %c0_i32_1 = arith.constant 0 : i32
    return %c0_i32, %c0_i32_0 : i32, i32
  }
  func.func @transform_14(%arg0: i32) -> (i32, i32) {
    %c0_i32 = arith.constant 0 : i32
    %c0_i32_0 = arith.constant 0 : i32
    %c0_i32_1 = arith.constant 0 : i32
    return %c0_i32, %c0_i32_0 : i32, i32
  }
  func.func @transform_15(%arg0: i32) -> (i32, i32) {
    %c0_i32 = arith.constant 0 : i32
    %c0_i32_0 = arith.constant 0 : i32
    %c0_i32_1 = arith.constant 0 : i32
    return %c0_i32, %c0_i32_0 : i32, i32
  }
  func.func @transform_16(%arg0: i32) -> (i32, i32, i32) {
    %c0_i32 = arith.constant 0 : i32
    %c0_i32_0 = arith.constant 0 : i32
    %c0_i32_1 = arith.constant 0 : i32
    return %arg0, %c0_i32, %c0_i32_0 : i32, i32, i32
  }
}

</mosaic_0001>

<bundles_post_ra>
// kernel: custom_net_forward.1
= control target key start
LH: loop header
LB: loop body
LE: loop exit
PB: predicated region body
PF: predicated region fallthrough
CT: control target
= control target key end

     0   :  { %v6597_v0 = vmov 0   ;;  %s6598_s28 = smov 1   ;;  %v6599_v4 = vmov 1   ;;  %v6600_v8 = vmov 2   ;;  %v210_v39 = vlaneseq  ;;  %s11379_s1 = inlined_call_operand.vmem [shape: f32[18,3], index: 1, kind: input, shape index: {}]   ;;  %s11380_s0 = inlined_call_operand.vmem [shape: f32[8,18,1024], index: 0, kind: input, shape index: {}]   ;;  %s11381_s3 = inlined_call_operand.vmem [shape: f32[18,1], index: 3, kind: input, shape index: {}]   ;;  %s11382_s2 = inlined_call_operand.vmem [shape: f32[18,1], index: 2, kind: input, shape index: {}]   ;;  %s11383_s4 = inlined_call_operand.vmem [shape: f32[3,32,18], index: 4, kind: input, shape index: {}]   ;;  %s11384_s5 = inlined_call_operand.vmem [shape: f32[32,1], index: 5, kind: input, shape index: {}]   ;;  %s11385_s6 = inlined_call_operand.vmem [shape: f32[32,1], index: 6, kind: input, shape index: {}]   ;;  %s11386_s8 = inlined_call_operand.vmem [shape: f32[32,1], index: 8, kind: input, shape index: {}]   ;;  %s11387_s9 = inlined_call_operand.vmem [shape: f32[32,1], index: 9, kind: input, shape index: {}]   ;;  %s11388_s7 = inlined_call_operand.vmem [shape: f32[3,32,32], index: 7, kind: input, shape index: {}]   ;;  %s11389_s11 = inlined_call_operand.vmem [shape: f32[64,1], index: 11, kind: input, shape index: {}]   ;;  %s11390_s15 = inlined_call_operand.<no memory space> [shape: f32[1,1], index: 15, kind: input, shape index: {}]   ;;  %s11391_s13 = inlined_call_operand.vmem [shape: f32[32,1], index: 13, kind: input, shape index: {}]   ;;  %s11392_s10 = inlined_call_operand.vmem [shape: f32[64,128], index: 10, kind: input, shape index: {}]   ;;  %s11393_s12 = inlined_call_operand.vmem [shape: f32[32,64], index: 12, kind: input, shape index: {}]   ;;  %s11394_s14 = inlined_call_operand.vmem [shape: f32[1,32], index: 14, kind: input, shape index: {}]   ;;  %s11395_s16 = inlined_call_operand.vmem [shape: f32[1,1,8], index: 16, kind: output, shape index: {}]  }
   0x1   :  { %11495 = sst [smem:[#allocation47_spill]] %s11379_s1  ;;  %6580 = vset.pattern.permute.xlu1 %v6597_v0  ;;  %v5867_v2 = vld [vmem:[%s11380_s0 + $0x5c0] sm:$0x3]  ;;  %6582 = vset.pattern.permute.xlu2 %v6597_v0  ;;  %v62_v9 = vld [vmem:[%s11381_s3 + $0x8] sm:$0xff]  ;;  %v60_v11 = vld [vmem:[%s11382_s2 + $0x10] sm:$0x3] }
   0x2   :  { %s11496_s23 = sld [smem:[#allocation47_spill]]  ;;  %v6695_v3 = vld [vmem:[%s11380_s0 + $0x540] sm:$0xff]  ;;  %145 = vrot.lane.b32.xlu0 %v5867_v2, %s6598_s28  ;;  %v59_v10 = vld [vmem:[%s11382_s2 + $0x8] sm:$0xff]  ;;  %v63_v14 = vld [vmem:[%s11381_s3 + $0x10] sm:$0x3]  ;;  %v6839_v40 = vand.u32 127, %v210_v39 }
   0x3   :  { %113 = vrot.lane.b32.xlu2 %v6695_v3, %s6598_s28  ;;  %6583 = vset.pattern.permute.xlu0 %v6599_v4  ;;  %v6703_v5 = vld [vmem:[%s11380_s0 + $0x580] sm:$0xff]  ;;  %v6725_v12 = vld [vmem:[%s11380_s0 + $0x588] sm:$0xff]  ;;  %v5870_v19 = vld [vmem:[%s11380_s0 + $0x5d8] sm:$0x3]  ;;  %vm161_vm0 = vcmask 7168   ;;  %vm1687_vm3 = vcmask 1041408  }
   0x4   :  { %v58_v13 = vld [vmem:[%s11382_s2] sm:$0xff]  ;;  %v6738_v15 = vld [vmem:[%s11380_s0 + $0x548] sm:$0xff]  ;;  %v5869_v20 = vld [vmem:[%s11380_s0 + $0x5d0] sm:$0x3]  ;;  %11499 = vst [vmem:[#allocation9_spill] sm:$0xff] %v6839_v40  ;;  %v6850_v45 = vadd.s32 128, %v6839_v40 }
   0x5   :  { %v5868_v16 = vld [vmem:[%s11380_s0 + $0x5c8] sm:$0x3]  ;;  %v61_v17 = vld [vmem:[%s11381_s3] sm:$0xff]  ;;  %v6767_v22 = vld [vmem:[%s11380_s0 + $0x598] sm:$0xff]  ;;  %vm227_vm1 = vcmp.eq.s32.totalorder %v6839_v40, 0  ;;  %vm1674_vm9 = vcmask 146432  }
   0x6   :  { %v5872_v18 = vld [vmem:[%s11380_s0 + $0x5e8] sm:$0x3]  ;;  %v6772_v23 = vld [vmem:[%s11380_s0 + $0x590] sm:$0xff]  ;;  %v6785_v25 = vld [vmem:[%s11380_s0 + $0x558] sm:$0xff]  ;;  %v220_v57 = vand.u32 127, %v6850_v45 }
   0x7   :  { %v5864_v21 = vld [vmem:[%s11380_s0 + $0x5a8] sm:$0xff]  ;;  %v6790_v26 = vld [vmem:[%s11380_s0 + $0x550] sm:$0xff]  ;;  %v5871_v27 = vld [vmem:[%s11380_s0 + $0x5e0] sm:$0x3] }
   0x8   :  { %v57_v1 = vld [vmem:[%s11496_s23 + $0x10] sm:$0x3]  ;;  %v56_v6 = vld [vmem:[%s11496_s23 + $0x8] sm:$0xff]  ;;  %v55_v7 = vld [vmem:[%s11496_s23] sm:$0xff]  ;;  %vm7067_vm2 = vcmp.eq.s32.totalorder %v220_v57, 0 }
   0x9   :  { %271 = vperm.xlu1 %6580, %v57_v1   ;;  %v5856_v24 = vld [vmem:[%s11380_s0 + $0x568] sm:$0xff]  ;;  %v5874_v28 = vld [vmem:[%s11380_s0 + $0x5f8] sm:$0x3]  ;;  %v5873_v29 = vld [vmem:[%s11380_s0 + $0x5f0] sm:$0x3] }
   0xa   :  { %129 = vrot.lane.b32.xlu0 %v6703_v5, %s6598_s28  ;;  %v5866_v30 = vld [vmem:[%s11380_s0 + $0x5b8] sm:$0xff]  ;;  %v5865_v31 = vld [vmem:[%s11380_s0 + $0x5b0] sm:$0xff]  ;;  %v5855_v36 = vld [vmem:[%s11380_s0 + $0x560] sm:$0xff] }
   0xb   :  { %266 = vperm.xlu2 %6582, %v56_v6   ;;  %v5858_v33 = vld [vmem:[%s11380_s0 + $0x578] sm:$0xff]  ;;  %v5857_v34 = vld [vmem:[%s11380_s0 + $0x570] sm:$0xff]  ;;  %v5863_v37 = vld [vmem:[%s11380_s0 + $0x5a0] sm:$0xff] }
   0xc   :  { %v6061_v47 = vld [vmem:[%s11380_s0 + $0x450] sm:$0x3]  ;;  %v6060_v48 = vld [vmem:[%s11380_s0 + $0x448] sm:$0x3]  ;;  %v6062_v50 = vld [vmem:[%s11380_s0 + $0x458] sm:$0x3] }
   0xd   :  { %v6046_v51 = vld [vmem:[%s11380_s0 + $0x3d8] sm:$0xff]  ;;  %v6059_v52 = vld [vmem:[%s11380_s0 + $0x440] sm:$0x3]  ;;  %v6045_v54 = vld [vmem:[%s11380_s0 + $0x3d0] sm:$0xff] }
   0xe   :  { %v314_v53 = vld [vmem:[%s11380_s0 + $0x80] sm:$0x3]  ;;  %v6044_v55 = vld [vmem:[%s11380_s0 + $0x3c8] sm:$0xff]  ;;  %v6085_v58 = vld [vmem:[%s11380_s0 + $0x510] sm:$0x3] }
   0xf   :  { %v6065_v59 = vld [vmem:[%s11380_s0 + $0x470] sm:$0x3]  ;;  %v6064_v60 = vld [vmem:[%s11380_s0 + $0x468] sm:$0x3]  ;;  %vm8801_vm13 = vmneg %vm227_vm1 }
  0x10   :  { %vm8818_vm14 = vmneg %vm7067_vm2 }
  0x11   :  { %6581 = vset.pattern.permute.xlu1 %v6599_v4 }
  0x12   :  { %331 = vperm.xlu1 %6581, %v57_v1   ;;  %327 = vperm.xlu0 %6583, %v56_v6  }
  0x13   :  { %261 = vperm.xlu2 %6582, %v55_v7  }
  0x1a   :  { %6584 = vset.pattern.permute.xlu1 %v6600_v8  ;;  %6587 = vset.pattern.permute.xlu0 %v6600_v8 }
  0x1b   :  { %416 = vperm.xlu1 %6584, %v57_v1   ;;  %6586 = vset.pattern.permute.xlu2 %v6600_v8  ;;  %v6053_v1 = vld [vmem:[%s11380_s0 + $0x410] sm:$0xff] }
  0x1c   :  { %408 = vperm.xlu0 %6587, %v55_v7   ;;  %412 = vperm.xlu2 %6586, %v56_v6   ;;  %v6066_v6 = vld [vmem:[%s11380_s0 + $0x478] sm:$0x3] }
  0x23   :  { %6585 = vset.pattern.permute.xlu1 %v6599_v4 }
  0x24   :  { %323 = vperm.xlu1 %6585, %v55_v7   ;;  %6590 = vset.pattern.permute.xlu0 %v6597_v0 }
  0x25   :  { %6589 = vset.pattern.permute.xlu2 %v6597_v0  ;;  %513 = vperm.xlu0 %6590, %v62_v9   ;;  %v6084_v9 = vld [vmem:[%s11380_s0 + $0x508] sm:$0x3] }
  0x26   :  { %474 = vperm.xlu2 %6589, %v59_v10  }
  0x2c   :  { %6588 = vset.pattern.permute.xlu1 %v6597_v0  ;;  %v6054_v0 = vld [vmem:[%s11380_s0 + $0x418] sm:$0xff] }
  0x2d   :  { %479 = vperm.xlu1 %6588, %v60_v11   ;;  %131 = vrot.lane.b32.xlu0 %v6725_v12, %s6598_s28  ;;  %v6086_v11 = vld [vmem:[%s11380_s0 + $0x518] sm:$0x3] }
  0x2e   :  { %469 = vperm.xlu2 %6589, %v58_v13  }
  0x35   :  { %518 = vperm.xlu1 %6588, %v63_v14   ;;  %115 = vrot.lane.b32.xlu0 %v6738_v15, %s6598_s28 }
  0x36   :  { %147 = vrot.lane.b32.xlu2 %v5868_v16, %s6598_s28 }
  0x3d   :  { %508 = vperm.xlu1 %6588, %v61_v17   ;;  %155 = vrot.lane.b32.xlu0 %v5872_v18, %s6598_s28  ;;  %v5883_v17 = vld [vmem:[%s11380_s0 + $0x100] sm:$0xff]  ;;  %v6052_v18 = vld [vmem:[%s11380_s0 + $0x408] sm:$0xff] }
  0x3e   :  { %151 = vrot.lane.b32.xlu2 %v5870_v19, %s6598_s28 }
  0x45   :  { %149 = vrot.lane.b32.xlu1 %v5869_v20, %s6598_s28  ;;  %139 = vrot.lane.b32.xlu0 %v5864_v21, %s6598_s28 }
  0x46   :  { %135 = vrot.lane.b32.xlu2 %v6767_v22, %s6598_s28 }
  0x4d   :  { %133 = vrot.lane.b32.xlu1 %v6772_v23, %s6598_s28  ;;  %123 = vrot.lane.b32.xlu0 %v5856_v24, %s6598_s28 }
  0x4e   :  { %119 = vrot.lane.b32.xlu2 %v6785_v25, %s6598_s28 }
  0x55   :  { %117 = vrot.lane.b32.xlu1 %v6790_v26, %s6598_s28  ;;  %153 = vrot.lane.b32.xlu0 %v5871_v27, %s6598_s28 }
  0x56   :  { %159 = vrot.lane.b32.xlu2 %v5874_v28, %s6598_s28 }
  0x5d   :  { %157 = vrot.lane.b32.xlu1 %v5873_v29, %s6598_s28  ;;  %v6816_v32 = vpop.permute.xlu2 %113 }
  0x5e   :  { %143 = vrot.lane.b32.xlu2 %v5866_v30, %s6598_s28  ;;  %11497 = vst [vmem:[#allocation7_spill] sm:$0xff] %v6816_v32  ;;  %v207_v43 = vsel %vm161_vm0, 0.0, %v6816_v32  ;;  %v6051_v30 = vld [vmem:[%s11380_s0 + $0x400] sm:$0xff] }
  0x5f   :  { %v235_v49 = vsel %vm227_vm1, 0.0, %v207_v43 }
  0x65   :  { %141 = vrot.lane.b32.xlu1 %v5865_v31, %s6598_s28  ;;  %v6826_v35 = vpop.permute.xlu2 %266  ;;  %v6083_v31 = vld [vmem:[%s11380_s0 + $0x500] sm:$0x3] }
  0x66   :  { %127 = vrot.lane.b32.xlu2 %v5858_v33, %s6598_s28  ;;  %v6947_v28 = vmul.f32 %v6054_v0, %v6826_v35  ;;  %v6950_v29 = vmul.f32 %v6053_v1, %v6826_v35 }
  0x6d   :  { %125 = vrot.lane.b32.xlu1 %v5857_v34, %s6598_s28  ;;  %v6836_v38 = vpop.permute.xlu2 %261 }
  0x6e   :  { %121 = vrot.lane.b32.xlu2 %v5855_v36, %s6598_s28  ;;  %11498 = vst [vmem:[#allocation8_spill] sm:$0xff] %v6836_v38  ;;  %v6904_v2 = vmul.f32 %v6836_v38, %v235_v49  ;;  %v6907_v4 = vmul.f32 %v6046_v51, %v6836_v38  ;;  %v6924_v13 = vmul.f32 %v6045_v54, %v6836_v38  ;;  %v315_v36 = vld [vmem:[%s11380_s0 + $0x88] sm:$0x3] }
  0x6f   :  { %v6927_v14 = vmul.f32 %v6044_v55, %v6836_v38  ;;  %v6987_v51 = vmul.f32 %v6052_v18, %v6826_v35  ;;  %v7006_v55 = vmul.f32 %v6051_v30, %v6826_v35  ;;  %v6076_v30 = vld [vmem:[%s11380_s0 + $0x4c8] sm:$0xff] }
  0x74   :  { %v6843_v42 = vpop.permute.xlu0 %145 }
  0x75   :  { %137 = vrot.lane.b32.xlu1 %v5863_v37, %s6598_s28  ;;  %v209_v46 = vsel %vm161_vm0, 0.0, %v6843_v42 }
  0x76   :  { %v6847_v44 = vpop.permute.xlu2 %412  ;;  %v251_v56 = vsel %vm227_vm1, 0.0, %v209_v46  ;;  %v316_v46 = vld [vmem:[%s11380_s0 + $0x90] sm:$0x3] }
  0x77   :  { %11500 = vst [vmem:[#allocation10_spill] sm:$0xff] %v6847_v44  ;;  %v6980_v49 = vmul.f32 %v6767_v22, %v6847_v44  ;;  %v306_v22 = vld [vmem:[%s11380_s0 + $0x40] sm:$0xff]  ;;  %v7003_v54 = vmul.f32 %v6725_v12, %v6847_v44 }
  0x7b   :  { %v6841_v41 = vpop.permute.xlu1 %271 }
  0x7c   :  { %v6893_v61 = vpop.permute.xlu0 %129  ;;  %v1217_v62 = vmul.f32 %v6061_v47, %v6841_v41  ;;  %v1216_v63 = vmul.f32 %v6060_v48, %v6841_v41  ;;  %v1218_v10 = vmul.f32 %v6062_v50, %v6841_v41  ;;  %v290_v16 = vmul.f32 %v6841_v41, %v251_v56  ;;  %v317_v48 = vld [vmem:[%s11380_s0 + $0x98] sm:$0x3] }
  0x7d   :  { %v208_v8 = vsel %vm161_vm0, 0.0, %v6893_v61  ;;  %v1215_v19 = vmul.f32 %v6059_v52, %v6841_v41  ;;  %v6938_v20 = vmul.f32 %v6065_v59, %v6841_v41  ;;  %v6941_v21 = vmul.f32 %v6064_v60, %v6841_v41  ;;  %v318_v52 = vld [vmem:[%s11380_s0 + $0xa0] sm:$0x3]  ;;  %v320_v59 = vld [vmem:[%s11380_s0 + $0xb0] sm:$0x3] }
  0x7e   :  { %v6959_v33 = vmul.f32 %v6066_v6, %v6841_v41  ;;  %v243_v34 = vsel %vm227_vm1, 0.0, %v208_v8  ;;  %v6973_v47 = vmul.f32 %v5883_v17, %v6847_v44  ;;  %v6984_v50 = vmul.f32 %v6772_v23, %v6847_v44  ;;  %v6078_v23 = vld [vmem:[%s11380_s0 + $0x4d8] sm:$0xff]  ;;  %v6043_v6 = vld [vmem:[%s11380_s0 + $0x3c0] sm:$0xff] }
  0x7f   :  { %v7010_v56 = vmul.f32 %v6703_v5, %v6847_v44  ;;  %v282_v60 = vmul.f32 %v6826_v35, %v243_v34  ;;  %v6077_v5 = vld [vmem:[%s11380_s0 + $0x4d0] sm:$0xff]  ;;  %v321_v8 = vld [vmem:[%s11380_s0 + $0xb8] sm:$0x3]  ;;  %v5891_v34 = vld [vmem:[%s11380_s0 + $0x140] sm:$0x3]  ;;  %v7084_v45 = vmul.f32 %v6043_v6, %v6836_v38 }
  0x80   :  { %v6943_v24 = vpop.permute.xlu2 %474 }
  0x84   :  { %v6912_v7 = vpop.permute.xlu1 %331 }
  0x85   :  { %11501 = vst [vmem:[#allocation11_spill] sm:$0xff] %v6912_v7  ;;  %v350_v27 = vmul.f32 %v6912_v7, %v314_v53  ;;  %v1266_v37 = vmul.f32 %v6085_v58, %v6912_v7  ;;  %v1265_v39 = vmul.f32 %v6084_v9, %v6912_v7  ;;  %v1267_v43 = vmul.f32 %v6086_v11, %v6912_v7  ;;  %v319_v53 = vld [vmem:[%s11380_s0 + $0xa8] sm:$0x3]  ;;  %v7032_v9 = vpop.permute.xlu0 %327 }
  0x86   :  { %v1264_v58 = vmul.f32 %v6083_v31, %v6912_v7  ;;  %v7018_v0 = vmul.f32 %v6912_v7, %v315_v36  ;;  %v7021_v1 = vmul.f32 %v6912_v7, %v316_v46  ;;  %v5884_v11 = vld [vmem:[%s11380_s0 + $0x108] sm:$0xff]  ;;  %v6089_v31 = vld [vmem:[%s11380_s0 + $0x530] sm:$0x3]  ;;  %v342_v36 = vmul.f32 %v7032_v9, %v306_v22 }
  0x87   :  { %v374_v12 = vadd.f32 %v350_v27, %v290_v16  ;;  %v1290_v16 = vadd.f32 %v1266_v37, %v1217_v62  ;;  %v1289_v17 = vadd.f32 %v1265_v39, %v1216_v63  ;;  %v1291_v18 = vadd.f32 %v1267_v43, %v1218_v10  ;;  %v6088_v37 = vld [vmem:[%s11380_s0 + $0x528] sm:$0x3]  ;;  %v6090_v39 = vld [vmem:[%s11380_s0 + $0x538] sm:$0x3] }
  0x88   :  { %11502 = vst [vmem:[#allocation12_spill] sm:$0xff] %v7021_v1  ;;  %v7038_v27 = vmul.f32 %v6912_v7, %v317_v48  ;;  %v1259_v62 = vmul.f32 %v6078_v23, %v7032_v9  ;;  %v7052_v63 = vmul.f32 %v6912_v7, %v318_v52  ;;  %v7055_v10 = vmul.f32 %v6912_v7, %v319_v53  ;;  %v6109_v48 = vld [vmem:[%s11380_s0 + $0x5d0] sm:$0x3]  ;;  %v6108_v52 = vld [vmem:[%s11380_s0 + $0x5c8] sm:$0x3] }
  0x89   :  { %v11507_v46 = vmov 0  ;;  %v6110_v53 = vld [vmem:[%s11380_s0 + $0x5d8] sm:$0x3]  ;;  %v1258_v22 = vmul.f32 %v6077_v5, %v7032_v9  ;;  %v7081_v23 = vadd.f32 %v1264_v58, %v1215_v19  ;;  %v7087_v57 = vmul.f32 %v6912_v7, %v320_v59  ;;  %v6075_v19 = vld [vmem:[%s11380_s0 + $0x4c0] sm:$0xff] }
  0x8a   :  { %11503 = vst [vmem:[#allocation13_spill] sm:$0xff] %v7038_v27  ;;  %v11508_v46 = vsel %vm7067_vm2, 4294967295, %v11507_v46  ;;  %v7095_v27 = vmul.f32 %v5884_v11, %v6847_v44  ;;  %v1257_v1 = vmul.f32 %v6076_v30, %v7032_v9  ;;  %v7102_v58 = vmul.f32 %v6912_v7, %v321_v8  ;;  %v308_v11 = vld [vmem:[%s11380_s0 + $0x50] sm:$0xff]  ;;  %v309_v30 = vld [vmem:[%s11380_s0 + $0x58] sm:$0xff] }
  0x8b   :  { %11504 = vst [vmem:[#allocation14_spill] sm:$0xff] %v7052_v63  ;;  %v307_v63 = vld [vmem:[%s11380_s0 + $0x48] sm:$0xff]  ;;  %v7105_v59 = vmul.f32 %v6089_v31, %v6912_v7  ;;  %v366_v6 = vadd.f32 %v342_v36, %v282_v60  ;;  %v7118_v8 = vmul.f32 %v6090_v39, %v6912_v7  ;;  %v1283_v39 = vadd.f32 %v1259_v62, %v6947_v28  ;;  %v5886_v28 = vld [vmem:[%s11380_s0 + $0x118] sm:$0xff] }
  0x8c   :  { %11505 = vst [vmem:[#allocation15_spill] sm:$0xff] %v7055_v10  ;;  %v7089_v10 = vpop.permute.xlu2 %469  ;;  %v5892_v31 = vld [vmem:[%s11380_s0 + $0x148] sm:$0x3]  ;;  %v7148_v62 = vmul.f32 %v7032_v9, %v308_v11 }
  0x8d   :  { %v7063_v43 = vpop.permute.xlu1 %416  ;;  %11509 = vst [vmem:[#allocation17_spill] sm:$0xff] %v11508_v46  ;;  %v451_v38 = vadd.f32 %v6973_v47, %v366_v6  ;;  %v1355_v32 = vadd.f32 %v6980_v49, %v1283_v39  ;;  %v7151_v47 = vmul.f32 %v7032_v9, %v309_v30  ;;  %v6070_v30 = vld [vmem:[%s11380_s0 + $0x498] sm:$0xff]  ;;  %v11535_v46 = vmov 0 }
  0x8e   :  { %11506 = vst [vmem:[#allocation16_spill] sm:$0xff] %v7063_v43  ;;  %v435_v5 = vmul.f32 %v5891_v34, %v7063_v43  ;;  %v1338_v60 = vmul.f32 %v6109_v48, %v7063_v43  ;;  %v1337_v34 = vmul.f32 %v6108_v52, %v7063_v43  ;;  %v1339_v36 = vmul.f32 %v6110_v53, %v7063_v43  ;;  %v5885_v52 = vld [vmem:[%s11380_s0 + $0x110] sm:$0xff] }
  0x8f   :  { %11510 = vst [vmem:[#allocation18_spill] sm:$0xff] %v7087_v57  ;;  %v7115_v57 = vmul.f32 %v6088_v37, %v6912_v7  ;;  %v5894_v37 = vld [vmem:[%s11380_s0 + $0x158] sm:$0x3]  ;;  %v7134_v7 = vmul.f32 %v7032_v9, %v307_v63  ;;  %v1282_v48 = vadd.f32 %v1258_v22, %v6950_v29  ;;  %v1256_v53 = vmul.f32 %v6075_v19, %v7032_v9  ;;  %v7170_v19 = vpop.permute.xlu0 %408 }
  0x90   :  { %11511 = vst [vmem:[#allocation19_spill] sm:$0xff] %v7095_v27  ;;  %v1281_v27 = vadd.f32 %v1257_v1, %v6987_v51  ;;  %v7154_v29 = vmul.f32 %v5892_v31, %v7063_v43  ;;  %v7156_v63 = vadd.f32 %v435_v5, %v374_v12  ;;  %v7162_v49 = vmul.f32 %v5894_v37, %v7063_v43  ;;  %v5875_v51 = vld [vmem:[%s11380_s0 + $0xc0] sm:$0xff] }
  0x91   :  { %11512 = vst [vmem:[#allocation20_spill] sm:$0xff] %v7102_v58  ;;  %v5893_v58 = vld [vmem:[%s11380_s0 + $0x150] sm:$0x3]  ;;  %v6107_v1 = vld [vmem:[%s11380_s0 + $0x5c0] sm:$0x3]  ;;  %v7172_v6 = vadd.f32 %v1338_v60, %v1290_v16  ;;  %v7174_v12 = vadd.f32 %v1337_v34, %v1289_v17  ;;  %v7176_v5 = vadd.f32 %v1339_v36, %v1291_v18  ;;  %v7182_v11 = vmul.f32 %v5885_v52, %v6847_v44 }
  0x92   :  { %v7159_v22 = vmul.f32 %v5893_v58, %v7063_v43  ;;  %v298_v58 = vld [vmem:[%s11380_s0] sm:$0xff]  ;;  %v490_v31 = vmul.f32 %v6943_v24, %v451_v38  ;;  %v1354_v16 = vadd.f32 %v6984_v50, %v1282_v48  ;;  %v7190_v17 = vmul.f32 %v5886_v28, %v6847_v44  ;;  %v6069_v18 = vld [vmem:[%s11380_s0 + $0x490] sm:$0xff]  ;;  %v6068_v50 = vld [vmem:[%s11380_s0 + $0x488] sm:$0xff] }
  0x93   :  { %11513 = vst [vmem:[#allocation21_spill] sm:$0xff] %v7182_v11  ;;  %v1280_v60 = vadd.f32 %v1256_v53, %v7006_v55  ;;  %v1379_v37 = vmul.f32 %v1355_v32, %v6943_v24  ;;  %v1353_v39 = vadd.f32 %v7003_v54, %v1281_v27  ;;  %v419_v38 = vmul.f32 %v5875_v51, %v7170_v19 }
  0x94   :  { %11514 = vst [vmem:[#allocation22_spill] sm:$0xff] %v7190_v17  ;;  %v7196_v34 = vpop.permute.xlu2 %147  ;;  %v7207_v48 = vmul.f32 %v6107_v1, %v7063_v43  ;;  %v1323_v32 = vmul.f32 %v6785_v25, %v7170_v19  ;;  %v1322_v28 = vmul.f32 %v6790_v26, %v7170_v19  ;;  %v1321_v51 = vmul.f32 %v6738_v15, %v7170_v19  ;;  %v5876_v25 = vld [vmem:[%s11380_s0 + $0xc8] sm:$0xff]  ;;  %v5877_v17 = vld [vmem:[%s11380_s0 + $0xd0] sm:$0xff] }
  0x95   :  { %v176_v55 = vsel %vm161_vm0, %v6843_v42, %v7196_v34  ;;  %v5895_v42 = vld [vmem:[%s11380_s0 + $0x160] sm:$0x3]  ;;  %v299_v15 = vld [vmem:[%s11380_s0 + $0x8] sm:$0xff]  ;;  %v1378_v26 = vmul.f32 %v1354_v16, %v6943_v24 }
  0x96   :  { %v7198_v36 = vpop.permute.xlu1 %323  ;;  %v252_v54 = vsel %vm7067_vm2, 0.0, %v176_v55  ;;  %v1377_v55 = vmul.f32 %v1353_v39, %v6943_v24  ;;  %v7251_v16 = vmul.f32 %v5895_v42, %v7063_v43  ;;  %v7269_v42 = vmul.f32 %v5877_v17, %v7170_v19 }
  0x97   :  { %v334_v52 = vmul.f32 %v7198_v36, %v298_v58  ;;  %v1251_v53 = vmul.f32 %v6070_v30, %v7198_v36  ;;  %v1250_v27 = vmul.f32 %v6069_v18, %v7198_v36  ;;  %v291_v1 = vmul.f32 %v6841_v41, %v252_v54 }
  0x98   :  { %v1249_v18 = vmul.f32 %v6068_v50, %v7198_v36  ;;  %v7247_v50 = vadd.s32 384, %v6839_v40  ;;  %11515 = vst [vmem:[#allocation23_spill] sm:$0xff] %v7251_v16  ;;  %v7263_v11 = vmul.f32 %v7198_v36, %v299_v15 }
  0x99   :  { %v358_v58 = vadd.f32 %v334_v52, %v6904_v2  ;;  %v1275_v30 = vadd.f32 %v1251_v53, %v6907_v4  ;;  %v1274_v54 = vadd.f32 %v1250_v27, %v6924_v13  ;;  %v1352_v2 = vadd.f32 %v7010_v56, %v1280_v60  ;;  %v300_v56 = vld [vmem:[%s11380_s0 + $0x10] sm:$0xff]  ;;  %v7260_v60 = vpop.permute.xlu0 %513  ;;  %11516 = vst [vmem:[#allocation24_spill] sm:$0xff] %v7269_v42  ;;  %v5880_v42 = vld [vmem:[%s11380_s0 + $0xe8] sm:$0xff] }
  0x9a   :  { %v7244_v4 = vadd.s32 256, %v6839_v40  ;;  %v1273_v52 = vadd.f32 %v1249_v18, %v6927_v14  ;;  %v375_v39 = vadd.f32 %v7018_v0, %v291_v1  ;;  %v7255_v13 = vmul.f32 %v5876_v25, %v7170_v19  ;;  %v301_v0 = vld [vmem:[%s11380_s0 + $0x18] sm:$0xff] }
  0x9b   :  { %v443_v53 = vadd.f32 %v419_v38, %v358_v58  ;;  %v1347_v27 = vadd.f32 %v1323_v32, %v1275_v30  ;;  %v1346_v14 = vadd.f32 %v1322_v28, %v1274_v54  ;;  %v7274_v32 = vadd.f32 %v7260_v60, %v490_v31  ;;  %v302_v58 = vld [vmem:[%s11380_s0 + $0x20] sm:$0xff] }
  0x9c   :  { %v1345_v18 = vadd.f32 %v1321_v51, %v1273_v52  ;;  %v7271_v38 = vpop.permute.xlu2 %151  ;;  %v7277_v1 = vadd.f32 %v1379_v37, %v7260_v60  ;;  %v7280_v25 = vadd.f32 %v1378_v26, %v7260_v60  ;;  %v7283_v28 = vadd.f32 %v1377_v55, %v7260_v60  ;;  %v6067_v37 = vld [vmem:[%s11380_s0 + $0x480] sm:$0xff]  ;;  %v5878_v52 = vld [vmem:[%s11380_s0 + $0xd8] sm:$0xff] }
  0x9d   :  { %v7290_v30 = vmul.f32 %v7198_v36, %v300_v56  ;;  %v1376_v31 = vmul.f32 %v1352_v2, %v6943_v24  ;;  %v460_v15 = vadd.f32 %v7154_v29, %v375_v39  ;;  %v7298_v26 = vmul.f32 %v7089_v10, %v443_v53  ;;  %v5896_v2 = vld [vmem:[%s11380_s0 + $0x168] sm:$0x3] }
  0x9e   :  { %v7301_v55 = vmul.f32 %v1347_v27, %v7089_v10  ;;  %v7304_v54 = vmul.f32 %v7198_v36, %v301_v0  ;;  %v11402_v56 = vmax.f32 %v7277_v1, 0.0  ;;  %v7313_v29 = vmul.f32 %v1346_v14, %v7089_v10 }
  0x9f   :  { %v7285_v51 = vpop.permute.xlu1 %479  ;;  %v7317_v53 = vmul.f32 %v1345_v18, %v7089_v10  ;;  %v7320_v27 = vadd.f32 %v1376_v31, %v7260_v60  ;;  %v1248_v0 = vmul.f32 %v6067_v37, %v7198_v36  ;;  %v7334_v39 = vmul.f32 %v5878_v52, %v7170_v19 }
  0xa0   :  { %11517 = vst [vmem:[#allocation25_spill] sm:$0xff] %v7304_v54  ;;  %v498_v14 = vmul.f32 %v7285_v51, %v7156_v63  ;;  %v1386_v18 = vmul.f32 %v7172_v6, %v7285_v51  ;;  %v1320_v31 = vmul.f32 %v6695_v3, %v7170_v19  ;;  %v1385_v37 = vmul.f32 %v7174_v12, %v7285_v51  ;;  %v6113_v6 = vld [vmem:[%s11380_s0 + $0x5f0] sm:$0x3]  ;;  %v6112_v3 = vld [vmem:[%s11380_s0 + $0x5e8] sm:$0x3] }
  0xa1   :  { %11518 = vst [vmem:[#allocation26_spill] sm:$0xff] %v7320_v27  ;;  %v1360_v63 = vadd.f32 %v7207_v48, %v7081_v23  ;;  %v1272_v16 = vadd.f32 %v1248_v0, %v7084_v45  ;;  %v7352_v52 = vpop.permute.xlu0 %131  ;;  %v1387_v12 = vmul.f32 %v7176_v5, %v7285_v51  ;;  %v11520_v17 = vmax.f32 %v7280_v25, 0.0 }
  0xa2   :  { %11519 = vst [vmem:[#allocation27_spill] sm:$0xff] %v7334_v39  ;;  %v7360_v23 = vmul.f32 %v5896_v2, %v7063_v43  ;;  %v7363_v45 = vmul.f32 %v7198_v36, %v302_v58  ;;  %v169_v48 = vsel %vm161_vm0, %v6893_v61, %v7352_v52  ;;  %v11524_v39 = vmax.f32 %v7283_v28, 0.0  ;;  %v6114_v58 = vld [vmem:[%s11380_s0 + $0x5f8] sm:$0x3] }
  0xa3   :  { %1452 = vst [vmem:[#allocation2 + $0xb0] sm:$0xff] %v11402_v56  ;;  %v499_v56 = vmul.f32 %v7285_v51, %v460_v15  ;;  %v1384_v5 = vmul.f32 %v1360_v63, %v7285_v51  ;;  %v1344_v15 = vadd.f32 %v1320_v31, %v1272_v16  ;;  %v244_v2 = vsel %vm7067_vm2, 0.0, %v169_v48 }
  0xa4   :  { %1451 = vst [vmem:[#allocation2 + $0x90] sm:$0xff] %v11520_v17  ;;  %v7368_v0 = vpop.permute.xlu2 %135  ;;  %v1294_v17 = vadd.f32 %v7105_v59, %v6938_v20  ;;  %v11525_v61 = vmax.f32 %v7320_v27, 0.0  ;;  %v1293_v16 = vadd.f32 %v7115_v57, %v6941_v21  ;;  %v1341_v31 = vmul.f32 %v6112_v3, %v7063_v43 }
  0xa5   :  { %11521 = vst [vmem:[#allocation28_spill] sm:$0xff] %v7360_v23  ;;  %v283_v20 = vmul.f32 %v6826_v35, %v244_v2 }
  0xa6   :  { %11522 = vst [vmem:[#allocation29_spill] sm:$0xff] %v7363_v45  ;;  %v303_v45 = vld [vmem:[%s11380_s0 + $0x28] sm:$0xff] }
  0xa7   :  { %11523 = vst [vmem:[#allocation30_spill] sm:$0xff] %v7368_v0  ;;  %v7380_v23 = vpop.permute.xlu1 %518  ;;  %v7407_v54 = vmul.f32 %v7198_v36, %v303_v45  ;;  %v6081_v45 = vld [vmem:[%s11380_s0 + $0x4f0] sm:$0xff] }
  0xa8   :  { %1450 = vst [vmem:[#allocation2 + $0x170] sm:$0xff] %v11524_v39  ;;  %v1342_v39 = vmul.f32 %v6113_v6, %v7063_v43  ;;  %v537_v59 = vadd.f32 %v7380_v23, %v498_v14  ;;  %v1410_v63 = vadd.f32 %v1386_v18, %v7380_v23  ;;  %v1409_v48 = vadd.f32 %v1385_v37, %v7380_v23  ;;  %v5879_v6 = vld [vmem:[%s11380_s0 + $0xe0] sm:$0xff] }
  0xa9   :  { %1449 = vst [vmem:[#allocation2 + $0xc0] sm:$0xff] %v11525_v61  ;;  %v1411_v21 = vadd.f32 %v1387_v12, %v7380_v23  ;;  %v538_v57 = vadd.f32 %v7380_v23, %v499_v56  ;;  %v1408_v3 = vadd.f32 %v1384_v5, %v7380_v23  ;;  %v1343_v14 = vmul.f32 %v6114_v58, %v7063_v43  ;;  %v11526_v5 = vld [vmem:[#allocation19_spill] sm:$0xff] }
  0xaa   :  { %v367_v18 = vadd.f32 %v7134_v7, %v283_v20  ;;  %v561_v37 = vmax.f32 %v537_v59, 0.0  ;;  %v1434_v2 = vmax.f32 %v1410_v63, 0.0  ;;  %v1433_v61 = vmax.f32 %v1409_v48, 0.0  ;;  %v6057_v63 = vld [vmem:[%s11380_s0 + $0x430] sm:$0xff]  ;;  %v7421_v48 = vpop.permute.xlu0 %115 }
  0xab   :  { %v1435_v27 = vmax.f32 %v1411_v21, 0.0  ;;  %v7410_v12 = vmul.f32 %v5879_v6, %v7170_v19  ;;  %v1295_v56 = vadd.f32 %v7118_v8, %v6959_v33  ;;  %v562_v7 = vmax.f32 %v538_v57, 0.0 }
  0xac   :  { %v452_v58 = vadd.f32 %v11526_v5, %v367_v18  ;;  %585 = vst [vmem:[#allocation2] sm:$0x3] %v561_v37  ;;  %v1366_v20 = vadd.f32 %v1342_v39, %v1294_v17  ;;  %v1365_v59 = vadd.f32 %v1341_v31, %v1293_v16  ;;  %v1432_v6 = vmax.f32 %v1408_v3, 0.0  ;;  %v11527_v39 = vld [vmem:[#allocation7_spill] sm:$0xff]  ;;  %v7431_v31 = vpop.permute.xlu2 %119 }
  0xad   :  { %1459 = vst [vmem:[#allocation2 + $0x88] sm:$0x3] %v1434_v2  ;;  %v1368_v33 = vmul.f32 %v1344_v15, %v7089_v10  ;;  %v7425_v8 = vmul.f32 %v5880_v42, %v7170_v19  ;;  %v1367_v21 = vadd.f32 %v1343_v14, %v1295_v56  ;;  %v162_v16 = vsel %vm161_vm0, %v11527_v39, %v7421_v48  ;;  %v11532_v56 = vld [vmem:[#allocation8_spill] sm:$0xff] }
  0xae   :  { %v491_v17 = vmul.f32 %v6943_v24, %v452_v58  ;;  %1458 = vst [vmem:[#allocation2 + $0x268] sm:$0x3] %v1433_v61  ;;  %v11528_v57 = vand.u32 127, %v7244_v4  ;;  %v11529_v18 = vmov 0  ;;  %v1390_v15 = vmul.f32 %v1366_v20, %v7285_v51 }
  0xaf   :  { %v1389_v42 = vmul.f32 %v1365_v59, %v7285_v51  ;;  %v236_v3 = vsel %vm7067_vm2, 0.0, %v162_v16  ;;  %v7443_v14 = vpop.permute.xlu1 %508  ;;  %1460 = vst [vmem:[#allocation2 + $0x110] sm:$0x3] %v1435_v27  ;;  %v1391_v37 = vmul.f32 %v1367_v21, %v7285_v51  ;;  %v1213_v2 = vmul.f32 %v6057_v63, %v6826_v35  ;;  %v5897_v27 = vld [vmem:[%s11380_s0 + $0x170] sm:$0x3] }
  0xb0   :  { %vm7435_vm4 = vcmp.eq.s32.totalorder %v11528_v57, 0  ;;  %v1262_v4 = vmul.f32 %v6081_v45, %v7032_v9  ;;  %v7449_v61 = vadd.f32 %v7260_v60, %v491_v17  ;;  %v275_v5 = vmul.f32 %v11532_v56, %v236_v3  ;;  %586 = vst [vmem:[#allocation2 + $0x248] sm:$0x3] %v562_v7  ;;  %v5898_v59 = vld [vmem:[%s11380_s0 + $0x178] sm:$0x3]  ;;  %v312_v3 = vld [vmem:[%s11380_s0 + $0x70] sm:$0xff] }
  0xb1   :  { %v11530_v18 = vsel %vm7435_vm4, 4294967295, %v11529_v18  ;;  %v521_v58 = vadd.f32 %v7443_v14, %v7298_v26  ;;  %v7456_v20 = vadd.f32 %v7301_v55, %v7443_v14  ;;  %v7466_v63 = vadd.f32 %v7313_v29, %v7443_v14  ;;  %1457 = vst [vmem:[#allocation2 + $0x260] sm:$0x3] %v1432_v6  ;;  %v6105_v29 = vld [vmem:[%s11380_s0 + $0x5b0] sm:$0xff]  ;;  %v6080_v6 = vld [vmem:[%s11380_s0 + $0x4e8] sm:$0xff]  ;;  %vm8631_vm12 = vmneg %vm7435_vm4 }
  0xb2   :  { %11531 = vst [vmem:[#allocation19_spill] sm:$0xff] %v11530_v18  ;;  %v7470_v7 = vadd.f32 %v7317_v53, %v7443_v14  ;;  %v7473_v26 = vadd.f32 %v1368_v33, %v7443_v14  ;;  %v7476_v55 = vadd.f32 %v1390_v15, %v7380_v23  ;;  %v554_v45 = vmax.f32 %v7449_v61, 0.0  ;;  %v6056_v53 = vld [vmem:[%s11380_s0 + $0x428] sm:$0xff]  ;;  %v7509_v39 = vpop.permute.xlu0 %155 }
  0xb3   :  { %v359_v21 = vadd.f32 %v7263_v11, %v275_v5  ;;  %v545_v17 = vmax.f32 %v521_v58, 0.0  ;;  %v1666_v33 = vld [vmem:[#allocation2] sm:$0x3]  ;;  %v7492_v11 = vmul.f32 %v5897_v27, %v7063_v43  ;;  %v7495_v57 = vmul.f32 %v5898_v59, %v7063_v43  ;;  %v6104_v59 = vld [vmem:[%s11380_s0 + $0x5a8] sm:$0xff] }
  0xb4   :  { %v1413_v15 = vadd.f32 %v1389_v42, %v7380_v23  ;;  %6119 = vmatpush.msk.msra.mxu3 %vm1687_vm3, %v1666_v33  ;;  %v1491_v5 = vld [vmem:[#allocation2 + $0x88] sm:$0x3]  ;;  %v1415_v16 = vadd.f32 %v1391_v37, %v7380_v23  ;;  %v1286_v27 = vadd.f32 %v1262_v4, %v1213_v2  ;;  %v1261_v33 = vmul.f32 %v6080_v6, %v7032_v9  ;;  %v7517_v4 = vpop.permute.xlu2 %159 }
  0xb5   :  { %v444_v61 = vadd.f32 %v7255_v13, %v359_v21  ;;  %1557 = vrot.lane.b32.xlu1 %v1491_v5, %s6598_s28  ;;  %v1490_v42 = vld [vmem:[#allocation2 + $0x268] sm:$0x3]  ;;  %v1334_v13 = vmul.f32 %v6105_v29, %v6847_v44  ;;  %v1212_v21 = vmul.f32 %v6056_v53, %v6826_v35  ;;  %v11533_v5 = vmax.f32 %v7274_v32, 0.0 }
  0xb6   :  { %1555 = vrot.lane.b32.xlu0 %v1490_v42, %s6598_s28  ;;  %v1492_v2 = vld [vmem:[#allocation2 + $0x110] sm:$0x3]  ;;  %v11534_v58 = vand.u32 127, %v7247_v50  ;;  %v11538_v29 = vmax.f32 %v7456_v20, 0.0  ;;  %v1438_v53 = vmax.f32 %v7476_v55, 0.0  ;;  %v7531_v6 = vmul.f32 %v7032_v9, %v312_v3 }
  0xb7   :  { %v483_v37 = vmul.f32 %v7089_v10, %v444_v61  ;;  %1726 = vmatpush.msra.mxu3 %v11533_v5  ;;  %1559 = vrot.lane.b32.xlu2 %v1492_v2, %s6598_s28  ;;  %v1667_v61 = vld [vmem:[#allocation2 + $0x248] sm:$0x3]  ;;  %v150_v42 = vpop.permute.xlu1 %149  ;;  %v11539_v32 = vmax.f32 %v7466_v63, 0.0  ;;  %v1437_v50 = vmax.f32 %v1413_v15, 0.0  ;;  %v1285_v5 = vadd.f32 %v1261_v33, %v1212_v21  ;;  %v313_v15 = vld [vmem:[%s11380_s0 + $0x78] sm:$0xff] }
  0xb8   :  { %vm7523_vm5 = vcmp.eq.s32.totalorder %v11534_v58, 0  ;;  %1444 = vst [vmem:[#allocation2 + $0x1d0] sm:$0xff] %v11538_v29  ;;  %v1358_v58 = vadd.f32 %v1334_v13, %v1286_v27  ;;  %v1333_v43 = vmul.f32 %v6104_v59, %v6847_v44  ;;  %6124 = vmatpush.msk.msra.mxu1 %vm1687_vm3, %v1667_v61  ;;  %v177_v55 = vsel %vm161_vm0, %v7196_v34, %v150_v42  ;;  %v5889_v27 = vld [vmem:[%s11380_s0 + $0x130] sm:$0xff]  ;;  %v6058_v34 = vld [vmem:[%s11380_s0 + $0x438] sm:$0xff] }
  0xb9   :  { %v11536_v46 = vsel %vm7523_vm5, 4294967295, %v11535_v46  ;;  %1443 = vst [vmem:[#allocation2 + $0x2c8] sm:$0xff] %v11539_v32  ;;  %v178_v3 = vsel %vm161_vm0, %v150_v42, %v7271_v38  ;;  %1727 = vmatpush.msra.mxu3 %v545_v17  ;;  %v11540_v2 = vmax.f32 %v7470_v7, 0.0  ;;  %v522_v29 = vadd.f32 %v7443_v14, %v483_v37  ;;  %v5890_v32 = vld [vmem:[%s11380_s0 + $0x138] sm:$0xff]  ;;  %vm8618_vm11 = vmneg %vm7523_vm5 }
  0xba   :  { %11537 = vst [vmem:[#allocation7_spill] sm:$0xff] %v11536_v46  ;;  %v253_v17 = vsel %vm7435_vm4, 0.0, %v177_v55  ;;  %v254_v59 = vsel %vm7523_vm5, 0.0, %v178_v3  ;;  %v11541_v13 = vmax.f32 %v7473_v26, 0.0  ;;  %v7561_v21 = vadd.s32 512, %v6839_v40  ;;  %1755 = vmatpush.msra.mxu1 %v554_v45  ;;  %v6082_v3 = vld [vmem:[%s11380_s0 + $0x4f8] sm:$0xff] }
  0xbb   :  { %1442 = vst [vmem:[#allocation2 + $0x150] sm:$0xff] %v11540_v2  ;;  %v1439_v33 = vmax.f32 %v1415_v16, 0.0  ;;  %v292_v37 = vmul.f32 %v6841_v41, %v253_v17  ;;  %v293_v61 = vmul.f32 %v6841_v41, %v254_v59  ;;  %v546_v42 = vmax.f32 %v522_v29, 0.0  ;;  %v11542_v29 = vld [vmem:[#allocation12_spill] sm:$0xff]  ;;  %v11543_v59 = vld [vmem:[#allocation13_spill] sm:$0xff] }
  0xbc   :  { %1441 = vst [vmem:[#allocation2 + $0x1e0] sm:$0xff] %v11541_v13  ;;  %v1382_v55 = vmul.f32 %v1358_v58, %v6943_v24  ;;  %v7573_v16 = vmul.f32 %v7032_v9, %v313_v15  ;;  %v7576_v2 = vmul.f32 %v5889_v27, %v6847_v44  ;;  %v1357_v45 = vadd.f32 %v1333_v43, %v1285_v5  ;;  %v7590_v27 = vpop.permute.xlu0 %139 }
  0xbd   :  { %1463 = vst [vmem:[#allocation2 + $0x148] sm:$0x3] %v1438_v53  ;;  %v1214_v53 = vmul.f32 %v6058_v34, %v6826_v35  ;;  %v376_v17 = vadd.f32 %v11542_v29, %v292_v37  ;;  %v377_v13 = vadd.f32 %v11543_v59, %v293_v61  ;;  %1756 = vmatpush.msra.mxu1 %v546_v42  ;;  %v11544_v15 = vmax.f32 %v7280_v25, 0.0 }
  0xbe   :  { %1462 = vst [vmem:[#allocation2 + $0x198] sm:$0x3] %v1437_v50  ;;  %v7582_v58 = vadd.f32 %v1382_v55, %v7260_v60  ;;  %v6106_v50 = vld [vmem:[%s11380_s0 + $0x5b8] sm:$0xff]  ;;  %v216_v43 = vadd.s32 640, %v6839_v40  ;;  %v7594_v5 = vmul.f32 %v5890_v32, %v6847_v44  ;;  %v1381_v34 = vmul.f32 %v1357_v45, %v6943_v24  ;;  %v7603_v55 = vpop.permute.xlu2 %143 }
  0xbf   :  { %1541 = vrot.lane.b32.xlu1 %v11544_v15, %s6598_s28  ;;  %1464 = vst [vmem:[#allocation2 + $0x118] sm:$0x3] %v1439_v33  ;;  %v1263_v37 = vmul.f32 %v6082_v3, %v7032_v9  ;;  %v461_v61 = vadd.f32 %v7159_v22, %v376_v17  ;;  %v462_v42 = vadd.f32 %v7162_v49, %v377_v13  ;;  %v11545_v25 = vmax.f32 %v7283_v28, 0.0  ;;  %v134_v45 = vpop.permute.xlu1 %133  ;;  %v304_v13 = vld [vmem:[%s11380_s0 + $0x30] sm:$0xff] }
  0xc0   :  { %v223_v29 = vand.u32 127, %v7561_v21  ;;  %v11408_v33 = vmax.f32 %v7582_v58, 0.0  ;;  %v11546_v32 = vmax.f32 %v7277_v1, 0.0  ;;  %v217_v3 = vadd.s32 768, %v6839_v40 }
  0xc1   :  { %1539 = vrot.lane.b32.xlu0 %v11545_v25, %s6598_s28  ;;  %v7612_v22 = vadd.f32 %v1381_v34, %v7260_v60  ;;  %v1287_v49 = vadd.f32 %v1263_v37, %v1214_v53  ;;  %v1335_v28 = vmul.f32 %v6106_v50, %v6847_v44  ;;  %v500_v17 = vmul.f32 %v7285_v51, %v461_v61  ;;  %v305_v25 = vld [vmem:[%s11380_s0 + $0x38] sm:$0xff] }
  0xc2   :  { %1543 = vrot.lane.b32.xlu2 %v11546_v32, %s6598_s28  ;;  %v501_v59 = vmul.f32 %v7285_v51, %v462_v42  ;;  %v170_v21 = vsel %vm161_vm0, %v7352_v52, %v134_v45  ;;  %v171_v1 = vsel %vm161_vm0, %v134_v45, %v7368_v0  ;;  %1455 = vst [vmem:[#allocation2 + $0x1d8] sm:$0xff] %v11408_v33  ;;  %v224_v15 = vand.u32 127, %v216_v43  ;;  %v11565_v0 = vld [vmem:[#allocation25_spill] sm:$0xff]  ;;  %v11566_v44 = vld [vmem:[#allocation26_spill] sm:$0xff] }
  0xc3   :  { %v245_v53 = vsel %vm7435_vm4, 0.0, %v170_v21  ;;  %v246_v50 = vsel %vm7523_vm5, 0.0, %v171_v1  ;;  %v218_v34 = vadd.s32 896, %v6839_v40  ;;  %v539_v52 = vadd.f32 %v7380_v23, %v500_v17 }
  0xc4   :  { %v540_v37 = vadd.f32 %v7380_v23, %v501_v59  ;;  %v284_v61 = vmul.f32 %v6826_v35, %v245_v53  ;;  %v285_v42 = vmul.f32 %v6826_v35, %v246_v50  ;;  %v225_v32 = vand.u32 127, %v217_v3  ;;  %v7647_v53 = vld [vmem:[%s11380_s0 + $0xf0] sm:$0xff] }
  0xc5   :  { %v11409_v45 = vmax.f32 %v7612_v22, 0.0  ;;  %v1359_v21 = vadd.f32 %v1335_v28, %v1287_v49  ;;  %v7640_v43 = vmul.f32 %v7198_v36, %v304_v13  ;;  %v563_v1 = vmax.f32 %v539_v52, 0.0  ;;  %11547 = vst [vmem:[#allocation8_spill] sm:$0xff] %v7647_v53  ;;  %v6049_v3 = vld [vmem:[%s11380_s0 + $0x3f0] sm:$0xff]  ;;  %v7673_v52 = vld [vmem:[%s11380_s0 + $0xf8] sm:$0xff] }
  0xc6   :  { %v564_v33 = vmax.f32 %v540_v37, 0.0  ;;  %v368_v17 = vadd.f32 %v7148_v62, %v284_v61  ;;  %v369_v59 = vadd.f32 %v7151_v47, %v285_v42  ;;  %v6073_v49 = vld [vmem:[%s11380_s0 + $0x4b0] sm:$0xff]  ;;  %v11548_v28 = vmax.f32 %v7466_v63, 0.0  ;;  %v7658_v62 = vpop.permute.xlu0 %123  ;;  %11551 = vst [vmem:[#allocation12_spill] sm:$0xff] %v7673_v52  ;;  %v11554_v61 = vld [vmem:[#allocation22_spill] sm:$0xff] }
  0xc7   :  { %vm7660_vm6 = vcmp.eq.s32.totalorder %v223_v29, 0  ;;  %1454 = vst [vmem:[#allocation2 + $0xd8] sm:$0xff] %v11409_v45  ;;  %v1383_v13 = vmul.f32 %v1359_v21, %v6943_v24  ;;  %v7668_v50 = vmul.f32 %v7198_v36, %v305_v25  ;;  %v7677_v63 = vmul.f32 %v7647_v53, %v7170_v19  ;;  %v11553_v29 = vld [vmem:[#allocation21_spill] sm:$0xff]  ;;  %v7684_v25 = vpop.permute.xlu2 %127 }
  0xc8   :  { %1525 = vrot.lane.b32.xlu1 %v11548_v28, %s6598_s28  ;;  %587 = vst [vmem:[#allocation2 + $0xe8] sm:$0x3] %v563_v1  ;;  %v453_v37 = vadd.f32 %v11553_v29, %v368_v17  ;;  %v454_v42 = vadd.f32 %v11554_v61, %v369_v59  ;;  %v11555_v21 = vmax.f32 %v7470_v7, 0.0  ;;  %v226_v28 = vand.u32 127, %v218_v34  ;;  %v118_v1 = vpop.permute.xlu1 %117 }
  0xc9   :  { %11552 = vst [vmem:[#allocation13_spill] sm:$0xff] %v7677_v63  ;;  %v7688_v45 = vmul.f32 %v7673_v52, %v7170_v19  ;;  %v11557_v40 = vmax.f32 %v7456_v20, 0.0  ;;  %vm7693_vm7 = vcmp.eq.s32.totalorder %v224_v15, 0  ;;  %v11558_v17 = vmov 0 }
  0xca   :  { %1523 = vrot.lane.b32.xlu0 %v11555_v21, %s6598_s28  ;;  %588 = vst [vmem:[#allocation2 + $0x68] sm:$0x3] %v564_v33  ;;  %v11559_v17 = vsel %vm7693_vm7, 4294967295, %v11558_v17  ;;  %v7698_v7 = vadd.f32 %v1383_v13, %v7260_v60  ;;  %v1205_v59 = vmul.f32 %v6049_v3, %v11532_v56  ;;  %v1254_v34 = vmul.f32 %v6073_v49, %v7198_v36  ;;  %v6097_v3 = vld [vmem:[%s11380_s0 + $0x570] sm:$0xff]  ;;  %v6048_v49 = vld [vmem:[%s11380_s0 + $0x3e8] sm:$0xff] }
  0xcb   :  { %11556 = vst [vmem:[#allocation21_spill] sm:$0xff] %v7688_v45  ;;  %1527 = vrot.lane.b32.xlu2 %v11557_v40, %s6598_s28  ;;  %v492_v29 = vmul.f32 %v6943_v24, %v453_v37  ;;  %v493_v33 = vmul.f32 %v6943_v24, %v454_v42  ;;  %v163_v20 = vsel %vm161_vm0, %v7421_v48, %v118_v1  ;;  %vm7708_vm8 = vcmp.eq.s32.totalorder %v225_v32, 0  ;;  %v6072_v13 = vld [vmem:[%s11380_s0 + $0x4a8] sm:$0xff]  ;;  %v7728_v37 = vld [vmem:[%s11383_s4 + $0x20] sm:$0xff] }
  0xcc   :  { %11560 = vst [vmem:[#allocation22_spill] sm:$0xff] %v11559_v17  ;;  %v164_v40 = vsel %vm161_vm0, %v118_v1, %v7431_v31  ;;  %v237_v48 = vsel %vm7435_vm4, 0.0, %v163_v20  ;;  %v11421_v61 = vmax.f32 %v7698_v7, 0.0  ;;  %vm7735_vm10 = vcmp.eq.s32.totalorder %v226_v28, 0  ;;  %6120 = vmatmul.msk.f32.vlgmr.msra.gmra.mxu3 %vm1674_vm9, %v7728_v37  ;;  %6125 = vmatmul.msk.f32.vlgmr.msra.gmra.mxu1 %vm1674_vm9, %v7728_v37  ;;  %v8946_v20 = vld [vmem:[%s11383_s4 + $0x18] sm:$0xff] }
  0xcd   :  { %v238_v32 = vsel %vm7523_vm5, 0.0, %v164_v40  ;;  %v531_v42 = vadd.f32 %v7260_v60, %v492_v29  ;;  %v532_v21 = vadd.f32 %v7260_v60, %v493_v33  ;;  %v276_v1 = vmul.f32 %v11532_v56, %v237_v48  ;;  %v6096_v40 = vld [vmem:[%s11380_s0 + $0x568] sm:$0xff]  ;;  %v6050_v29 = vld [vmem:[%s11380_s0 + $0x3f8] sm:$0xff]  ;;  %vm8930_vm15 = vmneg %vm7735_vm10 }
  0xce   :  { %v277_v18 = vmul.f32 %v11532_v56, %v238_v32  ;;  %1456 = vst [vmem:[#allocation2 + $0x2e8] sm:$0xff] %v11421_v61  ;;  %v1278_v33 = vadd.f32 %v1254_v34, %v1205_v59  ;;  %v1326_v28 = vmul.f32 %v6097_v3, %v7170_v19  ;;  %v1204_v48 = vmul.f32 %v6048_v49, %v11532_v56  ;;  %v1489_v59 = vld [vmem:[#allocation2 + $0x260] sm:$0x3]  ;;  %v154_v34 = vpop.permute.xlu0 %153 }
  0xcf   :  { %v1253_v32 = vmul.f32 %v6072_v13, %v7198_v36  ;;  %v555_v46 = vmax.f32 %v531_v42, 0.0  ;;  %v556_v52 = vmax.f32 %v532_v21, 0.0  ;;  %v360_v53 = vadd.f32 %v7290_v30, %v276_v1  ;;  %v1668_v3 = vld [vmem:[#allocation2 + $0xe8] sm:$0x3] }
  0xd0   :  { %v361_v45 = vadd.f32 %v11565_v0, %v277_v18  ;;  %v11567_v63 = vmax.f32 %v11566_v44, 0.0  ;;  %v7759_v61 = vadd.f32 %v1326_v28, %v1278_v33  ;;  %v7764_v13 = vmul.f32 %v6096_v40, %v7170_v19  ;;  %v11568_v0 = vld [vmem:[#allocation24_spill] sm:$0xff]  ;;  %v11569_v42 = vld [vmem:[#allocation27_spill] sm:$0xff]  ;;  %6129 = vmatpush.msk.msra.mxu2 %vm1687_vm3, %v1668_v3  ;;  %v158_v33 = vpop.permute.xlu1 %157 }
  0xd1   :  { %v7761_v49 = vadd.f32 %v1253_v32, %v1204_v48  ;;  %v7767_v30 = vmul.f32 %v6050_v29, %v11532_v56  ;;  %v445_v18 = vadd.f32 %v11568_v0, %v360_v53  ;;  %v179_v44 = vsel %vm161_vm0, %v7271_v38, %v154_v34  ;;  %v1669_v1 = vld [vmem:[#allocation2 + $0x68] sm:$0x3] }
  0xd2   :  { %1537 = vrot.lane.b32.xlu1 %v11567_v63, %s6598_s28  ;;  %v446_v21 = vadd.f32 %v11569_v42, %v361_v45  ;;  %1553 = vrot.lane.b32.xlu0 %v1489_v59, %s6598_s28  ;;  %v122_v63 = vpop.permute.xlu2 %121  ;;  %v11570_v40 = vmax.f32 %v7473_v26, 0.0  ;;  %v180_v29 = vsel %vm161_vm0, %v154_v34, %v7509_v39  ;;  %v255_v53 = vsel %vm7660_vm6, 0.0, %v179_v44  ;;  %v11571_v42 = vld [vmem:[#allocation14_spill] sm:$0xff] }
  0xd3   :  { %v165_v45 = vsel %vm161_vm0, %v7431_v31, %v122_v63  ;;  %v166_v38 = vsel %vm161_vm0, %v122_v63, %v7658_v62  ;;  %v484_v28 = vmul.f32 %v7089_v10, %v445_v18  ;;  %v256_v26 = vsel %vm7693_vm7, 0.0, %v180_v29  ;;  %6134 = vmatpush.msk.msrb.mxu3 %vm1687_vm3, %v1669_v1  ;;  %1784 = vmatpush.msra.mxu2 %v555_v46  ;;  %v7795_v31 = vld [vmem:[%s11383_s4 + $0x28] sm:$0xff] }
  0xd4   :  { %1521 = vrot.lane.b32.xlu2 %v11570_v40, %s6598_s28  ;;  %v485_v48 = vmul.f32 %v7089_v10, %v446_v21  ;;  %v294_v32 = vmul.f32 %v6841_v41, %v255_v53  ;;  %v295_v59 = vmul.f32 %v6841_v41, %v256_v26  ;;  %v239_v34 = vsel %vm7660_vm6, 0.0, %v165_v45  ;;  %v11572_v63 = vld [vmem:[#allocation15_spill] sm:$0xff]  ;;  %6121 = vmatmul.msk.f32.gmra.mxu3 %vm1674_vm9, %v7795_v31 }
  0xd5   :  { %v240_v3 = vsel %vm7693_vm7, 0.0, %v166_v38  ;;  %v181_v0 = vsel %vm161_vm0, %v7509_v39, %v158_v33  ;;  %v523_v18 = vadd.f32 %v7443_v14, %v484_v28  ;;  %v278_v44 = vmul.f32 %v11532_v56, %v239_v34  ;;  %1813 = vmatpush.msrb.mxu3 %v556_v52  ;;  %v11573_v38 = vld [vmem:[#allocation23_spill] sm:$0xff]  ;;  %6126 = vmatmul.msk.f32.gmra.mxu1 %vm1674_vm9, %v7795_v31 }
  0xd6   :  { %v524_v46 = vadd.f32 %v7443_v14, %v485_v48  ;;  %v378_v21 = vadd.f32 %v11571_v42, %v294_v32  ;;  %v379_v1 = vadd.f32 %v11572_v63, %v295_v59  ;;  %v279_v40 = vmul.f32 %v11532_v56, %v240_v3  ;;  %v11574_v48 = vld [vmem:[#allocation29_spill] sm:$0xff]  ;;  %v1495_v52 = vld [vmem:[#allocation2 + $0x148] sm:$0x3] }
  0xd7   :  { %v182_v29 = vsel %vm161_vm0, %v158_v33, %v7517_v4  ;;  %v257_v53 = vsel %vm7708_vm8, 0.0, %v181_v0  ;;  %v547_v39 = vmax.f32 %v523_v18, 0.0  ;;  %v362_v26 = vadd.f32 %v11574_v48, %v278_v44  ;;  %v11575_v32 = vld [vmem:[#allocation28_spill] sm:$0xff]  ;;  %v1494_v3 = vld [vmem:[#allocation2 + $0x198] sm:$0x3] }
  0xd8   :  { %v548_v45 = vmax.f32 %v524_v46, 0.0  ;;  %v463_v28 = vadd.f32 %v11573_v38, %v378_v21  ;;  %v464_v59 = vadd.f32 %v11575_v32, %v379_v1  ;;  %v363_v4 = vadd.f32 %v7407_v54, %v279_v40  ;;  %v1496_v42 = vld [vmem:[#allocation2 + $0x118] sm:$0x3]  ;;  %v142_v1 = vpop.permute.xlu1 %141 }
  0xd9   :  { %v258_v33 = vsel %vm7735_vm10, 0.0, %v182_v29  ;;  %v296_v34 = vmul.f32 %v6841_v41, %v257_v53  ;;  %v447_v18 = vadd.f32 %v7410_v12, %v362_v26  ;;  %1785 = vmatpush.msra.mxu2 %v547_v39  ;;  %v11576_v44 = vld [vmem:[#allocation18_spill] sm:$0xff]  ;;  %v11577_v29 = vld [vmem:[#allocation20_spill] sm:$0xff]  ;;  %v174_v38 = vsel %vm161_vm0, %v7590_v27, %v142_v1 }
  0xda   :  { %1565 = vrot.lane.b32.xlu1 %v1495_v52, %s6598_s28  ;;  %v502_v0 = vmul.f32 %v7285_v51, %v463_v28  ;;  %v297_v46 = vmul.f32 %v6841_v41, %v258_v33  ;;  %1563 = vrot.lane.b32.xlu0 %v1494_v3, %s6598_s28  ;;  %v503_v54 = vmul.f32 %v7285_v51, %v464_v59  ;;  %v7842_v39 = vld [vmem:[%s11383_s4 + $0x30] sm:$0xff]  ;;  %v249_v59 = vsel %vm7708_vm8, 0.0, %v174_v38 }
  0xdb   :  { %v448_v21 = vadd.f32 %v7425_v8, %v363_v4  ;;  %v380_v63 = vadd.f32 %v11576_v44, %v296_v34  ;;  %1814 = vmatpush.msrb.mxu3 %v548_v45  ;;  %v486_v12 = vmul.f32 %v7089_v10, %v447_v18  ;;  %6130 = vmatmul.msk.f32.vlgmr.msra.gmra.mxu2 %vm1674_vm9, %v7728_v37  ;;  %v6074_v18 = vld [vmem:[%s11380_s0 + $0x4b8] sm:$0xff] }
  0xdc   :  { %1567 = vrot.lane.b32.xlu2 %v1496_v42, %s6598_s28  ;;  %v541_v40 = vadd.f32 %v7380_v23, %v502_v0  ;;  %v381_v53 = vadd.f32 %v11577_v29, %v297_v46  ;;  %v542_v8 = vadd.f32 %v7380_v23, %v503_v54  ;;  %v175_v48 = vsel %vm161_vm0, %v142_v1, %v7603_v55 }
  0xdd   :  { %v487_v45 = vmul.f32 %v7089_v10, %v448_v21  ;;  %v465_v28 = vadd.f32 %v7492_v11, %v380_v63  ;;  %v7852_v52 = vadd.f32 %v7443_v14, %v486_v12  ;;  %v250_v11 = vsel %vm7735_vm10, 0.0, %v175_v48  ;;  %6122 = vmatmul.msk.f32.gmra.mxu3 %vm1674_vm9, %v7842_v39  ;;  %6127 = vmatmul.msk.f32.gmra.mxu1 %vm1674_vm9, %v7842_v39 }
  0xde   :  { %v565_v26 = vmax.f32 %v541_v40, 0.0  ;;  %v466_v32 = vadd.f32 %v7495_v57, %v381_v53  ;;  %v566_v4 = vmax.f32 %v542_v8, 0.0  ;;  %v288_v3 = vmul.f32 %v6826_v35, %v249_v59  ;;  %v311_v59 = vld [vmem:[%s11380_s0 + $0x68] sm:$0xff] }
  0xdf   :  { %v7858_v33 = vadd.f32 %v7443_v14, %v487_v45  ;;  %v504_v34 = vmul.f32 %v7285_v51, %v465_v28  ;;  %v549_v55 = vmax.f32 %v7852_v52, 0.0  ;;  %v289_v0 = vmul.f32 %v6826_v35, %v250_v11  ;;  %v7915_v28 = vld [vmem:[%s11383_s4 + $0x38] sm:$0xff] }
  0xe0   :  { %589 = vst [vmem:[#allocation2 + $0x228] sm:$0x3] %v565_v26  ;;  %v505_v57 = vmul.f32 %v7285_v51, %v466_v32  ;;  %v11578_v54 = vmax.f32 %v7582_v58, 0.0  ;;  %v1374_v21 = vmul.f32 %v7759_v61, %v7089_v10  ;;  %v1349_v44 = vadd.f32 %v7764_v13, %v7761_v49  ;;  %v126_v53 = vpop.permute.xlu1 %125  ;;  %v5926_v52 = vld [vmem:[%s11380_s0 + $0x198] sm:$0xff] }
  0xe1   :  { %590 = vst [vmem:[#allocation2 + $0xa8] sm:$0x3] %v566_v4  ;;  %v550_v46 = vmax.f32 %v7858_v33, 0.0  ;;  %v543_v42 = vadd.f32 %v7380_v23, %v504_v34  ;;  %v372_v1 = vadd.f32 %v7531_v6, %v288_v3  ;;  %v373_v40 = vadd.f32 %v7573_v16, %v289_v0  ;;  %v5887_v0 = vld [vmem:[%s11380_s0 + $0x120] sm:$0xff] }
  0xe2   :  { %1549 = vrot.lane.b32.xlu1 %v11578_v54, %s6598_s28  ;;  %v544_v63 = vadd.f32 %v7380_v23, %v505_v57  ;;  %v11579_v12 = vmax.f32 %v7612_v22, 0.0  ;;  %v11580_v58 = vmax.f32 %v7698_v7, 0.0  ;;  %v1398_v61 = vadd.f32 %v1374_v21, %v7443_v14  ;;  %v6098_v7 = vld [vmem:[%s11380_s0 + $0x578] sm:$0xff] }
  0xe3   :  { %v567_v29 = vmax.f32 %v543_v42, 0.0  ;;  %v1373_v49 = vmul.f32 %v1349_v44, %v7089_v10  ;;  %v1255_v13 = vmul.f32 %v6074_v18, %v7198_v36  ;;  %v457_v6 = vadd.f32 %v7576_v2, %v372_v1  ;;  %6131 = vmatmul.msk.f32.gmra.mxu2 %vm1674_vm9, %v7795_v31  ;;  %v5888_v44 = vld [vmem:[%s11380_s0 + $0x128] sm:$0xff] }
  0xe4   :  { %1547 = vrot.lane.b32.xlu0 %v11579_v12, %s6598_s28  ;;  %1551 = vrot.lane.b32.xlu2 %v11580_v58, %s6598_s28  ;;  %v568_v38 = vmax.f32 %v544_v63, 0.0  ;;  %v458_v16 = vadd.f32 %v7594_v5, %v373_v40  ;;  %v167_v22 = vsel %vm161_vm0, %v7658_v62, %v126_v53  ;;  %v168_v8 = vsel %vm161_vm0, %v126_v53, %v7684_v25  ;;  %v310_v62 = vld [vmem:[%s11380_s0 + $0x60] sm:$0xff]  ;;  %v11581_v53 = vld [vmem:[#allocation13_spill] sm:$0xff] }
  0xe5   :  { %591 = vst [vmem:[#allocation2 + $0x20] sm:$0x3] %v567_v29  ;;  %v241_v45 = vsel %vm7708_vm8, 0.0, %v167_v22  ;;  %v1422_v2 = vmax.f32 %v1398_v61, 0.0  ;;  %v1397_v5 = vadd.f32 %v1373_v49, %v7443_v14  ;;  %v496_v48 = vmul.f32 %v6943_v24, %v457_v6  ;;  %6123 = vmatmul.msk.f32.gmra.mxu3 %vm1674_vm9, %v7915_v28  ;;  %v6055_v63 = vld [vmem:[%s11380_s0 + $0x420] sm:$0xff]  ;;  %6128 = vmatmul.msk.f32.gmra.mxu1 %vm1674_vm9, %v7915_v28 }
  0xe6   :  { %592 = vst [vmem:[#allocation2 + $0x1b0] sm:$0x3] %v568_v38  ;;  %v497_v25 = vmul.f32 %v6943_v24, %v458_v16  ;;  %v242_v26 = vsel %vm7735_vm10, 0.0, %v168_v8  ;;  %v280_v32 = vmul.f32 %v11532_v56, %v241_v45  ;;  %v1279_v11 = vadd.f32 %v1255_v13, %v7767_v30  ;;  %v6079_v12 = vld [vmem:[%s11380_s0 + $0x4e0] sm:$0xff]  ;;  %v11583_v13 = vld [vmem:[#allocation21_spill] sm:$0xff] }
  0xe7   :  { %v281_v4 = vmul.f32 %v11532_v56, %v242_v26  ;;  %1447 = vst [vmem:[#allocation2 + $0x160] sm:$0xff] %v1422_v2  ;;  %v1421_v34 = vmax.f32 %v1397_v5, 0.0  ;;  %v1327_v57 = vmul.f32 %v6098_v7, %v7170_v19  ;;  %v1670_v3 = vld [vmem:[#allocation2 + $0x228] sm:$0x3]  ;;  %v535_v18 = vadd.f32 %v7260_v60, %v496_v48  ;;  %v11582_v49 = vld [vmem:[#allocation10_spill] sm:$0xff] }
  0xe8   :  { %v536_v42 = vadd.f32 %v7260_v60, %v497_v25  ;;  %v364_v54 = vadd.f32 %v7640_v43, %v280_v32  ;;  %6139 = vmatpush.msk.msra.mxu0 %vm1687_vm3, %v1670_v3  ;;  %v1671_v21 = vld [vmem:[#allocation2 + $0xa8] sm:$0x3]  ;;  %v346_v30 = vmul.f32 %v7032_v9, %v310_v62  ;;  %v347_v43 = vmul.f32 %v7032_v9, %v311_v59  ;;  %v138_v16 = vpop.permute.xlu1 %137  ;;  %v6063_v8 = vld [vmem:[%s11380_s0 + $0x460] sm:$0x3] }
  0xe9   :  { %v365_v1 = vadd.f32 %v7668_v50, %v281_v4  ;;  %1446 = vst [vmem:[#allocation2 + $0x230] sm:$0xff] %v1421_v34  ;;  %v1351_v40 = vadd.f32 %v1327_v57, %v1279_v11  ;;  %6144 = vmatpush.msk.msrb.mxu1 %vm1687_vm3, %v1671_v21  ;;  %v559_v29 = vmax.f32 %v535_v18, 0.0  ;;  %v431_v50 = vmul.f32 %v5887_v0, %v11582_v49  ;;  %v11584_v5 = vld [vmem:[#allocation30_spill] sm:$0xff] }
  0xea   :  { %1533 = vrot.lane.b32.xlu1 %v1422_v2, %s6598_s28  ;;  %v560_v58 = vmax.f32 %v536_v42, 0.0  ;;  %v449_v61 = vadd.f32 %v11581_v53, %v364_v54  ;;  %v432_v22 = vmul.f32 %v5888_v44, %v11582_v49  ;;  %v1211_v7 = vmul.f32 %v6055_v63, %v6826_v35  ;;  %v6103_v26 = vld [vmem:[%s11380_s0 + $0x5a0] sm:$0xff] }
  0xeb   :  { %v450_v38 = vadd.f32 %v11583_v13, %v365_v1  ;;  %v1375_v6 = vmul.f32 %v1351_v40, %v7089_v10  ;;  %v172_v62 = vsel %vm161_vm0, %v11584_v5, %v138_v16  ;;  %v173_v48 = vsel %vm161_vm0, %v138_v16, %v7590_v27  ;;  %v6087_v32 = vld [vmem:[%s11380_s0 + $0x520] sm:$0x3]  ;;  %6132 = vmatmul.msk.f32.gmra.mxu2 %vm1674_vm9, %v7842_v39 }
  0xec   :  { %1531 = vrot.lane.b32.xlu0 %v1421_v34, %s6598_s28  ;;  %v488_v45 = vmul.f32 %v7089_v10, %v449_v61  ;;  %v1672_v2 = vld [vmem:[#allocation2 + $0x20] sm:$0x3]  ;;  %v1260_v25 = vmul.f32 %v6079_v12, %v7032_v9  ;;  %v247_v27 = vsel %vm7660_vm6, 0.0, %v172_v62  ;;  %v248_v11 = vsel %vm7693_vm7, 0.0, %v173_v48  ;;  %v5941_v48 = vld [vmem:[%s11380_s0 + $0x210] sm:$0x3] }
  0xed   :  { %v489_v59 = vmul.f32 %v7089_v10, %v450_v38  ;;  %v1399_v4 = vadd.f32 %v1375_v6, %v7443_v14  ;;  %6149 = vmatpush.msk.msrb.mxu2 %vm1687_vm3, %v1672_v2  ;;  %v1673_v34 = vld [vmem:[#allocation2 + $0x1b0] sm:$0x3]  ;;  %v286_v3 = vmul.f32 %v6826_v35, %v247_v27  ;;  %v287_v0 = vmul.f32 %v6826_v35, %v248_v11  ;;  %v6111_v42 = vld [vmem:[%s11380_s0 + $0x5e0] sm:$0x3]  ;;  %v5942_v27 = vld [vmem:[%s11380_s0 + $0x218] sm:$0x3] }
  0xee   :  { %v527_v57 = vadd.f32 %v7443_v14, %v488_v45  ;;  %6154 = vmatpush.msk.msra.mxu3 %vm1687_vm3, %v1673_v34  ;;  %v1284_v18 = vadd.f32 %v1260_v25, %v1211_v7  ;;  %v6047_v54 = vld [vmem:[%s11380_s0 + $0x3e0] sm:$0xff]  ;;  %v1332_v63 = vmul.f32 %v6103_v26, %v11582_v49  ;;  %v1219_v1 = vmul.f32 %v6063_v8, %v6841_v41  ;;  %v5965_v25 = vld [vmem:[%s11380_s0 + $0x2d0] sm:$0x3]  ;;  %v5966_v11 = vld [vmem:[%s11380_s0 + $0x2d8] sm:$0x3] }
  0xef   :  { %v528_v21 = vadd.f32 %v7443_v14, %v489_v59  ;;  %v1423_v44 = vmax.f32 %v1399_v4, 0.0  ;;  %v6071_v40 = vld [vmem:[%s11380_s0 + $0x4a0] sm:$0xff]  ;;  %1900 = vmatpush.msrb.mxu2 %v559_v29  ;;  %6135 = vmatmul.msk.f32.vlgmr.msrb.gmra.mxu3 %vm1674_vm9, %v7728_v37  ;;  %v370_v53 = vadd.f32 %v346_v30, %v286_v3  ;;  %v371_v61 = vadd.f32 %v347_v43, %v287_v0  ;;  %v5917_v29 = vld [vmem:[%s11380_s0 + $0x150] sm:$0x3] }
  0xf0   :  { %v551_v12 = vmax.f32 %v527_v57, 0.0  ;;  %v11585_v13 = vld [vmem:[#allocation11_spill] sm:$0xff]  ;;  %1929 = vmatpush.msra.mxu3 %v560_v58  ;;  %v1356_v30 = vadd.f32 %v1332_v63, %v1284_v18  ;;  %v11586_v43 = vld [vmem:[#allocation16_spill] sm:$0xff]  ;;  %v1203_v8 = vmul.f32 %v6047_v54, %v11532_v56  ;;  %v5918_v58 = vld [vmem:[%s11380_s0 + $0x158] sm:$0x3]  ;;  %v1252_v62 = vmul.f32 %v6071_v40, %v7198_v36 }
  0xf1   :  { %v1268_v38 = vmul.f32 %v6087_v32, %v11585_v13  ;;  %v6095_v6 = vld [vmem:[%s11380_s0 + $0x560] sm:$0xff]  ;;  %v552_v16 = vmax.f32 %v528_v21, 0.0  ;;  %1448 = vst [vmem:[#allocation2 + $0x2d8] sm:$0xff] %v1423_v44  ;;  %1535 = vrot.lane.b32.xlu2 %v1423_v44, %s6598_s28  ;;  %v1340_v7 = vmul.f32 %v6111_v42, %v11586_v43  ;;  %v455_v45 = vadd.f32 %v431_v50, %v370_v53  ;;  %v5909_v63 = vld [vmem:[%s11380_s0 + $0x110] sm:$0xff] }
  0xf2   :  { %v456_v2 = vadd.f32 %v432_v22, %v371_v61  ;;  %v1380_v26 = vmul.f32 %v1356_v30, %v6943_v24  ;;  %v1324_v32 = vmul.f32 %v6095_v6, %v7170_v19  ;;  %1901 = vmatpush.msrb.mxu2 %v551_v12  ;;  %v635_v50 = vmul.f32 %v5917_v29, %v6841_v41  ;;  %v5933_v61 = vld [vmem:[%s11380_s0 + $0x1d0] sm:$0xff]  ;;  %v5910_v30 = vld [vmem:[%s11380_s0 + $0x118] sm:$0xff] }
  0xf3   :  { %v1292_v5 = vadd.f32 %v1268_v38, %v1219_v1  ;;  %1930 = vmatpush.msra.mxu3 %v552_v16  ;;  %v494_v22 = vmul.f32 %v6943_v24, %v455_v45  ;;  %v1276_v34 = vadd.f32 %v1252_v62, %v1203_v8  ;;  %v684_v3 = vmul.f32 %v5941_v48, %v11585_v13  ;;  %v5934_v45 = vld [vmem:[%s11380_s0 + $0x1d8] sm:$0xff]  ;;  %v8067_v48 = vld [vmem:[%s11380_s0 + $0x290] sm:$0xff] }
  0xf4   :  { %v495_v59 = vmul.f32 %v6943_v24, %v456_v2  ;;  %v1404_v57 = vadd.f32 %v1380_v26, %v7260_v60  ;;  %v757_v0 = vmul.f32 %v5965_v25, %v11586_v43  ;;  %v636_v18 = vmul.f32 %v5918_v58, %v6841_v41  ;;  %6133 = vmatmul.msk.f32.gmra.mxu2 %vm1674_vm9, %v7915_v28  ;;  %v5901_v25 = vld [vmem:[%s11380_s0 + $0xd0] sm:$0xff] }
  0xf5   :  { %v1364_v4 = vadd.f32 %v1340_v7, %v1292_v5  ;;  %v533_v42 = vadd.f32 %v7260_v60, %v494_v22  ;;  %v1348_v44 = vadd.f32 %v1324_v32, %v1276_v34  ;;  %v708_v40 = vadd.f32 %v684_v3, %v635_v50  ;;  %v1467_v3 = vld [vmem:[%s11384_s5 + $0x10] sm:$0xff] }
  0xf6   :  { %v534_v54 = vadd.f32 %v7260_v60, %v495_v59  ;;  %v1428_v1 = vmax.f32 %v1404_v57, 0.0  ;;  %v685_v12 = vmul.f32 %v5942_v27, %v11585_v13  ;;  %v758_v53 = vmul.f32 %v5966_v11, %v11586_v43  ;;  %v5925_v59 = vld [vmem:[%s11380_s0 + $0x190] sm:$0xff]  ;;  %v8087_v11 = vld [vmem:[%s11380_s0 + $0x298] sm:$0xff] }
  0xf7   :  { %v1388_v21 = vmul.f32 %v1364_v4, %v7285_v51  ;;  %6136 = vmatmul.msk.f32.gmra.mxu3 %vm1674_vm9, %v7795_v31  ;;  %v557_v38 = vmax.f32 %v533_v42, 0.0  ;;  %v1372_v16 = vmul.f32 %v1348_v44, %v7089_v10  ;;  %v781_v7 = vadd.f32 %v757_v0, %v708_v40  ;;  %v5902_v57 = vld [vmem:[%s11380_s0 + $0xd8] sm:$0xff] }
  0xf8   :  { %v558_v6 = vmax.f32 %v534_v54, 0.0  ;;  %1453 = vst [vmem:[#allocation2 + $0x200] sm:$0xff] %v1428_v1  ;;  %1545 = vrot.lane.b32.xlu1 %v1428_v1, %s6598_s28  ;;  %v709_v8 = vadd.f32 %v685_v12, %v636_v18  ;;  %v627_v58 = vmul.f32 %v5909_v63, %v6826_v35  ;;  %v676_v62 = vmul.f32 %v5933_v61, %v7032_v9  ;;  %v8111_v54 = vld [vmem:[%s11380_s0 + $0x250] sm:$0xff]  ;;  %v8126_v12 = vld [vmem:[%s11380_s0 + $0x258] sm:$0xff] }
  0xf9   :  { %v1412_v29 = vadd.f32 %v1388_v21, %v7380_v23  ;;  %v1396_v5 = vadd.f32 %v1372_v16, %v7443_v14  ;;  %1842 = vmatpush.msra.mxu0 %v557_v38  ;;  %v805_v26 = vmul.f32 %v781_v7, %v7285_v51  ;;  %v749_v50 = vmul.f32 %v8067_v48, %v11582_v49  ;;  %v5921_v21 = vld [vmem:[%s11380_s0 + $0x170] sm:$0x3] }
  0xfa   :  { %1871 = vmatpush.msrb.mxu1 %v558_v6  ;;  %v782_v32 = vadd.f32 %v758_v53, %v709_v8  ;;  %v628_v22 = vmul.f32 %v5910_v30, %v6826_v35  ;;  %v700_v34 = vadd.f32 %v676_v62, %v627_v58  ;;  %v677_v27 = vmul.f32 %v5934_v45, %v7032_v9  ;;  %v5945_v53 = vld [vmem:[%s11380_s0 + $0x230] sm:$0x3]  ;;  %v5922_v30 = vld [vmem:[%s11380_s0 + $0x178] sm:$0x3] }
  0xfb   :  { %v1436_v2 = vmax.f32 %v1412_v29, 0.0  ;;  %v1420_v4 = vmax.f32 %v1396_v5, 0.0  ;;  %1843 = vmatpush.msra.mxu0 %v549_v55  ;;  %v750_v55 = vmul.f32 %v8087_v11, %v11582_v49  ;;  %v668_v42 = vmul.f32 %v5925_v59, %v7198_v36  ;;  %v5969_v16 = vld [vmem:[%s11380_s0 + $0x2f0] sm:$0x3]  ;;  %v1472_v5 = vld [vmem:[%s11385_s6 + $0x18] sm:$0xff] }
  0xfc   :  { %1872 = vmatpush.msrb.mxu1 %v550_v46  ;;  %6140 = vmatmul.msk.f32.vlgmr.msra.gmra.mxu0 %vm1674_vm9, %v7728_v37  ;;  %v806_v33 = vmul.f32 %v782_v32, %v7285_v51  ;;  %v619_v46 = vmul.f32 %v5901_v25, %v11532_v56  ;;  %v773_v0 = vadd.f32 %v749_v50, %v700_v34  ;;  %v5970_v50 = vld [vmem:[%s11380_s0 + $0x2f8] sm:$0x3] }
  0xfd   :  { %1461 = vst [vmem:[#allocation2 + $0x108] sm:$0x3] %v1436_v2  ;;  %6145 = vmatmul.msk.f32.vlgmr.msrb.gmra.mxu1 %vm1674_vm9, %v7728_v37  ;;  %1529 = vrot.lane.b32.xlu2 %v1420_v4, %s6598_s28  ;;  %v701_v18 = vadd.f32 %v677_v27, %v628_v22  ;;  %v829_v44 = vadd.f32 %v805_v26, %v7380_v23  ;;  %v5946_v2 = vld [vmem:[%s11380_s0 + $0x238] sm:$0x3]  ;;  %v5913_v22 = vld [vmem:[%s11380_s0 + $0x130] sm:$0xff] }
  0xfe   :  { %1445 = vst [vmem:[#allocation2 + $0x140] sm:$0xff] %v1420_v4  ;;  %v741_v63 = vmul.f32 %v8111_v54, %v7170_v19  ;;  %v620_v1 = vmul.f32 %v5902_v57, %v11532_v56  ;;  %v669_v40 = vmul.f32 %v5926_v52, %v7198_v36  ;;  %6150 = vmatmul.msk.f32.vlgmr.msrb.gmra.mxu2 %vm1674_vm9, %v7728_v37  ;;  %v5937_v52 = vld [vmem:[%s11380_s0 + $0x1f0] sm:$0xff] }
  0xff   :  { %6137 = vmatmul.msk.f32.gmra.mxu3 %vm1674_vm9, %v7842_v39  ;;  %v797_v61 = vmul.f32 %v773_v0, %v6943_v24  ;;  %v774_v38 = vadd.f32 %v750_v55, %v701_v18  ;;  %v692_v6 = vadd.f32 %v668_v42, %v619_v46  ;;  %v742_v29 = vmul.f32 %v8126_v12, %v7170_v19  ;;  %v5914_v0 = vld [vmem:[%s11380_s0 + $0x138] sm:$0xff] }
 0x100   :  { %2553 = vperm.xlu1 %6588, %v1467_v3   ;;  %v853_v7 = vmax.f32 %v829_v44, 0.0  ;;  %v830_v8 = vadd.f32 %v806_v33, %v7380_v23  ;;  %v693_v58 = vadd.f32 %v669_v40, %v620_v1  ;;  %v639_v45 = vmul.f32 %v5921_v21, %v6841_v41  ;;  %v5938_v44 = vld [vmem:[%s11380_s0 + $0x1f8] sm:$0xff] }
 0x101   :  { %v821_v62 = vadd.f32 %v797_v61, %v7260_v60  ;;  %v798_v25 = vmul.f32 %v774_v38, %v6943_v24  ;;  %v765_v26 = vadd.f32 %v741_v63, %v692_v6  ;;  %v688_v32 = vmul.f32 %v5945_v53, %v11585_v13  ;;  %v1471_v63 = vld [vmem:[%s11385_s6 + $0x10] sm:$0xff] }
 0x102   :  { %878 = vst [vmem:[#allocation2 + $0x100] sm:$0x3] %v853_v7  ;;  %v854_v4 = vmax.f32 %v830_v8, 0.0  ;;  %v766_v34 = vadd.f32 %v742_v29, %v693_v58  ;;  %v761_v27 = vmul.f32 %v5969_v16, %v11586_v43  ;;  %v640_v57 = vmul.f32 %v5922_v30, %v6841_v41  ;;  %v8188_v38 = vld [vmem:[%s11380_s0 + $0x2b0] sm:$0xff]  ;;  %v8199_v7 = vld [vmem:[%s11380_s0 + $0x2b8] sm:$0xff] }
 0x103   :  { %v845_v33 = vmax.f32 %v821_v62, 0.0  ;;  %v822_v55 = vadd.f32 %v798_v25, %v7260_v60  ;;  %v789_v46 = vmul.f32 %v765_v26, %v7089_v10  ;;  %v712_v3 = vadd.f32 %v688_v32, %v639_v45  ;;  %v5929_v8 = vld [vmem:[%s11380_s0 + $0x1b0] sm:$0xff] }
 0x104   :  { %v1493_v59 = vld [vmem:[#allocation2 + $0x108] sm:$0x3]  ;;  %6141 = vmatmul.msk.f32.gmra.mxu0 %vm1674_vm9, %v7795_v31  ;;  %879 = vst [vmem:[#allocation2 + $0xb8] sm:$0x3] %v854_v4  ;;  %v790_v18 = vmul.f32 %v766_v34, %v7089_v10  ;;  %v689_v42 = vmul.f32 %v5946_v2, %v11585_v13  ;;  %v762_v21 = vmul.f32 %v5970_v50, %v11586_v43  ;;  %v8217_v50 = vld [vmem:[%s11380_s0 + $0x270] sm:$0xff] }
 0x105   :  { %1561 = vrot.lane.b32.xlu0 %v1493_v59, %s6598_s28  ;;  %6146 = vmatmul.msk.f32.gmra.mxu1 %vm1674_vm9, %v7795_v31  ;;  %870 = vst [vmem:[#allocation2 + $0x188] sm:$0xff] %v845_v33  ;;  %v846_v1 = vmax.f32 %v822_v55, 0.0  ;;  %v785_v40 = vadd.f32 %v761_v27, %v712_v3  ;;  %v631_v53 = vmul.f32 %v5913_v22, %v6826_v35  ;;  %v5930_v22 = vld [vmem:[%s11380_s0 + $0x1b8] sm:$0xff]  ;;  %v11587_v4 = vld [vmem:[#allocation8_spill] sm:$0xff] }
 0x106   :  { %2610 = vperm.xlu2 %6589, %v1472_v5   ;;  %v680_v61 = vmul.f32 %v5937_v52, %v7032_v9  ;;  %v713_v6 = vadd.f32 %v689_v42, %v640_v57  ;;  %v753_v29 = vmul.f32 %v8188_v38, %v11582_v49  ;;  %v632_v16 = vmul.f32 %v5914_v0, %v6826_v35  ;;  %v1468_v5 = vld [vmem:[%s11384_s5 + $0x18] sm:$0xff]  ;;  %v1465_v52 = vld [vmem:[%s11384_s5] sm:$0xff]  ;;  %v11588_v42 = vld [vmem:[#allocation12_spill] sm:$0xff] }
 0x107   :  { %6138 = vmatmul.msk.f32.gmra.mxu3 %vm1674_vm9, %v7915_v28  ;;  %v681_v30 = vmul.f32 %v5938_v44, %v7032_v9  ;;  %6151 = vmatmul.msk.f32.gmra.mxu2 %vm1674_vm9, %v7795_v31  ;;  %871 = vst [vmem:[#allocation2 + $0x208] sm:$0xff] %v846_v1  ;;  %v809_v58 = vmul.f32 %v785_v40, %v7285_v51 }
 0x108   :  { %v704_v45 = vadd.f32 %v680_v61, %v631_v53  ;;  %v754_v2 = vmul.f32 %v8199_v7, %v11582_v49  ;;  %2605 = vperm.xlu1 %6588, %v1471_v63   ;;  %v813_v62 = vadd.f32 %v789_v46, %v7443_v14  ;;  %v814_v25 = vadd.f32 %v790_v18, %v7443_v14  ;;  %v8238_v63 = vld [vmem:[%s11380_s0 + $0x278] sm:$0xff]  ;;  %v5915_v61 = vld [vmem:[%s11380_s0 + $0x140] sm:$0x3] }
 0x109   :  { %v786_v26 = vadd.f32 %v762_v21, %v713_v6  ;;  %v705_v32 = vadd.f32 %v681_v30, %v632_v16  ;;  %v623_v34 = vmul.f32 %v11587_v4, %v11532_v56  ;;  %v672_v27 = vmul.f32 %v5929_v8, %v7198_v36  ;;  %v5939_v6 = vld [vmem:[%s11380_s0 + $0x200] sm:$0x3]  ;;  %v5964_v4 = vld [vmem:[%s11380_s0 + $0x2c8] sm:$0x3] }
 0x10a   :  { %v777_v59 = vadd.f32 %v753_v29, %v704_v45  ;;  %v745_v57 = vmul.f32 %v8217_v50, %v7170_v19  ;;  %v837_v33 = vmax.f32 %v813_v62, 0.0  ;;  %v838_v55 = vmax.f32 %v814_v25, 0.0  ;;  %v1469_v29 = vld [vmem:[%s11385_s6] sm:$0xff]  ;;  %v1466_v45 = vld [vmem:[%s11384_s5 + $0x8] sm:$0xff] }
 0x10b   :  { %v810_v46 = vmul.f32 %v786_v26, %v7285_v51  ;;  %v778_v3 = vadd.f32 %v754_v2, %v705_v32  ;;  %v696_v18 = vadd.f32 %v672_v27, %v623_v34  ;;  %v624_v21 = vmul.f32 %v11588_v42, %v11532_v56  ;;  %v5916_v25 = vld [vmem:[%s11380_s0 + $0x148] sm:$0x3]  ;;  %v5907_v34 = vld [vmem:[%s11380_s0 + $0x100] sm:$0xff] }
 0x10c   :  { %v801_v0 = vmul.f32 %v777_v59, %v6943_v24  ;;  %v673_v44 = vmul.f32 %v5930_v22, %v7198_v36  ;;  %6142 = vmatmul.msk.f32.gmra.mxu0 %vm1674_vm9, %v7842_v39  ;;  %862 = vst [vmem:[#allocation2 + $0x238] sm:$0xff] %v837_v33  ;;  %v833_v1 = vadd.f32 %v809_v58, %v7380_v23  ;;  %v5963_v58 = vld [vmem:[%s11380_s0 + $0x2c0] sm:$0x3]  ;;  %v5940_v26 = vld [vmem:[%s11380_s0 + $0x208] sm:$0x3] }
 0x10d   :  { %2558 = vperm.xlu0 %6590, %v1468_v5   ;;  %6147 = vmatmul.msk.f32.gmra.mxu1 %vm1674_vm9, %v7842_v39  ;;  %v802_v40 = vmul.f32 %v778_v3, %v6943_v24  ;;  %v746_v53 = vmul.f32 %v8238_v63, %v7170_v19  ;;  %863 = vst [vmem:[#allocation2 + $0x130] sm:$0xff] %v838_v55  ;;  %v5931_v27 = vld [vmem:[%s11380_s0 + $0x1c0] sm:$0xff]  ;;  %v5932_v3 = vld [vmem:[%s11380_s0 + $0x1c8] sm:$0xff] }
 0x10e   :  { %2543 = vperm.xlu2 %6589, %v1465_v52   ;;  %v825_v16 = vadd.f32 %v801_v0, %v7260_v60  ;;  %v769_v30 = vadd.f32 %v745_v57, %v696_v18  ;;  %v697_v8 = vadd.f32 %v673_v44, %v624_v21  ;;  %v857_v2 = vmax.f32 %v833_v1, 0.0  ;;  %v8301_v44 = vld [vmem:[%s11380_s0 + $0x280] sm:$0xff] }
 0x10f   :  { %6155 = vmatmul.msk.f32.vlgmr.msra.gmra.mxu3 %vm1674_vm9, %v7728_v37  ;;  %v834_v5 = vadd.f32 %v810_v46, %v7380_v23  ;;  %v826_v62 = vadd.f32 %v802_v40, %v7260_v60  ;;  %6152 = vmatmul.msk.f32.gmra.mxu2 %vm1674_vm9, %v7842_v39  ;;  %v633_v37 = vmul.f32 %v5915_v61, %v6841_v41  ;;  %v5908_v46 = vld [vmem:[%s11380_s0 + $0x108] sm:$0xff]  ;;  %v5899_v1 = vld [vmem:[%s11380_s0 + $0xc0] sm:$0xff]  ;;  %v3760_v40 = vld [vmem:[%s11386_s8 + $0x10] sm:$0xff] }
 0x110   :  { %v849_v32 = vmax.f32 %v825_v16, 0.0  ;;  %v770_v22 = vadd.f32 %v746_v53, %v697_v8  ;;  %v682_v59 = vmul.f32 %v5939_v6, %v11585_v13  ;;  %2595 = vperm.xlu1 %6588, %v1469_v29   ;;  %882 = vst [vmem:[#allocation2 + $0x210] sm:$0x3] %v857_v2  ;;  %v793_v33 = vmul.f32 %v769_v30, %v7089_v10  ;;  %v5923_v16 = vld [vmem:[%s11380_s0 + $0x180] sm:$0xff]  ;;  %v8322_v2 = vld [vmem:[%s11380_s0 + $0x288] sm:$0xff] }
 0x111   :  { %v858_v57 = vmax.f32 %v834_v5, 0.0  ;;  %v850_v52 = vmax.f32 %v826_v62, 0.0  ;;  %v755_v55 = vmul.f32 %v5963_v58, %v11586_v43  ;;  %v634_v42 = vmul.f32 %v5916_v25, %v6841_v41  ;;  %v5900_v25 = vld [vmem:[%s11380_s0 + $0xc8] sm:$0xff] }
 0x112   :  { %874 = vst [vmem:[#allocation2 + $0x218] sm:$0xff] %v849_v32  ;;  %v794_v0 = vmul.f32 %v770_v22, %v7089_v10  ;;  %v706_v18 = vadd.f32 %v682_v59, %v633_v37  ;;  %v683_v21 = vmul.f32 %v5940_v26, %v11585_v13  ;;  %v625_v53 = vmul.f32 %v5907_v34, %v6826_v35  ;;  %v3761_v26 = vld [vmem:[%s11386_s8 + $0x18] sm:$0xff]  ;;  %v5924_v34 = vld [vmem:[%s11380_s0 + $0x188] sm:$0xff] }
 0x113   :  { %883 = vst [vmem:[#allocation2 + $0x50] sm:$0x3] %v858_v57  ;;  %v674_v61 = vmul.f32 %v5931_v27, %v7032_v9  ;;  %v747_v6 = vmul.f32 %v8301_v44, %v11582_v49  ;;  %v626_v29 = vmul.f32 %v5908_v46, %v6826_v35  ;;  %v756_v8 = vmul.f32 %v5964_v4, %v11586_v43  ;;  %v8342_v4 = vld [vmem:[%s11380_s0 + $0x240] sm:$0xff] }
 0x114   :  { %875 = vst [vmem:[#allocation2 + $0x250] sm:$0xff] %v850_v52  ;;  %v779_v30 = vadd.f32 %v755_v55, %v706_v18  ;;  %v675_v58 = vmul.f32 %v5932_v3, %v7032_v9  ;;  %6143 = vmatmul.msk.f32.gmra.mxu0 %vm1674_vm9, %v7915_v28  ;;  %v617_v62 = vmul.f32 %v5899_v1, %v11532_v56 }
 0x115   :  { %2548 = vperm.xlu0 %6590, %v1466_v45   ;;  %6148 = vmatmul.msk.f32.gmra.mxu1 %vm1674_vm9, %v7915_v28  ;;  %v698_v5 = vadd.f32 %v674_v61, %v625_v53  ;;  %v748_v45 = vmul.f32 %v8322_v2, %v11582_v49  ;;  %v707_v22 = vadd.f32 %v683_v21, %v634_v42  ;;  %v8376_v61 = vld [vmem:[%s11380_s0 + $0x248] sm:$0xff] }
 0x116   :  { %4813 = vperm.xlu2 %6589, %v3760_v40   ;;  %v803_v32 = vmul.f32 %v779_v30, %v7285_v51  ;;  %v699_v37 = vadd.f32 %v675_v58, %v626_v29  ;;  %v666_v59 = vmul.f32 %v5923_v16, %v7198_v36  ;;  %v8350_v27 = vadd.f32 %v793_v33, %v7443_v14  ;;  %v5943_v33 = vld [vmem:[%s11380_s0 + $0x220] sm:$0x3]  ;;  %v3764_v58 = vld [vmem:[%s11387_s9 + $0x10] sm:$0xff] }
 0x117   :  { %6156 = vmatmul.msk.f32.gmra.mxu3 %vm1674_vm9, %v7795_v31  ;;  %v8353_v57 = vadd.f32 %v794_v0, %v7443_v14  ;;  %v771_v52 = vadd.f32 %v747_v6, %v698_v5  ;;  %v739_v55 = vmul.f32 %v8342_v4, %v7170_v19  ;;  %6153 = vmatmul.msk.f32.gmra.mxu2 %vm1674_vm9, %v7915_v28  ;;  %v5919_v31 = vld [vmem:[%s11380_s0 + $0x160] sm:$0x3]  ;;  %v1470_v0 = vld [vmem:[%s11385_s6 + $0x8] sm:$0xff] }
 0x118   :  { %v780_v46 = vadd.f32 %v756_v8, %v707_v22  ;;  %v772_v3 = vadd.f32 %v748_v45, %v699_v37  ;;  %v690_v18 = vadd.f32 %v666_v59, %v617_v62  ;;  %v618_v42 = vmul.f32 %v5900_v25, %v11532_v56  ;;  %4818 = vperm.xlu1 %6588, %v3761_v26   ;;  %v5967_v6 = vld [vmem:[%s11380_s0 + $0x2e0] sm:$0x3]  ;;  %v5944_v26 = vld [vmem:[%s11380_s0 + $0x228] sm:$0x3] }
 0x119   :  { %v11424_v21 = vmax.f32 %v8350_v27, 0.0  ;;  %v11423_v1 = vmax.f32 %v8353_v57, 0.0  ;;  %v795_v40 = vmul.f32 %v771_v52, %v6943_v24  ;;  %v667_v53 = vmul.f32 %v5924_v34, %v7198_v36  ;;  %v5920_v59 = vld [vmem:[%s11380_s0 + $0x168] sm:$0x3]  ;;  %v8408_v34 = vpop.permute.xlu2 %1559 }
 0x11a   :  { %v804_v29 = vmul.f32 %v780_v46, %v7285_v51  ;;  %v796_v16 = vmul.f32 %v772_v3, %v6943_v24  ;;  %v763_v30 = vadd.f32 %v739_v55, %v690_v18  ;;  %v740_v8 = vmul.f32 %v8376_v61, %v7170_v19  ;;  %v5968_v18 = vld [vmem:[%s11380_s0 + $0x2e8] sm:$0x3] }
 0x11b   :  { %866 = vst [vmem:[#allocation2 + $0x2e0] sm:$0xff] %v11424_v21  ;;  %v827_v5 = vadd.f32 %v803_v32, %v7380_v23  ;;  %v8392_v45 = vadd.f32 %v795_v40, %v7260_v60  ;;  %v691_v62 = vadd.f32 %v667_v53, %v618_v42  ;;  %v686_v25 = vmul.f32 %v5943_v33, %v11585_v13  ;;  %v5911_v42 = vld [vmem:[%s11380_s0 + $0x120] sm:$0xff]  ;;  %v3759_v33 = vld [vmem:[%s11386_s8 + $0x8] sm:$0xff] }
 0x11c   :  { %867 = vst [vmem:[#allocation2 + $0x1a8] sm:$0xff] %v11423_v1  ;;  %v8401_v22 = vadd.f32 %v796_v16, %v7260_v60  ;;  %v637_v37 = vmul.f32 %v5919_v31, %v6841_v41  ;;  %v759_v32 = vmul.f32 %v5967_v6, %v11586_v43  ;;  %v828_v55 = vadd.f32 %v804_v29, %v7380_v23  ;;  %v5935_v31 = vld [vmem:[%s11380_s0 + $0x1e0] sm:$0xff]  ;;  %v5912_v29 = vld [vmem:[%s11380_s0 + $0x128] sm:$0xff] }
 0x11d   :  { %11589 = vst [vmem:[#allocation25_spill] sm:$0xff] %v8392_v45  ;;  %2600 = vperm.xlu0 %6590, %v1470_v0   ;;  %v851_v52 = vmax.f32 %v827_v5, 0.0  ;;  %v11422_v46 = vmax.f32 %v8392_v45, 0.0  ;;  %v764_v3 = vadd.f32 %v740_v8, %v691_v62  ;;  %v787_v40 = vmul.f32 %v763_v30, %v7089_v10  ;;  %v5936_v16 = vld [vmem:[%s11380_s0 + $0x1e8] sm:$0xff]  ;;  %v8441_v62 = vld [vmem:[%s11380_s0 + $0x2a0] sm:$0xff] }
 0x11e   :  { %11590 = vst [vmem:[#allocation26_spill] sm:$0xff] %v8401_v22  ;;  %4865 = vperm.xlu2 %6589, %v3764_v58   ;;  %v11426_v0 = vmax.f32 %v8401_v22, 0.0  ;;  %v710_v53 = vadd.f32 %v686_v25, %v637_v37  ;;  %v687_v6 = vmul.f32 %v5944_v26, %v11585_v13  ;;  %v852_v8 = vmax.f32 %v828_v55, 0.0  ;;  %v5903_v25 = vld [vmem:[%s11380_s0 + $0xe0] sm:$0xff]  ;;  %v5989_v22 = vld [vmem:[%s11380_s0 + $0x2d0] sm:$0x3] }
 0x11f   :  { %6157 = vmatmul.msk.f32.gmra.mxu3 %vm1674_vm9, %v7842_v39  ;;  %876 = vst [vmem:[#allocation2 + $0x1c8] sm:$0x3] %v851_v52  ;;  %v788_v58 = vmul.f32 %v764_v3, %v7089_v10  ;;  %v638_v30 = vmul.f32 %v5920_v59, %v6841_v41  ;;  %v629_v5 = vmul.f32 %v5911_v42, %v6826_v35  ;;  %v8455_v52 = vld [vmem:[%s11380_s0 + $0x2a8] sm:$0xff]  ;;  %v5927_v55 = vld [vmem:[%s11380_s0 + $0x1a0] sm:$0xff]  ;;  %v3765_v3 = vld [vmem:[%s11387_s9 + $0x18] sm:$0xff] }
 0x120   :  { %868 = vst [vmem:[#allocation2 + $0x1b8] sm:$0xff] %v11422_v46  ;;  %v783_v39 = vadd.f32 %v759_v32, %v710_v53  ;;  %v760_v26 = vmul.f32 %v5968_v18, %v11586_v43  ;;  %v678_v37 = vmul.f32 %v5935_v31, %v7032_v9  ;;  %v751_v59 = vmul.f32 %v8441_v62, %v11582_v49  ;;  %v5904_v32 = vld [vmem:[%s11380_s0 + $0xe8] sm:$0xff] }
 0x121   :  { %4808 = vperm.xlu1 %6588, %v3759_v33   ;;  %877 = vst [vmem:[#allocation2 + $0x280] sm:$0x3] %v852_v8  ;;  %v630_v18 = vmul.f32 %v5912_v29, %v6826_v35  ;;  %v679_v42 = vmul.f32 %v5936_v16, %v7032_v9  ;;  %v752_v31 = vmul.f32 %v8455_v52, %v11582_v49  ;;  %v5928_v53 = vld [vmem:[%s11380_s0 + $0x1a8] sm:$0xff]  ;;  %v8480_v29 = vld [vmem:[%s11380_s0 + $0x260] sm:$0xff] }
 0x122   :  { %869 = vst [vmem:[#allocation2 + $0x80] sm:$0xff] %v11426_v0  ;;  %v807_v46 = vmul.f32 %v783_v39, %v7285_v51  ;;  %v711_v1 = vadd.f32 %v687_v6, %v638_v30  ;;  %v702_v21 = vadd.f32 %v678_v37, %v629_v5  ;;  %v621_v33 = vmul.f32 %v5903_v25, %v11532_v56  ;;  %v3762_v16 = vld [vmem:[%s11387_s9] sm:$0xff]  ;;  %v8492_v30 = vld [vmem:[%s11380_s0 + $0x268] sm:$0xff] }
 0x123   :  { %v703_v8 = vadd.f32 %v679_v42, %v630_v18  ;;  %v670_v45 = vmul.f32 %v5927_v55, %v7198_v36  ;;  %v743_v0 = vmul.f32 %v8480_v29, %v7170_v19  ;;  %v622_v6 = vmul.f32 %v5904_v32, %v11532_v56 }
 0x124   :  { %v784_v5 = vadd.f32 %v760_v26, %v711_v1  ;;  %v775_v25 = vadd.f32 %v751_v59, %v702_v21  ;;  %v671_v39 = vmul.f32 %v5928_v53, %v7198_v36  ;;  %v744_v37 = vmul.f32 %v8492_v30, %v7170_v19  ;;  %v6013_v21 = vld [vmem:[%s11380_s0 + $0x390] sm:$0x3]  ;;  %v3763_v1 = vld [vmem:[%s11387_s9 + $0x8] sm:$0xff] }
 0x125   :  { %4870 = vperm.xlu0 %6590, %v3765_v3   ;;  %v8498_v55 = vadd.f32 %v787_v40, %v7443_v14  ;;  %v8501_v18 = vadd.f32 %v788_v58, %v7443_v14  ;;  %v776_v32 = vadd.f32 %v752_v31, %v703_v8  ;;  %v694_v42 = vadd.f32 %v670_v45, %v621_v33  ;;  %v6037_v59 = vld [vmem:[%s11380_s0 + $0x450] sm:$0x3]  ;;  %v8518_v3 = vpop.permute.xlu2 %1543 }
 0x126   :  { %4855 = vperm.xlu2 %6589, %v3762_v16   ;;  %v831_v40 = vadd.f32 %v807_v46, %v7380_v23  ;;  %v808_v58 = vmul.f32 %v784_v5, %v7285_v51  ;;  %v799_v26 = vmul.f32 %v775_v25, %v6943_v24  ;;  %v695_v45 = vadd.f32 %v671_v39, %v622_v6  ;;  %v5990_v16 = vld [vmem:[%s11380_s0 + $0x2d8] sm:$0x3]  ;;  %v3758_v39 = vld [vmem:[%s11386_s8] sm:$0xff] }
 0x127   :  { %11591 = vst [vmem:[#allocation24_spill] sm:$0xff] %v8501_v18  ;;  %6158 = vmatmul.msk.f32.gmra.mxu3 %vm1674_vm9, %v7915_v28  ;;  %v11430_v31 = vmax.f32 %v8498_v55, 0.0  ;;  %v11432_v53 = vmax.f32 %v8501_v18, 0.0  ;;  %v800_v46 = vmul.f32 %v776_v32, %v6943_v24  ;;  %v767_v33 = vadd.f32 %v743_v0, %v694_v42  ;;  %v6014_v28 = vld [vmem:[%s11380_s0 + $0x398] sm:$0x3] }
 0x128   :  { %v855_v8 = vmax.f32 %v831_v40, 0.0  ;;  %v8529_v6 = vadd.f32 %v799_v26, %v7260_v60  ;;  %v926_v5 = vmul.f32 %v5989_v22, %v6841_v41  ;;  %v975_v25 = vmul.f32 %v6013_v21, %v11585_v13  ;;  %v6038_v0 = vld [vmem:[%s11380_s0 + $0x458] sm:$0x3] }
 0x129   :  { %4860 = vperm.xlu1 %6588, %v3763_v1   ;;  %860 = vst [vmem:[#allocation2 + $0x220] sm:$0xff] %v11430_v31  ;;  %v8545_v22 = vadd.f32 %v800_v46, %v7260_v60  ;;  %v768_v32 = vadd.f32 %v744_v37, %v695_v45  ;;  %v1048_v42 = vmul.f32 %v6037_v59, %v11586_v43  ;;  %v6005_v1 = vld [vmem:[%s11380_s0 + $0x350] sm:$0xff]  ;;  %v1558_v31 = vpop.permute.xlu1 %1557 }
 0x12a   :  { %11592 = vst [vmem:[#allocation27_spill] sm:$0xff] %v8529_v6  ;;  %v832_v21 = vadd.f32 %v808_v58, %v7380_v23  ;;  %v11431_v40 = vmax.f32 %v8529_v6, 0.0  ;;  %v791_v26 = vmul.f32 %v767_v33, %v7089_v10  ;;  %v999_v17 = vadd.f32 %v975_v25, %v926_v5  ;;  %v8562_v33 = vpop.permute.xlu0 %1555 }
 0x12b   :  { %11593 = vst [vmem:[#allocation14_spill] sm:$0xff] %v8545_v22  ;;  %v11433_v37 = vmax.f32 %v8545_v22, 0.0  ;;  %v927_v45 = vmul.f32 %v5990_v16, %v6841_v41  ;;  %v976_v59 = vmul.f32 %v6014_v28, %v11585_v13  ;;  %v1049_v46 = vmul.f32 %v6038_v0, %v11586_v43  ;;  %v6029_v16 = vld [vmem:[%s11380_s0 + $0x410] sm:$0xff]  ;;  %v6006_v28 = vld [vmem:[%s11380_s0 + $0x358] sm:$0xff] }
 0x12c   :  { %861 = vst [vmem:[#allocation2 + $0x258] sm:$0xff] %v11432_v53  ;;  %v1585_v58 = vsel %vm161_vm0, %v1558_v31, %v8408_v34  ;;  %v856_v5 = vmax.f32 %v832_v21, 0.0  ;;  %v1072_v25 = vadd.f32 %v1048_v42, %v999_v17  ;;  %v1584_v21 = vsel %vm161_vm0, %v8562_v33, %v1558_v31  ;;  %v6030_v42 = vld [vmem:[%s11380_s0 + $0x418] sm:$0xff] }
 0x12d   :  { %880 = vst [vmem:[#allocation2 + $0x288] sm:$0x3] %v855_v8  ;;  %4803 = vperm.xlu0 %6590, %v3758_v39   ;;  %v918_v8 = vmul.f32 %v8067_v48, %v6826_v35  ;;  %v1636_v39 = vsel %vm7523_vm5, 0.0, %v1585_v58  ;;  %v1000_v17 = vadd.f32 %v976_v59, %v927_v45  ;;  %v967_v48 = vmul.f32 %v6005_v1, %v7032_v9  ;;  %v6021_v58 = vld [vmem:[%s11380_s0 + $0x3d0] sm:$0xff] }
 0x12e   :  { %872 = vst [vmem:[#allocation2 + $0x38] sm:$0xff] %v11431_v40  ;;  %v5997_v40 = vld [vmem:[%s11380_s0 + $0x310] sm:$0xff]  ;;  %v1635_v31 = vsel %vm7435_vm4, 0.0, %v1584_v21  ;;  %6186 = vmatpush.msk.msrb.mxu3 %vm1687_vm3, %v1636_v39  ;;  %v792_v1 = vmul.f32 %v768_v32, %v7089_v10  ;;  %v1096_v45 = vmul.f32 %v1072_v25, %v7285_v51  ;;  %v1040_v59 = vmul.f32 %v6029_v16, %v11582_v49  ;;  %v5998_v16 = vld [vmem:[%s11380_s0 + $0x318] sm:$0xff]  ;;  %vm9128_vm4 = vmneg %vm7693_vm7 }
 0x12f   :  { %873 = vst [vmem:[#allocation2 + $0x190] sm:$0xff] %v11433_v37  ;;  %6177 = vmatpush.msk.msra.mxu2 %vm1687_vm3, %v1635_v31  ;;  %v1073_v37 = vadd.f32 %v1049_v46, %v1000_v17  ;;  %v991_v22 = vadd.f32 %v967_v48, %v918_v8  ;;  %v919_v6 = vmul.f32 %v8087_v11, %v6826_v35  ;;  %v6022_v46 = vld [vmem:[%s11380_s0 + $0x3d8] sm:$0xff]  ;;  %v8611_v11 = vpop.permute.xlu2 %1527  ;;  %v6011_v31 = vld [vmem:[%s11380_s0 + $0x380] sm:$0x3]  ;;  %vm5035_vm5 = vcmask 1048320  }
 0x130   :  { %881 = vst [vmem:[#allocation2 + $0x60] sm:$0x3] %v856_v5  ;;  %v968_v18 = vmul.f32 %v6006_v28, %v7032_v9  ;;  %v1041_v21 = vmul.f32 %v6030_v42, %v11582_v49  ;;  %v910_v5 = vmul.f32 %v8111_v54, %v11532_v56  ;;  %v959_v32 = vmul.f32 %v5997_v40, %v7198_v36 }
 0x131   :  { %v1032_v25 = vmul.f32 %v6021_v58, %v7170_v19  ;;  %v1097_v8 = vmul.f32 %v1073_v37, %v7285_v51  ;;  %v1064_v28 = vadd.f32 %v1040_v59, %v991_v22  ;;  %v911_v54 = vmul.f32 %v8126_v12, %v11532_v56  ;;  %v1542_v22 = vpop.permute.xlu1 %1541  ;;  %v5987_v58 = vld [vmem:[%s11380_s0 + $0x2c0] sm:$0x3] }
 0x132   :  { %v992_v39 = vadd.f32 %v968_v18, %v919_v6  ;;  %v11596_v40 = vmov 0  ;;  %v8623_v17 = vadd.f32 %v791_v26, %v7443_v14  ;;  %v8626_v48 = vadd.f32 %v792_v1, %v7443_v14 }
 0x133   :  { %v11597_v40 = vsel %vm8618_vm11, 4294967295, %v11596_v40  ;;  %v1120_v42 = vadd.f32 %v1096_v45, %v7380_v23  ;;  %v983_v37 = vadd.f32 %v959_v32, %v910_v5  ;;  %v11601_v12 = vmov 0  ;;  %v8644_v53 = vpop.permute.xlu0 %1539 }
 0x134   :  { %11598 = vst [vmem:[#allocation15_spill] sm:$0xff] %v11597_v40  ;;  %v11602_v12 = vsel %vm8631_vm12, 4294967295, %v11601_v12  ;;  %v1088_v18 = vmul.f32 %v1064_v28, %v6943_v24  ;;  %v1065_v6 = vadd.f32 %v1041_v21, %v992_v39  ;;  %v960_v0 = vmul.f32 %v5998_v16, %v7198_v36  ;;  %v6035_v28 = vld [vmem:[%s11380_s0 + $0x440] sm:$0x3]  ;;  %v6009_v40 = vld [vmem:[%s11380_s0 + $0x370] sm:$0xff] }
 0x135   :  { %11599 = vst [vmem:[#allocation23_spill] sm:$0xff] %v8623_v17  ;;  %v1033_v26 = vmul.f32 %v6022_v46, %v7170_v19  ;;  %v1578_v1 = vsel %vm161_vm0, %v1542_v22, %v8518_v3  ;;  %v11438_v45 = vmax.f32 %v8623_v17, 0.0  ;;  %v11437_v59 = vmax.f32 %v8626_v48, 0.0 }
 0x136   :  { %11600 = vst [vmem:[#allocation29_spill] sm:$0xff] %v8626_v48  ;;  %v1144_v21 = vmax.f32 %v1120_v42, 0.0  ;;  %v1577_v5 = vsel %vm161_vm0, %v8644_v53, %v1542_v22  ;;  %6188 = vmatpush.msk.msrb.mxu3 %vm8618_vm11, %v1578_v1  ;;  %v8655_v32 = vadd.f32 %v1088_v18, %v7260_v60  ;;  %v1089_v16 = vmul.f32 %v1065_v6, %v6943_v24  ;;  %v5988_v18 = vld [vmem:[%s11380_s0 + $0x2c8] sm:$0x3] }
 0x137   :  { %11603 = vst [vmem:[#allocation28_spill] sm:$0xff] %v11602_v12  ;;  %v1056_v46 = vadd.f32 %v1032_v25, %v983_v37  ;;  %6179 = vmatpush.msk.msra.mxu2 %vm8631_vm12, %v1577_v5  ;;  %v984_v39 = vadd.f32 %v960_v0, %v911_v54  ;;  %v924_v42 = vmul.f32 %v5987_v58, %v6841_v41  ;;  %v6012_v25 = vld [vmem:[%s11380_s0 + $0x388] sm:$0x3]  ;;  %v6003_v58 = vld [vmem:[%s11380_s0 + $0x340] sm:$0xff] }
 0x138   :  { %11604 = vst [vmem:[#allocation18_spill] sm:$0xff] %v8655_v32  ;;  %v973_v22 = vmul.f32 %v6011_v31, %v11585_v13  ;;  %v1121_v37 = vadd.f32 %v1097_v8, %v7380_v23  ;;  %v8678_v54 = vadd.f32 %v1089_v16, %v7260_v60  ;;  %v6036_v0 = vld [vmem:[%s11380_s0 + $0x448] sm:$0x3]  ;;  %v1046_v8 = vmul.f32 %v6035_v28, %v11586_v43 }
 0x139   :  { %864 = vst [vmem:[#allocation2 + $0x158] sm:$0xff] %v11438_v45  ;;  %v1080_v31 = vmul.f32 %v1056_v46, %v7089_v10  ;;  %v1057_v1 = vadd.f32 %v1033_v26, %v984_v39  ;;  %v6004_v16 = vld [vmem:[%s11380_s0 + $0x348] sm:$0xff]  ;;  %v925_v6 = vmul.f32 %v5988_v18, %v6841_v41  ;;  %v974_v48 = vmul.f32 %v6012_v25, %v11585_v13  ;;  %v8708_v25 = vld [vmem:[%s11383_s4] sm:$0xff] }
 0x13a   :  { %865 = vst [vmem:[#allocation2 + $0x98] sm:$0xff] %v11437_v59  ;;  %v997_v5 = vadd.f32 %v973_v22, %v924_v42  ;;  %v1145_v59 = vmax.f32 %v1121_v37, 0.0  ;;  %v6028_v26 = vld [vmem:[%s11380_s0 + $0x408] sm:$0xff]  ;;  %v1047_v28 = vmul.f32 %v6036_v0, %v11586_v43  ;;  %v916_v39 = vmul.f32 %v8301_v44, %v6826_v35  ;;  %v1522_v22 = vpop.permute.xlu2 %1521  ;;  %v1526_v18 = vpop.permute.xlu1 %1525  ;;  %v5995_v44 = vld [vmem:[%s11380_s0 + $0x300] sm:$0xff] }
 0x13b   :  { %11605 = vst [vmem:[#allocation20_spill] sm:$0xff] %v8678_v54  ;;  %v1081_v46 = vmul.f32 %v1057_v1, %v7089_v10  ;;  %v965_v42 = vmul.f32 %v6003_v58, %v7032_v9  ;;  %v917_v1 = vmul.f32 %v8322_v2, %v6826_v35  ;;  %v966_v0 = vmul.f32 %v6004_v16, %v7032_v9 }
 0x13c   :  { %1169 = vst [vmem:[#allocation2 + $0x8] sm:$0x3] %v1144_v21  ;;  %v6027_v21 = vld [vmem:[%s11380_s0 + $0x400] sm:$0xff]  ;;  %v1070_v37 = vadd.f32 %v1046_v8, %v997_v5  ;;  %v1524_v58 = vpop.permute.xlu0 %1523  ;;  %v1571_v17 = vsel %vm161_vm0, %v1526_v18, %v8611_v11  ;;  %v998_v54 = vadd.f32 %v974_v48, %v925_v6  ;;  %v8735_v48 = vsel %vm161_vm0, 0.0, %v1522_v22 }
 0x13d   :  { %1170 = vst [vmem:[#allocation2 + $0x2c0] sm:$0x3] %v1145_v59  ;;  %v1038_v45 = vmul.f32 %v6027_v21, %v11582_v49  ;;  %v989_v32 = vadd.f32 %v965_v42, %v916_v39  ;;  %v1039_v59 = vmul.f32 %v6028_v26, %v11582_v49  ;;  %v1570_v5 = vsel %vm161_vm0, %v1524_v58, %v1526_v18  ;;  %v6019_v21 = vld [vmem:[%s11380_s0 + $0x3c0] sm:$0xff]  ;;  %v5996_v39 = vld [vmem:[%s11380_s0 + $0x308] sm:$0xff] }
 0x13e   :  { %6190 = vmatpush.msk.msrb.mxu3 %vm8618_vm11, %v1571_v17  ;;  %v8724_v2 = vsel %vm161_vm0, %v1522_v22, %v1524_v58  ;;  %v1094_v8 = vmul.f32 %v1070_v37, %v7285_v51  ;;  %v990_v16 = vadd.f32 %v966_v0, %v917_v1  ;;  %6181 = vmatpush.msk.msra.mxu2 %vm8631_vm12, %v1570_v5  ;;  %v6020_v0 = vld [vmem:[%s11380_s0 + $0x3c8] sm:$0xff] }
 0x13f   :  { %6191 = vmatmul.msk.f32.vlgmr.msrb.gmra.mxu3 %vm1674_vm9, %v8708_v25  ;;  %v1062_v17 = vadd.f32 %v1038_v45, %v989_v32  ;;  %v908_v6 = vmul.f32 %v8342_v4, %v11532_v56  ;;  %v957_v26 = vmul.f32 %v5995_v44, %v7198_v36  ;;  %6182 = vmatmul.msk.f32.vlgmr.msra.gmra.mxu2 %vm1674_vm9, %v8708_v25 }
 0x140   :  { %v8746_v42 = vadd.f32 %v1080_v31, %v7443_v14  ;;  %v8749_v18 = vadd.f32 %v1081_v46, %v7443_v14  ;;  %v1071_v22 = vadd.f32 %v1047_v28, %v998_v54  ;;  %v1063_v45 = vadd.f32 %v1039_v59, %v990_v16  ;;  %v6017_v31 = vld [vmem:[%s11380_s0 + $0x3b0] sm:$0x3] }
 0x141   :  { %v1086_v32 = vmul.f32 %v1062_v17, %v6943_v24  ;;  %v981_v4 = vadd.f32 %v957_v26, %v908_v6  ;;  %v1030_v37 = vmul.f32 %v6019_v21, %v7170_v19  ;;  %v909_v1 = vmul.f32 %v8376_v61, %v11532_v56  ;;  %v5993_v61 = vld [vmem:[%s11380_s0 + $0x2f0] sm:$0x3]  ;;  %v8776_v17 = vld [vmem:[%s11383_s4 + $0x8] sm:$0xff] }
 0x142   :  { %v1087_v28 = vmul.f32 %v1063_v45, %v6943_v24  ;;  %v958_v44 = vmul.f32 %v5996_v39, %v7198_v36  ;;  %v1118_v58 = vadd.f32 %v1094_v8, %v7380_v23  ;;  %v1095_v59 = vmul.f32 %v1071_v22, %v7285_v51  ;;  %v5994_v22 = vld [vmem:[%s11380_s0 + $0x2f8] sm:$0x3]  ;;  %v1568_v46 = vpop.permute.xlu2 %1567 }
 0x143   :  { %v8771_v5 = vadd.f32 %v1086_v32, %v7260_v60  ;;  %v1054_v16 = vadd.f32 %v1030_v37, %v981_v4  ;;  %v1031_v39 = vmul.f32 %v6020_v0, %v7170_v19  ;;  %v979_v8 = vmul.f32 %v6017_v31, %v11585_v13  ;;  %v6018_v0 = vld [vmem:[%s11380_s0 + $0x3b8] sm:$0x3] }
 0x144   :  { %v1538_v21 = vpop.permute.xlu1 %1537  ;;  %v8779_v6 = vadd.f32 %v1087_v28, %v7260_v60  ;;  %v982_v26 = vadd.f32 %v958_v44, %v909_v1  ;;  %v1554_v45 = vpop.permute.xlu0 %1553  ;;  %v1142_v4 = vmax.f32 %v1118_v58, 0.0  ;;  %v1119_v37 = vadd.f32 %v1095_v59, %v7380_v23  ;;  %v6041_v1 = vld [vmem:[%s11380_s0 + $0x470] sm:$0x3]  ;;  %v6042_v59 = vld [vmem:[%s11380_s0 + $0x478] sm:$0x3] }
 0x145   :  { %v1576_v32 = vsel %vm161_vm0, %v1538_v21, %v8644_v53  ;;  %v930_v54 = vmul.f32 %v5993_v61, %v6841_v41  ;;  %v1583_v31 = vsel %vm161_vm0, %v1554_v45, %v8562_v33  ;;  %v1616_v28 = vsel %vm161_vm0, 0.0, %v1554_v45 }
 0x146   :  { %v11607_v53 = vmov 0  ;;  %v1634_v33 = vsel %vm7067_vm2, 0.0, %v1583_v31  ;;  %v1633_v45 = vsel %vm227_vm1, 0.0, %v1616_v28  ;;  %v11611_v61 = vmov 0  ;;  %1167 = vst [vmem:[#allocation2 + $0xa0] sm:$0x3] %v1142_v4  ;;  %vm8939_vm1 = vmneg %vm7708_vm8 }
 0x147   :  { %v11608_v53 = vsel %vm8801_vm13, 4294967295, %v11607_v53  ;;  %6192 = vmatmul.msk.f32.gmra.mxu3 %vm1674_vm9, %v8776_v17  ;;  %v11612_v61 = vsel %vm8818_vm14, 4294967295, %v11611_v61  ;;  %v1143_v58 = vmax.f32 %v1119_v37, 0.0  ;;  %v1078_v12 = vmul.f32 %v1054_v16, %v7089_v10  ;;  %6159 = vmatpush.msk.msrb.mxu0 %vm1687_vm3, %v1633_v45  ;;  %vm9118_vm2 = vmneg %vm7660_vm6 }
 0x148   :  { %11609 = vst [vmem:[#allocation13_spill] sm:$0xff] %v11608_v53  ;;  %6168 = vmatpush.msk.msra.mxu1 %vm1687_vm3, %v1634_v33  ;;  %v1055_v31 = vadd.f32 %v1031_v39, %v982_v26  ;;  %v1003_v44 = vadd.f32 %v979_v8, %v930_v54  ;;  %v1052_v28 = vmul.f32 %v6041_v1, %v11586_v43  ;;  %v1615_v4 = vsel %vm161_vm0, 0.0, %v1538_v21  ;;  %v6010_v54 = vld [vmem:[%s11380_s0 + $0x378] sm:$0xff]  ;;  %v6033_v8 = vld [vmem:[%s11380_s0 + $0x430] sm:$0xff] }
 0x149   :  { %11613 = vst [vmem:[#allocation10_spill] sm:$0xff] %v11612_v61  ;;  %6183 = vmatmul.msk.f32.gmra.mxu2 %vm1674_vm9, %v8776_v17  ;;  %v931_v16 = vmul.f32 %v5994_v22, %v6841_v41  ;;  %v980_v37 = vmul.f32 %v6018_v0, %v11585_v13  ;;  %v1053_v33 = vmul.f32 %v6042_v59, %v11586_v43  ;;  %v6034_v22 = vld [vmem:[%s11380_s0 + $0x438] sm:$0xff]  ;;  %v8864_v59 = vld [vmem:[%s11383_s4 + $0x10] sm:$0xff] }
 0x14a   :  { %1168 = vst [vmem:[#allocation2 + $0x278] sm:$0x3] %v1143_v58  ;;  %6161 = vmatpush.msk.msrb.mxu0 %vm8801_vm13, %v1615_v4  ;;  %6170 = vmatpush.msk.msra.mxu1 %vm8818_vm14, %v1576_v32  ;;  %v1079_v26 = vmul.f32 %v1055_v31, %v7089_v10  ;;  %v1076_v21 = vadd.f32 %v1052_v28, %v1003_v44 }
 0x14b   :  { %v922_v39 = vmul.f32 %v8188_v38, %v6826_v35  ;;  %v1004_v1 = vadd.f32 %v980_v37, %v931_v16  ;;  %v971_v0 = vmul.f32 %v6009_v40, %v7032_v9  ;;  %v1044_v58 = vmul.f32 %v6033_v8, %v11582_v49  ;;  %v6001_v37 = vld [vmem:[%s11380_s0 + $0x330] sm:$0xff] }
 0x14c   :  { %v923_v32 = vmul.f32 %v8199_v7, %v6826_v35  ;;  %6163 = vmatpush.msk.msrb.mxu0 %vm8801_vm13, %v8735_v48  ;;  %6172 = vmatpush.msk.msra.mxu1 %vm8818_vm14, %v8724_v2  ;;  %v1566_v38 = vpop.permute.xlu1 %1565  ;;  %v1100_v45 = vmul.f32 %v1076_v21, %v7285_v51  ;;  %v972_v31 = vmul.f32 %v6010_v54, %v7032_v9  ;;  %v8870_v28 = vpop.permute.xlu0 %1563 }
 0x14d   :  { %v1045_v7 = vmul.f32 %v6034_v22, %v11582_v49  ;;  %v1589_v44 = vsel %vm161_vm0, %v1566_v38, %v1568_v46  ;;  %6164 = vmatmul.msk.f32.vlgmr.msrb.gmra.mxu0 %vm1674_vm9, %v8708_v25  ;;  %6173 = vmatmul.msk.f32.vlgmr.msra.gmra.mxu1 %vm1674_vm9, %v8708_v25  ;;  %v8877_v2 = vadd.f32 %v1078_v12, %v7443_v14 }
 0x14e   :  { %v8880_v48 = vadd.f32 %v1079_v26, %v7443_v14  ;;  %v1640_v40 = vsel %vm7735_vm10, 0.0, %v1589_v44  ;;  %v1588_v46 = vsel %vm161_vm0, %v8870_v28, %v1566_v38  ;;  %v1077_v4 = vadd.f32 %v1053_v33, %v1004_v1  ;;  %v6025_v33 = vld [vmem:[%s11380_s0 + $0x3f0] sm:$0xff]  ;;  %v6002_v1 = vld [vmem:[%s11380_s0 + $0x338] sm:$0xff]  ;;  %v1552_v38 = vpop.permute.xlu2 %1551  ;;  %v6015_v44 = vld [vmem:[%s11380_s0 + $0x3a0] sm:$0x3] }
 0x14f   :  { %v995_v16 = vadd.f32 %v971_v0, %v922_v39  ;;  %v1639_v54 = vsel %vm7708_vm8, 0.0, %v1588_v46  ;;  %6193 = vmatmul.msk.f32.gmra.mxu3 %vm1674_vm9, %v8864_v59  ;;  %v996_v21 = vadd.f32 %v972_v31, %v923_v32  ;;  %v1124_v39 = vadd.f32 %v1100_v45, %v7380_v23  ;;  %v6026_v0 = vld [vmem:[%s11380_s0 + $0x3f8] sm:$0xff]  ;;  %v5991_v32 = vld [vmem:[%s11380_s0 + $0x2e0] sm:$0x3]  ;;  %v8922_v46 = vpop.f32.mrf.mxu3 }
 0x150   :  { %6213 = vmatpush.msk.msrb.mxu2 %vm1687_vm3, %v1639_v54  ;;  %6222 = vmatpush.msk.msra.mxu3 %vm1687_vm3, %v1640_v40  ;;  %v1101_v8 = vmul.f32 %v1077_v4, %v7285_v51  ;;  %v963_v31 = vmul.f32 %v6001_v37, %v7198_v36  ;;  %v6039_v40 = vld [vmem:[%s11380_s0 + $0x460] sm:$0x3]  ;;  %11614 = vst [vmem:[#allocation21_spill] sm:$0xff] %v8922_v46  ;;  %v11615_v37 = vmov 0  ;;  %vm5068_vm8 = vcmask 15368  }
 0x151   :  { %v1068_v22 = vadd.f32 %v1044_v58, %v995_v16  ;;  %6184 = vmatmul.msk.f32.gmra.mxu2 %vm1674_vm9, %v8864_v59  ;;  %v1069_v45 = vadd.f32 %v1045_v7, %v996_v21  ;;  %v914_v58 = vmul.f32 %v8217_v50, %v11532_v56  ;;  %v1148_v4 = vmax.f32 %v1124_v39, 0.0 }
 0x152   :  { %v1036_v7 = vmul.f32 %v6025_v33, %v7170_v19  ;;  %v915_v50 = vmul.f32 %v8238_v63, %v11532_v56  ;;  %v11616_v37 = vsel %vm8930_vm15, 4294967295, %v11615_v37  ;;  %v964_v26 = vmul.f32 %v6002_v1, %v7198_v36 }
 0x153   :  { %v1092_v16 = vmul.f32 %v1068_v22, %v6943_v24  ;;  %11617 = vst [vmem:[#allocation30_spill] sm:$0xff] %v11616_v37  ;;  %v1093_v54 = vmul.f32 %v1069_v45, %v6943_v24  ;;  %v987_v21 = vadd.f32 %v963_v31, %v914_v58  ;;  %v1037_v39 = vmul.f32 %v6026_v0, %v7170_v19 }
 0x154   :  { %v1550_v12 = vpop.permute.xlu1 %1549  ;;  %v11618_v33 = vmov 0  ;;  %1173 = vst [vmem:[#allocation2 + $0x2a8] sm:$0x3] %v1148_v4  ;;  %v928_v22 = vmul.f32 %v5991_v32, %v6841_v41  ;;  %v977_v1 = vmul.f32 %v6015_v44, %v11585_v13  ;;  %v1050_v0 = vmul.f32 %v6039_v40, %v11586_v43  ;;  %v5992_v32 = vld [vmem:[%s11380_s0 + $0x2e8] sm:$0x3] }
 0x155   :  { %v11619_v33 = vsel %vm8939_vm1, 4294967295, %v11618_v33  ;;  %v8949_v63 = vadd.f32 %v1092_v16, %v7260_v60  ;;  %6165 = vmatmul.msk.f32.gmra.mxu0 %vm1674_vm9, %v8776_v17  ;;  %6174 = vmatmul.msk.f32.gmra.mxu1 %vm1674_vm9, %v8776_v17  ;;  %v1582_v45 = vsel %vm161_vm0, %v1550_v12, %v1552_v38  ;;  %v1125_v58 = vadd.f32 %v1101_v8, %v7380_v23  ;;  %v6016_v44 = vld [vmem:[%s11380_s0 + $0x3a8] sm:$0x3] }
 0x156   :  { %11620 = vst [vmem:[#allocation11_spill] sm:$0xff] %v11619_v33  ;;  %v8954_v15 = vpop.permute.xlu0 %1547  ;;  %v8963_v31 = vadd.f32 %v1093_v54, %v7260_v60  ;;  %v6040_v40 = vld [vmem:[%s11380_s0 + $0x468] sm:$0x3]  ;;  %6224 = vmatpush.msk.msra.mxu3 %vm8930_vm15, %v1582_v45  ;;  %v1060_v4 = vadd.f32 %v1036_v7, %v987_v21  ;;  %v988_v16 = vadd.f32 %v964_v26, %v915_v50  ;;  %v6007_v54 = vld [vmem:[%s11380_s0 + $0x360] sm:$0xff]  ;;  %vm5230_vm10 = vcmask 31768  }
 0x157   :  { %v1581_v38 = vsel %vm161_vm0, %v8954_v15, %v1550_v12  ;;  %6194 = vmatmul.msk.f32.gmra.mxu3 %vm1674_vm9, %v8946_v20  ;;  %v1149_v61 = vmax.f32 %v1125_v58, 0.0  ;;  %v1001_v53 = vadd.f32 %v977_v1, %v928_v22  ;;  %v929_v45 = vmul.f32 %v5992_v32, %v6841_v41  ;;  %v6031_v50 = vld [vmem:[%s11380_s0 + $0x420] sm:$0xff]  ;;  %v6008_v21 = vld [vmem:[%s11380_s0 + $0x368] sm:$0xff] }
 0x158   :  { %6215 = vmatpush.msk.msrb.mxu2 %vm8939_vm1, %v1581_v38  ;;  %v1061_v46 = vadd.f32 %v1037_v39, %v988_v16  ;;  %v978_v7 = vmul.f32 %v6016_v44, %v11585_v13  ;;  %v1051_v26 = vmul.f32 %v6040_v40, %v11586_v43  ;;  %v920_v39 = vmul.f32 %v8441_v62, %v6826_v35  ;;  %v6032_v13 = vld [vmem:[%s11380_s0 + $0x428] sm:$0xff]  ;;  %v5999_v43 = vld [vmem:[%s11380_s0 + $0x320] sm:$0xff] }
 0x159   :  { %6185 = vmatmul.msk.f32.gmra.mxu2 %vm1674_vm9, %v8946_v20  ;;  %1174 = vst [vmem:[#allocation2 + $0x2f0] sm:$0x3] %v1149_v61  ;;  %v969_v41 = vmul.f32 %v6007_v54, %v7032_v9  ;;  %v1084_v22 = vmul.f32 %v1060_v4, %v7089_v10  ;;  %v1074_v1 = vadd.f32 %v1050_v0, %v1001_v53  ;;  %v1536_v61 = vpop.permute.xlu2 %1535  ;;  %v9013_v54 = vpop.f32.mrf.mxu3 }
 0x15a   :  { %v1002_v58 = vadd.f32 %v978_v7, %v929_v45  ;;  %v1042_v32 = vmul.f32 %v6031_v50, %v11582_v49  ;;  %v1085_v44 = vmul.f32 %v1061_v46, %v7089_v10  ;;  %v921_v40 = vmul.f32 %v8455_v52, %v6826_v35  ;;  %v6023_v52 = vld [vmem:[%s11380_s0 + $0x3e0] sm:$0xff] }
 0x15b   :  { %v993_v62 = vadd.f32 %v969_v41, %v920_v39  ;;  %v970_v38 = vmul.f32 %v6008_v21, %v7032_v9  ;;  %v1043_v8 = vmul.f32 %v6032_v13, %v11582_v49  ;;  %v912_v53 = vmul.f32 %v8480_v29, %v11532_v56  ;;  %v2235_v50 = vld [vmem:[#allocation2 + $0x100] sm:$0x3]  ;;  %v2236_v21 = vld [vmem:[#allocation2 + $0xb8] sm:$0x3] }
 0x15c   :  { %v1534_v16 = vpop.permute.xlu1 %1533  ;;  %v1075_v12 = vadd.f32 %v1051_v26, %v1002_v58  ;;  %v961_v0 = vmul.f32 %v5999_v43, %v7198_v36  ;;  %v9027_v9 = vadd.f32 %v1084_v22, %v7443_v14  ;;  %v9030_v49 = vadd.f32 %v1085_v44, %v7443_v14  ;;  %v6000_v26 = vld [vmem:[%s11380_s0 + $0x328] sm:$0xff] }
 0x15d   :  { %6166 = vmatmul.msk.f32.gmra.mxu0 %vm1674_vm9, %v8864_v59  ;;  %6175 = vmatmul.msk.f32.gmra.mxu1 %vm1674_vm9, %v8864_v59  ;;  %v1575_v35 = vsel %vm161_vm0, %v1534_v16, %v1536_v61  ;;  %v1098_v46 = vmul.f32 %v1074_v1, %v7285_v51  ;;  %v1066_v7 = vadd.f32 %v1042_v32, %v993_v62  ;;  %v6024_v1 = vld [vmem:[%s11380_s0 + $0x3e8] sm:$0xff] }
 0x15e   :  { %v9019_v4 = vpop.permute.xlu0 %1531  ;;  %6226 = vmatpush.msk.msra.mxu3 %vm8930_vm15, %v1575_v35  ;;  %v1099_v45 = vmul.f32 %v1075_v12, %v7285_v51  ;;  %v1132_v39 = vmax.f32 %v9027_v9, 0.0  ;;  %v1133_v41 = vmax.f32 %v9030_v49, 0.0  ;;  %v994_v13 = vadd.f32 %v970_v38, %v921_v40  ;;  %v6591_v44 = vld [vmem:[#allocation2 + $0x188] sm:$0xff]  ;;  %v6593_v35 = vld [vmem:[#allocation2 + $0x238] sm:$0xff] }
 0x15f   :  { %v1574_v29 = vsel %vm161_vm0, %v9019_v4, %v1534_v16  ;;  %6227 = vmatmul.msk.f32.vlgmr.msra.gmra.mxu3 %vm1674_vm9, %v8708_v25  ;;  %v985_v43 = vadd.f32 %v961_v0, %v912_v53  ;;  %v1122_v51 = vadd.f32 %v1098_v46, %v7380_v23  ;;  %v1090_v12 = vmul.f32 %v1066_v7, %v6943_v24  ;;  %v6592_v62 = vld [vmem:[#allocation2 + $0x208] sm:$0xff]  ;;  %v6595_v7 = vld [vmem:[#allocation2 + $0x218] sm:$0xff] }
 0x160   :  { %6217 = vmatpush.msk.msrb.mxu2 %vm8939_vm1, %v1574_v29  ;;  %6250 = vmatpush.msk.msrb.mxu3 %vm1687_vm3, %v2236_v21  ;;  %v1034_v22 = vmul.f32 %v6023_v52, %v7170_v19  ;;  %v1067_v58 = vadd.f32 %v1043_v8, %v994_v13  ;;  %v913_v32 = vmul.f32 %v8492_v30, %v11532_v56  ;;  %v6594_v56 = vld [vmem:[#allocation2 + $0x130] sm:$0xff]  ;;  %v11621_v21 = vmax.f32 %v8350_v27, 0.0 }
 0x161   :  { %6218 = vmatmul.msk.f32.vlgmr.msrb.gmra.mxu2 %vm1674_vm9, %v8708_v25  ;;  %v962_v61 = vmul.f32 %v6000_v26, %v7198_v36  ;;  %v1146_v40 = vmax.f32 %v1122_v51, 0.0  ;;  %v9064_v38 = vadd.f32 %v1090_v12, %v7260_v60  ;;  %v1123_v16 = vadd.f32 %v1099_v45, %v7380_v23  ;;  %v2239_v30 = vld [vmem:[#allocation2 + $0x210] sm:$0x3]  ;;  %v9074_v52 = vpop.f32.mrf.mxu3 }
 0x162   :  { %6245 = vmatpush.msk.msra.mxu2 %vm1687_vm3, %v2235_v50  ;;  %2378 = vmatpush.msrb.mxu3 %v6592_v62  ;;  %v1091_v53 = vmul.f32 %v1067_v58, %v6943_v24  ;;  %v1035_v8 = vmul.f32 %v6024_v1, %v7170_v19  ;;  %v2240_v23 = vld [vmem:[#allocation2 + $0x50] sm:$0x3]  ;;  %v1058_v29 = vadd.f32 %v1034_v22, %v985_v43  ;;  %v11622_v13 = vmax.f32 %v8353_v57, 0.0 }
 0x163   :  { %v986_v0 = vadd.f32 %v962_v61, %v913_v32  ;;  %1171 = vst [vmem:[#allocation2 + $0x270] sm:$0x3] %v1146_v40  ;;  %v1138_v36 = vmax.f32 %v9064_v38, 0.0  ;;  %v1147_v24 = vmax.f32 %v1123_v16, 0.0  ;;  %v6596_v26 = vld [vmem:[#allocation2 + $0x250] sm:$0xff]  ;;  %v11623_v61 = vmov 0 }
 0x164   :  { %2349 = vmatpush.msra.mxu2 %v6591_v44  ;;  %2379 = vmatpush.msrb.mxu3 %v6594_v56  ;;  %v9077_v19 = vadd.f32 %v1091_v53, %v7260_v60  ;;  %v1082_v60 = vmul.f32 %v1058_v29, %v7089_v10  ;;  %v11624_v61 = vsel %vm9118_vm2, 4294967295, %v11623_v61  ;;  %v11627_v16 = vmov 0  ;;  %v2728_v38 = vld [vmem:[#allocation2 + $0xb8] sm:$0x3] }
 0x165   :  { %6167 = vmatmul.msk.f32.gmra.mxu0 %vm1674_vm9, %v8946_v20  ;;  %6176 = vmatmul.msk.f32.gmra.mxu1 %vm1674_vm9, %v8946_v20  ;;  %v1059_v46 = vadd.f32 %v1035_v8, %v986_v0  ;;  %1172 = vst [vmem:[#allocation2 + $0x290] sm:$0x3] %v1147_v24  ;;  %v11628_v16 = vsel %vm9128_vm4, 4294967295, %v11627_v16  ;;  %v2759_v24 = vld [vmem:[#allocation2 + $0x8] sm:$0x3]  ;;  %v11634_v29 = vmax.f32 %v8498_v55, 0.0 }
 0x166   :  { %2350 = vmatpush.msra.mxu2 %v6593_v35  ;;  %6270 = vmatpush.msk.msra.mxu3 %vm1687_vm3, %v2240_v23  ;;  %v1139_v45 = vmax.f32 %v9077_v19, 0.0  ;;  %v9093_v43 = vadd.f32 %v1082_v60, %v7443_v14  ;;  %11625 = vst [vmem:[#allocation16_spill] sm:$0xff] %v11624_v61  ;;  %v2238_v60 = vld [vmem:[#allocation2 + $0x60] sm:$0x3]  ;;  %v2720_v19 = vld [vmem:[#allocation2 + $0x208] sm:$0xff] }
 0x167   :  { %6228 = vmatmul.msk.f32.gmra.mxu3 %vm1674_vm9, %v8776_v17  ;;  %v1083_v50 = vmul.f32 %v1059_v46, %v7089_v10  ;;  %v9106_v10 = vpop.f32.mrf.mxu2  ;;  %11629 = vst [vmem:[#allocation8_spill] sm:$0xff] %v11628_v16  ;;  %v11635_v46 = vld [vmem:[#allocation24_spill] sm:$0xff]  ;;  %v11641_v55 = vld [vmem:[#allocation27_spill] sm:$0xff] }
 0x168   :  { %6265 = vmatpush.msk.msrb.mxu2 %vm1687_vm3, %v2239_v30  ;;  %2494 = vmatpush.msra.mxu3 %v6596_v26  ;;  %v1130_v22 = vmax.f32 %v9093_v43, 0.0  ;;  %v11632_v30 = vld [vmem:[#allocation26_spill] sm:$0xff]  ;;  %v2237_v26 = vld [vmem:[#allocation2 + $0x288] sm:$0x3] }
 0x169   :  { %6219 = vmatmul.msk.f32.gmra.mxu2 %vm1674_vm9, %v8776_v17  ;;  %v9096_v51 = vadd.f32 %v1083_v50, %v7443_v14  ;;  %v9098_v12 = vpop.f32.mrf.mxu3  ;;  %v11633_v23 = vmax.f32 %v11632_v30, 0.0  ;;  %v9181_v50 = vpop.f32.mrf.mxu1  ;;  %v9372_v43 = vld [vmem:[%s11383_s4 + $0x28] sm:$0xff] }
 0x16a   :  { %2465 = vmatpush.msrb.mxu2 %v6595_v7  ;;  %2495 = vmatpush.msra.mxu3 %v11622_v13  ;;  %v1546_v14 = vpop.permute.xlu1 %1545  ;;  %v11636_v7 = vmax.f32 %v11635_v46, 0.0  ;;  %v11652_v46 = vmax.f32 %v8779_v6, 0.0  ;;  %v11656_v6 = vmax.f32 %v8949_v63, 0.0  ;;  %v2729_v61 = vld [vmem:[#allocation2 + $0x288] sm:$0x3] }
 0x16b   :  { %v1131_v1 = vmax.f32 %v9096_v51, 0.0  ;;  %v1579_v47 = vsel %vm161_vm0, %v8518_v3, %v1546_v14  ;;  %v9159_v3 = vld [vmem:[%s11383_s4 + $0x40] sm:$0xff] }
 0x16c   :  { %2466 = vmatpush.msrb.mxu2 %v11621_v21  ;;  %v11637_v21 = vld [vmem:[#allocation18_spill] sm:$0xff] }
 0x16d   :  { %v11638_v13 = vmax.f32 %v11637_v21, 0.0  ;;  %v2763_v21 = vld [vmem:[#allocation2 + $0x2a8] sm:$0x3] }
 0x16f   :  { %6229 = vmatmul.msk.f32.gmra.mxu3 %vm1674_vm9, %v8864_v59  ;;  %v9148_v8 = vpop.f32.mrf.mxu2 }
 0x171   :  { %6220 = vmatmul.msk.f32.gmra.mxu2 %vm1674_vm9, %v8864_v59 }
 0x172   :  { %v9108_v27 = vpop.f32.mrf.mxu3 }
 0x177   :  { %v1562_v57 = vpop.permute.xlu0 %1561  ;;  %6230 = vmatmul.msk.f32.gmra.mxu3 %vm1674_vm9, %v8946_v20 }
 0x178   :  { %v1586_v58 = vsel %vm161_vm0, %v8408_v34, %v1562_v57  ;;  %v1587_v32 = vsel %vm161_vm0, %v1562_v57, %v8870_v28  ;;  %v1530_v34 = vpop.permute.xlu2 %1529  ;;  %v1580_v28 = vsel %vm161_vm0, %v1546_v14, %v8954_v15  ;;  %v2234_v15 = vld [vmem:[#allocation2 + $0x280] sm:$0x3]  ;;  %v11639_v57 = vld [vmem:[#allocation20_spill] sm:$0xff] }
 0x179   :  { %v1637_v44 = vsel %vm7660_vm6, 0.0, %v1586_v58  ;;  %v1638_v40 = vsel %vm7693_vm7, 0.0, %v1587_v32  ;;  %6221 = vmatmul.msk.f32.gmra.mxu2 %vm1674_vm9, %v8946_v20  ;;  %v1572_v53 = vsel %vm161_vm0, %v8611_v11, %v1530_v34  ;;  %v1573_v0 = vsel %vm161_vm0, %v1530_v34, %v9019_v4  ;;  %v2233_v11 = vld [vmem:[#allocation2 + $0x1c8] sm:$0x3]  ;;  %v11630_v4 = vld [vmem:[#allocation25_spill] sm:$0xff] }
 0x17a   :  { %6195 = vmatpush.msk.msra.mxu0 %vm1687_vm3, %v1637_v44  ;;  %6204 = vmatpush.msk.msrb.mxu1 %vm1687_vm3, %v1638_v40  ;;  %v9150_v35 = vpop.f32.mrf.mxu3  ;;  %v11631_v56 = vmax.f32 %v11630_v4, 0.0  ;;  %v11640_v14 = vmax.f32 %v11639_v57, 0.0  ;;  %v11642_v32 = vmax.f32 %v11641_v55, 0.0  ;;  %v11643_v44 = vld [vmem:[#allocation14_spill] sm:$0xff]  ;;  %v9195_v40 = vpop.f32.mrf.mxu2  ;;  %v9204_v34 = vld [vmem:[%s11383_s4 + $0x48] sm:$0xff]  ;;  %vm5014_vm6 = vcmask 785920  }
 0x17b   :  { %v11644_v62 = vmax.f32 %v11643_v44, 0.0  ;;  %v2761_v55 = vld [vmem:[#allocation2 + $0x270] sm:$0x3]  ;;  %vm4993_vm7 = vcmask 523520  }
 0x17c   :  { %6197 = vmatpush.msk.msra.mxu0 %vm9118_vm2, %v1579_v47  ;;  %6206 = vmatpush.msk.msrb.mxu1 %vm9128_vm4, %v1580_v28  ;;  %v11645_v47 = vld [vmem:[#allocation23_spill] sm:$0xff] }
 0x17d   :  { %v11646_v28 = vmax.f32 %v11645_v47, 0.0 }
 0x17e   :  { %6199 = vmatpush.msk.msra.mxu0 %vm9118_vm2, %v1572_v53  ;;  %6208 = vmatpush.msk.msrb.mxu1 %vm9128_vm4, %v1573_v0  ;;  %v11647_v53 = vld [vmem:[#allocation29_spill] sm:$0xff] }
 0x17f   :  { %6200 = vmatmul.msk.f32.vlgmr.msra.gmra.mxu0 %vm1674_vm9, %v8708_v25  ;;  %6209 = vmatmul.msk.f32.vlgmr.msrb.gmra.mxu1 %vm1674_vm9, %v8708_v25  ;;  %v2760_v25 = vld [vmem:[#allocation2 + $0x2c0] sm:$0x3]  ;;  %v11648_v0 = vmax.f32 %v11647_v53, 0.0 }
 0x180   :  { %6235 = vmatpush.msk.msrb.mxu0 %vm1687_vm3, %v2233_v11  ;;  %6240 = vmatpush.msk.msra.mxu1 %vm1687_vm3, %v2234_v15  ;;  %v11649_v11 = vmax.f32 %v8746_v42, 0.0  ;;  %v11650_v15 = vmax.f32 %v8749_v18, 0.0  ;;  %v9227_v42 = vld [vmem:[%s11383_s4 + $0x50] sm:$0xff] }
 0x181   :  { %6246 = vmatmul.msk.f32.vlgmr.msra.gmra.mxu2 %vm1674_vm9, %v9159_v3  ;;  %6251 = vmatmul.msk.f32.vlgmr.msrb.gmra.mxu3 %vm1674_vm9, %v9159_v3 }
 0x182   :  { %2291 = vmatpush.msrb.mxu0 %v11631_v56  ;;  %2320 = vmatpush.msra.mxu1 %v11633_v23  ;;  %v9189_v58 = vpop.f32.mrf.mxu3  ;;  %v9231_v4 = vpop.f32.mrf.mxu2 }
 0x183   :  { %6289 = vmatpush.msk.msra.mxu2 %vm1687_vm3, %v2759_v24  ;;  %6294 = vmatpush.msk.msrb.mxu3 %vm1687_vm3, %v2760_v25  ;;  %v2758_v24 = vld [vmem:[#allocation2 + $0x278] sm:$0x3] }
 0x184   :  { %2292 = vmatpush.msrb.mxu0 %v11634_v29  ;;  %2321 = vmatpush.msra.mxu1 %v11636_v7  ;;  %v11651_v29 = vmax.f32 %v8771_v5, 0.0  ;;  %v2764_v5 = vld [vmem:[#allocation2 + $0x2f0] sm:$0x3] }
 0x185   :  { %2873 = vmatpush.msra.mxu2 %v11638_v13  ;;  %2902 = vmatpush.msrb.mxu3 %v11640_v14 }
 0x186   :  { %6255 = vmatpush.msk.msra.mxu0 %vm1687_vm3, %v2237_v26  ;;  %6260 = vmatpush.msk.msrb.mxu1 %vm1687_vm3, %v2238_v60  ;;  %v11654_v26 = vmax.f32 %v8877_v2, 0.0  ;;  %v11655_v60 = vmax.f32 %v8880_v48, 0.0  ;;  %v11657_v2 = vmax.f32 %v8963_v31, 0.0  ;;  %v9294_v48 = vpop.f32.mrf.mxu0 }
 0x187   :  { %6201 = vmatmul.msk.f32.gmra.mxu0 %vm1674_vm9, %v8776_v17  ;;  %6210 = vmatmul.msk.f32.gmra.mxu1 %vm1674_vm9, %v8776_v17  ;;  %v9218_v17 = vpop.f32.mrf.mxu1  ;;  %11658 = vst [vmem:[#allocation7_spill] sm:$0xff] %v9294_v48  ;;  %v3324_v48 = vld [vmem:[#allocation2 + $0x110] sm:$0x3] }
 0x188   :  { %2407 = vmatpush.msra.mxu0 %v11642_v32  ;;  %2436 = vmatpush.msrb.mxu1 %v11644_v62  ;;  %v2762_v32 = vld [vmem:[#allocation2 + $0x290] sm:$0x3]  ;;  %v9343_v62 = vld [vmem:[%s11383_s4 + $0x20] sm:$0xff] }
 0x189   :  { %2874 = vmatpush.msra.mxu2 %v11649_v11  ;;  %2903 = vmatpush.msrb.mxu3 %v11650_v15 }
 0x18a   :  { %2408 = vmatpush.msra.mxu0 %v11646_v28  ;;  %2437 = vmatpush.msrb.mxu1 %v11648_v0  ;;  %v9229_v18 = vpop.f32.mrf.mxu3  ;;  %v9254_v23 = vpop.f32.mrf.mxu2  ;;  %v2727_v28 = vld [vmem:[#allocation2 + $0x100] sm:$0x3]  ;;  %v9391_v0 = vld [vmem:[%s11383_s4 + $0x30] sm:$0xff] }
 0x18b   :  { %6247 = vmatmul.msk.f32.gmra.mxu2 %vm1674_vm9, %v9204_v34  ;;  %6252 = vmatmul.msk.f32.gmra.mxu3 %vm1674_vm9, %v9204_v34 }
 0x18e   :  { %v9314_v9 = vpop.f32.mrf.mxu0 }
 0x18f   :  { %6202 = vmatmul.msk.f32.gmra.mxu0 %vm1674_vm9, %v8864_v59  ;;  %6211 = vmatmul.msk.f32.gmra.mxu1 %vm1674_vm9, %v8864_v59  ;;  %v9244_v59 = vld [vmem:[%s11383_s4 + $0x58] sm:$0xff]  ;;  %v9246_v56 = vpop.f32.mrf.mxu1  ;;  %11661 = vst [vmem:[#allocation17_spill] sm:$0xff] %v9314_v9 }
 0x192   :  { %v9248_v30 = vpop.f32.mrf.mxu3  ;;  %v9278_v13 = vpop.f32.mrf.mxu2 }
 0x193   :  { %6248 = vmatmul.msk.f32.gmra.mxu2 %vm1674_vm9, %v9227_v42  ;;  %6253 = vmatmul.msk.f32.gmra.mxu3 %vm1674_vm9, %v9227_v42 }
 0x196   :  { %v9330_v14 = vpop.f32.mrf.mxu0 }
 0x197   :  { %6203 = vmatmul.msk.f32.gmra.mxu0 %vm1674_vm9, %v8946_v20  ;;  %6212 = vmatmul.msk.f32.gmra.mxu1 %vm1674_vm9, %v8946_v20  ;;  %v2757_v20 = vld [vmem:[#allocation2 + $0xa0] sm:$0x3]  ;;  %v9262_v25 = vpop.f32.mrf.mxu1  ;;  %11663 = vst [vmem:[#allocation25_spill] sm:$0xff] %v9330_v14 }
 0x19a   :  { %v9272_v7 = vpop.f32.mrf.mxu3  ;;  %v9304_v31 = vpop.f32.mrf.mxu2 }
 0x19b   :  { %6249 = vmatmul.msk.f32.gmra.mxu2 %vm1674_vm9, %v9244_v59  ;;  %6254 = vmatmul.msk.f32.gmra.mxu3 %vm1674_vm9, %v9244_v59  ;;  %11653 = vst [vmem:[#allocation12_spill] sm:$0xff] %v9272_v7 }
 0x19c   :  { %11660 = vst [vmem:[#allocation9_spill] sm:$0xff] %v9304_v31 }
 0x19f   :  { %6236 = vmatmul.msk.f32.vlgmr.msrb.gmra.mxu0 %vm1674_vm9, %v9159_v3  ;;  %6241 = vmatmul.msk.f32.vlgmr.msra.gmra.mxu1 %vm1674_vm9, %v9159_v3  ;;  %v9300_v57 = vpop.f32.mrf.mxu1 }
 0x1a0   :  { %6279 = vmatpush.msk.msrb.mxu0 %vm1687_vm3, %v2757_v20  ;;  %6284 = vmatpush.msk.msra.mxu1 %vm1687_vm3, %v2758_v24  ;;  %11659 = vst [vmem:[#allocation19_spill] sm:$0xff] %v9300_v57  ;;  %v2714_v57 = vld [vmem:[#allocation2 + $0x98] sm:$0xff] }
 0x1a2   :  { %2815 = vmatpush.msrb.mxu0 %v11651_v29  ;;  %2844 = vmatpush.msra.mxu1 %v11652_v46  ;;  %v9302_v63 = vpop.f32.mrf.mxu3 }
 0x1a3   :  { %6266 = vmatmul.msk.f32.vlgmr.msrb.gmra.mxu2 %vm1674_vm9, %v9159_v3  ;;  %6271 = vmatmul.msk.f32.vlgmr.msra.gmra.mxu3 %vm1674_vm9, %v9159_v3 }
 0x1a4   :  { %2816 = vmatpush.msrb.mxu0 %v11654_v26  ;;  %2845 = vmatpush.msra.mxu1 %v11655_v60 }
 0x1a5   :  { %6309 = vmatpush.msk.msrb.mxu2 %vm1687_vm3, %v2763_v21  ;;  %6314 = vmatpush.msk.msra.mxu3 %vm1687_vm3, %v2764_v5  ;;  %v2726_v21 = vld [vmem:[#allocation2 + $0x280] sm:$0x3]  ;;  %v2717_v5 = vld [vmem:[#allocation2 + $0x1b8] sm:$0xff] }
 0x1a7   :  { %6237 = vmatmul.msk.f32.gmra.mxu0 %vm1674_vm9, %v9204_v34  ;;  %6242 = vmatmul.msk.f32.gmra.mxu1 %vm1674_vm9, %v9204_v34  ;;  %v9316_v49 = vpop.f32.mrf.mxu1 }
 0x1a8   :  { %2989 = vmatpush.msrb.mxu2 %v11656_v6  ;;  %3018 = vmatpush.msra.mxu3 %v11657_v2  ;;  %11662 = vst [vmem:[#allocation22_spill] sm:$0xff] %v9316_v49  ;;  %v2718_v6 = vld [vmem:[#allocation2 + $0x80] sm:$0xff] }
 0x1aa   :  { %2990 = vmatpush.msrb.mxu2 %v1132_v39  ;;  %3019 = vmatpush.msra.mxu3 %v1133_v41  ;;  %v9322_v39 = vpop.f32.mrf.mxu3  ;;  %v9324_v41 = vpop.f32.mrf.mxu2 }
 0x1ab   :  { %6267 = vmatmul.msk.f32.gmra.mxu2 %vm1674_vm9, %v9204_v34  ;;  %6272 = vmatmul.msk.f32.gmra.mxu3 %vm1674_vm9, %v9204_v34 }
 0x1af   :  { %6238 = vmatmul.msk.f32.gmra.mxu0 %vm1674_vm9, %v9227_v42  ;;  %6243 = vmatmul.msk.f32.gmra.mxu1 %vm1674_vm9, %v9227_v42  ;;  %v9336_v44 = vpop.f32.mrf.mxu1 }
 0x1b0   :  { %11664 = vst [vmem:[#allocation26_spill] sm:$0xff] %v9336_v44 }
 0x1b3   :  { %6268 = vmatmul.msk.f32.gmra.mxu2 %vm1674_vm9, %v9227_v42  ;;  %6273 = vmatmul.msk.f32.gmra.mxu3 %vm1674_vm9, %v9227_v42 }
 0x1b7   :  { %6239 = vmatmul.msk.f32.gmra.mxu0 %vm1674_vm9, %v9244_v59  ;;  %6244 = vmatmul.msk.f32.gmra.mxu1 %vm1674_vm9, %v9244_v59  ;;  %v9374_v51 = vpop.f32.mrf.mxu1 }
 0x1b8   :  { %11666 = vst [vmem:[#allocation18_spill] sm:$0xff] %v9374_v51  ;;  %v3313_v51 = vld [vmem:[#allocation2 + $0xc0] sm:$0xff] }
 0x1bb   :  { %6269 = vmatmul.msk.f32.gmra.mxu2 %vm1674_vm9, %v9244_v59  ;;  %6274 = vmatmul.msk.f32.gmra.mxu3 %vm1674_vm9, %v9244_v59 }
 0x1bf   :  { %6256 = vmatmul.msk.f32.vlgmr.msra.gmra.mxu0 %vm1674_vm9, %v9159_v3  ;;  %6261 = vmatmul.msk.f32.vlgmr.msrb.gmra.mxu1 %vm1674_vm9, %v9159_v3 }
 0x1c0   :  { %6299 = vmatpush.msk.msra.mxu0 %vm1687_vm3, %v2761_v55  ;;  %6304 = vmatpush.msk.msrb.mxu1 %vm1687_vm3, %v2762_v32  ;;  %v2709_v55 = vld [vmem:[#allocation2 + $0x220] sm:$0xff]  ;;  %v2710_v32 = vld [vmem:[#allocation2 + $0x258] sm:$0xff] }
 0x1c2   :  { %v9345_v47 = vpop.f32.mrf.mxu3  ;;  %2931 = vmatpush.msra.mxu0 %v1138_v36  ;;  %2960 = vmatpush.msrb.mxu1 %v1139_v45  ;;  %v9351_v3 = vpop.f32.mrf.mxu2  ;;  %v2719_v36 = vld [vmem:[#allocation2 + $0x188] sm:$0xff] }
 0x1c3   :  { %6290 = vmatmul.msk.f32.vlgmr.msra.gmra.mxu2 %vm1674_vm9, %v9343_v62  ;;  %6295 = vmatmul.msk.f32.vlgmr.msrb.gmra.mxu3 %vm1674_vm9, %v9343_v62  ;;  %v9367_v45 = vpop.f32.mrf.mxu0 }
 0x1c4   :  { %2932 = vmatpush.msra.mxu0 %v1130_v22  ;;  %2961 = vmatpush.msrb.mxu1 %v1131_v1  ;;  %11665 = vst [vmem:[#allocation24_spill] sm:$0xff] %v9367_v45  ;;  %v2711_v22 = vld [vmem:[#allocation2 + $0x238] sm:$0xff]  ;;  %v2712_v1 = vld [vmem:[#allocation2 + $0x130] sm:$0xff]  ;;  %v3305_v45 = vld [vmem:[#allocation2 + $0x1e0] sm:$0xff] }
 0x1c5   :  { %6329 = vmatpush.msk.msra.mxu2 %vm1687_vm3, %v2727_v28  ;;  %6334 = vmatpush.msk.msrb.mxu3 %vm1687_vm3, %v2728_v38  ;;  %v2731_v38 = vld [vmem:[#allocation2 + $0x210] sm:$0x3] }
 0x1c7   :  { %6257 = vmatmul.msk.f32.gmra.mxu0 %vm1674_vm9, %v9204_v34  ;;  %6262 = vmatmul.msk.f32.gmra.mxu1 %vm1674_vm9, %v9204_v34 }
 0x1c8   :  { %3141 = vmatpush.msra.mxu2 %v2719_v36  ;;  %3170 = vmatpush.msrb.mxu3 %v2720_v19  ;;  %v2732_v36 = vld [vmem:[#allocation2 + $0x50] sm:$0x3] }
 0x1ca   :  { %3142 = vmatpush.msra.mxu2 %v2711_v22  ;;  %3171 = vmatpush.msrb.mxu3 %v2712_v1  ;;  %v9376_v53 = vpop.f32.mrf.mxu3  ;;  %v9397_v20 = vpop.f32.mrf.mxu1  ;;  %v2723_v1 = vld [vmem:[#allocation2 + $0x218] sm:$0xff] }
 0x1cb   :  { %6291 = vmatmul.msk.f32.gmra.mxu2 %vm1674_vm9, %v9372_v43  ;;  %6296 = vmatmul.msk.f32.gmra.mxu3 %vm1674_vm9, %v9372_v43  ;;  %v9393_v11 = vpop.f32.mrf.mxu0 }
 0x1cc   :  { %v9382_v34 = vpop.f32.mrf.mxu2 }
 0x1cf   :  { %6258 = vmatmul.msk.f32.gmra.mxu0 %vm1674_vm9, %v9227_v42  ;;  %6263 = vmatmul.msk.f32.gmra.mxu1 %vm1674_vm9, %v9227_v42  ;;  %v9412_v42 = vld [vmem:[%s11383_s4 + $0x38] sm:$0xff] }
 0x1d2   :  { %v9395_v15 = vpop.f32.mrf.mxu3  ;;  %v9424_v60 = vpop.f32.mrf.mxu1 }
 0x1d3   :  { %6292 = vmatmul.msk.f32.gmra.mxu2 %vm1674_vm9, %v9391_v0  ;;  %6297 = vmatmul.msk.f32.gmra.mxu3 %vm1674_vm9, %v9391_v0  ;;  %v9422_v26 = vpop.f32.mrf.mxu0 }
 0x1d4   :  { %v9403_v24 = vpop.f32.mrf.mxu2 }
 0x1d7   :  { %6259 = vmatmul.msk.f32.gmra.mxu0 %vm1674_vm9, %v9244_v59  ;;  %6264 = vmatmul.msk.f32.gmra.mxu1 %vm1674_vm9, %v9244_v59  ;;  %v2725_v59 = vld [vmem:[#allocation2 + $0x1c8] sm:$0x3] }
 0x1da   :  { %v9414_v29 = vpop.f32.mrf.mxu3  ;;  %v9448_v22 = vpop.f32.mrf.mxu1 }
 0x1db   :  { %6293 = vmatmul.msk.f32.gmra.mxu2 %vm1674_vm9, %v9412_v42  ;;  %6298 = vmatmul.msk.f32.gmra.mxu3 %vm1674_vm9, %v9412_v42  ;;  %v9446_v19 = vpop.f32.mrf.mxu0 }
 0x1dc   :  { %v9420_v46 = vpop.f32.mrf.mxu2 }
 0x1df   :  { %6280 = vmatmul.msk.f32.vlgmr.msrb.gmra.mxu0 %vm1674_vm9, %v9343_v62  ;;  %6285 = vmatmul.msk.f32.vlgmr.msra.gmra.mxu1 %vm1674_vm9, %v9343_v62 }
 0x1e0   :  { %6319 = vmatpush.msk.msrb.mxu0 %vm1687_vm3, %v2725_v59  ;;  %6324 = vmatpush.msk.msra.mxu1 %vm1687_vm3, %v2726_v21  ;;  %v2724_v59 = vld [vmem:[#allocation2 + $0x250] sm:$0xff]  ;;  %v2715_v21 = vld [vmem:[#allocation2 + $0x2e0] sm:$0xff] }
 0x1e2   :  { %3083 = vmatpush.msrb.mxu0 %v2717_v5  ;;  %3112 = vmatpush.msra.mxu1 %v2718_v6  ;;  %v9432_v2 = vpop.f32.mrf.mxu3  ;;  %v2716_v5 = vld [vmem:[#allocation2 + $0x1a8] sm:$0xff] }
 0x1e3   :  { %6310 = vmatmul.msk.f32.vlgmr.msrb.gmra.mxu2 %vm1674_vm9, %v9343_v62  ;;  %6315 = vmatmul.msk.f32.vlgmr.msra.gmra.mxu3 %vm1674_vm9, %v9343_v62 }
 0x1e4   :  { %v9438_v28 = vpop.f32.mrf.mxu2  ;;  %3084 = vmatpush.msrb.mxu0 %v2709_v55  ;;  %3113 = vmatpush.msra.mxu1 %v2710_v32  ;;  %v9462_v32 = vpop.f32.mrf.mxu0 }
 0x1e5   :  { %6349 = vmatpush.msk.msrb.mxu2 %vm1687_vm3, %v2731_v38  ;;  %6354 = vmatpush.msk.msra.mxu3 %vm1687_vm3, %v2732_v36  ;;  %v9464_v38 = vpop.f32.mrf.mxu1 }
 0x1e7   :  { %6281 = vmatmul.msk.f32.gmra.mxu0 %vm1674_vm9, %v9372_v43  ;;  %6286 = vmatmul.msk.f32.gmra.mxu1 %vm1674_vm9, %v9372_v43 }
 0x1e8   :  { %3257 = vmatpush.msrb.mxu2 %v2723_v1  ;;  %3286 = vmatpush.msra.mxu3 %v2724_v59 }
 0x1ea   :  { %3258 = vmatpush.msrb.mxu2 %v2715_v21  ;;  %3287 = vmatpush.msra.mxu3 %v2716_v5  ;;  %v9450_v6 = vpop.f32.mrf.mxu3 }
 0x1eb   :  { %11667 = vst [vmem:[#allocation20_spill] sm:$0xff] %v9450_v6  ;;  %6311 = vmatmul.msk.f32.gmra.mxu2 %vm1674_vm9, %v9372_v43  ;;  %6316 = vmatmul.msk.f32.gmra.mxu3 %vm1674_vm9, %v9372_v43 }
 0x1ec   :  { %v9456_v55 = vpop.f32.mrf.mxu2 }
 0x1ef   :  { %6282 = vmatmul.msk.f32.gmra.mxu0 %vm1674_vm9, %v9391_v0  ;;  %6287 = vmatmul.msk.f32.gmra.mxu1 %vm1674_vm9, %v9391_v0 }
 0x1f2   :  { %v9466_v36 = vpop.f32.mrf.mxu3 }
 0x1f3   :  { %11668 = vst [vmem:[#allocation27_spill] sm:$0xff] %v9466_v36  ;;  %6312 = vmatmul.msk.f32.gmra.mxu2 %vm1674_vm9, %v9391_v0  ;;  %6317 = vmatmul.msk.f32.gmra.mxu3 %vm1674_vm9, %v9391_v0  ;;  %v2062_v36 = vadd.f32 %v9403_v24, %v9195_v40  ;;  %v2085_v40 = vadd.f32 %v9345_v47, %v9108_v27 }
 0x1f4   :  { %v9472_v1 = vpop.f32.mrf.mxu2 }
 0x1f5   :  { %11669 = vst [vmem:[#allocation14_spill] sm:$0xff] %v9472_v1  ;;  %v2094_v1 = vadd.f32 %v9414_v29, %v9229_v18  ;;  %v2059_v18 = vadd.f32 %v9382_v34, %v9148_v8  ;;  %v2056_v8 = vadd.f32 %v9351_v3, %v9106_v10 }
 0x1f7   :  { %6283 = vmatmul.msk.f32.gmra.mxu0 %vm1674_vm9, %v9412_v42  ;;  %6288 = vmatmul.msk.f32.gmra.mxu1 %vm1674_vm9, %v9412_v42 }
 0x1fa   :  { %v2209_v59 = vpop.f32.mrf.mxu3 }
 0x1fb   :  { %6313 = vmatmul.msk.f32.gmra.mxu2 %vm1674_vm9, %v9412_v42  ;;  %6318 = vmatmul.msk.f32.gmra.mxu3 %vm1674_vm9, %v9412_v42  ;;  %v9487_v33 = vadd.f32 %v2209_v59, %v9322_v39  ;;  %v9501_v39 = vld [vmem:[%s11383_s4] sm:$0xff]  ;;  %v2721_v59 = vld [vmem:[#allocation2 + $0x38] sm:$0xff] }
 0x1fc   :  { %v9478_v21 = vpop.f32.mrf.mxu0  ;;  %v9480_v5 = vpop.f32.mrf.mxu1 }
 0x1fd   :  { %11670 = vst [vmem:[#allocation23_spill] sm:$0xff] %v9478_v21  ;;  %v2180_v16 = vpop.f32.mrf.mxu2  ;;  %v3323_v21 = vld [vmem:[#allocation2 + $0x88] sm:$0x3] }
 0x1fe   :  { %11671 = vst [vmem:[#allocation29_spill] sm:$0xff] %v9480_v5  ;;  %v9490_v37 = vadd.f32 %v2180_v16, %v9324_v41  ;;  %v2730_v5 = vld [vmem:[#allocation2 + $0x60] sm:$0x3]  ;;  %v2722_v16 = vld [vmem:[#allocation2 + $0x190] sm:$0xff]  ;;  %v2713_v41 = vld [vmem:[#allocation2 + $0x158] sm:$0xff] }
 0x1ff   :  { %11672 = vst [vmem:[#allocation31_spill] sm:$0xff] %v9487_v33  ;;  %6300 = vmatmul.msk.f32.vlgmr.msra.gmra.mxu0 %vm1674_vm9, %v9343_v62  ;;  %6305 = vmatmul.msk.f32.vlgmr.msrb.gmra.mxu1 %vm1674_vm9, %v9343_v62  ;;  %v3311_v33 = vld [vmem:[#allocation2 + $0x160] sm:$0xff] }
 0x200   :  { %11673 = vst [vmem:[#allocation32_spill] sm:$0xff] %v9490_v37  ;;  %6339 = vmatpush.msk.msra.mxu0 %vm1687_vm3, %v2729_v61  ;;  %6344 = vmatpush.msk.msrb.mxu1 %vm1687_vm3, %v2730_v5  ;;  %v3312_v37 = vld [vmem:[#allocation2 + $0x2d8] sm:$0xff] }
 0x202   :  { %3199 = vmatpush.msra.mxu0 %v2721_v59  ;;  %3228 = vmatpush.msrb.mxu1 %v2722_v16  ;;  %v3315_v16 = vld [vmem:[#allocation2 + $0x90] sm:$0xff] }
 0x203   :  { %6330 = vmatmul.msk.f32.vlgmr.msra.gmra.mxu2 %vm1674_vm9, %v9501_v39  ;;  %6335 = vmatmul.msk.f32.vlgmr.msrb.gmra.mxu3 %vm1674_vm9, %v9501_v39 }
 0x204   :  { %v9507_v61 = vpop.f32.mrf.mxu3  ;;  %3200 = vmatpush.msra.mxu0 %v2713_v41  ;;  %3229 = vmatpush.msrb.mxu1 %v2714_v57  ;;  %v9509_v62 = vpop.f32.mrf.mxu0  ;;  %v3316_v57 = vld [vmem:[#allocation2 + $0xb0] sm:$0xff]  ;;  %v9524_v41 = vld [vmem:[%s11383_s4 + $0x8] sm:$0xff] }
 0x205   :  { %11674 = vst [vmem:[#allocation33_spill] sm:$0xff] %v9509_v62  ;;  %v9511_v5 = vpop.f32.mrf.mxu1  ;;  %6373 = vmatpush.msk.msra.mxu2 %vm1687_vm3, %v3323_v21  ;;  %6378 = vmatpush.msk.msrb.mxu3 %vm1687_vm3, %v3324_v48  ;;  %v9515_v59 = vpop.f32.mrf.mxu2  ;;  %v3307_v21 = vld [vmem:[#allocation2 + $0x2c8] sm:$0xff]  ;;  %v2512_v47 = vadd.f32 %v9507_v61, %v2085_v40 }
 0x206   :  { %11675 = vst [vmem:[#allocation34_spill] sm:$0xff] %v9511_v5  ;;  %v3308_v5 = vld [vmem:[#allocation2 + $0x1d0] sm:$0xff]  ;;  %v2511_v34 = vadd.f32 %v9515_v59, %v2056_v8  ;;  %v3325_v61 = vld [vmem:[#allocation2 + $0x108] sm:$0x3]  ;;  %v3326_v59 = vld [vmem:[#allocation2 + $0x198] sm:$0x3] }
 0x207   :  { %6301 = vmatmul.msk.f32.gmra.mxu0 %vm1674_vm9, %v9372_v43  ;;  %6306 = vmatmul.msk.f32.gmra.mxu1 %vm1674_vm9, %v9372_v43  ;;  %v3309_v8 = vld [vmem:[#allocation2 + $0x140] sm:$0xff] }
 0x208   :  { %3437 = vmatpush.msra.mxu2 %v3315_v16  ;;  %3466 = vmatpush.msrb.mxu3 %v3316_v57 }
 0x20a   :  { %3438 = vmatpush.msra.mxu2 %v3307_v21  ;;  %3467 = vmatpush.msrb.mxu3 %v3308_v5  ;;  %v9545_v5 = vld [vmem:[%s11383_s4 + $0x10] sm:$0xff] }
 0x20b   :  { %6331 = vmatmul.msk.f32.gmra.mxu2 %vm1674_vm9, %v9524_v41  ;;  %6336 = vmatmul.msk.f32.gmra.mxu3 %vm1674_vm9, %v9524_v41 }
 0x20c   :  { %v9530_v48 = vpop.f32.mrf.mxu0 }
 0x20d   :  { %11676 = vst [vmem:[#allocation35_spill] sm:$0xff] %v9530_v48  ;;  %v9532_v43 = vpop.f32.mrf.mxu1 }
 0x20e   :  { %11677 = vst [vmem:[#allocation36_spill] sm:$0xff] %v9532_v43  ;;  %v9534_v16 = vpop.f32.mrf.mxu2  ;;  %v9536_v57 = vpop.f32.mrf.mxu3 }
 0x20f   :  { %6302 = vmatmul.msk.f32.gmra.mxu0 %vm1674_vm9, %v9391_v0  ;;  %6307 = vmatmul.msk.f32.gmra.mxu1 %vm1674_vm9, %v9391_v0  ;;  %v9566_v0 = vld [vmem:[%s11383_s4 + $0x18] sm:$0xff] }
 0x213   :  { %6332 = vmatmul.msk.f32.gmra.mxu2 %vm1674_vm9, %v9545_v5  ;;  %6337 = vmatmul.msk.f32.gmra.mxu3 %vm1674_vm9, %v9545_v5 }
 0x214   :  { %v9551_v21 = vpop.f32.mrf.mxu0 }
 0x215   :  { %11678 = vst [vmem:[#allocation37_spill] sm:$0xff] %v9551_v21  ;;  %v9553_v49 = vpop.f32.mrf.mxu1  ;;  %v3314_v21 = vld [vmem:[#allocation2 + $0x170] sm:$0xff] }
 0x216   :  { %11679 = vst [vmem:[#allocation38_spill] sm:$0xff] %v9553_v49  ;;  %v9555_v62 = vpop.f32.mrf.mxu2  ;;  %v9557_v9 = vpop.f32.mrf.mxu3  ;;  %v3322_v49 = vld [vmem:[#allocation2 + $0x268] sm:$0x3] }
 0x217   :  { %6303 = vmatmul.msk.f32.gmra.mxu0 %vm1674_vm9, %v9412_v42  ;;  %6308 = vmatmul.msk.f32.gmra.mxu1 %vm1674_vm9, %v9412_v42  ;;  %v3321_v42 = vld [vmem:[#allocation2 + $0x260] sm:$0x3]  ;;  %v2527_v29 = vadd.f32 %v9555_v62, %v2062_v36 }
 0x21b   :  { %6333 = vmatmul.msk.f32.gmra.mxu2 %vm1674_vm9, %v9566_v0  ;;  %6338 = vmatmul.msk.f32.gmra.mxu3 %vm1674_vm9, %v9566_v0 }
 0x21c   :  { %v9572_v43 = vpop.f32.mrf.mxu0 }
 0x21d   :  { %11680 = vst [vmem:[#allocation39_spill] sm:$0xff] %v9572_v43  ;;  %v9574_v44 = vpop.f32.mrf.mxu1 }
 0x21e   :  { %11681 = vst [vmem:[#allocation40_spill] sm:$0xff] %v9574_v44  ;;  %v2361_v48 = vpop.f32.mrf.mxu2  ;;  %v2390_v14 = vpop.f32.mrf.mxu3  ;;  %v3306_v44 = vld [vmem:[#allocation2 + $0x150] sm:$0xff] }
 0x21f   :  { %6320 = vmatmul.msk.f32.vlgmr.msrb.gmra.mxu0 %vm1674_vm9, %v9501_v39  ;;  %6325 = vmatmul.msk.f32.vlgmr.msra.gmra.mxu1 %vm1674_vm9, %v9501_v39  ;;  %v2536_v43 = vadd.f32 %v2390_v14, %v2094_v1  ;;  %v2088_v14 = vadd.f32 %v9376_v53, %v9150_v35  ;;  %v2519_v35 = vadd.f32 %v9534_v16, %v2059_v18  ;;  %v3318_v18 = vld [vmem:[#allocation2 + $0xd8] sm:$0xff] }
 0x220   :  { %6363 = vmatpush.msk.msrb.mxu0 %vm1687_vm3, %v3321_v42  ;;  %6368 = vmatpush.msk.msra.mxu1 %vm1687_vm3, %v3322_v49  ;;  %v3327_v42 = vld [vmem:[#allocation2 + $0x148] sm:$0x3]  ;;  %v3328_v49 = vld [vmem:[#allocation2 + $0x118] sm:$0x3] }
 0x222   :  { %3379 = vmatpush.msrb.mxu0 %v3313_v51  ;;  %3408 = vmatpush.msra.mxu1 %v3314_v21 }
 0x223   :  { %6350 = vmatmul.msk.f32.vlgmr.msrb.gmra.mxu2 %vm1674_vm9, %v9501_v39  ;;  %6355 = vmatmul.msk.f32.vlgmr.msra.gmra.mxu3 %vm1674_vm9, %v9501_v39 }
 0x224   :  { %3380 = vmatpush.msrb.mxu0 %v3305_v45  ;;  %3409 = vmatpush.msra.mxu1 %v3306_v44  ;;  %v9586_v6 = vpop.f32.mrf.mxu0  ;;  %v3319_v44 = vld [vmem:[#allocation2 + $0x1d8] sm:$0xff]  ;;  %v3320_v45 = vld [vmem:[#allocation2 + $0x2e8] sm:$0xff] }
 0x225   :  { %11682 = vst [vmem:[#allocation41_spill] sm:$0xff] %v9586_v6  ;;  %v9588_v7 = vpop.f32.mrf.mxu1  ;;  %6393 = vmatpush.msk.msrb.mxu2 %vm1687_vm3, %v3327_v42  ;;  %6398 = vmatpush.msk.msra.mxu3 %vm1687_vm3, %v3328_v49 }
 0x226   :  { %11683 = vst [vmem:[#allocation42_spill] sm:$0xff] %v9588_v7  ;;  %v9592_v51 = vpop.f32.mrf.mxu2  ;;  %v9594_v21 = vpop.f32.mrf.mxu3 }
 0x227   :  { %11684 = vst [vmem:[#allocation43_spill] sm:$0xff] %v9592_v51  ;;  %6321 = vmatmul.msk.f32.gmra.mxu0 %vm1674_vm9, %v9524_v41  ;;  %6326 = vmatmul.msk.f32.gmra.mxu1 %vm1674_vm9, %v9524_v41 }
 0x228   :  { %11685 = vst [vmem:[#allocation44_spill] sm:$0xff] %v9594_v21  ;;  %3553 = vmatpush.msrb.mxu2 %v3319_v44  ;;  %3582 = vmatpush.msra.mxu3 %v3320_v45  ;;  %v9612_v44 = vpop.permute.xlu0 %2558 }
 0x22a   :  { %3554 = vmatpush.msrb.mxu2 %v3311_v33  ;;  %3583 = vmatpush.msra.mxu3 %v3312_v37  ;;  %v9618_v37 = vpop.permute.xlu1 %2553 }
 0x22b   :  { %6351 = vmatmul.msk.f32.gmra.mxu2 %vm1674_vm9, %v9524_v41  ;;  %6356 = vmatmul.msk.f32.gmra.mxu3 %vm1674_vm9, %v9524_v41 }
 0x22c   :  { %v9604_v42 = vpop.f32.mrf.mxu0 }
 0x22d   :  { %v9606_v49 = vpop.f32.mrf.mxu1 }
 0x22e   :  { %v9608_v21 = vpop.f32.mrf.mxu2  ;;  %v9610_v51 = vpop.f32.mrf.mxu3 }
 0x22f   :  { %11686 = vst [vmem:[#allocation45_spill] sm:$0xff] %v9608_v21  ;;  %6322 = vmatmul.msk.f32.gmra.mxu0 %vm1674_vm9, %v9545_v5  ;;  %6327 = vmatmul.msk.f32.gmra.mxu1 %vm1674_vm9, %v9545_v5  ;;  %v2065_v21 = vadd.f32 %v9420_v46, %v9231_v4  ;;  %v2091_v4 = vadd.f32 %v9395_v15, %v9189_v58 }
 0x230   :  { %11687 = vst [vmem:[#allocation46_spill] sm:$0xff] %v9610_v51  ;;  %v9628_v51 = vpop.permute.xlu2 %2610  ;;  %v9646_v46 = vpop.permute.xlu0 %2548  ;;  %v2588_v58 = vmul.f32 %v9612_v44, %v2536_v43  ;;  %v2579_v15 = vmul.f32 %v9618_v37, %v2527_v29 }
 0x231   :  { %v2535_v6 = vadd.f32 %v2361_v48, %v2065_v21  ;;  %v2528_v1 = vadd.f32 %v9557_v9, %v2091_v4  ;;  %v2520_v9 = vadd.f32 %v9536_v57, %v2088_v14  ;;  %v2571_v16 = vmul.f32 %v9646_v46, %v2519_v35  ;;  %v9695_v21 = vld [vmem:[%s11383_s4 + $0x40] sm:$0xff]  ;;  %v3310_v35 = vld [vmem:[#allocation2 + $0x230] sm:$0xff] }
 0x232   :  { %v9654_v48 = vpop.permute.xlu1 %2605  ;;  %v2640_v3 = vadd.f32 %v9628_v51, %v2588_v58 }
 0x233   :  { %6352 = vmatmul.msk.f32.gmra.mxu2 %vm1674_vm9, %v9545_v5  ;;  %6357 = vmatmul.msk.f32.gmra.mxu3 %vm1674_vm9, %v9545_v5  ;;  %v2587_v24 = vmul.f32 %v9612_v44, %v2535_v6  ;;  %v2580_v6 = vmul.f32 %v9618_v37, %v2528_v1  ;;  %v2572_v57 = vmul.f32 %v9646_v46, %v2520_v9 }
 0x234   :  { %v9624_v33 = vpop.f32.mrf.mxu0  ;;  %v2631_v29 = vadd.f32 %v9654_v48, %v2579_v15  ;;  %v2672_v58 = vmax.f32 %v2640_v3, 0.0 }
 0x235   :  { %v9626_v45 = vpop.f32.mrf.mxu1  ;;  %v2639_v10 = vadd.f32 %v9628_v51, %v2587_v24  ;;  %v2632_v1 = vadd.f32 %v9654_v48, %v2580_v6 }
 0x236   :  { %v9634_v31 = vpop.f32.mrf.mxu2  ;;  %v9636_v7 = vpop.f32.mrf.mxu3 }
 0x237   :  { %6323 = vmatmul.msk.f32.gmra.mxu0 %vm1674_vm9, %v9566_v0  ;;  %6328 = vmatmul.msk.f32.gmra.mxu1 %vm1674_vm9, %v9566_v0  ;;  %v2671_v24 = vmax.f32 %v2639_v10, 0.0  ;;  %v2663_v10 = vmax.f32 %v2631_v29, 0.0  ;;  %v2664_v3 = vmax.f32 %v2632_v1, 0.0  ;;  %v9728_v29 = vld [vmem:[%s11383_s4 + $0x48] sm:$0xff] }
 0x238   :  { %v9686_v43 = vpop.permute.xlu2 %2543  ;;  %v9701_v40 = vpop.permute.xlu0 %2600 }
 0x239   :  { %v2564_v4 = vmul.f32 %v9686_v43, %v2512_v47  ;;  %v2563_v14 = vmul.f32 %v9686_v43, %v2511_v34  ;;  %v2623_v34 = vadd.f32 %v9701_v40, %v2571_v16  ;;  %v2624_v15 = vadd.f32 %v9701_v40, %v2572_v57 }
 0x23a   :  { %v9713_v6 = vpop.permute.xlu1 %2595 }
 0x23b   :  { %6353 = vmatmul.msk.f32.gmra.mxu2 %vm1674_vm9, %v9566_v0  ;;  %6358 = vmatmul.msk.f32.gmra.mxu3 %vm1674_vm9, %v9566_v0  ;;  %v2655_v16 = vmax.f32 %v2623_v34, 0.0  ;;  %v2656_v57 = vmax.f32 %v2624_v15, 0.0  ;;  %v9753_v34 = vld [vmem:[%s11383_s4 + $0x50] sm:$0xff]  ;;  %v2004_v15 = vadd.f32 %v9446_v19, %v9074_v52  ;;  %v2030_v52 = vadd.f32 %v9424_v60, %v9218_v17  ;;  %v11690_v60 = vld [vmem:[#allocation39_spill] sm:$0xff] }
 0x23c   :  { %v9668_v53 = vpop.f32.mrf.mxu0 }
 0x23d   :  { %v9670_v27 = vpop.f32.mrf.mxu1 }
 0x23e   :  { %v9676_v36 = vpop.f32.mrf.mxu2  ;;  %v9678_v62 = vpop.f32.mrf.mxu3 }
 0x23f   :  { %6340 = vmatmul.msk.f32.vlgmr.msra.gmra.mxu0 %vm1674_vm9, %v9501_v39  ;;  %6345 = vmatmul.msk.f32.vlgmr.msrb.gmra.mxu1 %vm1674_vm9, %v9501_v39  ;;  %v3317_v39 = vld [vmem:[#allocation2 + $0x200] sm:$0xff] }
 0x240   :  { %6383 = vmatpush.msk.msra.mxu0 %vm1687_vm3, %v3325_v61  ;;  %6388 = vmatpush.msk.msrb.mxu1 %vm1687_vm3, %v3326_v59  ;;  %vm4031_vm3 = vcmask 261120  }
 0x242   :  { %3495 = vmatpush.msra.mxu0 %v3317_v39  ;;  %3524 = vmatpush.msrb.mxu1 %v3318_v18  ;;  %v2615_v39 = vadd.f32 %v9713_v6, %v2563_v14  ;;  %v2616_v18 = vadd.f32 %v9713_v6, %v2564_v4 }
 0x243   :  { %6374 = vmatmul.msk.f32.vlgmr.msra.gmra.mxu2 %vm1674_vm9, %v9695_v21  ;;  %6379 = vmatmul.msk.f32.vlgmr.msrb.gmra.mxu3 %vm1674_vm9, %v9695_v21 }
 0x244   :  { %3496 = vmatpush.msra.mxu0 %v3309_v8  ;;  %3525 = vmatpush.msrb.mxu1 %v3310_v35  ;;  %v9707_v9 = vpop.f32.mrf.mxu0  ;;  %v2647_v14 = vmax.f32 %v2615_v39, 0.0  ;;  %v2648_v1 = vmax.f32 %v2616_v18, 0.0  ;;  %v2007_v8 = vadd.f32 %v9462_v32, %v9098_v12  ;;  %v2036_v35 = vadd.f32 %v9464_v38, %v9262_v25  ;;  %v11688_v39 = vld [vmem:[#allocation21_spill] sm:$0xff] }
 0x245   :  { %v9709_v47 = vpop.f32.mrf.mxu1  ;;  %4114 = vmatpush.msra.mxu2 %v2671_v24  ;;  %4143 = vmatpush.msrb.mxu3 %v2672_v58  ;;  %v1998_v12 = vadd.f32 %v9393_v11, %v11688_v39  ;;  %v2027_v25 = vadd.f32 %v9397_v20, %v9181_v50  ;;  %v2001_v32 = vadd.f32 %v9422_v26, %v9013_v54  ;;  %v11700_v39 = vld [vmem:[#allocation45_spill] sm:$0xff] }
 0x246   :  { %v9715_v61 = vpop.f32.mrf.mxu2  ;;  %v9717_v59 = vpop.f32.mrf.mxu3  ;;  %v2525_v11 = vadd.f32 %v9604_v42, %v2004_v15  ;;  %v2172_v54 = vadd.f32 %v9438_v28, %v9254_v23  ;;  %v2175_v26 = vadd.f32 %v9456_v55, %v9278_v13  ;;  %v11692_v42 = vld [vmem:[#allocation42_spill] sm:$0xff]  ;;  %v11693_v23 = vld [vmem:[#allocation9_spill] sm:$0xff]  ;;  %v11695_v55 = vld [vmem:[#allocation32_spill] sm:$0xff] }
 0x247   :  { %6341 = vmatmul.msk.f32.gmra.mxu0 %vm1674_vm9, %v9524_v41  ;;  %6346 = vmatmul.msk.f32.gmra.mxu1 %vm1674_vm9, %v9524_v41  ;;  %v2509_v38 = vadd.f32 %v11690_v60, %v1998_v12  ;;  %v11694_v28 = vld [vmem:[#allocation14_spill] sm:$0xff]  ;;  %v11699_v15 = vld [vmem:[#allocation40_spill] sm:$0xff] }
 0x248   :  { %4115 = vmatpush.msra.mxu2 %v2663_v10  ;;  %4144 = vmatpush.msrb.mxu3 %v2664_v3  ;;  %v2033_v10 = vadd.f32 %v9448_v22, %v9246_v56  ;;  %v2533_v3 = vadd.f32 %v9624_v33, %v2007_v8  ;;  %v2201_v56 = vadd.f32 %v9432_v2, %v9248_v30  ;;  %v11689_v22 = vld [vmem:[#allocation27_spill] sm:$0xff]  ;;  %v11691_v30 = vld [vmem:[#allocation41_spill] sm:$0xff]  ;;  %v11698_v8 = vld [vmem:[#allocation20_spill] sm:$0xff] }
 0x249   :  { %v2207_v17 = vadd.f32 %v11689_v22, %v9302_v63  ;;  %v2517_v2 = vadd.f32 %v11691_v30, %v2001_v32  ;;  %v2518_v33 = vadd.f32 %v11692_v42, %v2030_v52  ;;  %v2178_v13 = vadd.f32 %v11694_v28, %v11693_v23  ;;  %v11701_v22 = vld [vmem:[#allocation46_spill] sm:$0xff] }
 0x24a   :  { %4116 = vmatpush.msra.mxu2 %v2655_v16  ;;  %4145 = vmatpush.msrb.mxu3 %v2656_v57  ;;  %v2526_v19 = vadd.f32 %v9606_v49, %v2033_v10  ;;  %v2585_v49 = vmul.f32 %v9612_v44, %v2533_v3  ;;  %v2539_v63 = vadd.f32 %v9676_v36, %v11695_v55  ;;  %v11696_v57 = vld [vmem:[#allocation31_spill] sm:$0xff]  ;;  %v9814_v36 = vld [vmem:[%s11383_s4 + $0x58] sm:$0xff] }
 0x24b   :  { %6375 = vmatmul.msk.f32.gmra.mxu2 %vm1674_vm9, %v9728_v29  ;;  %6380 = vmatmul.msk.f32.gmra.mxu3 %vm1674_vm9, %v9728_v29  ;;  %v2510_v10 = vadd.f32 %v11699_v15, %v2027_v25  ;;  %v2577_v3 = vmul.f32 %v9618_v37, %v2525_v11  ;;  %v2523_v12 = vadd.f32 %v11700_v39, %v2175_v26 }
 0x24c   :  { %v9734_v41 = vpop.f32.mrf.mxu0  ;;  %4117 = vmatpush.msra.mxu2 %v2647_v14  ;;  %4146 = vmatpush.msrb.mxu3 %v2648_v1  ;;  %v2540_v14 = vadd.f32 %v9678_v62, %v11696_v57  ;;  %v11697_v1 = vld [vmem:[#allocation12_spill] sm:$0xff]  ;;  %v2561_v62 = vmul.f32 %v9686_v43, %v2509_v38  ;;  %v2532_v32 = vadd.f32 %v9636_v7, %v2207_v17 }
 0x24d   :  { %v9736_v4 = vpop.f32.mrf.mxu1  ;;  %v2569_v52 = vmul.f32 %v9646_v46, %v2517_v2  ;;  %v2570_v25 = vmul.f32 %v9646_v46, %v2518_v33  ;;  %v2637_v11 = vadd.f32 %v9628_v51, %v2585_v49  ;;  %v2591_v30 = vmul.f32 %v9612_v44, %v2539_v63  ;;  %v11703_v49 = vld [vmem:[#allocation44_spill] sm:$0xff] }
 0x24e   :  { %v9738_v24 = vpop.f32.mrf.mxu2  ;;  %v9740_v58 = vpop.f32.mrf.mxu3  ;;  %v2592_v38 = vmul.f32 %v9612_v44, %v2540_v14  ;;  %v2562_v7 = vmul.f32 %v9686_v43, %v2510_v10  ;;  %v2629_v42 = vadd.f32 %v9654_v48, %v2577_v3  ;;  %v2575_v23 = vmul.f32 %v9646_v46, %v2523_v12 }
 0x24f   :  { %6342 = vmatmul.msk.f32.gmra.mxu0 %vm1674_vm9, %v9545_v5  ;;  %6347 = vmatmul.msk.f32.gmra.mxu1 %vm1674_vm9, %v9545_v5  ;;  %v2534_v5 = vadd.f32 %v9626_v45, %v2036_v35  ;;  %v2204_v35 = vadd.f32 %v11698_v8, %v11697_v1  ;;  %v2669_v55 = vmax.f32 %v2637_v11, 0.0  ;;  %v2622_v57 = vadd.f32 %v9701_v40, %v2570_v25 }
 0x250   :  { %v2661_v15 = vmax.f32 %v2629_v42, 0.0  ;;  %v2613_v3 = vadd.f32 %v9713_v6, %v2561_v62 }
 0x251   :  { %v2586_v45 = vmul.f32 %v9612_v44, %v2534_v5  ;;  %v2578_v5 = vmul.f32 %v9618_v37, %v2526_v19  ;;  %v2524_v60 = vadd.f32 %v11701_v22, %v2204_v35  ;;  %v2644_v35 = vadd.f32 %v9628_v51, %v2592_v38 }
 0x252   :  { %v2627_v38 = vadd.f32 %v9701_v40, %v2575_v23 }
 0x253   :  { %6376 = vmatmul.msk.f32.gmra.mxu2 %vm1674_vm9, %v9753_v34  ;;  %6381 = vmatmul.msk.f32.gmra.mxu3 %vm1674_vm9, %v9753_v34  ;;  %v2638_v19 = vadd.f32 %v9628_v51, %v2586_v45  ;;  %v2630_v33 = vadd.f32 %v9654_v48, %v2578_v5  ;;  %v2516_v45 = vadd.f32 %v11703_v49, %v2201_v56 }
 0x254   :  { %v9777_v50 = vpop.f32.mrf.mxu0  ;;  %v2576_v8 = vmul.f32 %v9646_v46, %v2524_v60  ;;  %v2643_v56 = vadd.f32 %v9628_v51, %v2591_v30  ;;  %v2614_v5 = vadd.f32 %v9713_v6, %v2562_v7  ;;  %v2645_v60 = vmax.f32 %v2613_v3, 0.0  ;;  %v11708_v3 = vld [vmem:[#allocation38_spill] sm:$0xff] }
 0x255   :  { %v9779_v20 = vpop.f32.mrf.mxu1  ;;  %v2670_v63 = vmax.f32 %v2638_v19, 0.0  ;;  %v2662_v10 = vmax.f32 %v2630_v33, 0.0  ;;  %v2568_v12 = vmul.f32 %v9686_v43, %v2516_v45  ;;  %v2676_v19 = vmax.f32 %v2644_v35, 0.0  ;;  %v11706_v35 = vld [vmem:[#allocation37_spill] sm:$0xff] }
 0x256   :  { %v9792_v18 = vpop.f32.mrf.mxu2  ;;  %v9794_v16 = vpop.f32.mrf.mxu3  ;;  %v2675_v11 = vmax.f32 %v2643_v56, 0.0  ;;  %v2646_v30 = vmax.f32 %v2614_v5, 0.0  ;;  %v2628_v7 = vadd.f32 %v9701_v40, %v2576_v8  ;;  %v2659_v23 = vmax.f32 %v2627_v38, 0.0  ;;  %v11705_v56 = vld [vmem:[#allocation24_spill] sm:$0xff] }
 0x257   :  { %6343 = vmatmul.msk.f32.gmra.mxu0 %vm1674_vm9, %v9566_v0  ;;  %6348 = vmatmul.msk.f32.gmra.mxu1 %vm1674_vm9, %v9566_v0  ;;  %v2531_v0 = vadd.f32 %v9634_v31, %v2178_v13  ;;  %v11702_v31 = vld [vmem:[#allocation43_spill] sm:$0xff]  ;;  %v2584_v13 = vmul.f32 %v9618_v37, %v2532_v32  ;;  %v2654_v32 = vmax.f32 %v2622_v57, 0.0  ;;  %v2620_v45 = vadd.f32 %v9713_v6, %v2568_v12 }
 0x258   :  { %v2515_v26 = vadd.f32 %v11702_v31, %v2172_v54  ;;  %v2621_v54 = vadd.f32 %v9701_v40, %v2569_v52  ;;  %v11710_v12 = vld [vmem:[#allocation35_spill] sm:$0xff] }
 0x259   :  { %v2583_v28 = vmul.f32 %v9618_v37, %v2531_v0  ;;  %v2636_v25 = vadd.f32 %v9654_v48, %v2584_v13 }
 0x25a   :  { %v2567_v39 = vmul.f32 %v9686_v43, %v2515_v26  ;;  %v2653_v0 = vmax.f32 %v2621_v54, 0.0 }
 0x25b   :  { %6377 = vmatmul.msk.f32.gmra.mxu2 %vm1674_vm9, %v9814_v36  ;;  %6382 = vmatmul.msk.f32.gmra.mxu3 %vm1674_vm9, %v9814_v36  ;;  %v2635_v52 = vadd.f32 %v9654_v48, %v2583_v28  ;;  %v2668_v26 = vmax.f32 %v2636_v25, 0.0  ;;  %v2660_v28 = vmax.f32 %v2628_v7, 0.0  ;;  %v11715_v7 = vld [vmem:[#allocation22_spill] sm:$0xff] }
 0x25c   :  { %v9833_v17 = vpop.f32.mrf.mxu0  ;;  %v2619_v49 = vadd.f32 %v9713_v6, %v2567_v39  ;;  %v11709_v39 = vld [vmem:[#allocation25_spill] sm:$0xff] }
 0x25d   :  { %v9835_v2 = vpop.f32.mrf.mxu1  ;;  %v2667_v31 = vmax.f32 %v2635_v52, 0.0  ;;  %v11712_v52 = vld [vmem:[#allocation36_spill] sm:$0xff] }
 0x25e   :  { %v9845_v14 = vpop.f32.mrf.mxu2  ;;  %v9847_v1 = vpop.f32.mrf.mxu3  ;;  %v2651_v13 = vmax.f32 %v2619_v49, 0.0 }
 0x25f   :  { %6364 = vmatmul.msk.f32.vlgmr.msrb.gmra.mxu0 %vm1674_vm9, %v9695_v21  ;;  %6369 = vmatmul.msk.f32.vlgmr.msra.gmra.mxu1 %vm1674_vm9, %v9695_v21 }
 0x260   :  { %4056 = vmatpush.msrb.mxu0 %v2669_v55  ;;  %4085 = vmatpush.msra.mxu1 %v2670_v63  ;;  %v2652_v55 = vmax.f32 %v2620_v45, 0.0 }
 0x262   :  { %4057 = vmatpush.msrb.mxu0 %v2661_v15  ;;  %4086 = vmatpush.msra.mxu1 %v2662_v10  ;;  %v2123_v15 = vadd.f32 %v11706_v35, %v11705_v56  ;;  %v11707_v10 = vld [vmem:[#allocation18_spill] sm:$0xff]  ;;  %v11720_v56 = vld [vmem:[#allocation29_spill] sm:$0xff] }
 0x263   :  { %6394 = vmatmul.msk.f32.vlgmr.msrb.gmra.mxu2 %vm1674_vm9, %v9695_v21  ;;  %6399 = vmatmul.msk.f32.vlgmr.msra.gmra.mxu3 %vm1674_vm9, %v9695_v21  ;;  %v2152_v5 = vadd.f32 %v11708_v3, %v11707_v10 }
 0x264   :  { %4058 = vmatpush.msrb.mxu0 %v2653_v0  ;;  %4087 = vmatpush.msra.mxu1 %v2654_v32  ;;  %v9866_v62 = vpop.f32.mrf.mxu0  ;;  %v2120_v0 = vadd.f32 %v11710_v12, %v11709_v39  ;;  %v11711_v32 = vld [vmem:[#allocation26_spill] sm:$0xff] }
 0x265   :  { %v9868_v22 = vpop.f32.mrf.mxu1  ;;  %4230 = vmatpush.msrb.mxu2 %v2675_v11  ;;  %4259 = vmatpush.msra.mxu3 %v2676_v19  ;;  %v2149_v25 = vadd.f32 %v11712_v52, %v11711_v32  ;;  %v2537_v11 = vadd.f32 %v9777_v50, %v2123_v15  ;;  %v2538_v19 = vadd.f32 %v9779_v20, %v2152_v5  ;;  %v11717_v20 = vld [vmem:[#allocation7_spill] sm:$0xff] }
 0x266   :  { %4059 = vmatpush.msrb.mxu0 %v2645_v60  ;;  %4088 = vmatpush.msra.mxu1 %v2646_v30  ;;  %v9872_v42 = vpop.f32.mrf.mxu2  ;;  %v9874_v33 = vpop.f32.mrf.mxu3  ;;  %v11713_v60 = vld [vmem:[#allocation17_spill] sm:$0xff]  ;;  %v2529_v49 = vadd.f32 %v9734_v41, %v2120_v0 }
 0x267   :  { %6365 = vmatmul.msk.f32.gmra.mxu0 %vm1674_vm9, %v9728_v29  ;;  %6370 = vmatmul.msk.f32.gmra.mxu1 %vm1674_vm9, %v9728_v29  ;;  %v11714_v30 = vld [vmem:[#allocation33_spill] sm:$0xff]  ;;  %v2530_v45 = vadd.f32 %v9736_v4, %v2149_v25  ;;  %v2589_v3 = vmul.f32 %v9612_v44, %v2537_v11  ;;  %v2590_v41 = vmul.f32 %v9612_v44, %v2538_v19 }
 0x268   :  { %4231 = vmatpush.msrb.mxu2 %v2667_v31  ;;  %4260 = vmatpush.msra.mxu3 %v2668_v26  ;;  %v2117_v38 = vadd.f32 %v11714_v30, %v11713_v60  ;;  %v11716_v31 = vld [vmem:[#allocation34_spill] sm:$0xff] }
 0x269   :  { %v2146_v26 = vadd.f32 %v11716_v31, %v11715_v7  ;;  %v2582_v12 = vmul.f32 %v9618_v37, %v2530_v45  ;;  %v2641_v52 = vadd.f32 %v9628_v51, %v2589_v3  ;;  %v2642_v25 = vadd.f32 %v9628_v51, %v2590_v41 }
 0x26a   :  { %4232 = vmatpush.msrb.mxu2 %v2659_v23  ;;  %4261 = vmatpush.msra.mxu3 %v2660_v28  ;;  %v11718_v28 = vld [vmem:[#allocation23_spill] sm:$0xff]  ;;  %v2521_v15 = vadd.f32 %v9707_v9, %v2117_v38 }
 0x26b   :  { %6395 = vmatmul.msk.f32.gmra.mxu2 %vm1674_vm9, %v9728_v29  ;;  %6400 = vmatmul.msk.f32.gmra.mxu3 %vm1674_vm9, %v9728_v29  ;;  %v2522_v10 = vadd.f32 %v9709_v47, %v2146_v26  ;;  %v2581_v47 = vmul.f32 %v9618_v37, %v2529_v49  ;;  %v2634_v30 = vadd.f32 %v9654_v48, %v2582_v12  ;;  %v2673_v38 = vmax.f32 %v2641_v52, 0.0 }
 0x26c   :  { %v9886_v63 = vpop.f32.mrf.mxu0  ;;  %4233 = vmatpush.msrb.mxu2 %v2651_v13  ;;  %4262 = vmatpush.msra.mxu3 %v2652_v55  ;;  %v2114_v13 = vadd.f32 %v11718_v28, %v11717_v20  ;;  %v11719_v55 = vld [vmem:[#allocation19_spill] sm:$0xff]  ;;  %v2573_v0 = vmul.f32 %v9646_v46, %v2521_v15  ;;  %v2674_v7 = vmax.f32 %v2642_v25, 0.0 }
 0x26d   :  { %v9888_v54 = vpop.f32.mrf.mxu1  ;;  %v2143_v35 = vadd.f32 %v11720_v56, %v11719_v55  ;;  %v2574_v32 = vmul.f32 %v9646_v46, %v2522_v10  ;;  %v2633_v60 = vadd.f32 %v9654_v48, %v2581_v47  ;;  %v2666_v28 = vmax.f32 %v2634_v30, 0.0 }
 0x26e   :  { %v9890_v57 = vpop.f32.mrf.mxu2  ;;  %v9892_v8 = vpop.f32.mrf.mxu3  ;;  %v2513_v39 = vadd.f32 %v9668_v53, %v2114_v13  ;;  %v2625_v31 = vadd.f32 %v9701_v40, %v2573_v0 }
 0x26f   :  { %11704 = vst [vmem:[#allocation21_spill] sm:$0xff] %v9892_v8  ;;  %6366 = vmatmul.msk.f32.gmra.mxu0 %vm1674_vm9, %v9753_v34  ;;  %6371 = vmatmul.msk.f32.gmra.mxu1 %vm1674_vm9, %v9753_v34  ;;  %v2514_v9 = vadd.f32 %v9670_v27, %v2143_v35  ;;  %v2626_v26 = vadd.f32 %v9701_v40, %v2574_v32  ;;  %v2665_v20 = vmax.f32 %v2633_v60, 0.0 }
 0x270   :  { %v2565_v53 = vmul.f32 %v9686_v43, %v2513_v39  ;;  %v2657_v56 = vmax.f32 %v2625_v31, 0.0 }
 0x271   :  { %v2566_v27 = vmul.f32 %v9686_v43, %v2514_v9  ;;  %v2658_v35 = vmax.f32 %v2626_v26, 0.0 }
 0x272   :  { %v2617_v13 = vadd.f32 %v9713_v6, %v2565_v53 }
 0x273   :  { %6396 = vmatmul.msk.f32.gmra.mxu2 %vm1674_vm9, %v9753_v34  ;;  %6401 = vmatmul.msk.f32.gmra.mxu3 %vm1674_vm9, %v9753_v34  ;;  %v2618_v55 = vadd.f32 %v9713_v6, %v2566_v27 }
 0x274   :  { %v9918_v23 = vpop.f32.mrf.mxu0  ;;  %v2649_v3 = vmax.f32 %v2617_v13, 0.0 }
 0x275   :  { %v9920_v50 = vpop.f32.mrf.mxu1 }
 0x276   :  { %v9930_v5 = vpop.f32.mrf.mxu2  ;;  %v9932_v4 = vpop.f32.mrf.mxu3 }
 0x277   :  { %11721 = vst [vmem:[#allocation27_spill] sm:$0xff] %v9930_v5  ;;  %6367 = vmatmul.msk.f32.gmra.mxu0 %vm1674_vm9, %v9814_v36  ;;  %6372 = vmatmul.msk.f32.gmra.mxu1 %vm1674_vm9, %v9814_v36 }
 0x278   :  { %11722 = vst [vmem:[#allocation39_spill] sm:$0xff] %v9932_v4 }
 0x27b   :  { %6397 = vmatmul.msk.f32.gmra.mxu2 %vm1674_vm9, %v9814_v36  ;;  %6402 = vmatmul.msk.f32.gmra.mxu3 %vm1674_vm9, %v9814_v36 }
 0x27c   :  { %v9952_v11 = vpop.f32.mrf.mxu0 }
 0x27d   :  { %v9954_v19 = vpop.f32.mrf.mxu1 }
 0x27e   :  { %v9960_v49 = vpop.f32.mrf.mxu2  ;;  %v9962_v45 = vpop.f32.mrf.mxu3 }
 0x27f   :  { %11723 = vst [vmem:[#allocation41_spill] sm:$0xff] %v9960_v49  ;;  %6384 = vmatmul.msk.f32.vlgmr.msra.gmra.mxu0 %vm1674_vm9, %v9695_v21  ;;  %6389 = vmatmul.msk.f32.vlgmr.msrb.gmra.mxu1 %vm1674_vm9, %v9695_v21  ;;  %v2650_v21 = vmax.f32 %v2618_v55, 0.0 }
 0x280   :  { %11724 = vst [vmem:[#allocation42_spill] sm:$0xff] %v9962_v45  ;;  %4172 = vmatpush.msra.mxu0 %v2673_v38  ;;  %4201 = vmatpush.msrb.mxu1 %v2674_v7 }
 0x282   :  { %4173 = vmatpush.msra.mxu0 %v2665_v20  ;;  %4202 = vmatpush.msrb.mxu1 %v2666_v28 }
 0x284   :  { %4174 = vmatpush.msra.mxu0 %v2657_v56  ;;  %4203 = vmatpush.msrb.mxu1 %v2658_v35  ;;  %v9970_v15 = vpop.f32.mrf.mxu0 }
 0x285   :  { %11725 = vst [vmem:[#allocation9_spill] sm:$0xff] %v9970_v15  ;;  %v9972_v10 = vpop.f32.mrf.mxu1 }
 0x286   :  { %4175 = vmatpush.msra.mxu0 %v2649_v3  ;;  %4204 = vmatpush.msrb.mxu1 %v2650_v21  ;;  %v3144_v41 = vpop.f32.mrf.mxu2  ;;  %v3173_v39 = vpop.f32.mrf.mxu3 }
 0x287   :  { %6385 = vmatmul.msk.f32.gmra.mxu0 %vm1674_vm9, %v9728_v29  ;;  %6390 = vmatmul.msk.f32.gmra.mxu1 %vm1674_vm9, %v9728_v29  ;;  %v3145_v49 = vadd.f32 %v3144_v41, %v9715_v61 }
 0x28c   :  { %v9978_v9 = vpop.f32.mrf.mxu0 }
 0x28d   :  { %11726 = vst [vmem:[#allocation14_spill] sm:$0xff] %v9978_v9  ;;  %v9980_v47 = vpop.f32.mrf.mxu1 }
 0x28e   :  { %11727 = vst [vmem:[#allocation32_spill] sm:$0xff] %v9980_v47  ;;  %v9982_v12 = vpop.f32.mrf.mxu2  ;;  %v9984_v0 = vpop.f32.mrf.mxu3 }
 0x28f   :  { %6386 = vmatmul.msk.f32.gmra.mxu0 %vm1674_vm9, %v9753_v34  ;;  %6391 = vmatmul.msk.f32.gmra.mxu1 %vm1674_vm9, %v9753_v34 }
 0x294   :  { %v9990_v32 = vpop.f32.mrf.mxu0 }
 0x295   :  { %11728 = vst [vmem:[#allocation31_spill] sm:$0xff] %v9990_v32  ;;  %v9992_v52 = vpop.f32.mrf.mxu1 }
 0x296   :  { %11729 = vst [vmem:[#allocation12_spill] sm:$0xff] %v9992_v52  ;;  %v9994_v25 = vpop.f32.mrf.mxu2  ;;  %v3179_v29 = vpop.f32.mrf.mxu3 }
 0x297   :  { %6387 = vmatmul.msk.f32.gmra.mxu0 %vm1674_vm9, %v9814_v36  ;;  %6392 = vmatmul.msk.f32.gmra.mxu1 %vm1674_vm9, %v9814_v36  ;;  %vm5149_vm9 = vcmask 23568  }
 0x29c   :  { %v3086_v53 = vpop.f32.mrf.mxu0 }
 0x29d   :  { %v3115_v27 = vpop.f32.mrf.mxu1 }
 0x29e   :  { %v10000_v60 = vpop.f32.mrf.mxu2  ;;  %v10002_v30 = vpop.f32.mrf.mxu3 }
 0x2a4   :  { %v3089_v34 = vpop.f32.mrf.mxu0 }
 0x2a5   :  { %v3118_v38 = vpop.f32.mrf.mxu1 }
 0x2a6   :  { %v10004_v7 = vpop.f32.mrf.mxu2  ;;  %v10006_v31 = vpop.f32.mrf.mxu3 }
 0x2ac   :  { %v10008_v26 = vpop.f32.mrf.mxu0 }
 0x2ad   :  { %v10010_v20 = vpop.f32.mrf.mxu1 }
 0x2ae   :  { %v10012_v28 = vpop.f32.mrf.mxu2  ;;  %v10014_v13 = vpop.f32.mrf.mxu3 }
 0x2af   :  { %11730 = vst [vmem:[#allocation20_spill] sm:$0xff] %v10012_v28 }
 0x2b0   :  { %11731 = vst [vmem:[#allocation40_spill] sm:$0xff] %v10014_v13 }
 0x2b4   :  { %v10016_v36 = vpop.f32.mrf.mxu0 }
 0x2b5   :  { %v10018_v55 = vpop.f32.mrf.mxu1 }
 0x2b6   :  { %v10020_v56 = vpop.f32.mrf.mxu2  ;;  %v10022_v35 = vpop.f32.mrf.mxu3 }
 0x2b7   :  { %11732 = vst [vmem:[#allocation45_spill] sm:$0xff] %v10020_v56 }
 0x2b8   :  { %11733 = vst [vmem:[#allocation46_spill] sm:$0xff] %v10022_v35 }
 0x2bc   :  { %v10024_v3 = vpop.f32.mrf.mxu0 }
 0x2bd   :  { %v10026_v21 = vpop.f32.mrf.mxu1 }
 0x2be   :  { %v10028_v45 = vpop.f32.mrf.mxu2  ;;  %v10035_v9 = vpop.f32.mrf.mxu3 }
 0x2bf   :  { %11734 = vst [vmem:[#allocation43_spill] sm:$0xff] %v10028_v45 }
 0x2c0   :  { %11736 = vst [vmem:[#allocation24_spill] sm:$0xff] %v10035_v9 }
 0x2c4   :  { %v10030_v52 = vpop.f32.mrf.mxu0 }
 0x2c5   :  { %11735 = vst [vmem:[#allocation44_spill] sm:$0xff] %v10030_v52  ;;  %v10032_v32 = vpop.f32.mrf.mxu1 }
 0x2c6   :  { %v3440_v4 = vpop.f32.mrf.mxu2  ;;  %v3469_v52 = vpop.f32.mrf.mxu3 }
 0x2c7   :  { %v3599_v47 = vadd.f32 %v3440_v4, %v3145_v49  ;;  %v3087_v49 = vadd.f32 %v3086_v53, %v9833_v17  ;;  %v3090_v17 = vadd.f32 %v3089_v34, %v9866_v62  ;;  %v3180_v53 = vadd.f32 %v3179_v29, %v9794_v16 }
 0x2c8   :  { %v3177_v62 = vadd.f32 %v9984_v0, %v9740_v58 }
 0x2c9   :  { %v3631_v56 = vmul.f32 %v3599_v47, %v9686_v43  ;;  %v3116_v47 = vadd.f32 %v3115_v27, %v9835_v2  ;;  %v3119_v2 = vadd.f32 %v3118_v38, %v9868_v22 }
 0x2cb   :  { %v10039_v35 = vadd.f32 %v3631_v56, %v9713_v6 }
 0x2cc   :  { %v10041_v5 = vpop.f32.mrf.mxu0 }
 0x2cd   :  { %11737 = vst [vmem:[#allocation37_spill] sm:$0xff] %v10039_v35  ;;  %v10043_v15 = vpop.f32.mrf.mxu1  ;;  %v11459_v45 = vmax.f32 %v10039_v35, 0.0 }
 0x2ce   :  { %11738 = vst [vmem:[#allocation18_spill] sm:$0xff] %v10041_v5  ;;  %v3472_v4 = vpop.f32.mrf.mxu3  ;;  %v3174_v5 = vadd.f32 %v3173_v39, %v9717_v59  ;;  %v3443_v35 = vpop.f32.mrf.mxu2 }
 0x2cf   :  { %11739 = vst [vmem:[#allocation38_spill] sm:$0xff] %v10043_v15  ;;  %3838 = vrot.lane.b32.xlu1 %v11459_v45, %s6598_s28  ;;  %v3608_v29 = vadd.f32 %v3472_v4, %v3177_v62 }
 0x2d0   :  { %v3600_v8 = vadd.f32 %v3469_v52, %v3174_v5 }
 0x2d2   :  { %v3632_v59 = vmul.f32 %v3600_v8, %v9686_v43 }
 0x2d4   :  { %v10049_v61 = vpop.f32.mrf.mxu0  ;;  %v10083_v16 = vadd.f32 %v3632_v59, %v9713_v6  ;;  %v3122_v59 = vadd.f32 %v10010_v20, %v9888_v54 }
 0x2d5   :  { %11740 = vst [vmem:[#allocation25_spill] sm:$0xff] %v10049_v61  ;;  %v10051_v41 = vpop.f32.mrf.mxu1 }
 0x2d6   :  { %11741 = vst [vmem:[#allocation35_spill] sm:$0xff] %v10051_v41  ;;  %v3475_v39 = vpop.f32.mrf.mxu3  ;;  %v3446_v34 = vpop.f32.mrf.mxu2 }
 0x2dc   :  { %v3382_v56 = vpop.f32.mrf.mxu0 }
 0x2dd   :  { %v3411_v9 = vpop.f32.mrf.mxu1  ;;  %v3597_v15 = vadd.f32 %v3382_v56, %v3087_v49  ;;  %v3640_v56 = vmul.f32 %v3608_v29, %v9646_v46  ;;  %v3093_v29 = vadd.f32 %v10008_v26, %v9886_v63 }
 0x2de   :  { %v3598_v13 = vadd.f32 %v3411_v9, %v3116_v47  ;;  %v3148_v9 = vadd.f32 %v9982_v12, %v9738_v24  ;;  %v3616_v12 = vadd.f32 %v3475_v39, %v3180_v53  ;;  %v3449_v20 = vpop.f32.mrf.mxu2  ;;  %v3478_v53 = vpop.f32.mrf.mxu3 }
 0x2df   :  { %v3629_v28 = vmul.f32 %v3597_v15, %v9686_v43 }
 0x2e0   :  { %v3630_v45 = vmul.f32 %v3598_v13, %v9686_v43  ;;  %v3607_v22 = vadd.f32 %v3443_v35, %v3148_v9  ;;  %v3648_v58 = vmul.f32 %v3616_v12, %v9618_v37  ;;  %v11483_v35 = vmax.f32 %v10083_v16, 0.0 }
 0x2e1   :  { %v10062_v41 = vadd.f32 %v3629_v28, %v9713_v6  ;;  %v3154_v12 = vadd.f32 %v10000_v60, %v9845_v14 }
 0x2e2   :  { %v10059_v61 = vadd.f32 %v3630_v45, %v9713_v6  ;;  %v3639_v49 = vmul.f32 %v3607_v22, %v9646_v46  ;;  %v10111_v9 = vadd.f32 %v3648_v58, %v9654_v48 }
 0x2e3   :  { %v11486_v15 = vmax.f32 %v10062_v41, 0.0  ;;  %v3623_v14 = vadd.f32 %v3449_v20, %v3154_v12 }
 0x2e4   :  { %v11465_v5 = vmax.f32 %v10059_v61, 0.0  ;;  %v3385_v52 = vpop.f32.mrf.mxu0 }
 0x2e5   :  { %v3414_v45 = vpop.f32.mrf.mxu1  ;;  %v3605_v27 = vadd.f32 %v3385_v52, %v3090_v17  ;;  %3834 = vrot.lane.b32.xlu2 %v11486_v15, %s6598_s28  ;;  %v10117_v52 = vadd.f32 %v3640_v56, %v9701_v40  ;;  %v3655_v63 = vmul.f32 %v3623_v14, %v9612_v44 }
 0x2e6   :  { %v3606_v28 = vadd.f32 %v3414_v45, %v3119_v2  ;;  %3836 = vrot.lane.b32.xlu0 %v11465_v5, %s6598_s28  ;;  %v3151_v2 = vadd.f32 %v9994_v25, %v9792_v18  ;;  %v10114_v18 = vadd.f32 %v3639_v49, %v9701_v40  ;;  %v3096_v45 = vadd.f32 %v10016_v36, %v9918_v23  ;;  %v3556_v20 = vpop.f32.mrf.mxu2 }
 0x2e7   :  { %v3637_v24 = vmul.f32 %v3605_v27, %v9646_v46  ;;  %v11487_v27 = vmax.f32 %v10111_v9, 0.0  ;;  %v3183_v23 = vadd.f32 %v10002_v30, %v9847_v1 }
 0x2e8   :  { %v3638_v8 = vmul.f32 %v3606_v28, %v9646_v46  ;;  %v3615_v39 = vadd.f32 %v3446_v34, %v3151_v2  ;;  %v11467_v28 = vmax.f32 %v10114_v18, 0.0 }
 0x2e9   :  { %v10086_v38 = vadd.f32 %v3637_v24, %v9701_v40  ;;  %v3624_v60 = vadd.f32 %v3478_v53, %v3183_v23 }
 0x2ea   :  { %v10089_v13 = vadd.f32 %v3638_v8, %v9701_v40  ;;  %v3647_v54 = vmul.f32 %v3615_v39, %v9618_v37  ;;  %v11485_v8 = vmax.f32 %v10117_v52, 0.0 }
 0x2eb   :  { %v11488_v0 = vmax.f32 %v10086_v38, 0.0  ;;  %v3656_v26 = vmul.f32 %v3624_v60, %v9612_v44  ;;  %v3235_v60 = vadd.f32 %v10032_v32, %v9972_v10 }
 0x2ec   :  { %v11472_v47 = vmax.f32 %v10089_v13, 0.0  ;;  %v3388_v4 = vpop.f32.mrf.mxu0  ;;  %v10143_v30 = vadd.f32 %v3647_v54, %v9654_v48  ;;  %v3125_v54 = vadd.f32 %v10018_v55, %v9920_v50 }
 0x2ed   :  { %v3417_v17 = vpop.f32.mrf.mxu1  ;;  %3850 = vrot.lane.b32.xlu1 %v11488_v0, %s6598_s28  ;;  %v3613_v34 = vadd.f32 %v3388_v4, %v3093_v29 }
 0x2ee   :  { %3840 = vrot.lane.b32.xlu0 %v11483_v35, %s6598_s28  ;;  %3852 = vrot.lane.b32.xlu2 %v11472_v47, %s6598_s28  ;;  %v3614_v25 = vadd.f32 %v3417_v17, %v3122_v59  ;;  %v11475_v17 = vmax.f32 %v10143_v30, 0.0 }
 0x2ef   :  { %v3645_v2 = vmul.f32 %v3613_v34, %v9618_v37 }
 0x2f0   :  { %v3646_v62 = vmul.f32 %v3614_v25, %v9618_v37  ;;  %v3203_v25 = vadd.f32 %v10024_v3, %v9952_v11 }
 0x2f2   :  { %v10146_v49 = vadd.f32 %v3646_v62, %v9654_v48  ;;  %v10179_v62 = vadd.f32 %v3645_v2, %v9654_v48 }
 0x2f4   :  { %v3391_v22 = vpop.f32.mrf.mxu0  ;;  %v11476_v4 = vmax.f32 %v10146_v49, 0.0  ;;  %v11490_v14 = vmax.f32 %v10179_v62, 0.0 }
 0x2f5   :  { %v3420_v24 = vpop.f32.mrf.mxu1  ;;  %v3621_v36 = vadd.f32 %v3391_v22, %v3096_v45  ;;  %3872 = vrot.lane.b32.xlu1 %v11487_v27, %s6598_s28  ;;  %v3232_v45 = vadd.f32 %v10026_v21, %v9954_v19  ;;  %v10173_v19 = vadd.f32 %v3656_v26, %v9628_v51  ;;  %v10176_v21 = vadd.f32 %v3655_v63, %v9628_v51  ;;  %v3585_v22 = vpop.f32.mrf.mxu3 }
 0x2f6   :  { %3854 = vrot.lane.b32.xlu0 %v11467_v28, %s6598_s28  ;;  %3856 = vrot.lane.b32.xlu2 %v11485_v8, %s6598_s28  ;;  %v3622_v53 = vadd.f32 %v3420_v24, %v3125_v54  ;;  %v3290_v24 = vadd.f32 %v10006_v31, %v9874_v33  ;;  %v3559_v63 = vpop.f32.mrf.mxu2 }
 0x2f7   :  { %v3653_v1 = vmul.f32 %v3621_v36, %v9612_v44  ;;  %v11489_v12 = vmax.f32 %v10173_v19, 0.0  ;;  %v11479_v23 = vmax.f32 %v10176_v21, 0.0 }
 0x2f8   :  { %v3654_v36 = vmul.f32 %v3622_v53, %v9612_v44  ;;  %v3604_v34 = vadd.f32 %v3585_v22, %v3290_v24  ;;  %v11744_v53 = vld [vmem:[#allocation40_spill] sm:$0xff] }
 0x2f9   :  { %v10149_v58 = vadd.f32 %v3653_v1, %v9628_v51  ;;  %v3261_v1 = vadd.f32 %v10004_v7, %v9872_v42 }
 0x2fa   :  { %v10209_v26 = vadd.f32 %v3654_v36, %v9628_v51  ;;  %v3636_v42 = vmul.f32 %v3604_v34, %v9686_v43 }
 0x2fb   :  { %v11491_v56 = vmax.f32 %v10149_v58, 0.0  ;;  %v3603_v32 = vadd.f32 %v3556_v20, %v3261_v1  ;;  %v11742_v20 = vld [vmem:[#allocation20_spill] sm:$0xff] }
 0x2fc   :  { %v3498_v59 = vpop.f32.mrf.mxu0  ;;  %v11480_v54 = vmax.f32 %v10209_v26, 0.0 }
 0x2fd   :  { %v3527_v39 = vpop.f32.mrf.mxu1  ;;  %3882 = vrot.lane.b32.xlu1 %v11491_v56, %s6598_s28  ;;  %v3601_v11 = vadd.f32 %v3498_v59, %v3203_v25  ;;  %v3588_v7 = vpop.f32.mrf.mxu3 }
 0x2fe   :  { %3870 = vrot.lane.b32.xlu0 %v11475_v17, %s6598_s28  ;;  %3868 = vrot.lane.b32.xlu2 %v11476_v4, %s6598_s28  ;;  %v3602_v3 = vadd.f32 %v3527_v39, %v3232_v45  ;;  %v3635_v45 = vmul.f32 %v3603_v32, %v9686_v43  ;;  %v3562_v34 = vpop.f32.mrf.mxu2 }
 0x2ff   :  { %v3633_v50 = vmul.f32 %v3601_v11, %v9686_v43  ;;  %v3264_v11 = vadd.f32 %v11742_v20, %v9890_v57 }
 0x300   :  { %v3634_v55 = vmul.f32 %v3602_v3, %v9686_v43  ;;  %v11743_v3 = vld [vmem:[#allocation21_spill] sm:$0xff]  ;;  %v10239_v1 = vadd.f32 %v3635_v45, %v9713_v6  ;;  %v11750_v45 = vld [vmem:[#allocation38_spill] sm:$0xff] }
 0x301   :  { %v10206_v10 = vadd.f32 %v3633_v50, %v9713_v6  ;;  %v3293_v22 = vadd.f32 %v11744_v53, %v11743_v3  ;;  %v11745_v50 = vld [vmem:[#allocation9_spill] sm:$0xff]  ;;  %v3611_v43 = vadd.f32 %v3559_v63, %v3264_v11 }
 0x302   :  { %v10203_v31 = vadd.f32 %v3634_v55, %v9713_v6  ;;  %v11746_v55 = vld [vmem:[#allocation44_spill] sm:$0xff] }
 0x303   :  { %v11474_v25 = vmax.f32 %v10206_v10, 0.0  ;;  %v3206_v36 = vadd.f32 %v11746_v55, %v11745_v50  ;;  %v3612_v57 = vadd.f32 %v3588_v7, %v3293_v22  ;;  %v11747_v7 = vld [vmem:[#allocation27_spill] sm:$0xff] }
 0x304   :  { %v3501_v2 = vpop.f32.mrf.mxu0  ;;  %v11462_v39 = vmax.f32 %v10203_v31, 0.0  ;;  %v11751_v55 = vld [vmem:[#allocation39_spill] sm:$0xff] }
 0x305   :  { %v3530_v29 = vpop.f32.mrf.mxu1  ;;  %3888 = vrot.lane.b32.xlu1 %v11489_v12, %s6598_s28  ;;  %v3644_v32 = vmul.f32 %v3612_v57, %v9646_v46  ;;  %v3591_v50 = vpop.f32.mrf.mxu3 }
 0x306   :  { %3886 = vrot.lane.b32.xlu0 %v11479_v23, %s6598_s28  ;;  %3866 = vrot.lane.b32.xlu2 %v11490_v14, %s6598_s28  ;;  %v3610_v33 = vadd.f32 %v3530_v29, %v3235_v60  ;;  %v10233_v29 = vadd.f32 %v3636_v42, %v9713_v6  ;;  %v3609_v60 = vadd.f32 %v3501_v2, %v3206_v36  ;;  %v11748_v42 = vld [vmem:[#allocation45_spill] sm:$0xff]  ;;  %v11461_v2 = vmax.f32 %v10239_v1, 0.0  ;;  %v11749_v6 = vld [vmem:[#allocation32_spill] sm:$0xff]  ;;  %v11752_v36 = vld [vmem:[#allocation46_spill] sm:$0xff] }
 0x307   :  { %v3267_v11 = vadd.f32 %v11748_v42, %v11747_v7  ;;  %v3238_v22 = vadd.f32 %v11750_v45, %v11749_v6  ;;  %v10271_v42 = vadd.f32 %v3644_v32, %v9701_v40 }
 0x308   :  { %v3642_v59 = vmul.f32 %v3610_v33, %v9646_v46  ;;  %v3643_v33 = vmul.f32 %v3611_v43, %v9646_v46  ;;  %v11466_v3 = vmax.f32 %v10233_v29, 0.0  ;;  %v3296_v43 = vadd.f32 %v11752_v36, %v11751_v55  ;;  %v11755_v36 = vld [vmem:[#allocation41_spill] sm:$0xff] }
 0x309   :  { %v3619_v57 = vadd.f32 %v3562_v34, %v3267_v11  ;;  %v11473_v6 = vmax.f32 %v10271_v42, 0.0 }
 0x30a   :  { %v10236_v24 = vadd.f32 %v3642_v59, %v9701_v40  ;;  %v3641_v59 = vmul.f32 %v3609_v60, %v9646_v46  ;;  %v10265_v46 = vld [vmem:[%s11388_s7 + $0x20] sm:$0xff]  ;;  %v10268_v7 = vadd.f32 %v3643_v33, %v9701_v40  ;;  %v3620_v34 = vadd.f32 %v3591_v50, %v3296_v43 }
 0x30b   :  { %6407 = vmatmul.msk.f32.vlgmr.msrb.gmra.mxu0 %vm4031_vm3, %v10265_v46  ;;  %6411 = vmatmul.msk.f32.vlgmr.msra.gmra.mxu1 %vm4031_vm3, %v10265_v46  ;;  %v3651_v33 = vmul.f32 %v3619_v57, %v9618_v37  ;;  %v11754_v50 = vld [vmem:[#allocation18_spill] sm:$0xff]  ;;  %v11756_v43 = vld [vmem:[#allocation43_spill] sm:$0xff] }
 0x30c   :  { %v3504_v20 = vpop.f32.mrf.mxu0  ;;  %v11464_v63 = vmax.f32 %v10236_v24, 0.0  ;;  %v10278_v11 = vadd.f32 %v3641_v59, %v9701_v40  ;;  %6415 = vmatmul.msk.f32.vlgmr.msra.gmra.mxu2 %vm4031_vm3, %v10265_v46  ;;  %6419 = vmatmul.msk.f32.vlgmr.msrb.gmra.mxu3 %vm4031_vm3, %v10265_v46  ;;  %v3652_v45 = vmul.f32 %v3620_v34, %v9618_v37  ;;  %v11753_v59 = vld [vmem:[#allocation14_spill] sm:$0xff]  ;;  %v11757_v57 = vld [vmem:[#allocation31_spill] sm:$0xff] }
 0x30d   :  { %3844 = vrot.lane.b32.xlu1 %v11462_v39, %s6598_s28  ;;  %v3533_v53 = vpop.f32.mrf.mxu1  ;;  %v3209_v55 = vadd.f32 %v11754_v50, %v11753_v59 }
 0x30e   :  { %3842 = vrot.lane.b32.xlu0 %v11474_v25, %s6598_s28  ;;  %3884 = vrot.lane.b32.xlu2 %v11480_v54, %s6598_s28  ;;  %v3618_v60 = vadd.f32 %v3533_v53, %v3238_v22  ;;  %v11463_v53 = vmax.f32 %v10268_v7, 0.0  ;;  %v3565_v22 = vpop.f32.mrf.mxu2  ;;  %v11478_v40 = vmax.f32 %v10278_v11, 0.0  ;;  %v10315_v5 = vadd.f32 %v3652_v45, %v9654_v48 }
 0x30f   :  { %v3617_v59 = vadd.f32 %v3504_v20, %v3209_v55  ;;  %v10321_v20 = vpop.permute.xlu2 %4813 }
 0x310   :  { %v3650_v32 = vmul.f32 %v3618_v60, %v9618_v37  ;;  %v11758_v60 = vld [vmem:[#allocation25_spill] sm:$0xff]  ;;  %v11477_v55 = vmax.f32 %v10315_v5, 0.0 }
 0x311   :  { %v3212_v34 = vadd.f32 %v11758_v60, %v11757_v57  ;;  %v11759_v57 = vld [vmem:[#allocation12_spill] sm:$0xff]  ;;  %v11760_v60 = vld [vmem:[#allocation35_spill] sm:$0xff] }
 0x314   :  { %v3507_v39 = vpop.f32.mrf.mxu0 }
 0x315   :  { %3848 = vrot.lane.b32.xlu1 %v11466_v3, %s6598_s28  ;;  %v3594_v3 = vpop.f32.mrf.mxu3 }
 0x316   :  { %3860 = vrot.lane.b32.xlu0 %v11464_v63, %s6598_s28  ;;  %3846 = vrot.lane.b32.xlu2 %v11461_v2, %s6598_s28  ;;  %v3270_v2 = vadd.f32 %v11756_v43, %v11755_v36  ;;  %v10306_v36 = vadd.f32 %v3651_v33, %v9654_v48  ;;  %v10309_v43 = vadd.f32 %v3650_v32, %v9654_v48 }
 0x317   :  { %v3625_v63 = vadd.f32 %v3507_v39, %v3212_v34  ;;  %v3241_v34 = vadd.f32 %v11760_v60, %v11759_v57 }
 0x318   :  { %v3627_v50 = vadd.f32 %v3565_v22, %v3270_v2  ;;  %v3649_v2 = vmul.f32 %v3617_v59, %v9618_v37  ;;  %v11468_v32 = vmax.f32 %v10306_v36, 0.0  ;;  %v11469_v39 = vmax.f32 %v10309_v43, 0.0  ;;  %v3536_v22 = vpop.f32.mrf.mxu1  ;;  %v11761_v37 = vld [vmem:[#allocation42_spill] sm:$0xff]  ;;  %v11762_v59 = vld [vmem:[#allocation24_spill] sm:$0xff] }
 0x319   :  { %v3657_v45 = vmul.f32 %v3625_v63, %v9612_v44  ;;  %v3626_v63 = vadd.f32 %v3536_v22, %v3241_v34  ;;  %v10363_v22 = vpop.permute.xlu2 %4865 }
 0x31a   :  { %v3659_v33 = vmul.f32 %v3627_v50, %v9612_v44  ;;  %v3299_v50 = vadd.f32 %v11762_v59, %v11761_v37  ;;  %v10346_v57 = vadd.f32 %v3649_v2, %v9654_v48  ;;  %11763 = vst [vmem:[#allocation26_spill] sm:$0xff] %v10363_v22  ;;  %v6406_v37 = vld [vmem:[%s11388_s7 + $0x38] sm:$0xff] }
 0x31c   :  { %v10343_v28 = vadd.f32 %v3659_v33, %v9628_v51  ;;  %v3628_v60 = vadd.f32 %v3594_v3, %v3299_v50  ;;  %v3658_v33 = vmul.f32 %v3626_v63, %v9612_v44  ;;  %v11482_v3 = vmax.f32 %v10346_v57, 0.0  ;;  %v10405_v63 = vpop.permute.xlu1 %4818 }
 0x31d   :  { %3862 = vrot.lane.b32.xlu1 %v11463_v53, %s6598_s28  ;;  %v6404_v53 = vld [vmem:[%s11388_s7 + $0x28] sm:$0xff]  ;;  %11764 = vst [vmem:[#allocation36_spill] sm:$0xff] %v10405_v63 }
 0x31e   :  { %3864 = vrot.lane.b32.xlu0 %v11473_v6, %s6598_s28  ;;  %3858 = vrot.lane.b32.xlu2 %v11478_v40, %s6598_s28  ;;  %v11470_v48 = vmax.f32 %v10343_v28, 0.0  ;;  %v3660_v2 = vmul.f32 %v3628_v60, %v9612_v44  ;;  %v10375_v34 = vadd.f32 %v3658_v33, %v9628_v51  ;;  %v10411_v33 = vpop.permute.xlu0 %4870 }
 0x31f   :  { %6408 = vmatmul.msk.f32.gmra.mxu0 %vm4031_vm3, %v6404_v53  ;;  %6412 = vmatmul.msk.f32.gmra.mxu1 %vm4031_vm3, %v6404_v53  ;;  %11765 = vst [vmem:[#allocation17_spill] sm:$0xff] %v10411_v33 }
 0x320   :  { %6416 = vmatmul.msk.f32.gmra.mxu2 %vm4031_vm3, %v6404_v53  ;;  %6420 = vmatmul.msk.f32.gmra.mxu3 %vm4031_vm3, %v6404_v53  ;;  %v10378_v44 = vadd.f32 %v3660_v2, %v9628_v51  ;;  %v11471_v59 = vmax.f32 %v10375_v34, 0.0 }
 0x322   :  { %v11481_v50 = vmax.f32 %v10378_v44, 0.0 }
 0x324   :  { %v10413_v2 = vpop.permute.xlu1 %4808 }
 0x325   :  { %3878 = vrot.lane.b32.xlu1 %v11468_v32, %s6598_s28  ;;  %v10349_v32 = vadd.f32 %v3657_v45, %v9628_v51  ;;  %v10395_v51 = vpop.permute.xlu2 %4855 }
 0x326   :  { %3876 = vrot.lane.b32.xlu0 %v11469_v39, %s6598_s28  ;;  %3880 = vrot.lane.b32.xlu2 %v11477_v55, %s6598_s28  ;;  %v6405_v39 = vld [vmem:[%s11388_s7 + $0x30] sm:$0xff] }
 0x327   :  { %6409 = vmatmul.msk.f32.gmra.mxu0 %vm4031_vm3, %v6405_v39  ;;  %6413 = vmatmul.msk.f32.gmra.mxu1 %vm4031_vm3, %v6405_v39  ;;  %v11484_v45 = vmax.f32 %v10349_v32, 0.0 }
 0x328   :  { %6417 = vmatmul.msk.f32.gmra.mxu2 %vm4031_vm3, %v6405_v39  ;;  %6421 = vmatmul.msk.f32.gmra.mxu3 %vm4031_vm3, %v6405_v39 }
 0x32d   :  { %3894 = vrot.lane.b32.xlu1 %v11470_v48, %s6598_s28 }
 0x32e   :  { %3874 = vrot.lane.b32.xlu0 %v11482_v3, %s6598_s28  ;;  %3890 = vrot.lane.b32.xlu2 %v11484_v45, %s6598_s28 }
 0x32f   :  { %6410 = vmatmul.msk.f32.gmra.mxu0 %vm4031_vm3, %v6406_v37  ;;  %6414 = vmatmul.msk.f32.gmra.mxu1 %vm4031_vm3, %v6406_v37 }
 0x330   :  { %6418 = vmatmul.msk.f32.gmra.mxu2 %vm4031_vm3, %v6406_v37  ;;  %6422 = vmatmul.msk.f32.gmra.mxu3 %vm4031_vm3, %v6406_v37 }
 0x336   :  { %3892 = vrot.lane.b32.xlu0 %v11471_v59, %s6598_s28  ;;  %3896 = vrot.lane.b32.xlu2 %v11481_v50, %s6598_s28  ;;  %v10421_v59 = vpop.permute.xlu1 %4860 }
 0x337   :  { %6423 = vmatmul.msk.f32.vlgmr.msra.gmra.mxu0 %vm4031_vm3, %v10265_v46  ;;  %6427 = vmatmul.msk.f32.vlgmr.msrb.gmra.mxu1 %vm4031_vm3, %v10265_v46 }
 0x338   :  { %6431 = vmatmul.msk.f32.vlgmr.msrb.gmra.mxu2 %vm4031_vm3, %v10265_v46  ;;  %6435 = vmatmul.msk.f32.vlgmr.msra.gmra.mxu3 %vm4031_vm3, %v10265_v46  ;;  %v10419_v46 = vpop.permute.xlu0 %4803 }
 0x33f   :  { %v3835_v60 = vpop.permute.xlu2 %3834  ;;  %6424 = vmatmul.msk.f32.gmra.mxu0 %vm4031_vm3, %v6404_v53  ;;  %6428 = vmatmul.msk.f32.gmra.mxu1 %vm4031_vm3, %v6404_v53 }
 0x340   :  { %6432 = vmatmul.msk.f32.gmra.mxu2 %vm4031_vm3, %v6404_v53  ;;  %6436 = vmatmul.msk.f32.gmra.mxu3 %vm4031_vm3, %v6404_v53 }
 0x341   :  { %v3839_v53 = vpop.permute.xlu1 %3838 }
 0x347   :  { %6425 = vmatmul.msk.f32.gmra.mxu0 %vm4031_vm3, %v6405_v39  ;;  %6429 = vmatmul.msk.f32.gmra.mxu1 %vm4031_vm3, %v6405_v39 }
 0x348   :  { %v3853_v48 = vpop.permute.xlu2 %3852  ;;  %6433 = vmatmul.msk.f32.gmra.mxu2 %vm4031_vm3, %v6405_v39  ;;  %6437 = vmatmul.msk.f32.gmra.mxu3 %vm4031_vm3, %v6405_v39 }
 0x34f   :  { %6426 = vmatmul.msk.f32.gmra.mxu0 %vm4031_vm3, %v6406_v37  ;;  %6430 = vmatmul.msk.f32.gmra.mxu1 %vm4031_vm3, %v6406_v37 }
 0x350   :  { %v10423_v47 = vpop.permute.xlu2 %3856  ;;  %6434 = vmatmul.msk.f32.gmra.mxu2 %vm4031_vm3, %v6406_v37  ;;  %6438 = vmatmul.msk.f32.gmra.mxu3 %vm4031_vm3, %v6406_v37 }
 0x358   :  { %v3837_v6 = vpop.permute.xlu0 %3836  ;;  %v3869_v25 = vpop.permute.xlu2 %3868 }
 0x35f   :  { %v3851_v17 = vpop.permute.xlu1 %3850 }
 0x360   :  { %v10429_v4 = vpop.permute.xlu0 %3840  ;;  %v3867_v39 = vpop.permute.xlu2 %3866  ;;  %v3905_v0 = vsel %vm161_vm0, %v3851_v17, %v3853_v48 }
 0x361   :  { %v3960_v15 = vsel %vm161_vm0, 0.0, %v3867_v39  ;;  %v3912_v27 = vsel %vm161_vm0, %v3867_v39, %v3869_v25 }
 0x367   :  { %v10431_v55 = vpop.permute.xlu1 %3872 }
 0x368   :  { %v3855_v40 = vpop.permute.xlu0 %3854  ;;  %v3885_v23 = vpop.permute.xlu2 %3884 }
 0x36f   :  { %v3883_v54 = vpop.permute.xlu1 %3882 }
 0x370   :  { %v3871_v50 = vpop.permute.xlu0 %3870  ;;  %v3919_v3 = vsel %vm161_vm0, %v3883_v54, %v3885_v23  ;;  %v3961_v35 = vsel %vm161_vm0, 0.0, %v3883_v54  ;;  %v10435_v45 = vpop.permute.xlu2 %3846  ;;  %v3959_v54 = vsel %vm161_vm0, 0.0, %v3851_v17 }
 0x371   :  { %6440 = vmatpush.msk.msrb.mxu0 %vm8801_vm13, %v3961_v35  ;;  %6452 = vmatpush.msk.msra.mxu1 %vm8818_vm14, %v3919_v3  ;;  %v10456_v35 = vld [vmem:[%s11388_s7] sm:$0xff]  ;;  %v3898_v3 = vsel %vm161_vm0, %v3835_v60, %v3837_v6  ;;  %v3913_v8 = vsel %vm161_vm0, %v3869_v25, %v3871_v50  ;;  %v10493_v25 = vld [vmem:[%s11388_s7 + $0x8] sm:$0xff] }
 0x373   :  { %6442 = vmatpush.msk.msrb.mxu0 %vm8801_vm13, %v3960_v15  ;;  %6454 = vmatpush.msk.msra.mxu1 %vm8818_vm14, %v3912_v27  ;;  %v3958_v15 = vsel %vm161_vm0, 0.0, %v3835_v60 }
 0x375   :  { %6444 = vmatpush.msk.msrb.mxu0 %vm8801_vm13, %v3959_v54  ;;  %6456 = vmatpush.msk.msra.mxu1 %vm8818_vm14, %v3905_v0 }
 0x377   :  { %v3889_v27 = vpop.permute.xlu1 %3888  ;;  %6446 = vmatpush.msk.msrb.mxu0 %vm8801_vm13, %v3958_v15  ;;  %6458 = vmatpush.msk.msra.mxu1 %vm8818_vm14, %v3898_v3  ;;  %v3906_v15 = vsel %vm161_vm0, %v3853_v48, %v3855_v40  ;;  %v3907_v3 = vsel %vm161_vm0, %v3855_v40, %v10423_v47  ;;  %vm5554_vm13 = vcmask 64568   ;;  %vm5768_vm14 = vcmask 523264  }
 0x378   :  { %v3887_v39 = vpop.permute.xlu0 %3886  ;;  %v10466_v54 = vpop.permute.xlu2 %3858  ;;  %6447 = vmatmul.msk.f32.vlgmr.msrb.gmra.mxu0 %vm4031_vm3, %v10456_v35  ;;  %6459 = vmatmul.msk.f32.vlgmr.msra.gmra.mxu1 %vm4031_vm3, %v10456_v35 }
 0x379   :  { %v3920_v17 = vsel %vm161_vm0, %v3885_v23, %v3887_v39  ;;  %v3921_v0 = vsel %vm161_vm0, %v3887_v39, %v3889_v27  ;;  %v3914_v23 = vsel %vm161_vm0, %v3871_v50, %v10431_v55  ;;  %v3899_v50 = vsel %vm161_vm0, %v3837_v6, %v3839_v53  ;;  %v10517_v6 = vld [vmem:[%s11388_s7 + $0x10] sm:$0xff] }
 0x37a   :  { %6464 = vmatpush.msk.msra.mxu2 %vm8631_vm12, %v3920_v17  ;;  %6476 = vmatpush.msk.msrb.mxu3 %vm8618_vm11, %v3921_v0  ;;  %v3900_v39 = vsel %vm161_vm0, %v3839_v53, %v10429_v4  ;;  %v3908_v22 = vsel %vm161_vm0, %v10423_v47, %v10466_v54 }
 0x37c   :  { %6466 = vmatpush.msk.msra.mxu2 %vm8631_vm12, %v3913_v8  ;;  %6478 = vmatpush.msk.msrb.mxu3 %vm8618_vm11, %v3914_v23  ;;  %v10533_v23 = vld [vmem:[%s11388_s7 + $0x18] sm:$0xff] }
 0x37e   :  { %6468 = vmatpush.msk.msra.mxu2 %vm8631_vm12, %v3906_v15  ;;  %6480 = vmatpush.msk.msrb.mxu3 %vm8618_vm11, %v3907_v3 }
 0x37f   :  { %v10498_v48 = vpop.permute.xlu1 %3844 }
 0x380   :  { %v10500_v17 = vpop.permute.xlu0 %3842  ;;  %6470 = vmatpush.msk.msra.mxu2 %vm8631_vm12, %v3899_v50  ;;  %6482 = vmatpush.msk.msrb.mxu3 %vm8618_vm11, %v3900_v39  ;;  %v3881_v40 = vpop.permute.xlu2 %3880  ;;  %vm5392_vm11 = vcmask 48168   ;;  %vm5473_vm12 = vcmask 56368  }
 0x381   :  { %6448 = vmatmul.msk.f32.gmra.mxu0 %vm4031_vm3, %v10493_v25  ;;  %6460 = vmatmul.msk.f32.gmra.mxu1 %vm4031_vm3, %v10493_v25 }
 0x382   :  { %6471 = vmatmul.msk.f32.vlgmr.msra.gmra.mxu2 %vm4031_vm3, %v10456_v35  ;;  %6483 = vmatmul.msk.f32.vlgmr.msrb.gmra.mxu3 %vm4031_vm3, %v10456_v35 }
 0x387   :  { %v3849_v53 = vpop.permute.xlu1 %3848 }
 0x388   :  { %v3861_v0 = vpop.permute.xlu0 %3860  ;;  %v3891_v60 = vpop.permute.xlu2 %3890  ;;  %v3904_v47 = vsel %vm161_vm0, %v10435_v45, %v3849_v53  ;;  %v11774_v53 = vmax.f32 %v10173_v19, 0.0  ;;  %v11779_v19 = vmax.f32 %v10062_v41, 0.0  ;;  %v11782_v41 = vmax.f32 %v10083_v16, 0.0 }
 0x389   :  { %6449 = vmatmul.msk.f32.gmra.mxu0 %vm4031_vm3, %v10517_v6  ;;  %6461 = vmatmul.msk.f32.gmra.mxu1 %vm4031_vm3, %v10517_v6  ;;  %v3922_v37 = vsel %vm161_vm0, %v3889_v27, %v3891_v60  ;;  %v11783_v16 = vmax.f32 %v10346_v57, 0.0  ;;  %v11787_v57 = vmax.f32 %v10278_v11, 0.0  ;;  %v11793_v11 = vmax.f32 %v10089_v13, 0.0 }
 0x38a   :  { %6472 = vmatmul.msk.f32.gmra.mxu2 %vm4031_vm3, %v10493_v25  ;;  %6484 = vmatmul.msk.f32.gmra.mxu3 %vm4031_vm3, %v10493_v25  ;;  %v11799_v13 = vmax.f32 %v10375_v34, 0.0  ;;  %v11803_v34 = vmax.f32 %v10236_v24, 0.0 }
 0x38b   :  { %6488 = vmatpush.msk.msra.mxu0 %vm9118_vm2, %v3922_v37 }
 0x38f   :  { %v3863_v15 = vpop.permute.xlu1 %3862  ;;  %v10711_v24 = vpop.f32.mrf.mxu3 }
 0x390   :  { %v3865_v3 = vpop.permute.xlu0 %3864  ;;  %v3897_v39 = vpop.permute.xlu2 %3896 }
 0x391   :  { %6450 = vmatmul.msk.f32.gmra.mxu0 %vm4031_vm3, %v10533_v23  ;;  %6462 = vmatmul.msk.f32.gmra.mxu1 %vm4031_vm3, %v10533_v23 }
 0x392   :  { %6473 = vmatmul.msk.f32.gmra.mxu2 %vm4031_vm3, %v10517_v6  ;;  %6485 = vmatmul.msk.f32.gmra.mxu3 %vm4031_vm3, %v10517_v6 }
 0x397   :  { %v3879_v27 = vpop.permute.xlu1 %3878 }
 0x398   :  { %v3877_v50 = vpop.permute.xlu0 %3876  ;;  %v3918_v63 = vsel %vm161_vm0, %v3879_v27, %v3881_v40  ;;  %v11773_v40 = vmax.f32 %v10179_v62, 0.0 }
 0x399   :  { %v3917_v62 = vsel %vm161_vm0, %v3877_v50, %v3879_v27  ;;  %v11781_v27 = vmax.f32 %v10349_v32, 0.0  ;;  %v11784_v32 = vmax.f32 %v10378_v44, 0.0  ;;  %v11788_v44 = vmax.f32 %v10315_v5, 0.0 }
 0x39a   :  { %6474 = vmatmul.msk.f32.gmra.mxu2 %vm4031_vm3, %v10533_v23  ;;  %6486 = vmatmul.msk.f32.gmra.mxu3 %vm4031_vm3, %v10533_v23  ;;  %v11794_v5 = vmax.f32 %v10114_v18, 0.0  ;;  %v11800_v18 = vmax.f32 %v10343_v28, 0.0  ;;  %v11804_v28 = vmax.f32 %v10268_v7, 0.0 }
 0x39f   :  { %v3895_v37 = vpop.permute.xlu1 %3894 }
 0x3a0   :  { %v3875_v12 = vpop.permute.xlu0 %3874  ;;  %v3925_v14 = vsel %vm161_vm0, %v3895_v37, %v3897_v39  ;;  %v11780_v39 = vmax.f32 %v10117_v52, 0.0  ;;  %v3902_v52 = vsel %vm161_vm0, %v10500_v17, %v10498_v48 }
 0x3a1   :  { %v3915_v56 = vsel %vm161_vm0, %v10431_v55, %v3875_v12  ;;  %6524 = vmatpush.msk.msra.mxu3 %vm8930_vm15, %v3925_v14  ;;  %v3911_v55 = vsel %vm161_vm0, %v3863_v15, %v3865_v3  ;;  %v11772_v14 = vmax.f32 %v10149_v58, 0.0  ;;  %v3916_v33 = vsel %vm161_vm0, %v3875_v12, %v3877_v50  ;;  %v10607_v12 = vpop.f32.mrf.mxu0 }
 0x3a2   :  { %6490 = vmatpush.msk.msra.mxu0 %vm9118_vm2, %v3915_v56  ;;  %v3901_v56 = vsel %vm161_vm0, %v10429_v4, %v10500_v17  ;;  %v11778_v3 = vmax.f32 %v10111_v9, 0.0  ;;  %v3910_v9 = vsel %vm161_vm0, %v3861_v0, %v3863_v15  ;;  %v11789_v17 = vmax.f32 %v10146_v49, 0.0  ;;  %v10661_v15 = vpop.f32.mrf.mxu1 }
 0x3a3   :  { %6526 = vmatpush.msk.msra.mxu3 %vm8930_vm15, %v3918_v63  ;;  %v11795_v49 = vmax.f32 %v10233_v29, 0.0  ;;  %v11802_v29 = vmax.f32 %v10306_v36, 0.0  ;;  %v11805_v50 = vmax.f32 %v10203_v31, 0.0  ;;  %v6535_v31 = vld [vmem:[%s11388_s7 + $0x40] sm:$0xff] }
 0x3a4   :  { %6492 = vmatpush.msk.msra.mxu0 %vm9118_vm2, %v3908_v22 }
 0x3a5   :  { %6528 = vmatpush.msk.msra.mxu3 %vm8930_vm15, %v3911_v55  ;;  %v6536_v55 = vld [vmem:[%s11388_s7 + $0x48] sm:$0xff] }
 0x3a6   :  { %6494 = vmatpush.msk.msra.mxu0 %vm9118_vm2, %v3901_v56  ;;  %v10728_v56 = vpop.f32.mrf.mxu3 }
 0x3a7   :  { %6495 = vmatmul.msk.f32.vlgmr.msra.gmra.mxu0 %vm4031_vm3, %v10456_v35  ;;  %6530 = vmatpush.msk.msra.mxu3 %vm8930_vm15, %v3904_v47  ;;  %vm5845_vm15 = vcmask 57344  }
 0x3a8   :  { %4549 = vmatpush.msrb.mxu0 %v11772_v14  ;;  %v3893_v22 = vpop.permute.xlu0 %3892  ;;  %6531 = vmatmul.msk.f32.vlgmr.msra.gmra.mxu3 %vm4031_vm3, %v10456_v35  ;;  %v6537_v14 = vld [vmem:[%s11388_s7 + $0x50] sm:$0xff] }
 0x3a9   :  { %v3923_v4 = vsel %vm161_vm0, %v3891_v60, %v3893_v22  ;;  %v3924_v63 = vsel %vm161_vm0, %v3893_v22, %v3895_v37  ;;  %4636 = vmatpush.msrb.mxu3 %v11774_v53  ;;  %v11777_v60 = vmax.f32 %v10086_v38, 0.0  ;;  %v3909_v38 = vsel %vm161_vm0, %v10466_v54, %v3861_v0  ;;  %v10697_v37 = vpop.f32.mrf.mxu2 }
 0x3aa   :  { %4550 = vmatpush.msrb.mxu0 %v11773_v40  ;;  %6500 = vmatpush.msk.msrb.mxu1 %vm9128_vm4, %v3923_v4  ;;  %v3903_v54 = vsel %vm161_vm0, %v10498_v48, %v10435_v45  ;;  %v11785_v45 = vmax.f32 %v10209_v26, 0.0  ;;  %v11786_v48 = vmax.f32 %v10176_v21, 0.0  ;;  %v11791_v0 = vmax.f32 %v10206_v10, 0.0  ;;  %v10655_v21 = vpop.f32.mrf.mxu0  ;;  %v11797_v10 = vld [vmem:[#allocation37_spill] sm:$0xff]  ;;  %v10699_v36 = vpop.f32.mrf.mxu1 }
 0x3ab   :  { %6512 = vmatpush.msk.msrb.mxu2 %vm8939_vm1, %v3924_v63  ;;  %4637 = vmatpush.msrb.mxu3 %v11778_v3  ;;  %v11792_v26 = vmax.f32 %v10271_v42, 0.0  ;;  %v11798_v42 = vmax.f32 %v11797_v10, 0.0  ;;  %v6538_v63 = vld [vmem:[%s11388_s7 + $0x58] sm:$0xff] }
 0x3ac   :  { %4551 = vmatpush.msrb.mxu0 %v11777_v60  ;;  %6502 = vmatpush.msk.msrb.mxu1 %vm9128_vm4, %v3916_v33 }
 0x3ad   :  { %6514 = vmatpush.msk.msrb.mxu2 %vm8939_vm1, %v3917_v62  ;;  %4638 = vmatpush.msrb.mxu3 %v11780_v39 }
 0x3ae   :  { %4552 = vmatpush.msrb.mxu0 %v11779_v19  ;;  %6504 = vmatpush.msk.msrb.mxu1 %vm9128_vm4, %v3909_v38  ;;  %v10746_v4 = vpop.f32.mrf.mxu3 }
 0x3af   :  { %6516 = vmatpush.msk.msrb.mxu2 %vm8939_vm1, %v3910_v9  ;;  %4639 = vmatpush.msrb.mxu3 %v11782_v41 }
 0x3b0   :  { %4665 = vmatpush.msra.mxu0 %v11781_v27  ;;  %6506 = vmatpush.msk.msrb.mxu1 %vm9128_vm4, %v3902_v52 }
 0x3b1   :  { %6496 = vmatmul.msk.f32.gmra.mxu0 %vm4031_vm3, %v10493_v25  ;;  %6518 = vmatpush.msk.msrb.mxu2 %vm8939_vm1, %v3903_v54  ;;  %v10719_v7 = vpop.f32.mrf.mxu2 }
 0x3b2   :  { %4666 = vmatpush.msra.mxu0 %v11783_v16  ;;  %4752 = vmatpush.msra.mxu3 %v11784_v32 }
 0x3b3   :  { %6507 = vmatmul.msk.f32.vlgmr.msrb.gmra.mxu1 %vm4031_vm3, %v10456_v35  ;;  %6519 = vmatmul.msk.f32.vlgmr.msrb.gmra.mxu2 %vm4031_vm3, %v10456_v35  ;;  %v11790_v35 = vmax.f32 %v10143_v30, 0.0  ;;  %v11796_v30 = vmax.f32 %v10059_v61, 0.0  ;;  %v11801_v61 = vmax.f32 %v10309_v43, 0.0  ;;  %v11806_v43 = vmax.f32 %v10239_v1, 0.0 }
 0x3b4   :  { %6532 = vmatmul.msk.f32.gmra.mxu3 %vm4031_vm3, %v10493_v25  ;;  %4578 = vmatpush.msra.mxu1 %v11785_v45 }
 0x3b5   :  { %4607 = vmatpush.msra.mxu2 %v11786_v48  ;;  %4667 = vmatpush.msra.mxu0 %v11787_v57 }
 0x3b6   :  { %4753 = vmatpush.msra.mxu3 %v11788_v44  ;;  %4579 = vmatpush.msra.mxu1 %v11789_v17  ;;  %v10761_v58 = vpop.f32.mrf.mxu3 }
 0x3b7   :  { %4608 = vmatpush.msra.mxu2 %v11790_v35  ;;  %4668 = vmatpush.msra.mxu0 %v11791_v0 }
 0x3b8   :  { %4754 = vmatpush.msra.mxu3 %v11792_v26  ;;  %4580 = vmatpush.msra.mxu1 %v11793_v11 }
 0x3b9   :  { %4609 = vmatpush.msra.mxu2 %v11794_v5  ;;  %6497 = vmatmul.msk.f32.gmra.mxu0 %vm4031_vm3, %v10517_v6  ;;  %v10735_v47 = vpop.f32.mrf.mxu2 }
 0x3ba   :  { %4755 = vmatpush.msra.mxu3 %v11795_v49  ;;  %4581 = vmatpush.msra.mxu1 %v11796_v30 }
 0x3bb   :  { %4610 = vmatpush.msra.mxu2 %v11798_v42  ;;  %6508 = vmatmul.msk.f32.gmra.mxu1 %vm4031_vm3, %v10493_v25 }
 0x3bc   :  { %4694 = vmatpush.msrb.mxu1 %v11799_v13  ;;  %6520 = vmatmul.msk.f32.gmra.mxu2 %vm4031_vm3, %v10493_v25  ;;  %v10693_v25 = vpop.f32.mrf.mxu0 }
 0x3bd   :  { %4723 = vmatpush.msrb.mxu2 %v11800_v18  ;;  %6533 = vmatmul.msk.f32.gmra.mxu3 %vm4031_vm3, %v10517_v6 }
 0x3be   :  { %4695 = vmatpush.msrb.mxu1 %v11801_v61  ;;  %v10774_v62 = vpop.f32.mrf.mxu3 }
 0x3bf   :  { %4724 = vmatpush.msrb.mxu2 %v11802_v29 }
 0x3c0   :  { %4696 = vmatpush.msrb.mxu1 %v11803_v34 }
 0x3c1   :  { %4725 = vmatpush.msrb.mxu2 %v11804_v28  ;;  %6498 = vmatmul.msk.f32.gmra.mxu0 %vm4031_vm3, %v10533_v23  ;;  %v10753_v53 = vpop.f32.mrf.mxu2 }
 0x3c2   :  { %4697 = vmatpush.msrb.mxu1 %v11805_v50 }
 0x3c3   :  { %4726 = vmatpush.msrb.mxu2 %v11806_v43  ;;  %6509 = vmatmul.msk.f32.gmra.mxu1 %vm4031_vm3, %v10517_v6 }
 0x3c4   :  { %6521 = vmatmul.msk.f32.gmra.mxu2 %vm4031_vm3, %v10517_v6  ;;  %v10713_v1 = vpop.f32.mrf.mxu0  ;;  %v10721_v6 = vpop.f32.mrf.mxu1 }
 0x3c5   :  { %6534 = vmatmul.msk.f32.gmra.mxu3 %vm4031_vm3, %v10533_v23 }
 0x3c6   :  { %v10786_v9 = vpop.f32.mrf.mxu3 }
 0x3c7   :  { %11810 = vst [vmem:[#allocation7_spill] sm:$0xff] %v10786_v9 }
 0x3c9   :  { %6539 = vmatmul.msk.f32.vlgmr.msrb.gmra.mxu0 %vm4031_vm3, %v6535_v31  ;;  %v10766_v60 = vpop.f32.mrf.mxu2 }
 0x3cb   :  { %6510 = vmatmul.msk.f32.gmra.mxu1 %vm4031_vm3, %v10533_v23 }
 0x3cc   :  { %6522 = vmatmul.msk.f32.gmra.mxu2 %vm4031_vm3, %v10533_v23  ;;  %v10733_v23 = vpop.f32.mrf.mxu0  ;;  %v10740_v22 = vpop.f32.mrf.mxu1 }
 0x3cd   :  { %6551 = vmatmul.msk.f32.vlgmr.msrb.gmra.mxu3 %vm4031_vm3, %v6535_v31 }
 0x3ce   :  { %v10799_v54 = vpop.f32.mrf.mxu3 }
 0x3cf   :  { %11813 = vst [vmem:[#allocation29_spill] sm:$0xff] %v10799_v54 }
 0x3d1   :  { %6540 = vmatmul.msk.f32.gmra.mxu0 %vm4031_vm3, %v6536_v55  ;;  %v10778_v39 = vpop.f32.mrf.mxu2 }
 0x3d2   :  { %11808 = vst [vmem:[#allocation22_spill] sm:$0xff] %v10778_v39 }
 0x3d3   :  { %6543 = vmatmul.msk.f32.vlgmr.msra.gmra.mxu1 %vm4031_vm3, %v6535_v31 }
 0x3d4   :  { %6547 = vmatmul.msk.f32.vlgmr.msra.gmra.mxu2 %vm4031_vm3, %v6535_v31  ;;  %v10751_v40 = vpop.f32.mrf.mxu0  ;;  %v10755_v8 = vpop.f32.mrf.mxu1 }
 0x3d5   :  { %6552 = vmatmul.msk.f32.gmra.mxu3 %vm4031_vm3, %v6536_v55 }
 0x3d6   :  { %v10805_v48 = vpop.f32.mrf.mxu3 }
 0x3d7   :  { %11815 = vst [vmem:[#allocation21_spill] sm:$0xff] %v10805_v48 }
 0x3d9   :  { %6541 = vmatmul.msk.f32.gmra.mxu0 %vm4031_vm3, %v6537_v14  ;;  %v10791_v41 = vpop.f32.mrf.mxu2 }
 0x3da   :  { %11811 = vst [vmem:[#allocation23_spill] sm:$0xff] %v10791_v41 }
 0x3db   :  { %6544 = vmatmul.msk.f32.gmra.mxu1 %vm4031_vm3, %v6536_v55 }
 0x3dc   :  { %6548 = vmatmul.msk.f32.gmra.mxu2 %vm4031_vm3, %v6536_v55  ;;  %v10763_v33 = vpop.f32.mrf.mxu0  ;;  %v10768_v3 = vpop.f32.mrf.mxu1 }
 0x3dd   :  { %6553 = vmatmul.msk.f32.gmra.mxu3 %vm4031_vm3, %v6537_v14 }
 0x3e1   :  { %6542 = vmatmul.msk.f32.gmra.mxu0 %vm4031_vm3, %v6538_v63  ;;  %v10801_v32 = vpop.f32.mrf.mxu2 }
 0x3e2   :  { %11814 = vst [vmem:[#allocation20_spill] sm:$0xff] %v10801_v32 }
 0x3e3   :  { %6545 = vmatmul.msk.f32.gmra.mxu1 %vm4031_vm3, %v6537_v14 }
 0x3e4   :  { %6549 = vmatmul.msk.f32.gmra.mxu2 %vm4031_vm3, %v6537_v14  ;;  %v10776_v19 = vpop.f32.mrf.mxu0  ;;  %v10782_v38 = vpop.f32.mrf.mxu1 }
 0x3e5   :  { %6554 = vmatmul.msk.f32.gmra.mxu3 %vm4031_vm3, %v6538_v63  ;;  %11807 = vst [vmem:[#allocation33_spill] sm:$0xff] %v10776_v19 }
 0x3e6   :  { %11809 = vst [vmem:[#allocation34_spill] sm:$0xff] %v10782_v38 }
 0x3e9   :  { %6555 = vmatmul.msk.f32.vlgmr.msra.gmra.mxu0 %vm4031_vm3, %v6535_v31 }
 0x3eb   :  { %6546 = vmatmul.msk.f32.gmra.mxu1 %vm4031_vm3, %v6538_v63 }
 0x3ec   :  { %6550 = vmatmul.msk.f32.gmra.mxu2 %vm4031_vm3, %v6538_v63  ;;  %v10793_v52 = vpop.f32.mrf.mxu1 }
 0x3ed   :  { %6567 = vmatmul.msk.f32.vlgmr.msra.gmra.mxu3 %vm4031_vm3, %v6535_v31  ;;  %11812 = vst [vmem:[#allocation19_spill] sm:$0xff] %v10793_v52 }
 0x3f1   :  { %6556 = vmatmul.msk.f32.gmra.mxu0 %vm4031_vm3, %v6536_v55 }
 0x3f3   :  { %6559 = vmatmul.msk.f32.vlgmr.msrb.gmra.mxu1 %vm4031_vm3, %v6535_v31 }
 0x3f4   :  { %6563 = vmatmul.msk.f32.vlgmr.msrb.gmra.mxu2 %vm4031_vm3, %v6535_v31 }
 0x3f5   :  { %6568 = vmatmul.msk.f32.gmra.mxu3 %vm4031_vm3, %v6536_v55  ;;  %v4305_v27 = vpop.f32.mrf.mxu0  ;;  %v4334_v45 = vpop.f32.mrf.mxu1 }
 0x3f9   :  { %6557 = vmatmul.msk.f32.gmra.mxu0 %vm4031_vm3, %v6537_v14 }
 0x3fb   :  { %6560 = vmatmul.msk.f32.gmra.mxu1 %vm4031_vm3, %v6536_v55 }
 0x3fc   :  { %6564 = vmatmul.msk.f32.gmra.mxu2 %vm4031_vm3, %v6536_v55 }
 0x3fd   :  { %6569 = vmatmul.msk.f32.gmra.mxu3 %vm4031_vm3, %v6537_v14 }
 0x3fe   :  { %v4308_v16 = vpop.f32.mrf.mxu0  ;;  %v4337_v17 = vpop.f32.mrf.mxu1 }
 0x401   :  { %6558 = vmatmul.msk.f32.gmra.mxu0 %vm4031_vm3, %v6538_v63 }
 0x403   :  { %6561 = vmatmul.msk.f32.gmra.mxu1 %vm4031_vm3, %v6537_v14 }
 0x404   :  { %6565 = vmatmul.msk.f32.gmra.mxu2 %vm4031_vm3, %v6537_v14 }
 0x405   :  { %6570 = vmatmul.msk.f32.gmra.mxu3 %vm4031_vm3, %v6538_v63  ;;  %v10809_v44 = vpop.f32.mrf.mxu2  ;;  %v10811_v35 = vpop.f32.mrf.mxu3 }
 0x406   :  { %v10807_v57 = vpop.f32.mrf.mxu0  ;;  %v10817_v11 = vpop.f32.mrf.mxu1 }
 0x40b   :  { %6562 = vmatmul.msk.f32.gmra.mxu1 %vm4031_vm3, %v6538_v63 }
 0x40c   :  { %6566 = vmatmul.msk.f32.gmra.mxu2 %vm4031_vm3, %v6538_v63  ;;  %v4306_v63 = vadd.f32 %v4305_v27, %v10607_v12  ;;  %v4335_v12 = vadd.f32 %v4334_v45, %v10661_v15  ;;  %v4338_v15 = vadd.f32 %v4337_v17, %v10699_v36  ;;  %v4364_v17 = vadd.f32 %v10809_v44, %v10697_v37 }
 0x40d   :  { %v10815_v26 = vpop.f32.mrf.mxu2  ;;  %v10821_v49 = vpop.f32.mrf.mxu3 }
 0x40e   :  { %v10813_v0 = vpop.f32.mrf.mxu0  ;;  %v10825_v10 = vpop.f32.mrf.mxu1 }
 0x415   :  { %v10823_v30 = vpop.f32.mrf.mxu2  ;;  %v10829_v13 = vpop.f32.mrf.mxu3 }
 0x41d   :  { %v10833_v61 = vpop.f32.mrf.mxu2  ;;  %v10837_v34 = vpop.f32.mrf.mxu3 }
 0x424   :  { %v10819_v5 = vpop.f32.mrf.mxu0 }
 0x42b   :  { %v10845_v31 = vpop.f32.mrf.mxu3 }
 0x42e   :  { %v10827_v42 = vpop.f32.mrf.mxu0 }
 0x430   :  { %v10831_v18 = vpop.f32.mrf.mxu1 }
 0x436   :  { %v10835_v29 = vpop.f32.mrf.mxu0  ;;  %v10839_v28 = vpop.f32.mrf.mxu2 }
 0x437   :  { %v10855_v52 = vpop.f32.mrf.mxu3 }
 0x438   :  { %v10841_v50 = vpop.f32.mrf.mxu1  ;;  %11820 = vst [vmem:[#allocation45_spill] sm:$0xff] %v10855_v52 }
 0x43e   :  { %v10843_v43 = vpop.f32.mrf.mxu0 }
 0x43f   :  { %11816 = vst [vmem:[#allocation40_spill] sm:$0xff] %v10843_v43  ;;  %v10849_v14 = vpop.f32.mrf.mxu2 }
 0x440   :  { %v10847_v55 = vpop.f32.mrf.mxu1  ;;  %11818 = vst [vmem:[#allocation44_spill] sm:$0xff] %v10849_v14 }
 0x441   :  { %11817 = vst [vmem:[#allocation9_spill] sm:$0xff] %v10847_v55 }
 0x446   :  { %v4554_v48 = vpop.f32.mrf.mxu0 }
 0x447   :  { %v4769_v32 = vadd.f32 %v4554_v48, %v4306_v63  ;;  %v10858_v39 = vpop.f32.mrf.mxu2 }
 0x448   :  { %v10853_v41 = vpop.f32.mrf.mxu1  ;;  %11821 = vst [vmem:[#allocation32_spill] sm:$0xff] %v10858_v39 }
 0x449   :  { %v4821_v54 = vmul.f32 %v10419_v46, %v4769_v32  ;;  %11819 = vst [vmem:[#allocation27_spill] sm:$0xff] %v10853_v41  ;;  %v4309_v32 = vadd.f32 %v4308_v16, %v10655_v21 }
 0x44b   :  { %v4873_v19 = vadd.f32 %v10395_v51, %v4821_v54  ;;  %v10864_v54 = vpop.f32.mrf.mxu3 }
 0x44d   :  { %v4905_v43 = vmax.f32 %v4873_v19, 0.0 }
 0x44e   :  { %v4557_v27 = vpop.f32.mrf.mxu0 }
 0x44f   :  { %v5036_v9 = vsel %vm5035_vm5, %v4905_v43, -inf  ;;  %v5015_v14 = vsel %vm5014_vm6, %v4905_v43, -inf  ;;  %v4777_v41 = vadd.f32 %v4557_v27, %v4309_v32  ;;  %v10867_v52 = vpop.f32.mrf.mxu2  ;;  %v4994_v32 = vsel %vm4993_vm7, %v4905_v43, -inf }
 0x450   :  { %5037 = vmax.xlane.f32.xlu2 %v5036_v9  ;;  %5016 = vmax.xlane.f32.xlu1 %v5015_v14  ;;  %v4583_v48 = vpop.f32.mrf.mxu1 }
 0x451   :  { %v4770_v63 = vadd.f32 %v4583_v48, %v4335_v12  ;;  %v4829_v55 = vmul.f32 %v10413_v2, %v4777_v41  ;;  %v4973_v48 = vsel %vm4031_vm3, %v4905_v43, -inf }
 0x453   :  { %v4822_v39 = vmul.f32 %v10419_v46, %v4770_v63  ;;  %v4881_v16 = vadd.f32 %v10421_v59, %v4829_v55 }
 0x455   :  { %v4874_v19 = vadd.f32 %v10395_v51, %v4822_v39  ;;  %v10876_v39 = vpop.f32.mrf.mxu3  ;;  %v4913_v41 = vmax.f32 %v4881_v16, 0.0 }
 0x457   :  { %v4906_v38 = vmax.f32 %v4874_v19, 0.0  ;;  %v4612_v36 = vpop.f32.mrf.mxu2  ;;  %v4997_v19 = vsel %vm4993_vm7, %v4913_v41, -inf  ;;  %v5039_v44 = vsel %vm5035_vm5, %v4913_v41, -inf }
 0x458   :  { %v4586_v9 = vpop.f32.mrf.mxu1  ;;  %v4771_v55 = vadd.f32 %v4612_v36, %v4364_v17 }
 0x459   :  { %v5117_v45 = vsel %vm5035_vm5, %v4906_v38, -inf  ;;  %v5097_v21 = vsel %vm5014_vm6, %v4906_v38, -inf  ;;  %v4778_v14 = vadd.f32 %v4586_v9, %v4338_v15  ;;  %v5077_v12 = vsel %vm4993_vm7, %v4906_v38, -inf }
 0x45a   :  { %5118 = vmax.xlane.f32.xlu0 %v5117_v45  ;;  %5098 = vmax.xlane.f32.xlu2 %v5097_v21  ;;  %v4823_v15 = vmul.f32 %v10419_v46, %v4771_v55  ;;  %v4393_v21 = vadd.f32 %v10811_v35, %v10711_v24  ;;  %v5056_v37 = vsel %vm4031_vm3, %v4906_v38, -inf }
 0x45b   :  { %5078 = vmax.xlane.f32.xlu1 %v5077_v12  ;;  %v4830_v27 = vmul.f32 %v10413_v2, %v4778_v14 }
 0x45c   :  { %v4875_v16 = vadd.f32 %v10395_v51, %v4823_v15 }
 0x45d   :  { %v4882_v63 = vadd.f32 %v10421_v59, %v4830_v27  ;;  %v4641_v45 = vpop.f32.mrf.mxu3 }
 0x45e   :  { %v4772_v43 = vadd.f32 %v4641_v45, %v4393_v21  ;;  %v4907_v27 = vmax.f32 %v4875_v16, 0.0 }
 0x45f   :  { %v4914_v9 = vmax.f32 %v4882_v63, 0.0 }
 0x460   :  { %v4824_v12 = vmul.f32 %v10419_v46, %v4772_v43  ;;  %v5178_v38 = vsel %vm5014_vm6, %v4907_v27, -inf  ;;  %v4589_v63 = vpop.f32.mrf.mxu1  ;;  %v4312_v43 = vadd.f32 %v10807_v57, %v10693_v25 }
 0x461   :  { %v5059_v14 = vsel %vm4031_vm3, %v4914_v9, -inf  ;;  %v5100_v36 = vsel %vm5014_vm6, %v4914_v9, -inf  ;;  %v5120_v17 = vsel %vm5035_vm5, %v4914_v9, -inf  ;;  %v5080_v45 = vsel %vm4993_vm7, %v4914_v9, -inf }
 0x462   :  { %4995 = vmax.xlane.f32.xlu0 %v4994_v32  ;;  %4974 = vmax.xlane.f32.xlu2 %v4973_v48  ;;  %v4876_v24 = vadd.f32 %v10395_v51, %v4824_v12  ;;  %v5018_v32 = vsel %vm5014_vm6, %v4913_v41, -inf  ;;  %v4976_v48 = vsel %vm4031_vm3, %v4913_v41, -inf }
 0x463   :  { %4998 = vmax.xlane.f32.xlu1 %v4997_v19  ;;  %v4341_v19 = vadd.f32 %v10817_v11, %v10721_v6  ;;  %v5198_v6 = vsel %vm5035_vm5, %v4907_v27, -inf  ;;  %v5158_v11 = vsel %vm4993_vm7, %v4907_v27, -inf }
 0x464   :  { %v4908_v35 = vmax.f32 %v4876_v24, 0.0 }
 0x465   :  { %v4786_v15 = vadd.f32 %v4589_v63, %v4341_v19  ;;  %v4644_v24 = vpop.f32.mrf.mxu3  ;;  %v4615_v19 = vpop.f32.mrf.mxu2 }
 0x466   :  { %v5239_v55 = vsel %vm4993_vm7, %v4908_v35, -inf  ;;  %v5279_v21 = vsel %vm5035_vm5, %v4908_v35, -inf  ;;  %v5218_v9 = vsel %vm4031_vm3, %v4908_v35, -inf }
 0x467   :  { %v4838_v41 = vmul.f32 %v10321_v20, %v4786_v15  ;;  %v4367_v15 = vadd.f32 %v10815_v26, %v10719_v7 }
 0x46a   :  { %5057 = vmax.xlane.f32.xlu0 %v5056_v37  ;;  %5040 = vmax.xlane.f32.xlu2 %v5039_v44  ;;  %v5137_v37 = vsel %vm4031_vm3, %v4907_v27, -inf  ;;  %v4560_v44 = vpop.f32.mrf.mxu0 }
 0x46b   :  { %5060 = vmax.xlane.f32.xlu1 %v5059_v14  ;;  %v4785_v16 = vadd.f32 %v4560_v44, %v4312_v43  ;;  %v11822_v14 = vld [vmem:[#allocation26_spill] sm:$0xff] }
 0x46c   :  { %v4890_v12 = vadd.f32 %v11822_v14, %v4838_v41 }
 0x472   :  { %5101 = vmax.xlane.f32.xlu0 %v5100_v36  ;;  %5121 = vmax.xlane.f32.xlu2 %v5120_v17  ;;  %v4837_v36 = vmul.f32 %v10321_v20, %v4785_v16  ;;  %v4922_v17 = vmax.f32 %v4890_v12, 0.0  ;;  %v4592_v12 = vpop.f32.mrf.mxu1 }
 0x473   :  { %5179 = vmax.xlane.f32.xlu1 %v5178_v38  ;;  %v4396_v38 = vadd.f32 %v10821_v49, %v10728_v56  ;;  %v4779_v56 = vadd.f32 %v4615_v19, %v4367_v15 }
 0x474   :  { %v4889_v25 = vadd.f32 %v11822_v14, %v4837_v36  ;;  %v5123_v57 = vsel %vm5035_vm5, %v4922_v17, -inf  ;;  %v5103_v27 = vsel %vm5014_vm6, %v4922_v17, -inf  ;;  %v5083_v43 = vsel %vm4993_vm7, %v4922_v17, -inf }
 0x47a   :  { %5019 = vmax.xlane.f32.xlu2 %v5018_v32  ;;  %4977 = vmax.xlane.f32.xlu0 %v4976_v48  ;;  %v5259_v32 = vsel %vm5014_vm6, %v4908_v35, -inf  ;;  %v4780_v48 = vadd.f32 %v4644_v24, %v4396_v38  ;;  %v4563_v38 = vpop.f32.mrf.mxu0 }
 0x47b   :  { %5240 = vmax.xlane.f32.xlu1 %v5239_v55  ;;  %v4921_v55 = vmax.f32 %v4889_v25, 0.0  ;;  %v11823_v25 = vld [vmem:[#allocation36_spill] sm:$0xff] }
 0x47c   :  { %v4832_v63 = vmul.f32 %v10413_v2, %v4780_v48 }
 0x47d   :  { %v5021_v49 = vsel %vm5014_vm6, %v4921_v55, -inf  ;;  %v5000_v7 = vsel %vm4993_vm7, %v4921_v55, -inf }
 0x47e   :  { %v4884_v35 = vadd.f32 %v10421_v59, %v4832_v63 }
 0x480   :  { %v4916_v41 = vmax.f32 %v4884_v35, 0.0  ;;  %v4370_v35 = vadd.f32 %v10823_v30, %v10735_v47 }
 0x482   :  { %5081 = vmax.xlane.f32.xlu2 %v5080_v45  ;;  %5280 = vmax.xlane.f32.xlu0 %v5279_v21  ;;  %v5042_v45 = vsel %vm5035_vm5, %v4921_v55, -inf  ;;  %v4979_v21 = vsel %vm4031_vm3, %v4921_v55, -inf  ;;  %v5282_v26 = vsel %vm5035_vm5, %v4916_v41, -inf }
 0x483   :  { %5138 = vmax.xlane.f32.xlu1 %v5137_v37  ;;  %v4831_v37 = vmul.f32 %v10413_v2, %v4779_v56 }
 0x485   :  { %v4883_v44 = vadd.f32 %v10421_v59, %v4831_v37  ;;  %v4399_v37 = vadd.f32 %v10829_v13, %v10746_v4 }
 0x487   :  { %v4915_v16 = vmax.f32 %v4883_v44, 0.0 }
 0x489   :  { %v5161_v24 = vsel %vm4993_vm7, %v4915_v16, -inf  ;;  %v5140_v56 = vsel %vm4031_vm3, %v4915_v16, -inf }
 0x48a   :  { %5199 = vmax.xlane.f32.xlu2 %v5198_v6  ;;  %5159 = vmax.xlane.f32.xlu0 %v5158_v11  ;;  %v4344_v6 = vadd.f32 %v10825_v10, %v10740_v22  ;;  %v5201_v11 = vsel %vm5035_vm5, %v4915_v16, -inf  ;;  %v5262_v22 = vsel %vm5014_vm6, %v4916_v41, -inf  ;;  %v11824_v10 = vld [vmem:[#allocation17_spill] sm:$0xff] }
 0x48b   :  { %5219 = vmax.xlane.f32.xlu1 %v5218_v9  ;;  %v5062_v9 = vsel %vm4031_vm3, %v4922_v17, -inf  ;;  %v5221_v17 = vsel %vm4031_vm3, %v4916_v41, -inf }
 0x48c   :  { %v4794_v36 = vadd.f32 %v4592_v12, %v4344_v6 }
 0x492   :  { %5124 = vmax.xlane.f32.xlu0 %v5123_v57  ;;  %5260 = vmax.xlane.f32.xlu2 %v5259_v32  ;;  %v4846_v57 = vmul.f32 %v11823_v25, %v4794_v36  ;;  %v4315_v32 = vadd.f32 %v10813_v0, %v10713_v1  ;;  %v5242_v1 = vsel %vm4993_vm7, %v4916_v41, -inf }
 0x493   :  { %5104 = vmax.xlane.f32.xlu1 %v5103_v27  ;;  %v5181_v27 = vsel %vm5014_vm6, %v4915_v16, -inf }
 0x494   :  { %v4793_v48 = vadd.f32 %v4563_v38, %v4315_v32  ;;  %v4898_v55 = vadd.f32 %v11824_v10, %v4846_v57  ;;  %v4670_v32 = vpop.f32.mrf.mxu0 }
 0x496   :  { %v4845_v63 = vmul.f32 %v11823_v25, %v4793_v48  ;;  %v4930_v19 = vmax.f32 %v4898_v55, 0.0 }
 0x498   :  { %v4897_v15 = vadd.f32 %v11824_v10, %v4845_v63  ;;  %v5126_v0 = vsel %vm5035_vm5, %v4930_v19, -inf  ;;  %v5065_v55 = vsel %vm4031_vm3, %v4930_v19, -inf }
 0x49a   :  { %5022 = vmax.xlane.f32.xlu0 %v5021_v49  ;;  %5043 = vmax.xlane.f32.xlu2 %v5042_v45  ;;  %v4929_v49 = vmax.f32 %v4897_v15, 0.0  ;;  %v4618_v45 = vpop.f32.mrf.mxu2 }
 0x49b   :  { %4980 = vmax.xlane.f32.xlu1 %v4979_v21  ;;  %v4647_v21 = vpop.f32.mrf.mxu3  ;;  %v4787_v44 = vadd.f32 %v4618_v45, %v4370_v35 }
 0x49c   :  { %v4788_v41 = vadd.f32 %v4647_v21, %v4399_v37  ;;  %v5003_v13 = vsel %vm4993_vm7, %v4929_v49, -inf  ;;  %v4982_v6 = vsel %vm4031_vm3, %v4929_v49, -inf }
 0x49d   :  { %v4839_v47 = vmul.f32 %v10321_v20, %v4787_v44 }
 0x49e   :  { %v4840_v4 = vmul.f32 %v10321_v20, %v4788_v41  ;;  %v4373_v41 = vadd.f32 %v10833_v61, %v10753_v53 }
 0x49f   :  { %v4891_v30 = vadd.f32 %v11822_v14, %v4839_v47 }
 0x4a1   :  { %v10964_v36 = vmax.f32 %v4891_v30, 0.0 }
 0x4a2   :  { %5084 = vmax.xlane.f32.xlu0 %v5083_v43  ;;  %5001 = vmax.xlane.f32.xlu2 %v5000_v7  ;;  %v5045_v43 = vsel %vm5035_vm5, %v4929_v49, -inf  ;;  %v5106_v7 = vsel %vm5014_vm6, %v4930_v19, -inf }
 0x4a3   :  { %5283 = vmax.xlane.f32.xlu1 %v5282_v26  ;;  %v5024_v26 = vsel %vm5014_vm6, %v4929_v49, -inf  ;;  %v5204_v45 = vsel %vm5035_vm5, %v10964_v36, -inf  ;;  %v5143_v21 = vsel %vm4031_vm3, %v10964_v36, -inf }
 0x4aa   :  { %5202 = vmax.xlane.f32.xlu0 %v5201_v11  ;;  %5063 = vmax.xlane.f32.xlu2 %v5062_v9  ;;  %v4892_v11 = vadd.f32 %v11822_v14, %v4840_v4  ;;  %v5086_v9 = vsel %vm4993_vm7, %v4930_v19, -inf }
 0x4ab   :  { %5162 = vmax.xlane.f32.xlu1 %v5161_v24 }
 0x4ac   :  { %v10966_v57 = vmax.f32 %v4892_v11, 0.0 }
 0x4ae   :  { %v5265_v63 = vsel %vm5014_vm6, %v10966_v57, -inf  ;;  %v5224_v35 = vsel %vm4031_vm3, %v10966_v57, -inf  ;;  %v5285_v4 = vsel %vm5035_vm5, %v10966_v57, -inf }
 0x4b2   :  { %5182 = vmax.xlane.f32.xlu2 %v5181_v27  ;;  %5263 = vmax.xlane.f32.xlu0 %v5262_v22  ;;  %v4422_v27 = vadd.f32 %v10819_v5, %v10733_v23  ;;  %v4451_v5 = vadd.f32 %v10831_v18, %v10755_v8 }
 0x4b3   :  { %5222 = vmax.xlane.f32.xlu1 %v5221_v17  ;;  %v5164_v17 = vsel %vm4993_vm7, %v10964_v36, -inf }
 0x4b4   :  { %v4773_v22 = vadd.f32 %v4670_v32, %v4422_v27 }
 0x4b6   :  { %v4825_v15 = vmul.f32 %v10419_v46, %v4773_v22 }
 0x4b8   :  { %v4877_v19 = vadd.f32 %v10395_v51, %v4825_v15 }
 0x4ba   :  { %5141 = vmax.xlane.f32.xlu0 %v5140_v56  ;;  %5243 = vmax.xlane.f32.xlu2 %v5242_v1  ;;  %v10991_v8 = vmax.f32 %v4877_v19, 0.0 }
 0x4bb   :  { %5127 = vmax.xlane.f32.xlu1 %v5126_v0  ;;  %v4699_v0 = vpop.f32.mrf.mxu1 }
 0x4bc   :  { %v4774_v49 = vadd.f32 %v4699_v0, %v4451_v5  ;;  %v5360_v30 = vsel %vm5035_vm5, %v10991_v8, -inf  ;;  %v5340_v53 = vsel %vm5014_vm6, %v10991_v8, -inf  ;;  %v4673_v5 = vpop.f32.mrf.mxu0 }
 0x4be   :  { %v4826_v18 = vmul.f32 %v10419_v46, %v4774_v49  ;;  %v4425_v49 = vadd.f32 %v10827_v42, %v10751_v40 }
 0x4c0   :  { %v4878_v47 = vadd.f32 %v10395_v51, %v4826_v18 }
 0x4c2   :  { %5046 = vmax.xlane.f32.xlu0 %v5045_v43  ;;  %5107 = vmax.xlane.f32.xlu2 %v5106_v7  ;;  %v4621_v43 = vpop.f32.mrf.mxu2 }
 0x4c3   :  { %v5017_v16 = vpop.xlane.xlu1 %5016  ;;  %v5038_v12 = vpop.xlane.xlu2 %5037  ;;  %5025 = vmax.xlane.f32.xlu1 %v5024_v26 }
 0x4c4   :  { %5027 = vst.msk [vmem:[#allocation5 + $0x40] sm:$0xff] %vm161_vm0, %v5017_v16  ;;  %v4650_v26 = vpop.f32.mrf.mxu3  ;;  %v4402_v16 = vadd.f32 %v10837_v34, %v10761_v58  ;;  %v11008_v58 = vmax.f32 %v4878_v47, 0.0 }
 0x4c5   :  { %5048 = vst.msk [vmem:[#allocation5 + $0x60] sm:$0xff] %vm161_vm0, %v5038_v12  ;;  %v4795_v12 = vadd.f32 %v4621_v43, %v4373_v41  ;;  %v5320_v41 = vsel %vm4993_vm7, %v10991_v8, -inf }
 0x4c6   :  { %v5421_v32 = vsel %vm5014_vm6, %v11008_v58, -inf  ;;  %v5401_v27 = vsel %vm4993_vm7, %v11008_v58, -inf }
 0x4c7   :  { %v4847_v61 = vmul.f32 %v11823_v25, %v4795_v12 }
 0x4ca   :  { %5004 = vmax.xlane.f32.xlu0 %v5003_v13  ;;  %4983 = vmax.xlane.f32.xlu2 %v4982_v6  ;;  %v4796_v13 = vadd.f32 %v4650_v26, %v4402_v16 }
 0x4cb   :  { %5087 = vmax.xlane.f32.xlu1 %v5086_v9 }
 0x4cc   :  { %v4848_v11 = vmul.f32 %v11823_v25, %v4796_v13 }
 0x4cd   :  { %v5119_v24 = vpop.xlane.xlu0 %5118  ;;  %v5099_v38 = vpop.xlane.xlu2 %5098 }
 0x4ce   :  { %5129 = vst.msk [vmem:[#allocation5 + $0x60] sm:$0xff] %vm5068_vm8, %v5119_v24  ;;  %v5079_v48 = vpop.xlane.xlu1 %5078  ;;  %v4899_v24 = vadd.f32 %v11824_v10, %v4847_v61  ;;  %v4728_v61 = vpop.f32.mrf.mxu2 }
 0x4cf   :  { %5109 = vst.msk [vmem:[#allocation5 + $0x40] sm:$0xff] %vm5068_vm8, %v5099_v38  ;;  %v5184_v38 = vsel %vm5014_vm6, %v10964_v36, -inf  ;;  %v5245_v36 = vsel %vm4993_vm7, %v10966_v57, -inf  ;;  %v4454_v57 = vadd.f32 %v10841_v50, %v10768_v3 }
 0x4d0   :  { %v4931_v22 = vmax.f32 %v4899_v24, 0.0 }
 0x4d2   :  { %5066 = vmax.xlane.f32.xlu0 %v5065_v55  ;;  %5165 = vmax.xlane.f32.xlu2 %v5164_v17  ;;  %v5146_v26 = vsel %vm4031_vm3, %v4931_v22, -inf }
 0x4d3   :  { %5266 = vmax.xlane.f32.xlu1 %v5265_v63 }
 0x4d5   :  { %v4996_v56 = vpop.xlane.xlu0 %4995  ;;  %v4975_v1 = vpop.xlane.xlu2 %4974 }
 0x4d6   :  { %5006 = vst.msk [vmem:[#allocation5 + $0x20] sm:$0xff] %vm161_vm0, %v4996_v56  ;;  %v4999_v23 = vpop.xlane.xlu1 %4998  ;;  %v5207_v56 = vsel %vm5035_vm5, %v4931_v22, -inf }
 0x4d7   :  { %5089 = vst.msk [vmem:[#allocation5 + $0x20] sm:$0xff] %vm5068_vm8, %v5079_v48  ;;  %v4900_v48 = vadd.f32 %v11824_v10, %v4848_v11 }
 0x4d8   :  { %5007 = vst.msk [vmem:[#allocation5 + $0x28] sm:$0xff] %vm161_vm0, %v4999_v23 }
 0x4d9   :  { %4985 = vst.msk [vmem:[#allocation5] sm:$0xff] %vm161_vm0, %v4975_v1  ;;  %v11021_v63 = vmax.f32 %v4900_v48, 0.0 }
 0x4da   :  { %5205 = vmax.xlane.f32.xlu0 %v5204_v45  ;;  %5225 = vmax.xlane.f32.xlu2 %v5224_v35  ;;  %v4702_v45 = vpop.f32.mrf.mxu1  ;;  %v4781_v35 = vadd.f32 %v4673_v5, %v4425_v49 }
 0x4db   :  { %5144 = vmax.xlane.f32.xlu1 %v5143_v21  ;;  %v5288_v1 = vsel %vm5035_vm5, %v11021_v63, -inf  ;;  %v5441_v21 = vsel %vm5035_vm5, %v11008_v58, -inf  ;;  %v5268_v18 = vsel %vm5014_vm6, %v11021_v63, -inf  ;;  %v5248_v12 = vsel %vm4993_vm7, %v11021_v63, -inf }
 0x4dc   :  { %v4833_v40 = vmul.f32 %v10413_v2, %v4781_v35 }
 0x4dd   :  { %v5058_v37 = vpop.xlane.xlu0 %5057  ;;  %v5041_v44 = vpop.xlane.xlu2 %5040 }
 0x4de   :  { %5069 = vst.msk [vmem:[#allocation5] sm:$0xff] %vm5068_vm8, %v5058_v37  ;;  %v5061_v7 = vpop.xlane.xlu1 %5060  ;;  %v4782_v37 = vadd.f32 %v4702_v45, %v4454_v57 }
 0x4df   :  { %5049 = vst.msk [vmem:[#allocation5 + $0x68] sm:$0xff] %vm161_vm0, %v5041_v44  ;;  %v5187_v44 = vsel %vm5014_vm6, %v4931_v22, -inf }
 0x4e0   :  { %v4834_v3 = vmul.f32 %v10413_v2, %v4782_v37  ;;  %v11826_v37 = vld [vmem:[#allocation9_spill] sm:$0xff] }
 0x4e2   :  { %5286 = vmax.xlane.f32.xlu0 %v5285_v4  ;;  %5361 = vmax.xlane.f32.xlu2 %v5360_v30  ;;  %v4886_v16 = vadd.f32 %v10421_v59, %v4834_v3 }
 0x4e3   :  { %5341 = vmax.xlane.f32.xlu1 %v5340_v53 }
 0x4e4   :  { %v4918_v13 = vmax.f32 %v4886_v16, 0.0 }
 0x4e5   :  { %v5102_v34 = vpop.xlane.xlu0 %5101  ;;  %v5122_v6 = vpop.xlane.xlu2 %5121 }
 0x4e6   :  { %v5180_v9 = vpop.xlane.xlu1 %5179  ;;  %5130 = vst.msk [vmem:[#allocation5 + $0x68] sm:$0xff] %vm5068_vm8, %v5122_v6  ;;  %v5167_v6 = vsel %vm4993_vm7, %v4931_v22, -inf  ;;  %v5444_v24 = vsel %vm5035_vm5, %v4918_v13, -inf  ;;  %v5227_v22 = vsel %vm4031_vm3, %v11021_v63, -inf  ;;  %v4676_v63 = vpop.f32.mrf.mxu0 }
 0x4e7   :  { %5190 = vst.msk [vmem:[#allocation5 + $0x40] sm:$0xff] %vm5149_vm9, %v5180_v9 }
 0x4ea   :  { %5185 = vmax.xlane.f32.xlu0 %v5184_v38  ;;  %5422 = vmax.xlane.f32.xlu2 %v5421_v32 }
 0x4eb   :  { %5402 = vmax.xlane.f32.xlu1 %v5401_v27 }
 0x4ed   :  { %v4978_v55 = vpop.xlane.xlu0 %4977  ;;  %v5020_v17 = vpop.xlane.xlu2 %5019 }
 0x4ee   :  { %4986 = vst.msk [vmem:[#allocation5 + $0x8] sm:$0xff] %vm161_vm0, %v4978_v55  ;;  %v5241_v15 = vpop.xlane.xlu1 %5240  ;;  %v4757_v55 = vpop.f32.mrf.mxu3 }
 0x4ef   :  { %5070 = vst.msk [vmem:[#allocation5 + $0x8] sm:$0xff] %vm5068_vm8, %v5061_v7  ;;  %v4885_v7 = vadd.f32 %v10421_v59, %v4833_v40  ;;  %v5383_v40 = vsel %vm4031_vm3, %v4918_v13, -inf }
 0x4f0   :  { %5028 = vst.msk [vmem:[#allocation5 + $0x48] sm:$0xff] %vm161_vm0, %v5020_v17 }
 0x4f1   :  { %5110 = vst.msk [vmem:[#allocation5 + $0x48] sm:$0xff] %vm5068_vm8, %v5102_v34  ;;  %v4917_v47 = vmax.f32 %v4885_v7, 0.0  ;;  %v4480_v34 = vadd.f32 %v10839_v28, %v10766_v60  ;;  %v4509_v60 = vadd.f32 %v10845_v31, %v10774_v62  ;;  %v5404_v28 = vsel %vm4993_vm7, %v4918_v13, -inf }
 0x4f2   :  { %5246 = vmax.xlane.f32.xlu0 %v5245_v36  ;;  %5208 = vmax.xlane.f32.xlu2 %v5207_v56 }
 0x4f3   :  { %5289 = vmax.xlane.f32.xlu1 %v5288_v1  ;;  %v5343_v11 = vsel %vm5014_vm6, %v4917_v47, -inf  ;;  %v4775_v9 = vadd.f32 %v4728_v61, %v4480_v34  ;;  %v4776_v17 = vadd.f32 %v4757_v55, %v4509_v60  ;;  %v5323_v36 = vsel %vm4993_vm7, %v4917_v47, -inf }
 0x4f4   :  { %v5302_v5 = vsel %vm4031_vm3, %v4917_v47, -inf }
 0x4f5   :  { %v5281_v0 = vpop.xlane.xlu0 %5280  ;;  %v5082_v23 = vpop.xlane.xlu2 %5081  ;;  %v4827_v48 = vmul.f32 %v10419_v46, %v4775_v9  ;;  %v4828_v56 = vmul.f32 %v10419_v46, %v4776_v17  ;;  %v11827_v9 = vld [vmem:[#allocation7_spill] sm:$0xff] }
 0x4f6   :  { %v5139_v19 = vpop.xlane.xlu1 %5138  ;;  %5090 = vst.msk [vmem:[#allocation5 + $0x28] sm:$0xff] %vm5068_vm8, %v5082_v23  ;;  %v4428_v23 = vadd.f32 %v10835_v29, %v10763_v33  ;;  %v4705_v29 = vpop.f32.mrf.mxu1 }
 0x4f7   :  { %5150 = vst.msk [vmem:[#allocation5] sm:$0xff] %vm5149_vm9, %v5139_v19  ;;  %v5363_v19 = vsel %vm5035_vm5, %v4917_v47, -inf  ;;  %v4880_v49 = vadd.f32 %v10395_v51, %v4828_v56  ;;  %v4731_v17 = vpop.f32.mrf.mxu2 }
 0x4f8   :  { %v4789_v45 = vadd.f32 %v4676_v63, %v4428_v23 }
 0x4fa   :  { %5442 = vmax.xlane.f32.xlu0 %v5441_v21  ;;  %5269 = vmax.xlane.f32.xlu2 %v5268_v18  ;;  %v11088_v21 = vmax.f32 %v4880_v49, 0.0  ;;  %v4841_v18 = vmul.f32 %v10321_v20, %v4789_v45 }
 0x4fb   :  { %5188 = vmax.xlane.f32.xlu1 %v5187_v44 }
 0x4fd   :  { %v5160_v42 = vpop.xlane.xlu0 %5159  ;;  %v5200_v43 = vpop.xlane.xlu2 %5199 }
 0x4fe   :  { %5170 = vst.msk [vmem:[#allocation5 + $0x20] sm:$0xff] %vm5149_vm9, %v5160_v42  ;;  %v5220_v50 = vpop.xlane.xlu1 %5219  ;;  %v5424_v42 = vsel %vm5014_vm6, %v4918_v13, -inf }
 0x4ff   :  { %5231 = vst.msk [vmem:[#allocation5] sm:$0xff] %vm5230_vm10, %v5220_v50  ;;  %v5563_v50 = vsel %vm4993_vm7, %v11088_v21, -inf }
 0x500   :  { %5251 = vst.msk [vmem:[#allocation5 + $0x20] sm:$0xff] %vm5230_vm10, %v5241_v15  ;;  %v4879_v15 = vadd.f32 %v10395_v51, %v4827_v48  ;;  %v11825_v51 = vld [vmem:[#allocation34_spill] sm:$0xff]  ;;  %v5583_v48 = vsel %vm5014_vm6, %v11088_v21, -inf }
 0x501   :  { %5210 = vst.msk [vmem:[#allocation5 + $0x60] sm:$0xff] %vm5149_vm9, %v5200_v43  ;;  %v4457_v44 = vadd.f32 %v11826_v37, %v11825_v51  ;;  %v4893_v43 = vadd.f32 %v11822_v14, %v4841_v18  ;;  %v11831_v18 = vld [vmem:[#allocation33_spill] sm:$0xff] }
 0x502   :  { %5291 = vst.msk [vmem:[#allocation5 + $0x60] sm:$0xff] %vm5230_vm10, %v5281_v0  ;;  %5321 = vmax.xlane.f32.xlu0 %v5320_v41  ;;  %5147 = vmax.xlane.f32.xlu2 %v5146_v26  ;;  %v11077_v1 = vmax.f32 %v4879_v15, 0.0 }
 0x503   :  { %5249 = vmax.xlane.f32.xlu1 %v5248_v12  ;;  %v4790_v3 = vadd.f32 %v4705_v29, %v4457_v44  ;;  %v4925_v26 = vmax.f32 %v4893_v43, 0.0 }
 0x504   :  { %v5502_v46 = vsel %vm5014_vm6, %v11077_v1, -inf  ;;  %v5522_v47 = vsel %vm5035_vm5, %v11077_v1, -inf }
 0x505   :  { %v5125_v4 = vpop.xlane.xlu0 %5124  ;;  %v5261_v30 = vpop.xlane.xlu2 %5260  ;;  %v4842_v16 = vmul.f32 %v10321_v20, %v4790_v3  ;;  %v5366_v13 = vsel %vm5035_vm5, %v4925_v26, -inf }
 0x506   :  { %v5105_v53 = vpop.xlane.xlu1 %5104  ;;  %5271 = vst.msk [vmem:[#allocation5 + $0x40] sm:$0xff] %vm5230_vm10, %v5261_v30 }
 0x507   :  { %v4894_v30 = vadd.f32 %v11822_v14, %v4842_v16 }
 0x509   :  { %v4926_v34 = vmax.f32 %v4894_v30, 0.0 }
 0x50a   :  { %5168 = vmax.xlane.f32.xlu0 %v5167_v6  ;;  %5344 = vmax.xlane.f32.xlu2 %v5343_v11  ;;  %v4760_v11 = vpop.f32.mrf.mxu3 }
 0x50b   :  { %5445 = vmax.xlane.f32.xlu1 %v5444_v24  ;;  %v11828_v24 = vld [vmem:[#allocation45_spill] sm:$0xff]  ;;  %v5427_v55 = vsel %vm5014_vm6, %v4926_v34, -inf  ;;  %v5447_v63 = vsel %vm5035_vm5, %v4926_v34, -inf  ;;  %v5407_v37 = vsel %vm4993_vm7, %v4926_v34, -inf }
 0x50d   :  { %v5023_v38 = vpop.xlane.xlu0 %5022  ;;  %v5044_v32 = vpop.xlane.xlu2 %5043 }
 0x50e   :  { %5029 = vst.msk [vmem:[#allocation5 + $0x50] sm:$0xff] %vm161_vm0, %v5023_v38  ;;  %v4981_v27 = vpop.xlane.xlu1 %4980  ;;  %v4512_v38 = vadd.f32 %v11828_v24, %v11827_v9 }
 0x50f   :  { %5111 = vst.msk [vmem:[#allocation5 + $0x50] sm:$0xff] %vm5068_vm8, %v5105_v53 }
 0x510   :  { %4987 = vst.msk [vmem:[#allocation5 + $0x10] sm:$0xff] %vm161_vm0, %v4981_v27  ;;  %v4784_v27 = vadd.f32 %v4760_v11, %v4512_v38 }
 0x511   :  { %5050 = vst.msk [vmem:[#allocation5 + $0x70] sm:$0xff] %vm161_vm0, %v5044_v32  ;;  %v5482_v32 = vsel %vm4993_vm7, %v11077_v1, -inf }
 0x512   :  { %5131 = vst.msk [vmem:[#allocation5 + $0x70] sm:$0xff] %vm5068_vm8, %v5125_v4  ;;  %5405 = vmax.xlane.f32.xlu2 %v5404_v28  ;;  %5228 = vmax.xlane.f32.xlu0 %v5227_v22  ;;  %v5603_v4 = vsel %vm5035_vm5, %v11088_v21, -inf  ;;  %v4836_v22 = vmul.f32 %v10413_v2, %v4784_v27 }
 0x513   :  { %5324 = vmax.xlane.f32.xlu1 %v5323_v36  ;;  %v11829_v36 = vld [vmem:[#allocation22_spill] sm:$0xff] }
 0x514   :  { %v4888_v23 = vadd.f32 %v10421_v59, %v4836_v22  ;;  %v11835_v22 = vld [vmem:[#allocation23_spill] sm:$0xff] }
 0x515   :  { %v5085_v62 = vpop.xlane.xlu0 %5084  ;;  %v5002_v31 = vpop.xlane.xlu2 %5001 }
 0x516   :  { %v5284_v0 = vpop.xlane.xlu1 %5283  ;;  %5008 = vst.msk [vmem:[#allocation5 + $0x30] sm:$0xff] %vm161_vm0, %v5002_v31 }
 0x517   :  { %5091 = vst.msk [vmem:[#allocation5 + $0x30] sm:$0xff] %vm5068_vm8, %v5085_v62  ;;  %v11830_v62 = vld [vmem:[#allocation44_spill] sm:$0xff] }
 0x518   :  { %v4483_v31 = vadd.f32 %v11830_v62, %v11829_v36 }
 0x51a   :  { %5303 = vmax.xlane.f32.xlu2 %v5302_v5  ;;  %5364 = vmax.xlane.f32.xlu0 %v5363_v19  ;;  %v4783_v56 = vadd.f32 %v4731_v17, %v4483_v31  ;;  %v5305_v5 = vsel %vm4031_vm3, %v4925_v26, -inf  ;;  %v11836_v17 = vld [vmem:[#allocation32_spill] sm:$0xff] }
 0x51b   :  { %5503 = vmax.xlane.f32.xlu1 %v5502_v46  ;;  %v11133_v46 = vmax.f32 %v4888_v23, 0.0 }
 0x51c   :  { %v4835_v19 = vmul.f32 %v10413_v2, %v4783_v56  ;;  %v5326_v2 = vsel %vm4993_vm7, %v4925_v26, -inf }
 0x51d   :  { %v5203_v57 = vpop.xlane.xlu0 %5202  ;;  %v5064_v35 = vpop.xlane.xlu2 %5063  ;;  %v5566_v31 = vsel %vm4993_vm7, %v11133_v46, -inf }
 0x51e   :  { %5211 = vst.msk [vmem:[#allocation5 + $0x68] sm:$0xff] %vm5149_vm9, %v5203_v57  ;;  %v5163_v33 = vpop.xlane.xlu1 %5162  ;;  %v4887_v51 = vadd.f32 %v10421_v59, %v4835_v19 }
 0x51f   :  { %5292 = vst.msk [vmem:[#allocation5 + $0x68] sm:$0xff] %vm5230_vm10, %v5284_v0  ;;  %v5346_v0 = vsel %vm5014_vm6, %v4925_v26, -inf  ;;  %v11834_v26 = vld [vmem:[#allocation27_spill] sm:$0xff] }
 0x520   :  { %5171 = vst.msk [vmem:[#allocation5 + $0x28] sm:$0xff] %vm5149_vm9, %v5163_v33  ;;  %v11832_v33 = vld [vmem:[#allocation40_spill] sm:$0xff] }
 0x521   :  { %5071 = vst.msk [vmem:[#allocation5 + $0x10] sm:$0xff] %vm5068_vm8, %v5064_v35  ;;  %v4679_v35 = vpop.f32.mrf.mxu0  ;;  %v4431_v29 = vadd.f32 %v11832_v33, %v11831_v18 }
 0x522   :  { %5384 = vmax.xlane.f32.xlu2 %v5383_v40  ;;  %5425 = vmax.xlane.f32.xlu0 %v5424_v42  ;;  %v5606_v40 = vsel %vm5035_vm5, %v11133_v46, -inf  ;;  %v11145_v42 = vmax.f32 %v4887_v51, 0.0 }
 0x523   :  { %5564 = vmax.xlane.f32.xlu1 %v5563_v50  ;;  %v4797_v44 = vadd.f32 %v4679_v35, %v4431_v29 }
 0x524   :  { %v5505_v24 = vsel %vm5014_vm6, %v11145_v42, -inf }
 0x525   :  { %v5264_v7 = vpop.xlane.xlu0 %5263  ;;  %v5183_v41 = vpop.xlane.xlu2 %5182  ;;  %v4849_v50 = vmul.f32 %v11823_v25, %v4797_v44 }
 0x526   :  { %v5223_v12 = vpop.xlane.xlu1 %5222  ;;  %5191 = vst.msk [vmem:[#allocation5 + $0x48] sm:$0xff] %vm5149_vm9, %v5183_v41  ;;  %v11833_v41 = vld [vmem:[#allocation19_spill] sm:$0xff] }
 0x527   :  { %5272 = vst.msk [vmem:[#allocation5 + $0x48] sm:$0xff] %vm5230_vm10, %v5264_v7  ;;  %v4708_v7 = vpop.f32.mrf.mxu1  ;;  %v4460_v16 = vadd.f32 %v11834_v26, %v11833_v41 }
 0x529   :  { %v4798_v30 = vadd.f32 %v4708_v7, %v4460_v16  ;;  %v11838_v16 = vld [vmem:[#allocation20_spill] sm:$0xff] }
 0x52a   :  { %5523 = vmax.xlane.f32.xlu2 %v5522_v47  ;;  %5604 = vmax.xlane.f32.xlu0 %v5603_v4  ;;  %v5386_v47 = vsel %vm4031_vm3, %v4926_v34, -inf  ;;  %v4901_v4 = vadd.f32 %v11824_v10, %v4849_v50  ;;  %v5586_v34 = vsel %vm5014_vm6, %v11133_v46, -inf }
 0x52b   :  { %5367 = vmax.xlane.f32.xlu1 %v5366_v13  ;;  %v5485_v13 = vsel %vm4993_vm7, %v11145_v42, -inf  ;;  %v4850_v11 = vmul.f32 %v11823_v25, %v4798_v30 }
 0x52d   :  { %v5142_v53 = vpop.xlane.xlu0 %5141  ;;  %v5244_v61 = vpop.xlane.xlu2 %5243  ;;  %v4902_v38 = vadd.f32 %v11824_v10, %v4850_v11  ;;  %v11839_v11 = vld [vmem:[#allocation21_spill] sm:$0xff] }
 0x52e   :  { %5151 = vst.msk [vmem:[#allocation5 + $0x8] sm:$0xff] %vm5149_vm9, %v5142_v53  ;;  %v5128_v6 = vpop.xlane.xlu1 %5127 }
 0x52f   :  { %5232 = vst.msk [vmem:[#allocation5 + $0x8] sm:$0xff] %vm5230_vm10, %v5223_v12  ;;  %v5525_v12 = vsel %vm5035_vm5, %v11145_v42, -inf }
 0x530   :  { %5252 = vst.msk [vmem:[#allocation5 + $0x28] sm:$0xff] %vm5230_vm10, %v5244_v61 }
 0x532   :  { %5483 = vmax.xlane.f32.xlu0 %v5482_v32  ;;  %5584 = vmax.xlane.f32.xlu2 %v5583_v48 }
 0x533   :  { %5428 = vmax.xlane.f32.xlu1 %v5427_v55  ;;  %v4734_v55 = vpop.f32.mrf.mxu2 }
 0x535   :  { %v5047_v60 = vpop.xlane.xlu0 %5046  ;;  %v5108_v28 = vpop.xlane.xlu2 %5107 }
 0x536   :  { %5051 = vst.msk [vmem:[#allocation5 + $0x78] sm:$0xff] %vm161_vm0, %v5047_v60  ;;  %v5026_v15 = vpop.xlane.xlu1 %5025  ;;  %v4934_v60 = vmax.f32 %v4902_v38, 0.0 }
 0x537   :  { %5132 = vst.msk [vmem:[#allocation5 + $0x78] sm:$0xff] %vm5068_vm8, %v5128_v6  ;;  %v4933_v6 = vmax.f32 %v4901_v4, 0.0 }
 0x538   :  { %5030 = vst.msk [vmem:[#allocation5 + $0x58] sm:$0xff] %vm161_vm0, %v5026_v15  ;;  %v4486_v15 = vadd.f32 %v11836_v17, %v11835_v22  ;;  %v5450_v56 = vsel %vm5035_vm5, %v4934_v60, -inf  ;;  %v5389_v18 = vsel %vm4031_vm3, %v4934_v60, -inf  ;;  %v5430_v33 = vsel %vm5014_vm6, %v4934_v60, -inf }
 0x539   :  { %5112 = vst.msk [vmem:[#allocation5 + $0x58] sm:$0xff] %vm5068_vm8, %v5108_v28  ;;  %v5369_v32 = vsel %vm5035_vm5, %v4933_v6, -inf  ;;  %v5329_v62 = vsel %vm4993_vm7, %v4933_v6, -inf  ;;  %v5349_v29 = vsel %vm5014_vm6, %v4933_v6, -inf }
 0x53a   :  { %5347 = vmax.xlane.f32.xlu0 %v5346_v0  ;;  %5448 = vmax.xlane.f32.xlu2 %v5447_v63  ;;  %v4791_v36 = vadd.f32 %v4734_v55, %v4486_v15 }
 0x53b   :  { %5306 = vmax.xlane.f32.xlu1 %v5305_v5  ;;  %v4763_v5 = vpop.f32.mrf.mxu3  ;;  %v4737_v41 = vpop.f32.mrf.mxu2 }
 0x53c   :  { %v4843_v0 = vmul.f32 %v10321_v20, %v4791_v36 }
 0x53d   :  { %v5005_v49 = vpop.xlane.xlu0 %5004  ;;  %v4984_v45 = vpop.xlane.xlu2 %4983 }
 0x53e   :  { %5009 = vst.msk [vmem:[#allocation5 + $0x38] sm:$0xff] %vm161_vm0, %v5005_v49  ;;  %v5088_v57 = vpop.xlane.xlu1 %5087  ;;  %v11837_v49 = vld [vmem:[#allocation29_spill] sm:$0xff]  ;;  %v4895_v35 = vadd.f32 %v11822_v14, %v4843_v0 }
 0x53f   :  { %5092 = vst.msk [vmem:[#allocation5 + $0x38] sm:$0xff] %vm5068_vm8, %v5088_v57 }
 0x540   :  { %4988 = vst.msk [vmem:[#allocation5 + $0x18] sm:$0xff] %vm161_vm0, %v4984_v45  ;;  %vm5311_vm0 = vcmask 39968   ;;  %v4515_v45 = vadd.f32 %v10864_v54, %v11837_v49 }
 0x542   :  { %5408 = vmax.xlane.f32.xlu0 %v5407_v37  ;;  %5327 = vmax.xlane.f32.xlu2 %v5326_v2  ;;  %v4792_v57 = vadd.f32 %v4763_v5, %v4515_v45  ;;  %v4927_v37 = vmax.f32 %v4895_v35, 0.0  ;;  %v5464_v45 = vsel %vm4031_vm3, %v11145_v42, -inf  ;;  %v5545_v42 = vsel %vm4031_vm3, %v11133_v46, -inf }
 0x543   :  { %5607 = vmax.xlane.f32.xlu1 %v5606_v40 }
 0x544   :  { %v4844_v51 = vmul.f32 %v10321_v20, %v4792_v57  ;;  %v5410_v20 = vsel %vm4993_vm7, %v4934_v60, -inf  ;;  %v5528_v30 = vsel %vm5035_vm5, %v4927_v37, -inf  ;;  %v5467_v38 = vsel %vm4031_vm3, %v4927_v37, -inf }
 0x545   :  { %v5067_v43 = vpop.xlane.xlu0 %5066  ;;  %v5166_v3 = vpop.xlane.xlu2 %5165  ;;  %v5299_v57 = vsel %vm4031_vm3, %v10991_v8, -inf }
 0x546   :  { %5072 = vst.msk [vmem:[#allocation5 + $0x18] sm:$0xff] %vm5068_vm8, %v5067_v43  ;;  %v5267_v59 = vpop.xlane.xlu1 %5266  ;;  %v4896_v40 = vadd.f32 %v11822_v14, %v4844_v51  ;;  %v5508_v43 = vsel %vm5014_vm6, %v4927_v37, -inf }
 0x547   :  { %5172 = vst.msk [vmem:[#allocation5 + $0x30] sm:$0xff] %vm5149_vm9, %v5166_v3  ;;  %v5308_v3 = vsel %vm4031_vm3, %v4933_v6, -inf  ;;  %v4766_v6 = vpop.f32.mrf.mxu3 }
 0x548   :  { %v4928_v50 = vmax.f32 %v4896_v40, 0.0 }
 0x54a   :  { %5526 = vmax.xlane.f32.xlu0 %v5525_v12  ;;  %5387 = vmax.xlane.f32.xlu2 %v5386_v47  ;;  %v4489_v12 = vadd.f32 %v10867_v52, %v11838_v16  ;;  %v5569_v47 = vsel %vm4993_vm7, %v4928_v50, -inf  ;;  %v5609_v4 = vsel %vm5035_vm5, %v4928_v50, -inf  ;;  %v5548_v17 = vsel %vm4031_vm3, %v4928_v50, -inf  ;;  %v5647_v16 = vld [vmem:[%s11389_s11 + $0x20] sm:$0xff] }
 0x54b   :  { %5486 = vmax.xlane.f32.xlu1 %v5485_v13 }
 0x54c   :  { %v4799_v14 = vadd.f32 %v4737_v41, %v4489_v12  ;;  %v5648_v12 = vld [vmem:[%s11389_s11 + $0x28] sm:$0xff] }
 0x54d   :  { %v5206_v53 = vpop.xlane.xlu0 %5205  ;;  %v5226_v61 = vpop.xlane.xlu2 %5225 }
 0x54e   :  { %5212 = vst.msk [vmem:[#allocation5 + $0x70] sm:$0xff] %vm5149_vm9, %v5206_v53  ;;  %v5145_v9 = vpop.xlane.xlu1 %5144  ;;  %v4851_v13 = vmul.f32 %v11823_v25, %v4799_v14 }
 0x54f   :  { %5152 = vst.msk [vmem:[#allocation5 + $0x10] sm:$0xff] %vm5149_vm9, %v5145_v9  ;;  %v4518_v9 = vadd.f32 %v10876_v39, %v11839_v11  ;;  %v5747_v11 = vld [vmem:[%s11391_s13 + $0x18] sm:$0xff] }
 0x550   :  { %5233 = vst.msk [vmem:[#allocation5 + $0x10] sm:$0xff] %vm5230_vm10, %v5226_v61 }
 0x552   :  { %5587 = vmax.xlane.f32.xlu0 %v5586_v34  ;;  %5506 = vmax.xlane.f32.xlu2 %v5505_v24  ;;  %v4800_v34 = vadd.f32 %v4766_v6, %v4518_v9  ;;  %v4903_v24 = vadd.f32 %v11824_v10, %v4851_v13  ;;  %v5644_v13 = vld [vmem:[%s11389_s11 + $0x8] sm:$0xff]  ;;  %v5746_v9 = vld [vmem:[%s11391_s13 + $0x10] sm:$0xff] }
 0x553   :  { %5370 = vmax.xlane.f32.xlu1 %v5369_v32  ;;  %v5488_v32 = vsel %vm4993_vm7, %v4927_v37, -inf }
 0x554   :  { %v4935_v55 = vmax.f32 %v4903_v24, 0.0 }
 0x555   :  { %v5287_v48 = vpop.xlane.xlu0 %5286  ;;  %v5362_v27 = vpop.xlane.xlu2 %5361 }
 0x556   :  { %5293 = vst.msk [vmem:[#allocation5 + $0x70] sm:$0xff] %vm5230_vm10, %v5287_v48  ;;  %v5342_v28 = vpop.xlane.xlu1 %5341  ;;  %v5589_v48 = vsel %vm5014_vm6, %v4928_v50, -inf  ;;  %v5531_v15 = vsel %vm5035_vm5, %v4935_v55, -inf  ;;  %v5491_v49 = vsel %vm4993_vm7, %v4935_v55, -inf  ;;  %v5470_v51 = vsel %vm4031_vm3, %v4935_v55, -inf  ;;  %v5650_v50 = vld [vmem:[%s11389_s11 + $0x38] sm:$0xff] }
 0x557   :  { %5352 = vst.msk [vmem:[#allocation5 + $0x40] sm:$0xff] %vm5311_vm0, %v5342_v28 }
 0x558   :  { %5372 = vst.msk [vmem:[#allocation5 + $0x60] sm:$0xff] %vm5311_vm0, %v5362_v27  ;;  %v4852_v27 = vmul.f32 %v11823_v25, %v4800_v34  ;;  %v5511_v25 = vsel %vm5014_vm6, %v4935_v55, -inf  ;;  %v5643_v34 = vld [vmem:[%s11389_s11] sm:$0xff]  ;;  %v5745_v55 = vld [vmem:[%s11391_s13 + $0x8] sm:$0xff] }
 0x55a   :  { %5330 = vmax.xlane.f32.xlu0 %v5329_v62  ;;  %5567 = vmax.xlane.f32.xlu2 %v5566_v31  ;;  %v4904_v22 = vadd.f32 %v11824_v10, %v4852_v27 }
 0x55b   :  { %5451 = vmax.xlane.f32.xlu1 %v5450_v56 }
 0x55c   :  { %v4936_v36 = vmax.f32 %v4904_v22, 0.0 }
 0x55d   :  { %v5186_v63 = vpop.xlane.xlu0 %5185  ;;  %v5423_v23 = vpop.xlane.xlu2 %5422 }
 0x55e   :  { %5192 = vst.msk [vmem:[#allocation5 + $0x50] sm:$0xff] %vm5149_vm9, %v5186_v63  ;;  %v5403_v19 = vpop.xlane.xlu1 %5402  ;;  %v5612_v10 = vsel %vm5035_vm5, %v4936_v36, -inf  ;;  %v5592_v0 = vsel %vm5014_vm6, %v4936_v36, -inf  ;;  %v5572_v63 = vsel %vm4993_vm7, %v4936_v36, -inf }
 0x55f   :  { %5273 = vst.msk [vmem:[#allocation5 + $0x50] sm:$0xff] %vm5230_vm10, %v5267_v59 }
 0x560   :  { %5433 = vst.msk [vmem:[#allocation5 + $0x40] sm:$0xff] %vm5392_vm11, %v5423_v23 }
 0x562   :  { %5390 = vmax.xlane.f32.xlu0 %v5389_v18  ;;  %5431 = vmax.xlane.f32.xlu2 %v5430_v33 }
 0x563   :  { %5350 = vmax.xlane.f32.xlu1 %v5349_v29  ;;  %v5380_v29 = vsel %vm4031_vm3, %v11008_v58, -inf  ;;  %v5551_v58 = vsel %vm4031_vm3, %v4936_v36, -inf }
 0x565   :  { %v5247_v54 = vpop.xlane.xlu0 %5246  ;;  %v5209_v2 = vpop.xlane.xlu2 %5208 }
 0x566   :  { %5253 = vst.msk [vmem:[#allocation5 + $0x30] sm:$0xff] %vm5230_vm10, %v5247_v54  ;;  %v5290_v44 = vpop.xlane.xlu1 %5289 }
 0x567   :  { %5213 = vst.msk [vmem:[#allocation5 + $0x78] sm:$0xff] %vm5149_vm9, %v5209_v2  ;;  %v5461_v2 = vsel %vm4031_vm3, %v11077_v1, -inf }
 0x568   :  { %5294 = vst.msk [vmem:[#allocation5 + $0x78] sm:$0xff] %vm5230_vm10, %v5290_v44 }
 0x56a   :  { %5509 = vmax.xlane.f32.xlu0 %v5508_v43  ;;  %5309 = vmax.xlane.f32.xlu2 %v5308_v3  ;;  %v5542_v43 = vsel %vm4031_vm3, %v11088_v21, -inf  ;;  %v21_v21 = vstv %s11390_s15 }
 0x56b   :  { %5411 = vmax.xlane.f32.xlu1 %v5410_v20  ;;  %22 = vst [vmem:[#allocation6] sm:$0x1] %v21_v21 }
 0x56d   :  { %v5443_v59 = vpop.xlane.xlu0 %5442  ;;  %v5270_v7 = vpop.xlane.xlu2 %5269 }
 0x56e   :  { %5453 = vst.msk [vmem:[#allocation5 + $0x60] sm:$0xff] %vm5392_vm11, %v5443_v59  ;;  %v5189_v26 = vpop.xlane.xlu1 %5188 }
 0x56f   :  { %5193 = vst.msk [vmem:[#allocation5 + $0x58] sm:$0xff] %vm5149_vm9, %v5189_v26  ;;  %v5649_v26 = vld [vmem:[%s11389_s11 + $0x30] sm:$0xff] }
 0x570   :  { %5274 = vst.msk [vmem:[#allocation5 + $0x58] sm:$0xff] %vm5230_vm10, %v5270_v7 }
 0x572   :  { %5570 = vmax.xlane.f32.xlu0 %v5569_v47  ;;  %5610 = vmax.xlane.f32.xlu2 %v5609_v4  ;;  %v5815_v27 = vld [vmem:[#allocation6] sm:$0x1] }
 0x573   :  { %5529 = vmax.xlane.f32.xlu1 %v5528_v30  ;;  %v5645_v30 = vld [vmem:[%s11389_s11 + $0x10] sm:$0xff] }
 0x575   :  { %v5322_v53 = vpop.xlane.xlu0 %5321  ;;  %v5148_v61 = vpop.xlane.xlu2 %5147 }
 0x576   :  { %5332 = vst.msk [vmem:[#allocation5 + $0x20] sm:$0xff] %vm5311_vm0, %v5322_v53  ;;  %v5250_v52 = vpop.xlane.xlu1 %5249  ;;  %v5646_v53 = vld [vmem:[%s11389_s11 + $0x18] sm:$0xff] }
 0x577   :  { %5413 = vst.msk [vmem:[#allocation5 + $0x20] sm:$0xff] %vm5392_vm11, %v5403_v19 }
 0x578   :  { %5153 = vst.msk [vmem:[#allocation5 + $0x18] sm:$0xff] %vm5149_vm9, %v5148_v61 }
 0x57a   :  { %5468 = vmax.xlane.f32.xlu0 %v5467_v38  ;;  %5489 = vmax.xlane.f32.xlu2 %v5488_v32 }
 0x57b   :  { %5590 = vmax.xlane.f32.xlu1 %v5589_v48  ;;  %v5744_v48 = vld [vmem:[%s11391_s13] sm:$0xff] }
 0x57d   :  { %v5169_v39 = vpop.xlane.xlu0 %5168  ;;  %v5345_v60 = vpop.xlane.xlu2 %5344 }
 0x57e   :  { %5173 = vst.msk [vmem:[#allocation5 + $0x38] sm:$0xff] %vm5149_vm9, %v5169_v39  ;;  %v5446_v28 = vpop.xlane.xlu1 %5445 }
 0x57f   :  { %5254 = vst.msk [vmem:[#allocation5 + $0x38] sm:$0xff] %vm5230_vm10, %v5250_v52 }
 0x580   :  { %5353 = vst.msk [vmem:[#allocation5 + $0x48] sm:$0xff] %vm5311_vm0, %v5345_v60 }
 0x582   :  { %5549 = vmax.xlane.f32.xlu0 %v5548_v17  ;;  %5532 = vmax.xlane.f32.xlu2 %v5531_v15 }
 0x583   :  { %5512 = vmax.xlane.f32.xlu1 %v5511_v25 }
 0x585   :  { %v5229_v62 = vpop.xlane.xlu0 %5228  ;;  %v5406_v31 = vpop.xlane.xlu2 %5405 }
 0x586   :  { %v5325_v56 = vpop.xlane.xlu1 %5324  ;;  %5234 = vst.msk [vmem:[#allocation5 + $0x18] sm:$0xff] %vm5230_vm10, %v5229_v62 }
 0x587   :  { %5333 = vst.msk [vmem:[#allocation5 + $0x28] sm:$0xff] %vm5311_vm0, %v5325_v56 }
 0x588   :  { %5414 = vst.msk [vmem:[#allocation5 + $0x28] sm:$0xff] %vm5392_vm11, %v5406_v31 }
 0x58a   :  { %5613 = vmax.xlane.f32.xlu0 %v5612_v10  ;;  %5593 = vmax.xlane.f32.xlu2 %v5592_v0 }
 0x58b   :  { %5573 = vmax.xlane.f32.xlu1 %v5572_v63 }
 0x58d   :  { %v5365_v23 = vpop.xlane.xlu0 %5364  ;;  %v5304_v5 = vpop.xlane.xlu2 %5303 }
 0x58e   :  { %v5504_v19 = vpop.xlane.xlu1 %5503  ;;  %5373 = vst.msk [vmem:[#allocation5 + $0x68] sm:$0xff] %vm5311_vm0, %v5365_v23 }
 0x58f   :  { %5514 = vst.msk [vmem:[#allocation5 + $0x40] sm:$0xff] %vm5473_vm12, %v5504_v19 }
 0x590   :  { %5454 = vst.msk [vmem:[#allocation5 + $0x68] sm:$0xff] %vm5392_vm11, %v5446_v28 }
 0x591   :  { %5313 = vst.msk [vmem:[#allocation5 + $0x8] sm:$0xff] %vm5311_vm0, %v5304_v5 }
 0x592   :  { %5492 = vmax.xlane.f32.xlu0 %v5491_v49  ;;  %5465 = vmax.xlane.f32.xlu2 %v5464_v45 }
 0x593   :  { %5300 = vmax.xlane.f32.xlu1 %v5299_v57 }
 0x595   :  { %v5426_v35 = vpop.xlane.xlu0 %5425  ;;  %v5385_v18 = vpop.xlane.xlu2 %5384 }
 0x596   :  { %5434 = vst.msk [vmem:[#allocation5 + $0x48] sm:$0xff] %vm5392_vm11, %v5426_v35  ;;  %v5565_v33 = vpop.xlane.xlu1 %5564 }
 0x597   :  { %5394 = vst.msk [vmem:[#allocation5 + $0x8] sm:$0xff] %vm5392_vm11, %v5385_v18 }
 0x59a   :  { %5381 = vmax.xlane.f32.xlu0 %v5380_v29  ;;  %5471 = vmax.xlane.f32.xlu2 %v5470_v51 }
 0x59b   :  { %5546 = vmax.xlane.f32.xlu1 %v5545_v42 }
 0x59d   :  { %v5605_v8 = vpop.xlane.xlu0 %5604  ;;  %v5524_v37 = vpop.xlane.xlu2 %5523 }
 0x59e   :  { %v5368_v54 = vpop.xlane.xlu1 %5367  ;;  %5534 = vst.msk [vmem:[#allocation5 + $0x60] sm:$0xff] %vm5473_vm12, %v5524_v37 }
 0x59f   :  { %5374 = vst.msk [vmem:[#allocation5 + $0x70] sm:$0xff] %vm5311_vm0, %v5368_v54 }
 0x5a0   :  { %5615 = vst.msk [vmem:[#allocation5 + $0x60] sm:$0xff] %vm5554_vm13, %v5605_v8 }
 0x5a2   :  { %5552 = vmax.xlane.f32.xlu0 %v5551_v58  ;;  %5462 = vmax.xlane.f32.xlu2 %v5461_v2 }
 0x5a5   :  { %v5484_v44 = vpop.xlane.xlu0 %5483  ;;  %v5585_v46 = vpop.xlane.xlu2 %5584 }
 0x5a6   :  { %5494 = vst.msk [vmem:[#allocation5 + $0x20] sm:$0xff] %vm5473_vm12, %v5484_v44  ;;  %v5429_v40 = vpop.xlane.xlu1 %5428 }
 0x5a7   :  { %5575 = vst.msk [vmem:[#allocation5 + $0x20] sm:$0xff] %vm5554_vm13, %v5565_v33  ;;  %v5639_v51 = vld [vmem:[#allocation5 + $0x60] sm:$0xff] }
 0x5a8   :  { %5595 = vst.msk [vmem:[#allocation5 + $0x40] sm:$0xff] %vm5554_vm13, %v5585_v46 }
 0x5aa   :  { %5543 = vmax.xlane.f32.xlu0 %v5542_v43 }
 0x5ad   :  { %v5348_v3 = vpop.xlane.xlu0 %5347  ;;  %v5449_v20 = vpop.xlane.xlu2 %5448 }
 0x5ae   :  { %5354 = vst.msk [vmem:[#allocation5 + $0x50] sm:$0xff] %vm5311_vm0, %v5348_v3  ;;  %v5307_v1 = vpop.xlane.xlu1 %5306 }
 0x5af   :  { %5435 = vst.msk [vmem:[#allocation5 + $0x50] sm:$0xff] %vm5392_vm11, %v5429_v40  ;;  %v5635_v44 = vld [vmem:[#allocation5 + $0x40] sm:$0xff] }
 0x5b0   :  { %5314 = vst.msk [vmem:[#allocation5 + $0x10] sm:$0xff] %vm5311_vm0, %v5307_v1  ;;  %v5631_v1 = vld [vmem:[#allocation5 + $0x20] sm:$0xff] }
 0x5b1   :  { %5455 = vst.msk [vmem:[#allocation5 + $0x70] sm:$0xff] %vm5392_vm11, %v5449_v20 }
 0x5b4   :  { %5688 = vperm.xlu1 %6588, %v5650_v50  }
 0x5b5   :  { %v5409_v59 = vpop.xlane.xlu0 %5408  ;;  %v5328_v7 = vpop.xlane.xlu2 %5327 }
 0x5b6   :  { %v5608_v41 = vpop.xlane.xlu1 %5607  ;;  %5334 = vst.msk [vmem:[#allocation5 + $0x30] sm:$0xff] %vm5311_vm0, %v5328_v7 }
 0x5b7   :  { %5415 = vst.msk [vmem:[#allocation5 + $0x30] sm:$0xff] %vm5392_vm11, %v5409_v59 }
 0x5ba   :  { %5683 = vperm.xlu2 %6589, %v5649_v26  }
 0x5bc   :  { %5673 = vperm.xlu1 %6588, %v5647_v16   ;;  %v5620_v16 = vld [vmem:[%s11392_s10 + $0x8] sm:$0xff] }
 0x5bd   :  { %v5527_v14 = vpop.xlane.xlu0 %5526  ;;  %v5388_v47 = vpop.xlane.xlu2 %5387 }
 0x5be   :  { %5535 = vst.msk [vmem:[#allocation5 + $0x68] sm:$0xff] %vm5473_vm12, %v5527_v14  ;;  %v5487_v4 = vpop.xlane.xlu1 %5486  ;;  %5678 = vperm.xlu0 %6590, %v5648_v12   ;;  %v5621_v12 = vld [vmem:[%s11392_s10 + $0x10] sm:$0xff]  ;;  %v5622_v14 = vld [vmem:[%s11392_s10 + $0x18] sm:$0xff] }
 0x5bf   :  { %5616 = vst.msk [vmem:[#allocation5 + $0x68] sm:$0xff] %vm5554_vm13, %v5608_v41  ;;  %v5619_v41 = vld [vmem:[%s11392_s10] sm:$0xff] }
 0x5c0   :  { %5495 = vst.msk [vmem:[#allocation5 + $0x28] sm:$0xff] %vm5473_vm12, %v5487_v4  ;;  %v5624_v4 = vld [vmem:[%s11392_s10 + $0x28] sm:$0xff] }
 0x5c1   :  { %5395 = vst.msk [vmem:[#allocation5 + $0x10] sm:$0xff] %vm5392_vm11, %v5388_v47  ;;  %v5623_v47 = vld [vmem:[%s11392_s10 + $0x20] sm:$0xff] }
 0x5c2   :  { %5663 = vperm.xlu2 %6589, %v5645_v30   ;;  %v5625_v30 = vld [vmem:[%s11392_s10 + $0x30] sm:$0xff] }
 0x5c4   :  { %5658 = vperm.xlu1 %6588, %v5644_v13   ;;  %v5626_v13 = vld [vmem:[%s11392_s10 + $0x38] sm:$0xff] }
 0x5c5   :  { %v5588_v61 = vpop.xlane.xlu0 %5587  ;;  %v5507_v6 = vpop.xlane.xlu2 %5506 }
 0x5c6   :  { %v5371_v52 = vpop.xlane.xlu1 %5370  ;;  %5515 = vst.msk [vmem:[#allocation5 + $0x48] sm:$0xff] %vm5473_vm12, %v5507_v6  ;;  %5668 = vperm.xlu0 %6590, %v5646_v53   ;;  %v5640_v29 = vld [vmem:[#allocation5 + $0x68] sm:$0xff] }
 0x5c7   :  { %5375 = vst.msk [vmem:[#allocation5 + $0x78] sm:$0xff] %vm5311_vm0, %v5371_v52 }
 0x5c8   :  { %5596 = vst.msk [vmem:[#allocation5 + $0x48] sm:$0xff] %vm5554_vm13, %v5588_v61 }
 0x5ca   :  { %5765 = vperm.xlu2 %6589, %v5747_v11  }
 0x5cc   :  { %5760 = vperm.xlu1 %6588, %v5746_v9  }
 0x5cd   :  { %v5331_v24 = vpop.xlane.xlu0 %5330  ;;  %v5568_v38 = vpop.xlane.xlu2 %5567 }
 0x5ce   :  { %5335 = vst.msk [vmem:[#allocation5 + $0x38] sm:$0xff] %vm5311_vm0, %v5331_v24  ;;  %v5452_v32 = vpop.xlane.xlu1 %5451  ;;  %5653 = vperm.xlu0 %6590, %v5643_v34  }
 0x5cf   :  { %5456 = vst.msk [vmem:[#allocation5 + $0x78] sm:$0xff] %vm5392_vm11, %v5452_v32  ;;  %v5636_v2 = vld [vmem:[#allocation5 + $0x48] sm:$0xff] }
 0x5d0   :  { %5576 = vst.msk [vmem:[#allocation5 + $0x28] sm:$0xff] %vm5554_vm13, %v5568_v38 }
 0x5d2   :  { %5750 = vperm.xlu2 %6589, %v5744_v48  }
 0x5d4   :  { %5818 = vperm.xlu1 %6588, %v5815_v27  }
 0x5d5   :  { %v5391_v39 = vpop.xlane.xlu0 %5390  ;;  %v5432_v60 = vpop.xlane.xlu2 %5431 }
 0x5d6   :  { %v5351_v28 = vpop.xlane.xlu1 %5350  ;;  %5755 = vperm.xlu0 %6590, %v5745_v55  }
 0x5d7   :  { %5355 = vst.msk [vmem:[#allocation5 + $0x58] sm:$0xff] %vm5311_vm0, %v5351_v28  ;;  %v5632_v20 = vld [vmem:[#allocation5 + $0x28] sm:$0xff] }
 0x5d8   :  { %5436 = vst.msk [vmem:[#allocation5 + $0x58] sm:$0xff] %vm5392_vm11, %v5432_v60 }
 0x5dd   :  { %v5510_v22 = vpop.xlane.xlu0 %5509  ;;  %v5310_v17 = vpop.xlane.xlu2 %5309 }
 0x5de   :  { %5516 = vst.msk [vmem:[#allocation5 + $0x50] sm:$0xff] %vm5473_vm12, %v5510_v22  ;;  %v5412_v15 = vpop.xlane.xlu1 %5411 }
 0x5df   :  { %5416 = vst.msk [vmem:[#allocation5 + $0x38] sm:$0xff] %vm5392_vm11, %v5412_v15 }
 0x5e0   :  { %5315 = vst.msk [vmem:[#allocation5 + $0x18] sm:$0xff] %vm5311_vm0, %v5310_v17 }
 0x5e1   :  { %5396 = vst.msk [vmem:[#allocation5 + $0x18] sm:$0xff] %vm5392_vm11, %v5391_v39 }
 0x5e5   :  { %v5571_v25 = vpop.xlane.xlu0 %5570  ;;  %v5611_v36 = vpop.xlane.xlu2 %5610 }
 0x5e6   :  { %v5530_v62 = vpop.xlane.xlu1 %5529 }
 0x5e7   :  { %5536 = vst.msk [vmem:[#allocation5 + $0x70] sm:$0xff] %vm5473_vm12, %v5530_v62 }
 0x5e8   :  { %5617 = vst.msk [vmem:[#allocation5 + $0x70] sm:$0xff] %vm5554_vm13, %v5611_v36 }
 0x5ed   :  { %v5469_v31 = vpop.xlane.xlu0 %5468  ;;  %v5490_v56 = vpop.xlane.xlu2 %5489 }
 0x5ee   :  { %5476 = vst.msk [vmem:[#allocation5 + $0x10] sm:$0xff] %vm5473_vm12, %v5469_v31  ;;  %v5591_v10 = vpop.xlane.xlu1 %5590 }
 0x5ef   :  { %5597 = vst.msk [vmem:[#allocation5 + $0x50] sm:$0xff] %vm5554_vm13, %v5591_v10  ;;  %v5641_v33 = vld [vmem:[#allocation5 + $0x70] sm:$0xff] }
 0x5f0   :  { %5496 = vst.msk [vmem:[#allocation5 + $0x30] sm:$0xff] %vm5473_vm12, %v5490_v56 }
 0x5f1   :  { %5577 = vst.msk [vmem:[#allocation5 + $0x30] sm:$0xff] %vm5554_vm13, %v5571_v25 }
 0x5f5   :  { %v5550_v0 = vpop.xlane.xlu0 %5549  ;;  %v5533_v63 = vpop.xlane.xlu2 %5532 }
 0x5f6   :  { %5557 = vst.msk [vmem:[#allocation5 + $0x10] sm:$0xff] %vm5554_vm13, %v5550_v0  ;;  %v5513_v23 = vpop.xlane.xlu1 %5512  ;;  %v5637_v58 = vld [vmem:[#allocation5 + $0x50] sm:$0xff] }
 0x5f7   :  { %5517 = vst.msk [vmem:[#allocation5 + $0x58] sm:$0xff] %vm5473_vm12, %v5513_v23 }
 0x5f8   :  { %5537 = vst.msk [vmem:[#allocation5 + $0x78] sm:$0xff] %vm5473_vm12, %v5533_v63  ;;  %v5633_v3 = vld [vmem:[#allocation5 + $0x30] sm:$0xff] }
 0x5fd   :  { %v5614_v5 = vpop.xlane.xlu0 %5613  ;;  %v5594_v19 = vpop.xlane.xlu2 %5593  ;;  %v5629_v59 = vld [vmem:[#allocation5 + $0x10] sm:$0xff] }
 0x5fe   :  { %5618 = vst.msk [vmem:[#allocation5 + $0x78] sm:$0xff] %vm5554_vm13, %v5614_v5  ;;  %v5574_v49 = vpop.xlane.xlu1 %5573 }
 0x5ff   :  { %5598 = vst.msk [vmem:[#allocation5 + $0x58] sm:$0xff] %vm5554_vm13, %v5594_v19 }
 0x605   :  { %v5493_v45 = vpop.xlane.xlu0 %5492  ;;  %v5466_v57 = vpop.xlane.xlu2 %5465  ;;  %v5642_v35 = vld [vmem:[#allocation5 + $0x78] sm:$0xff] }
 0x606   :  { %5497 = vst.msk [vmem:[#allocation5 + $0x38] sm:$0xff] %vm5473_vm12, %v5493_v45  ;;  %v5301_v18 = vpop.xlane.xlu1 %5300  ;;  %5691 = vmatpush.msrb.mxu0 %v5642_v35  ;;  %v5638_v37 = vld [vmem:[#allocation5 + $0x58] sm:$0xff]  ;;  %v5741_v35 = vld [vmem:[%s11393_s12 + $0x8] sm:$0xff] }
 0x607   :  { %5578 = vst.msk [vmem:[#allocation5 + $0x38] sm:$0xff] %vm5554_vm13, %v5574_v49 }
 0x608   :  { %5312 = vst.msk [vmem:[#allocation5] sm:$0xff] %vm5311_vm0, %v5301_v18  ;;  %5692 = vmatpush.msrb.mxu0 %v5641_v33  ;;  %v5742_v18 = vld [vmem:[%s11393_s12 + $0x10] sm:$0xff]  ;;  %v5743_v33 = vld [vmem:[%s11393_s12 + $0x18] sm:$0xff] }
 0x609   :  { %5475 = vst.msk [vmem:[#allocation5 + $0x8] sm:$0xff] %vm5473_vm12, %v5466_v57  ;;  %v5740_v57 = vld [vmem:[%s11393_s12] sm:$0xff] }
 0x60a   :  { %5693 = vmatpush.msrb.mxu0 %v5640_v29 }
 0x60c   :  { %5694 = vmatpush.msrb.mxu0 %v5639_v51 }
 0x60d   :  { %v5382_v42 = vpop.xlane.xlu0 %5381  ;;  %v5472_v8 = vpop.xlane.xlu2 %5471 }
 0x60e   :  { %5393 = vst.msk [vmem:[#allocation5] sm:$0xff] %vm5392_vm11, %v5382_v42  ;;  %v5547_v54 = vpop.xlane.xlu1 %5546  ;;  %5695 = vmatpush.msrb.mxu0 %v5638_v37  ;;  %v5634_v43 = vld [vmem:[#allocation5 + $0x38] sm:$0xff] }
 0x60f   :  { %5556 = vst.msk [vmem:[#allocation5 + $0x8] sm:$0xff] %vm5554_vm13, %v5547_v54 }
 0x610   :  { %5477 = vst.msk [vmem:[#allocation5 + $0x18] sm:$0xff] %vm5473_vm12, %v5472_v8  ;;  %5696 = vmatpush.msrb.mxu0 %v5637_v58 }
 0x612   :  { %5697 = vmatpush.msrb.mxu0 %v5636_v2 }
 0x614   :  { %5698 = vmatpush.msrb.mxu0 %v5635_v44 }
 0x615   :  { %v5553_v46 = vpop.xlane.xlu0 %5552  ;;  %v5463_v40 = vpop.xlane.xlu2 %5462 }
 0x616   :  { %5558 = vst.msk [vmem:[#allocation5 + $0x18] sm:$0xff] %vm5554_vm13, %v5553_v46  ;;  %5699 = vmatpush.msrb.mxu0 %v5634_v43  ;;  %v5628_v7 = vld [vmem:[#allocation5 + $0x8] sm:$0xff] }
 0x617   :  { %5474 = vst.msk [vmem:[#allocation5] sm:$0xff] %vm5473_vm12, %v5463_v40 }
 0x618   :  { %5700 = vmatpush.msrb.mxu0 %v5633_v3 }
 0x61a   :  { %5701 = vmatpush.msrb.mxu0 %v5632_v20 }
 0x61c   :  { %5702 = vmatpush.msrb.mxu0 %v5631_v1 }
 0x61d   :  { %v5544_v50 = vpop.xlane.xlu0 %5543  ;;  %v5630_v21 = vld [vmem:[#allocation5 + $0x18] sm:$0xff]  ;;  %v5684_v32 = vpop.permute.xlu2 %5683 }
 0x61e   :  { %5555 = vst.msk [vmem:[#allocation5] sm:$0xff] %vm5554_vm13, %v5544_v50  ;;  %5703 = vmatpush.msrb.mxu0 %v5630_v21  ;;  %v5814_v21 = vld [vmem:[%s11394_s14] sm:$0x1] }
 0x620   :  { %5704 = vmatpush.msrb.mxu0 %v5629_v59 }
 0x622   :  { %5705 = vmatpush.msrb.mxu0 %v5628_v7 }
 0x625   :  { %v5627_v26 = vld [vmem:[#allocation5] sm:$0xff]  ;;  %v5664_v62 = vpop.permute.xlu2 %5663 }
 0x626   :  { %5706 = vmatpush.msrb.mxu0 %v5627_v26  ;;  %v5689_v34 = vpop.permute.xlu1 %5688 }
 0x627   :  { %5707 = vmatmul.f32.vlgmr.msrb.gmra.mxu0 %v5619_v41 }
 0x62d   :  { %v5766_v8 = vpop.permute.xlu2 %5765 }
 0x62e   :  { %v5674_v48 = vpop.permute.xlu1 %5673 }
 0x62f   :  { %5710 = vmatmul.f32.gmra.mxu0 %v5620_v16 }
 0x630   :  { %v5679_v24 = vpop.permute.xlu0 %5678 }
 0x635   :  { %v5751_v43 = vpop.permute.xlu2 %5750 }
 0x636   :  { %v5659_v10 = vpop.permute.xlu1 %5658 }
 0x637   :  { %5713 = vmatmul.f32.gmra.mxu0 %v5621_v12 }
 0x638   :  { %v5669_v60 = vpop.permute.xlu0 %5668 }
 0x63e   :  { %v5761_v37 = vpop.permute.xlu1 %5760 }
 0x63f   :  { %5716 = vmatmul.f32.gmra.mxu0 %v5622_v14 }
 0x640   :  { %v5654_v23 = vpop.permute.xlu0 %5653 }
 0x646   :  { %v5819_v59 = vpop.permute.xlu1 %5818 }
 0x647   :  { %5719 = vmatmul.f32.gmra.mxu0 %v5623_v47  ;;  %v5821_v7 = vperm.slane %v5819_v59, 0 }
 0x648   :  { %v5756_v44 = vpop.permute.xlu0 %5755 }
 0x64f   :  { %5722 = vmatmul.f32.gmra.mxu0 %v5624_v4 }
 0x657   :  { %5725 = vmatmul.f32.gmra.mxu0 %v5625_v30 }
 0x65f   :  { %5728 = vmatmul.f32.gmra.mxu0 %v5626_v13 }
 0x6a4   :  { %v5708_v53 = vpop.f32.mrf.mxu0 }
 0x6a5   :  { %v5709_v5 = vadd.f32 %v5708_v53, %v5654_v23 }
 0x6a7   :  { %v5732_v45 = vmax.f32 %v5709_v5, 0.0 }
 0x6ac   :  { %v5711_v61 = vpop.f32.mrf.mxu0 }
 0x6ad   :  { %v5712_v0 = vadd.f32 %v5711_v61, %v5659_v10 }
 0x6af   :  { %v5733_v49 = vmax.f32 %v5712_v0, 0.0 }
 0x6b4   :  { %v5714_v6 = vpop.f32.mrf.mxu0 }
 0x6b5   :  { %v5715_v31 = vadd.f32 %v5714_v6, %v5664_v62 }
 0x6b7   :  { %v5734_v19 = vmax.f32 %v5715_v31, 0.0 }
 0x6bc   :  { %v5717_v52 = vpop.f32.mrf.mxu0 }
 0x6bd   :  { %v5718_v25 = vadd.f32 %v5717_v52, %v5669_v60 }
 0x6bf   :  { %v5735_v63 = vmax.f32 %v5718_v25, 0.0 }
 0x6c4   :  { %v5720_v11 = vpop.f32.mrf.mxu0 }
 0x6c5   :  { %v5721_v17 = vadd.f32 %v5720_v11, %v5674_v48 }
 0x6c7   :  { %v5736_v56 = vmax.f32 %v5721_v17, 0.0 }
 0x6cc   :  { %v5723_v9 = vpop.f32.mrf.mxu0 }
 0x6cd   :  { %v5724_v28 = vadd.f32 %v5723_v9, %v5679_v24 }
 0x6cf   :  { %v5737_v36 = vmax.f32 %v5724_v28, 0.0 }
 0x6d4   :  { %v5726_v38 = vpop.f32.mrf.mxu0 }
 0x6d5   :  { %v5727_v55 = vadd.f32 %v5726_v38, %v5684_v32 }
 0x6d7   :  { %v5738_v15 = vmax.f32 %v5727_v55, 0.0 }
 0x6dc   :  { %v5729_v27 = vpop.f32.mrf.mxu0 }
 0x6dd   :  { %v5730_v39 = vadd.f32 %v5729_v27, %v5689_v34 }
 0x6df   :  { %v5739_v22 = vmax.f32 %v5730_v39, 0.0 }
 0x6e1   :  { %5789 = vmatpush.msra.mxu1 %v5739_v22 }
 0x6e3   :  { %5790 = vmatpush.msra.mxu1 %v5738_v15 }
 0x6e5   :  { %5791 = vmatpush.msra.mxu1 %v5737_v36 }
 0x6e7   :  { %5792 = vmatpush.msra.mxu1 %v5736_v56 }
 0x6e9   :  { %5793 = vmatpush.msra.mxu1 %v5735_v63 }
 0x6eb   :  { %5794 = vmatpush.msra.mxu1 %v5734_v19 }
 0x6ed   :  { %5795 = vmatpush.msra.mxu1 %v5733_v49 }
 0x6ef   :  { %5796 = vmatpush.msra.mxu1 %v5732_v45 }
 0x6f0   :  { %6571 = vmatmul.msk.f32.vlgmr.msra.gmra.mxu1 %vm5768_vm14, %v5740_v57 }
 0x6f8   :  { %6572 = vmatmul.msk.f32.gmra.mxu1 %vm5768_vm14, %v5741_v35 }
 0x700   :  { %6573 = vmatmul.msk.f32.gmra.mxu1 %vm5768_vm14, %v5742_v18 }
 0x708   :  { %6574 = vmatmul.msk.f32.gmra.mxu1 %vm5768_vm14, %v5743_v33 }
 0x76d   :  { %v5798_v29 = vpop.f32.mrf.mxu1 }
 0x76e   :  { %v5799_v3 = vadd.f32 %v5798_v29, %v5751_v43 }
 0x770   :  { %v5810_v50 = vmax.f32 %v5799_v3, 0.0 }
 0x775   :  { %v5801_v51 = vpop.f32.mrf.mxu1 }
 0x776   :  { %v5802_v46 = vadd.f32 %v5801_v51, %v5756_v44 }
 0x778   :  { %v5811_v1 = vmax.f32 %v5802_v46, 0.0 }
 0x77d   :  { %v5804_v42 = vpop.f32.mrf.mxu1 }
 0x77e   :  { %v5805_v58 = vadd.f32 %v5804_v42, %v5761_v37 }
 0x780   :  { %v5812_v20 = vmax.f32 %v5805_v58, 0.0 }
 0x785   :  { %v5807_v54 = vpop.f32.mrf.mxu1 }
 0x786   :  { %v5808_v2 = vadd.f32 %v5807_v54, %v5766_v8 }
 0x788   :  { %v5813_v40 = vmax.f32 %v5808_v2, 0.0 }
 0x78a   :  { %5837 = vmatpush.msra.mxu2 %v5813_v40 }
 0x78c   :  { %5838 = vmatpush.msra.mxu2 %v5812_v20 }
 0x78e   :  { %5839 = vmatpush.msra.mxu2 %v5811_v1 }
 0x790   :  { %5840 = vmatpush.msra.mxu2 %v5810_v50 }
 0x791   :  { %6575 = vmatmul.msk.f32.vlgmr.msra.gmra.mxu2 %vm4031_vm3, %v5814_v21 }
 0x814   :  { %v5842_v41 = vpop.f32.mrf.mxu2 }
 0x815   :  { %v5843_v26 = vadd.f32 %v5842_v41, %v5821_v7 }
 0x817   :  { %5846 = vst.msk [vmem:[%s11395_s16] sm:$0x1] %vm5845_vm15, %v5843_v26 }

</bundles_post_ra>
